<compile_context>
chip_gen: v7x
topology: tpu7x:2x2x1
jax: 0.10.0
libtpu: 0.0.40
codegen_flags: <defaults>
</compile_context>

<pallas_src>
import functools

import jax
import jax.numpy as jnp
from jax import lax
from jax.experimental import pallas as pl
from jax.experimental.pallas import tpu as pltpu

DROPOUT_P = 0.1

# int32 two's-complement versions of uint32 hash constants.
_M1 = 0x7FEB352D            # 2146121005
_M2 = -2073385333           # 0x846CA68B
_GOLD = -1640531527         # 0x9E3779B9

_RHS_RESIDENT_BYTES = 8 * 1024 * 1024      # keep whole z^T in VMEM below this
_VMEM_LIMIT_BYTES = 32 * 1024 * 1024       # explicit scoped-VMEM limit (safe on v5e/v6e/v7x)
_VMEM_BUDGET_BYTES = 24 * 1024 * 1024      # tile budget (headroom under the limit)


# ----------------------------------------------------------------------------
# Hash-based, tiling-invariant dropout mask (plain jnp ops: identical inside the
# kernel and in the pure-JAX reference).
# ----------------------------------------------------------------------------
def _premix_seed(seed):
    """Full-avalanche mix of the user seed (runs once, outside the kernel)."""
    x = jnp.asarray(seed, dtype=jnp.int32).reshape((1,))
    x = x ^ ((x >> 16) & 0xFFFF)
    x = x * _M1
    x = x ^ ((x >> 15) & 0x1FFFF)
    x = x * _M2
    x = x ^ ((x >> 16) & 0xFFFF)
    return x


def _keep_mask(idx, seed, threshold24):
    """keep = hash(idx, seed) low-24-bits >= threshold24  (P(drop) = threshold24 / 2^24).

    Light 2-multiply hash (dropout does not need full avalanche; the seed is pre-mixed).
    NOTE: idx may wrap int32 for N*D > 2^31 — that is harmless (and intended) for a hash
    input; do not "fix" it into an overflow-checked path.
    """
    x = idx * _GOLD + seed
    x = x ^ ((x >> 16) & 0xFFFF)      # logical >>16 emulated on int32
    x = x * _M1
    x = x ^ ((x >> 15) & 0x1FFFF)     # logical >>15
    return (x & 0x00FFFFFF) >= threshold24


# ----------------------------------------------------------------------------
# Fused kernel: S[i, j] = sigmoid( sum_d drop(z)[i, d] * drop(z)[j, d] )
# ----------------------------------------------------------------------------
def _fused_decoder_kernel(seed_ref, z_ref, zt_ref, o_ref, *,
                          threshold24, scale, rhs_resident, apply_dropout, precision):
    i = pl.program_id(0)
    j = pl.program_id(1)
    tm, d = z_ref.shape
    tn = o_ref.shape[1]
    seed = seed_ref[0]

    # ---- lhs: (tm, d) row block i, dropout applied in-register ------------
    zl = z_ref[...].astype(jnp.float32)
    if apply_dropout:
        rows = lax.broadcasted_iota(jnp.int32, (tm, d), 0) + i * tm
        cols = lax.broadcasted_iota(jnp.int32, (tm, d), 1)
        keep = _keep_mask(rows * d + cols, seed, threshold24)
        zl = jnp.where(keep, zl * jnp.float32(scale), 0.0)

    # ---- rhs: (d, tn) column window j of z^T -------------------------------
    if rhs_resident:
        c0 = pl.multiple_of(j * tn, 128)          # aligned, unmasked lane loads
        zr = zt_ref[:, pl.ds(c0, tn)].astype(jnp.float32)
    else:
        zr = zt_ref[...].astype(jnp.float32)
    if apply_dropout:
        feat = lax.broadcasted_iota(jnp.int32, (d, tn), 0)            # feature index
        node = lax.broadcasted_iota(jnp.int32, (d, tn), 1) + j * tn   # original row of z
        keep = _keep_mask(node * d + feat, seed, threshold24)         # same mask as lhs view
        zr = jnp.where(keep, zr * jnp.float32(scale), 0.0)

    # ---- (tm, d) x (d, tn) on the MXU, f32 accumulation, sigmoid in f32 ----
    s = jnp.dot(zl, zr, preferred_element_type=jnp.float32, precision=precision)
    o_ref[...] = jax.nn.sigmoid(s).astype(o_ref.dtype)


# ----------------------------------------------------------------------------
# Tiling helpers (no single-huge-block fallbacks)
# ----------------------------------------------------------------------------
def _pick_tile(n, cap, quantum):
    """Largest multiple of `quantum` that divides n and is <= cap (requires n % quantum == 0)."""
    t = max(min(cap, n) // quantum * quantum, quantum)
    while t > quantum and n % t != 0:
        t -= quantum
    return t


def _fit_tiles(n_pad, d, tm, tn, in_itemsize, out_itemsize, rhs_resident, rhs_bytes):
    """Shrink (tm, tn) until the double-buffered tiles + resident RHS fit the VMEM budget."""
    def usage(tm_, tn_):
        out_b = 2 * tm_ * tn_ * out_itemsize                     # double-buffered output tile
        lhs_b = 2 * tm_ * d * in_itemsize                         # double-buffered lhs tile
        rhs_b = rhs_bytes if rhs_resident else 2 * d * tn_ * in_itemsize
        return out_b + lhs_b + rhs_b

    while usage(tm, tn) > _VMEM_BUDGET_BYTES and (tm > 8 or tn > 128):
        if tn >= tm and tn > 128:
            tn = _pick_tile(n_pad, tn // 2, 128)
        elif tm > 8:
            tm = _pick_tile(n_pad, tm // 2, 8)
        else:
            break
    return tm, tn


# ----------------------------------------------------------------------------
# Module-equivalent forward
# ----------------------------------------------------------------------------
def inner_product_decoder_forward(z, seed, dropout=DROPOUT_P, *, tm=512, tn=1024,
                                  out_dtype=None, precision=lax.Precision.HIGHEST):
    """sigmoid(dropout(z) @ dropout(z).T)  — fused Pallas TPU forward of InnerProductDecoder.

    out_dtype=jnp.bfloat16 halves the dominant N x N writeback when downstream tolerates it;
    the default matches the PyTorch module (z.dtype, f32 math end to end).
    """
    n, d = z.shape
    out_dtype = z.dtype if out_dtype is None else out_dtype
    apply_dropout = float(dropout) > 0.0
    if apply_dropout:
        threshold24 = min(int(round(float(dropout) * (1 << 24))), (1 << 24) - 1)
        scale = 1.0 / (1.0 - float(dropout))
    else:
        threshold24, scale = 0, 1.0

    # Pad N to a multiple of 128 so tiles can be (mult-of-8, mult-of-128); padded rows are
    # zero and the padded part of the (N, N) output is sliced away below.
    n_pad = -(-n // 128) * 128
    zp = z if n_pad == n else jnp.pad(z, ((0, n_pad - n), (0, 0)))
    zt = zp.T                                       # one-time O(N*D) layout plumbing

    in_itemsize = zp.dtype.itemsize
    out_itemsize = jnp.dtype(out_dtype).itemsize
    rhs_bytes = zt.size * in_itemsize
    rhs_resident = rhs_bytes <= _RHS_RESIDENT_BYTES

    tm_t = _pick_tile(n_pad, tm, 8)
    tn_t = _pick_tile(n_pad, tn, 128)
    tm_t, tn_t = _fit_tiles(n_pad, d, tm_t, tn_t, in_itemsize, out_itemsize,
                            rhs_resident, rhs_bytes)

    if rhs_resident:
        # Whole z^T lives in VMEM for the kernel's lifetime: single buffer, DMA'd once.
        rhs_spec = pl.BlockSpec(memory_space=pltpu.MemorySpace.VMEM)
    else:
        rhs_spec = pl.BlockSpec((d, tn_t), lambda i, j: (0, j))

    kernel = functools.partial(
        _fused_decoder_kernel,
        threshold24=threshold24, scale=scale, rhs_resident=rhs_resident,
        apply_dropout=apply_dropout, precision=precision)

    out = pl.pallas_call(
        kernel,
        out_shape=jax.ShapeDtypeStruct((n_pad, n_pad), out_dtype),
        grid=(n_pad // tm_t, n_pad // tn_t),
        in_specs=[
            pl.BlockSpec(memory_space=pltpu.MemorySpace.SMEM),        # pre-mixed seed scalar
            pl.BlockSpec((tm_t, d), lambda i, j: (i, 0)),             # lhs row block
            rhs_spec,                                                 # z^T: resident or streamed
        ],
        out_specs=pl.BlockSpec((tm_t, tn_t), lambda i, j: (i, j)),    # lane-dense output tiles
        compiler_params=pltpu.CompilerParams(
            dimension_semantics=("parallel", "parallel"),
            vmem_limit_bytes=_VMEM_LIMIT_BYTES),
    )(_premix_seed(seed), zp, zt)

    return out if n_pad == n else out[:n, :n]


# ----------------------------------------------------------------------------
# Pure-JAX reference (identical hash mask) — for correctness checking
# ----------------------------------------------------------------------------
def inner_product_decoder_reference(z, seed, dropout=DROPOUT_P,
                                    precision=lax.Precision.HIGHEST):
    n, d = z.shape
    zf = z.astype(jnp.float32)
    if float(dropout) > 0.0:
        threshold24 = min(int(round(float(dropout) * (1 << 24))), (1 << 24) - 1)
        seed_mixed = _premix_seed(seed)[0]
        idx = (jnp.arange(n, dtype=jnp.int32)[:, None] * d
               + jnp.arange(d, dtype=jnp.int32)[None, :])
        keep = _keep_mask(idx, seed_mixed, threshold24)
        zf = jnp.where(keep, zf * (1.0 / (1.0 - float(dropout))), 0.0)
        keep_frac = jnp.mean(keep.astype(jnp.float32))
    else:
        keep_frac = jnp.float32(1.0)
    adj = jax.nn.sigmoid(jnp.dot(zf, zf.T, precision=precision))
    return adj.astype(z.dtype), keep_frac


if __name__ == "__main__":
    key = jax.random.PRNGKey(0)

    # Case 1: tile-aligned shape.
    N, D = 512, 64
    z = jax.random.normal(key, (N, D), dtype=jnp.float32)
    seed = 0

    adj = jax.block_until_ready(inner_product_decoder_forward(z, seed))
    assert adj.shape == (N, N) and adj.dtype == jnp.float32
    assert bool(jnp.all(adj >= 0.0)) and bool(jnp.all(adj <= 1.0))

    ref, keep_frac = inner_product_decoder_reference(z, seed)
    assert bool(jnp.allclose(adj, ref, atol=1e-3, rtol=1e-3)), "decoder mismatch vs reference"

    # Dropout-rate sanity from the actual mask (natural zeros of z not counted).
    drop_frac = 1.0 - float(keep_frac)
    assert abs(drop_frac - DROPOUT_P) < 0.04, f"unexpected dropout rate {drop_frac}"

    # Case 2: non-tile-aligned shape — exercises the padding / divisor-tile path.
    N2, D2 = 200, 48
    z2 = jax.random.normal(jax.random.PRNGKey(1), (N2, D2), dtype=jnp.float32)
    adj2 = jax.block_until_ready(inner_product_decoder_forward(z2, 3))
    ref2, _ = inner_product_decoder_reference(z2, 3)
    assert adj2.shape == (N2, N2)
    assert bool(jnp.allclose(adj2, ref2, atol=1e-3, rtol=1e-3)), "padded-path mismatch"

    print("KERNEL_OK")
</pallas_src>

<mosaic_0001>
module attributes {stable_mosaic.version = 11 : i64} {
  func.func @_fused_decoder_kernel(%arg0: i32, %arg1: i32, %arg2: memref<1xi32, #tpu.memory_space<smem>>, %arg3: memref<512x64xf32, #tpu.memory_space<vmem>>, %arg4: memref<64x512xf32, #tpu.memory_space<vmem>>, %arg5: memref<512x512xf32, #tpu.memory_space<vmem>>) attributes {dimension_semantics = [#tpu.dimension_semantics<parallel>, #tpu.dimension_semantics<parallel>], iteration_bounds = array<i64: 1, 1>, scalar_prefetch = 0 : i64, scratch_operands = 0 : i64, tpu.core_type = #tpu.core_type<tc>, window_params = [{transform_indices = @transform_0, window_bounds = array<i64: 1>}, {transform_indices = @transform_1, window_bounds = array<i64: 512, 64>}, {pipeline_mode = #tpu.pipeline_mode<synchronous>, transform_indices = @transform_2, window_bounds = array<i64: 64, 512>}, {transform_indices = @transform_3, window_bounds = array<i64: 512, 512>}]} {
    %c0 = arith.constant 0 : index
    %0 = memref.load %arg2[%c0] : memref<1xi32, #tpu.memory_space<smem>>
    %c0_0 = arith.constant 0 : index
    %c0_1 = arith.constant 0 : index
    %1 = vector.load %arg3[%c0_0, %c0_1] : memref<512x64xf32, #tpu.memory_space<vmem>>, vector<512x64xf32>
    %2 = tpu.iota {dimensions = array<i32: 0>} : vector<512x64xi32>
    %c512_i32 = arith.constant 512 : i32
    %3 = arith.muli %arg0, %c512_i32 : i32
    %4 = vector.broadcast %3 : i32 to vector<512x64xi32>
    %5 = arith.addi %2, %4 : vector<512x64xi32>
    %6 = tpu.iota {dimensions = array<i32: 1>} : vector<512x64xi32>
    %c64_i32 = arith.constant 64 : i32
    %7 = vector.broadcast %c64_i32 : i32 to vector<512x64xi32>
    %8 = arith.muli %5, %7 : vector<512x64xi32>
    %9 = arith.addi %8, %6 : vector<512x64xi32>
    %c-1640531527_i32 = arith.constant -1640531527 : i32
    %10 = vector.broadcast %c-1640531527_i32 : i32 to vector<512x64xi32>
    %11 = arith.muli %9, %10 : vector<512x64xi32>
    %12 = vector.broadcast %0 : i32 to vector<512x64xi32>
    %13 = arith.addi %11, %12 : vector<512x64xi32>
    %c16_i32 = arith.constant 16 : i32
    %14 = vector.broadcast %c16_i32 : i32 to vector<512x64xi32>
    %15 = arith.shrsi %13, %14 : vector<512x64xi32>
    %c65535_i32 = arith.constant 65535 : i32
    %16 = vector.broadcast %c65535_i32 : i32 to vector<512x64xi32>
    %17 = arith.andi %15, %16 : vector<512x64xi32>
    %18 = arith.xori %13, %17 : vector<512x64xi32>
    %c2146121005_i32 = arith.constant 2146121005 : i32
    %19 = vector.broadcast %c2146121005_i32 : i32 to vector<512x64xi32>
    %20 = arith.muli %18, %19 : vector<512x64xi32>
    %c15_i32 = arith.constant 15 : i32
    %21 = vector.broadcast %c15_i32 : i32 to vector<512x64xi32>
    %22 = arith.shrsi %20, %21 : vector<512x64xi32>
    %c131071_i32 = arith.constant 131071 : i32
    %23 = vector.broadcast %c131071_i32 : i32 to vector<512x64xi32>
    %24 = arith.andi %22, %23 : vector<512x64xi32>
    %25 = arith.xori %20, %24 : vector<512x64xi32>
    %c16777215_i32 = arith.constant 16777215 : i32
    %26 = vector.broadcast %c16777215_i32 : i32 to vector<512x64xi32>
    %27 = arith.andi %25, %26 : vector<512x64xi32>
    %c1677722_i32 = arith.constant 1677722 : i32
    %28 = vector.broadcast %c1677722_i32 : i32 to vector<512x64xi32>
    %29 = arith.cmpi sge, %27, %28 : vector<512x64xi32>
    %cst = arith.constant 1.11111116 : f32
    %30 = vector.broadcast %cst : f32 to vector<512x64xf32>
    %31 = arith.mulf %1, %30 : vector<512x64xf32>
    %cst_2 = arith.constant 0.000000e+00 : f32
    %32 = vector.broadcast %cst_2 : f32 to vector<512x64xf32>
    %33 = arith.select %29, %31, %32 : vector<512x64xi1>, vector<512x64xf32>
    %c512_i32_3 = arith.constant 512 : i32
    %34 = arith.muli %arg1, %c512_i32_3 : i32
    %35 = tpu.assume_multiple %34, 128 : i32
    %c0_4 = arith.constant 0 : index
    %36 = arith.index_cast %35 : i32 to index
    %37 = vector.load %arg4[%c0_4, %36] : memref<64x512xf32, #tpu.memory_space<vmem>>, vector<64x512xf32>
    %38 = tpu.iota {dimensions = array<i32: 0>} : vector<64x512xi32>
    %39 = tpu.iota {dimensions = array<i32: 1>} : vector<64x512xi32>
    %c512_i32_5 = arith.constant 512 : i32
    %40 = arith.muli %arg1, %c512_i32_5 : i32
    %41 = vector.broadcast %40 : i32 to vector<64x512xi32>
    %42 = arith.addi %39, %41 : vector<64x512xi32>
    %c64_i32_6 = arith.constant 64 : i32
    %43 = vector.broadcast %c64_i32_6 : i32 to vector<64x512xi32>
    %44 = arith.muli %42, %43 : vector<64x512xi32>
    %45 = arith.addi %44, %38 : vector<64x512xi32>
    %c-1640531527_i32_7 = arith.constant -1640531527 : i32
    %46 = vector.broadcast %c-1640531527_i32_7 : i32 to vector<64x512xi32>
    %47 = arith.muli %45, %46 : vector<64x512xi32>
    %48 = vector.broadcast %0 : i32 to vector<64x512xi32>
    %49 = arith.addi %47, %48 : vector<64x512xi32>
    %c16_i32_8 = arith.constant 16 : i32
    %50 = vector.broadcast %c16_i32_8 : i32 to vector<64x512xi32>
    %51 = arith.shrsi %49, %50 : vector<64x512xi32>
    %c65535_i32_9 = arith.constant 65535 : i32
    %52 = vector.broadcast %c65535_i32_9 : i32 to vector<64x512xi32>
    %53 = arith.andi %51, %52 : vector<64x512xi32>
    %54 = arith.xori %49, %53 : vector<64x512xi32>
    %c2146121005_i32_10 = arith.constant 2146121005 : i32
    %55 = vector.broadcast %c2146121005_i32_10 : i32 to vector<64x512xi32>
    %56 = arith.muli %54, %55 : vector<64x512xi32>
    %c15_i32_11 = arith.constant 15 : i32
    %57 = vector.broadcast %c15_i32_11 : i32 to vector<64x512xi32>
    %58 = arith.shrsi %56, %57 : vector<64x512xi32>
    %c131071_i32_12 = arith.constant 131071 : i32
    %59 = vector.broadcast %c131071_i32_12 : i32 to vector<64x512xi32>
    %60 = arith.andi %58, %59 : vector<64x512xi32>
    %61 = arith.xori %56, %60 : vector<64x512xi32>
    %c16777215_i32_13 = arith.constant 16777215 : i32
    %62 = vector.broadcast %c16777215_i32_13 : i32 to vector<64x512xi32>
    %63 = arith.andi %61, %62 : vector<64x512xi32>
    %c1677722_i32_14 = arith.constant 1677722 : i32
    %64 = vector.broadcast %c1677722_i32_14 : i32 to vector<64x512xi32>
    %65 = arith.cmpi sge, %63, %64 : vector<64x512xi32>
    %cst_15 = arith.constant 1.11111116 : f32
    %66 = vector.broadcast %cst_15 : f32 to vector<64x512xf32>
    %67 = arith.mulf %37, %66 : vector<64x512xf32>
    %cst_16 = arith.constant 0.000000e+00 : f32
    %68 = vector.broadcast %cst_16 : f32 to vector<64x512xf32>
    %69 = arith.select %65, %67, %68 : vector<64x512xi1>, vector<64x512xf32>
    %cst_17 = arith.constant dense<0.000000e+00> : vector<512x512xf32>
    %70 = tpu.matmul %33, %69, %cst_17 {dimension_numbers = #tpu.dot_dimension_numbers<[1], [0], [0], [1], [0, 0, 1, 1], [], []>, precision = #tpu.contract_precision<fp32>} : vector<512x64xf32>, vector<64x512xf32>, vector<512x512xf32> -> vector<512x512xf32>
    %71 = arith.negf %70 : vector<512x512xf32>
    %72 = math.exp %71 : vector<512x512xf32>
    %cst_18 = arith.constant 1.000000e+00 : f32
    %73 = vector.broadcast %cst_18 : f32 to vector<512x512xf32>
    %74 = arith.addf %73, %72 : vector<512x512xf32>
    %75 = arith.divf %73, %74 : vector<512x512xf32>
    %c0_19 = arith.constant 0 : index
    %c0_20 = arith.constant 0 : index
    %76 = vector.load %arg5[%c0_19, %c0_20] : memref<512x512xf32, #tpu.memory_space<vmem>>, vector<512x512xf32>
    tpu.vector_store %arg5[%c0_19, %c0_20], %75 {strides = array<i32>} : memref<512x512xf32, #tpu.memory_space<vmem>>, vector<512x512xf32>,
    return
  }
  func.func @transform_0(%arg0: i32, %arg1: i32) -> i32 {
    %c0_i32 = arith.constant 0 : i32
    %c0_i32_0 = arith.constant 0 : i32
    return %c0_i32 : i32
  }
  func.func @transform_1(%arg0: i32, %arg1: i32) -> (i32, i32) {
    %c0_i32 = arith.constant 0 : i32
    %c0_i32_0 = arith.constant 0 : i32
    return %arg0, %c0_i32 : i32, i32
  }
  func.func @transform_2(%arg0: i32, %arg1: i32) -> (i32, i32) {
    %c0_i32 = arith.constant 0 : i32
    %c0_i32_0 = arith.constant 0 : i32
    %c0_i32_1 = arith.constant 0 : i32
    return %c0_i32, %c0_i32_0 : i32, i32
  }
  func.func @transform_3(%arg0: i32, %arg1: i32) -> (i32, i32) {
    %c0_i32 = arith.constant 0 : i32
    return %arg0, %arg1 : i32, i32
  }
}

</mosaic_0001>

<bundles_post_ra>
// kernel: tpu_custom_call.1
= control target key start
LH: loop header
LB: loop body
LE: loop exit
PB: predicated region body
PF: predicated region fallthrough
CT: control target
= control target key end

     0   :  { %v81_v0 = vlaneseq  ;;  %v18262_v22 = vmov 0.0   ;;  %s18258_s0 = inlined_call_operand.<no memory space> [shape: s32[1], index: 0, kind: input, shape index: {}]   ;;  %s18259_s1 = inlined_call_operand.vmem [shape: f32[512,64], index: 1, kind: input, shape index: {}]   ;;  %s18260_s2 = inlined_call_operand.vmem [shape: f32[64,512], index: 2, kind: input, shape index: {}]   ;;  %s18261_s3 = inlined_call_operand.hbm [shape: f32[512,512], index: 3, kind: output, shape index: {}]  }
   0x1   :  { %v1181_v1 = vld [vmem:[%s18260_s2 + $0x8] sm:$0xff]  ;;  %v1183_v3 = vld [vmem:[%s18260_s2 + $0x18] sm:$0xff]  ;;  %v1180_v7 = vld [vmem:[%s18260_s2] sm:$0xff]  ;;  %v14169_v12 = vstv %s18258_s0  ;;  %1945 = vmatprep.mubr.f32.mxu0 %v18262_v22  ;;  %5679 = vmatprep.mubr.f32.mxu1 %v18262_v22 }
   0x2   :  { %v1185_v2 = vld [vmem:[%s18260_s2 + $0x28] sm:$0xff]  ;;  %v14148_v4 = vmul.f32 1.1111112, %v1181_v1  ;;  %v1187_v6 = vld [vmem:[%s18260_s2 + $0x38] sm:$0xff]  ;;  %v14158_v8 = vshrl.u32 %v81_v0, 7  ;;  %v14160_v9 = vand.u32 127, %v81_v0 }
   0x3   :  { %v14150_v5 = vmul.f32 1.1111112, %v1185_v2  ;;  %v14162_v10 = vmul.f32 1.1111112, %v1183_v3  ;;  %v14164_v11 = vmul.f32 1.1111112, %v1187_v6 }
   0x4   :  { %v1184_v13 = vld [vmem:[%s18260_s2 + $0x20] sm:$0xff]  ;;  %v14174_v14 = vmul.f32 1.1111112, %v1180_v7  ;;  %v1182_v15 = vld [vmem:[%s18260_s2 + $0x10] sm:$0xff]  ;;  %v14180_v16 = vadd.s32 8, %v14158_v8  ;;  %v1212_v17 = vadd.s32 128, %v14160_v9 }
   0x5   :  { %v1214_v18 = vadd.s32 384, %v14160_v9  ;;  %v14185_v19 = vmul.u32 64, %v14160_v9  ;;  %v1186_v20 = vld [vmem:[%s18260_s2 + $0x30] sm:$0xff]  ;;  %v1189_v21 = vld [vmem:[%s18260_s2 + $0x48] sm:$0xff]  ;;  %v14195_v23 = vmul.f32 1.1111112, %v1184_v13 }
   0x6   :  { %v1213_v24 = vadd.s32 256, %v14160_v9  ;;  %v14198_v25 = vmul.f32 1.1111112, %v1182_v15  ;;  %v14201_v26 = vadd.s32 16, %v14158_v8  ;;  %v14203_v27 = vmul.u32 64, %v1212_v17 }
   0x7   :  { %v14205_v28 = vmul.u32 64, %v1214_v18  ;;  %v1224_v29 = vadd.s32 %v14185_v19, %v14158_v8  ;;  %v1228_v30 = vadd.s32 %v14185_v19, %v14180_v16  ;;  %v14213_v32 = vmul.f32 1.1111112, %v1186_v20 }
   0x8   :  { %v14211_v31 = vmul.u32 64, %v1213_v24  ;;  %v14216_v33 = vadd.s32 24, %v14158_v8  ;;  %v14218_v34 = vmul.f32 1.1111112, %v1189_v21  ;;  %v1225_v35 = vadd.s32 %v14203_v27, %v14158_v8 }
   0x9   :  { %v1229_v36 = vadd.s32 %v14203_v27, %v14180_v16  ;;  %v1227_v37 = vadd.s32 %v14205_v28, %v14158_v8  ;;  %v1231_v38 = vadd.s32 %v14205_v28, %v14180_v16  ;;  %v1256_v39 = vmul.u32 2654435769, %v1224_v29 }
   0xa   :  { %v1260_v40 = vmul.u32 2654435769, %v1228_v30  ;;  %v1226_v41 = vadd.s32 %v14211_v31, %v14158_v8  ;;  %v1230_v42 = vadd.s32 %v14211_v31, %v14180_v16  ;;  %v1257_v43 = vmul.u32 2654435769, %v1225_v35 }
   0xb   :  { %v1261_v44 = vmul.u32 2654435769, %v1229_v36  ;;  %v14234_v45 = vadd.s32 %v14203_v27, %v14201_v26  ;;  %v14238_v46 = vadd.s32 %v14203_v27, %v14216_v33  ;;  %v1259_v47 = vmul.u32 2654435769, %v1227_v37 }
   0xc   :  { %v1263_v48 = vmul.u32 2654435769, %v1231_v38  ;;  %v1288_v49 = vadd.s32 %v1256_v39, %v14169_v12  ;;  %v1292_v50 = vadd.s32 %v1260_v40, %v14169_v12  ;;  %v1289_v51 = vadd.s32 %v1257_v43, %v14169_v12 }
   0xd   :  { %v1293_v52 = vadd.s32 %v1261_v44, %v14169_v12  ;;  %v1258_v53 = vmul.u32 2654435769, %v1226_v41  ;;  %v1262_v54 = vmul.u32 2654435769, %v1230_v42  ;;  %v1291_v55 = vadd.s32 %v1259_v47, %v14169_v12 }
   0xe   :  { %v1295_v56 = vadd.s32 %v1263_v48, %v14169_v12  ;;  %v11271_v57 = vshrl.u32 %v1288_v49, 16  ;;  %v11275_v58 = vshrl.u32 %v1292_v50, 16  ;;  %v11272_v59 = vshrl.u32 %v1289_v51, 16 }
   0xf   :  { %v11276_v60 = vshrl.u32 %v1293_v52, 16  ;;  %v1290_v61 = vadd.s32 %v1258_v53, %v14169_v12  ;;  %v1294_v62 = vadd.s32 %v1262_v54, %v14169_v12  ;;  %v11274_v63 = vshrl.u32 %v1291_v55, 16 }
  0x10   :  { %v11278_v0 = vshrl.u32 %v1295_v56, 16  ;;  %v1384_v1 = vxor.u32 %v11271_v57, %v1288_v49  ;;  %v1388_v2 = vxor.u32 %v11275_v58, %v1292_v50  ;;  %v1385_v3 = vxor.u32 %v11272_v59, %v1289_v51 }
  0x11   :  { %v1389_v6 = vxor.u32 %v11276_v60, %v1293_v52  ;;  %v11273_v7 = vshrl.u32 %v1290_v61, 16  ;;  %v11277_v13 = vshrl.u32 %v1294_v62, 16 }
  0x12   :  { %9 = vsyncpa [#allocation4], 0  ;;  %v1387_v15 = vxor.u32 %v11274_v63, %v1291_v55  ;;  %v1391_v17 = vxor.u32 %v11278_v0, %v1295_v56  ;;  %v1416_v18 = vmul.u32 2146121005, %v1384_v1  ;;  %v1420_v20 = vmul.u32 2146121005, %v1388_v2 }
  0x13   :  { %v1417_v21 = vmul.u32 2146121005, %v1385_v3  ;;  %v1421_v24 = vmul.u32 2146121005, %v1389_v6  ;;  %v1386_v29 = vxor.u32 %v11273_v7, %v1290_v61  ;;  %v1390_v30 = vxor.u32 %v11277_v13, %v1294_v62 }
  0x14   :  { %v1419_v35 = vmul.u32 2146121005, %v1387_v15  ;;  %v1423_v36 = vmul.u32 2146121005, %v1391_v17  ;;  %v11303_v37 = vshrl.u32 %v1416_v18, 15  ;;  %v11307_v38 = vshrl.u32 %v1420_v20, 15 }
  0x15   :  { %v11304_v39 = vshrl.u32 %v1417_v21, 15  ;;  %v11308_v40 = vshrl.u32 %v1421_v24, 15  ;;  %v1418_v41 = vmul.u32 2146121005, %v1386_v29  ;;  %v1422_v42 = vmul.u32 2146121005, %v1390_v30 }
  0x16   :  { %v11306_v43 = vshrl.u32 %v1419_v35, 15  ;;  %v11310_v44 = vshrl.u32 %v1423_v36, 15  ;;  %v1512_v47 = vxor.u32 %v11303_v37, %v1416_v18  ;;  %v1516_v48 = vxor.u32 %v11307_v38, %v1420_v20 }
  0x17   :  { %v1513_v49 = vxor.u32 %v11304_v39, %v1417_v21  ;;  %v1517_v50 = vxor.u32 %v11308_v40, %v1421_v24  ;;  %v11305_v51 = vshrl.u32 %v1418_v41, 15  ;;  %v11309_v52 = vshrl.u32 %v1422_v42, 15 }
  0x18   :  { %v1515_v53 = vxor.u32 %v11306_v43, %v1419_v35  ;;  %v1519_v54 = vxor.u32 %v11310_v44, %v1423_v36  ;;  %v1544_v55 = vand.u32 16777215, %v1512_v47  ;;  %v1548_v56 = vand.u32 16777215, %v1516_v48  ;;  %v1191_v43 = vld [vmem:[%s18260_s2 + $0x58] sm:$0xff] }
  0x19   :  { %v1545_v57 = vand.u32 16777215, %v1513_v49  ;;  %v1549_v58 = vand.u32 16777215, %v1517_v50  ;;  %v1514_v59 = vxor.u32 %v11305_v51, %v1418_v41  ;;  %v1518_v60 = vxor.u32 %v11309_v52, %v1422_v42  ;;  %v1195_v44 = vld [vmem:[%s18260_s2 + $0x78] sm:$0xff] }
  0x1a   :  { %v1547_v61 = vand.u32 16777215, %v1515_v53  ;;  %v1551_v62 = vand.u32 16777215, %v1519_v54  ;;  %vm14248_vm0 = vcmp.ge.s32.totalorder %v1544_v55, 1677722  ;;  %v1235_v0 = vadd.s32 %v14205_v28, %v14201_v26 }
  0x1b   :  { %vm1577_vm1 = vcmp.ge.s32.totalorder %v1545_v57, 1677722  ;;  %vm1581_vm2 = vcmp.ge.s32.totalorder %v1549_v58, 1677722  ;;  %vm1580_vm3 = vcmp.ge.s32.totalorder %v1548_v56, 1677722  ;;  %v1239_v1 = vadd.s32 %v14205_v28, %v14216_v33 }
  0x1c   :  { %v1641_v2 = vsel %vm1577_vm1, %v14148_v4, 0.0  ;;  %v1645_v3 = vsel %vm1581_vm2, %v14150_v5, 0.0  ;;  %vm1579_vm4 = vcmp.ge.s32.totalorder %v1547_v61, 1677722  ;;  %vm1583_vm5 = vcmp.ge.s32.totalorder %v1551_v62, 1677722 }
  0x1d   :  { %v1865_v6 = vand.u32 4294901760, %v1641_v2  ;;  %v1869_v7 = vand.u32 4294901760, %v1645_v3  ;;  %v1643_v13 = vsel %vm1579_vm4, %v14162_v10, 0.0  ;;  %v1647_v15 = vsel %vm1583_vm5, %v14164_v11, 0.0  ;;  %v1193_v10 = vld [vmem:[%s18260_s2 + $0x68] sm:$0xff]  ;;  %v1188_v55 = vld [vmem:[%s18260_s2 + $0x40] sm:$0xff] }
  0x1e   :  { %v5599_v17 = vand.u32 4294901760, %v1643_v13  ;;  %v5603_v18 = vand.u32 4294901760, %v1647_v15  ;;  %v1640_v20 = vsel %vm14248_vm0, %v14174_v14, 0.0  ;;  %v1644_v21 = vsel %vm1580_vm3, %v14195_v23, 0.0 }
  0x1f   :  { %v14264_v24 = vpack.c.bf16 %v1869_v7, %v1865_v6  ;;  %v14266_v4 = vsub.f32 %v1641_v2, %v1865_v6  ;;  %v14268_v5 = vsub.f32 %v1645_v3, %v1869_v7  ;;  %v1867_v29 = vand.u32 4294901760, %v1640_v20 }
  0x20   :  { %v14273_v11 = vpack.c.bf16 %v5603_v18, %v5599_v17  ;;  %v14275_v30 = vsub.f32 %v1643_v13, %v5599_v17  ;;  %v14277_v35 = vsub.f32 %v1647_v15, %v5603_v18  ;;  %v1871_v14 = vand.u32 4294901760, %v1644_v21 }
  0x21   :  { %18759 = vst [vmem:[#allocation6_spill] sm:$0xff] %v14264_v24  ;;  %11592 = vmatprep.subr.bf16.mxu0 %v14264_v24  ;;  %v14280_v23 = vsub.f32 %v1640_v20, %v1867_v29  ;;  %v1546_v36 = vand.u32 16777215, %v1514_v59  ;;  %v1550_v37 = vand.u32 16777215, %v1518_v60  ;;  %v1232_v2 = vadd.s32 %v14185_v19, %v14201_v26 }
  0x22   :  { %18760 = vst [vmem:[#allocation7_spill] sm:$0xff] %v14273_v11  ;;  %v1265_v38 = vmul.u32 2654435769, %v14234_v45  ;;  %11688 = vmatprep.subr.bf16.mxu1 %v14273_v11  ;;  %v14284_v39 = vpack.c.bf16 %v1871_v14, %v1867_v29  ;;  %v14286_v40 = vsub.f32 %v1644_v21, %v1871_v14  ;;  %v1269_v41 = vmul.u32 2654435769, %v14238_v46 }
  0x23   :  { %v14289_v42 = vmul.f32 1.1111112, %v1193_v10  ;;  %vm1578_vm6 = vcmp.ge.s32.totalorder %v1546_v36, 1677722  ;;  %vm1582_vm7 = vcmp.ge.s32.totalorder %v1550_v37, 1677722  ;;  %v1236_v6 = vadd.s32 %v14185_v19, %v14216_v33 }
  0x24   :  { %18761 = vst [vmem:[#allocation8_spill] sm:$0xff] %v14284_v39  ;;  %18762 = vst [vmem:[#allocation9_spill] sm:$0xff] %v14286_v40  ;;  %v1297_v45 = vadd.s32 %v1265_v38, %v14169_v12  ;;  %v1267_v47 = vmul.u32 2654435769, %v1235_v0  ;;  %11594 = vmatpush1.bf16.msra.mxu0 %v14284_v39  ;;  %v1642_v48 = vsel %vm1578_vm6, %v14198_v25, 0.0  ;;  %v1646_v46 = vsel %vm1582_vm7, %v14213_v32, 0.0 }
  0x25   :  { %v1301_v49 = vadd.s32 %v1269_v41, %v14169_v12  ;;  %v1271_v50 = vmul.u32 2654435769, %v1239_v1  ;;  %v5601_v51 = vand.u32 4294901760, %v1642_v48  ;;  %v5605_v52 = vand.u32 4294901760, %v1646_v46  ;;  %v1192_v25 = vld [vmem:[%s18260_s2 + $0x60] sm:$0xff] }
  0x26   :  { %v11280_v53 = vshrl.u32 %v1297_v45, 16  ;;  %v1299_v54 = vadd.s32 %v1267_v47, %v14169_v12  ;;  %v1619_v58 = vmul.f32 1.1111112, %v1191_v43  ;;  %v14307_v59 = vmul.f32 1.1111112, %v1195_v44 }
  0x27   :  { %v11284_v56 = vshrl.u32 %v1301_v49, 16  ;;  %v1303_v57 = vadd.s32 %v1271_v50, %v14169_v12  ;;  %v14312_v32 = vpack.c.bf16 %v5605_v52, %v5601_v51  ;;  %v14314_v60 = vsub.f32 %v1642_v48, %v5601_v51 }
  0x28   :  { %v14316_v61 = vsub.f32 %v1646_v46, %v5605_v52  ;;  %v1393_v62 = vxor.u32 %v11280_v53, %v1297_v45  ;;  %v11282_v0 = vshrl.u32 %v1299_v54, 16  ;;  %v14323_v7 = vmul.f32 1.1111112, %v1188_v55 }
  0x29   :  { %18763 = vst [vmem:[#allocation10_spill] sm:$0xff] %v14312_v32  ;;  %18764 = vst [vmem:[#allocation11_spill] sm:$0xff] %v14314_v60  ;;  %v1397_v63 = vxor.u32 %v11284_v56, %v1301_v49  ;;  %v11286_v1 = vshrl.u32 %v1303_v57, 16  ;;  %11690 = vmatpush1.bf16.msra.mxu1 %v14312_v32  ;;  %v14325_v13 = vmul.f32 1.1111112, %v1192_v25  ;;  %v1234_v10 = vadd.s32 %v14211_v31, %v14201_v26 }
  0x2a   :  { %18765 = vst [vmem:[#allocation12_spill] sm:$0xff] %v14316_v61  ;;  %v1425_v3 = vmul.u32 2146121005, %v1393_v62  ;;  %v1395_v17 = vxor.u32 %v11282_v0, %v1299_v54  ;;  %v1264_v20 = vmul.u32 2654435769, %v1232_v2  ;;  %v1238_v14 = vadd.s32 %v14211_v31, %v14216_v33 }
  0x2b   :  { %v1429_v15 = vmul.u32 2146121005, %v1397_v63  ;;  %v1399_v18 = vxor.u32 %v11286_v1, %v1303_v57  ;;  %v1268_v29 = vmul.u32 2654435769, %v1236_v6 }
  0x2c   :  { %v11312_v21 = vshrl.u32 %v1425_v3, 15  ;;  %v1427_v37 = vmul.u32 2146121005, %v1395_v17  ;;  %v1296_v41 = vadd.s32 %v1264_v20, %v14169_v12  ;;  %v1266_v45 = vmul.u32 2654435769, %v1234_v10 }
  0x2d   :  { %v11316_v36 = vshrl.u32 %v1429_v15, 15  ;;  %v1431_v38 = vmul.u32 2146121005, %v1399_v18  ;;  %v1300_v44 = vadd.s32 %v1268_v29, %v14169_v12  ;;  %v1270_v47 = vmul.u32 2654435769, %v1238_v14 }
  0x2e   :  { %v1521_v43 = vxor.u32 %v11312_v21, %v1425_v3  ;;  %v11314_v46 = vshrl.u32 %v1427_v37, 15  ;;  %v11279_v50 = vshrl.u32 %v1296_v41, 16  ;;  %v1298_v53 = vadd.s32 %v1266_v45, %v14169_v12 }
  0x2f   :  { %v1525_v48 = vxor.u32 %v11316_v36, %v1429_v15  ;;  %v11318_v49 = vshrl.u32 %v1431_v38, 15  ;;  %v11283_v52 = vshrl.u32 %v1300_v44, 16  ;;  %v1302_v54 = vadd.s32 %v1270_v47, %v14169_v12 }
  0x30   :  { %v1553_v51 = vand.u32 16777215, %v1521_v43  ;;  %v1523_v56 = vxor.u32 %v11314_v46, %v1427_v37  ;;  %v1392_v25 = vxor.u32 %v11279_v50, %v1296_v41  ;;  %v11281_v63 = vshrl.u32 %v1298_v53, 16 }
  0x31   :  { %v1557_v55 = vand.u32 16777215, %v1525_v48  ;;  %v1527_v57 = vxor.u32 %v11318_v49, %v1431_v38  ;;  %v1396_v62 = vxor.u32 %v11283_v52, %v1300_v44  ;;  %v11285_v0 = vshrl.u32 %v1302_v54, 16  ;;  %v1197_v48 = vld [vmem:[%s18260_s2 + $0x88] sm:$0xff] }
  0x32   :  { %vm1585_vm8 = vcmp.ge.s32.totalorder %v1553_v51, 1677722  ;;  %v1555_v2 = vand.u32 16777215, %v1523_v56  ;;  %v14337_v3 = vadd.s32 32, %v14158_v8  ;;  %v1394_v29 = vxor.u32 %v11281_v63, %v1298_v53 }
  0x33   :  { %vm1589_vm9 = vcmp.ge.s32.totalorder %v1557_v55, 1677722  ;;  %v1649_v1 = vsel %vm1585_vm8, %v14218_v34, 0.0  ;;  %v1559_v17 = vand.u32 16777215, %v1527_v57  ;;  %v1190_v34 = vld [vmem:[%s18260_s2 + $0x50] sm:$0xff] }
  0x34   :  { %v1653_v6 = vsel %vm1589_vm9, %v14289_v42, 0.0  ;;  %v1873_v15 = vand.u32 4294901760, %v1649_v1  ;;  %v1424_v18 = vmul.u32 2146121005, %v1392_v25  ;;  %vm1587_vm10 = vcmp.ge.s32.totalorder %v1555_v2, 1677722 }
  0x35   :  { %v1877_v20 = vand.u32 4294901760, %v1653_v6  ;;  %v1428_v21 = vmul.u32 2146121005, %v1396_v62  ;;  %vm1591_vm11 = vcmp.ge.s32.totalorder %v1559_v17, 1677722  ;;  %v1651_v14 = vsel %vm1587_vm10, %v1619_v58, 0.0 }
  0x36   :  { %v14340_v10 = vsub.f32 %v1649_v1, %v1873_v15  ;;  %v11311_v36 = vshrl.u32 %v1424_v18, 15  ;;  %v1194_v42 = vld [vmem:[%s18260_s2 + $0x70] sm:$0xff]  ;;  %v1655_v41 = vsel %vm1591_vm11, %v14307_v59, 0.0  ;;  %v5607_v43 = vand.u32 4294901760, %v1651_v14 }
  0x37   :  { %v14348_v37 = vpack.c.bf16 %v1877_v20, %v1873_v15  ;;  %v14350_v38 = vsub.f32 %v1653_v6, %v1877_v20  ;;  %v5611_v44 = vand.u32 4294901760, %v1655_v41  ;;  %v11315_v45 = vshrl.u32 %v1428_v21, 15  ;;  %v1201_v15 = vld [vmem:[%s18260_s2 + $0xa8] sm:$0xff] }
  0x38   :  { %v1520_v47 = vxor.u32 %v11311_v36, %v1424_v18  ;;  %v1398_v58 = vxor.u32 %v11285_v0, %v1302_v54  ;;  %v14357_v46 = vsub.f32 %v1651_v14, %v5607_v43  ;;  %v1426_v49 = vmul.u32 2146121005, %v1394_v29 }
  0x39   :  { %18766 = vst [vmem:[#allocation13_spill] sm:$0xff] %v14348_v37  ;;  %11596 = vmatprep.subr.bf16.mxu0 %v14348_v37  ;;  %v1618_v50 = vmul.f32 1.1111112, %v1190_v34  ;;  %v1622_v51 = vmul.f32 1.1111112, %v1194_v42  ;;  %v14359_v52 = vpack.c.bf16 %v5611_v44, %v5607_v43  ;;  %v14361_v53 = vsub.f32 %v1655_v41, %v5611_v44  ;;  %v1199_v44 = vld [vmem:[%s18260_s2 + $0x98] sm:$0xff] }
  0x3a   :  { %v1524_v59 = vxor.u32 %v11315_v45, %v1428_v21  ;;  %v1552_v55 = vand.u32 16777215, %v1520_v47  ;;  %v1430_v56 = vmul.u32 2146121005, %v1398_v58  ;;  %v11313_v57 = vshrl.u32 %v1426_v49, 15 }
  0x3b   :  { %18767 = vst [vmem:[#allocation14_spill] sm:$0xff] %v14359_v52  ;;  %v14364_v54 = vadd.s32 40, %v14158_v8  ;;  %v1241_v25 = vadd.s32 %v14203_v27, %v14337_v3  ;;  %11692 = vmatprep.subr.bf16.mxu1 %v14359_v52  ;;  %v14369_v63 = vmul.f32 1.1111112, %v1197_v48  ;;  %v1243_v0 = vadd.s32 %v14205_v28, %v14337_v3 }
  0x3c   :  { %v1556_v62 = vand.u32 16777215, %v1524_v59  ;;  %vm1584_vm12 = vcmp.ge.s32.totalorder %v1552_v55, 1677722  ;;  %v11317_v2 = vshrl.u32 %v1430_v56, 15  ;;  %v1522_v6 = vxor.u32 %v11313_v57, %v1426_v49  ;;  %v1203_v55 = vld [vmem:[%s18260_s2 + $0xb8] sm:$0xff] }
  0x3d   :  { %v1648_v1 = vsel %vm1584_vm12, %v14323_v7, 0.0  ;;  %v1245_v17 = vadd.s32 %v14203_v27, %v14364_v54  ;;  %v1273_v20 = vmul.u32 2654435769, %v1241_v25  ;;  %v1247_v21 = vadd.s32 %v14205_v28, %v14364_v54 }
  0x3e   :  { %vm1588_vm13 = vcmp.ge.s32.totalorder %v1556_v62, 1677722  ;;  %v1875_v18 = vand.u32 4294901760, %v1648_v1  ;;  %v1526_v14 = vxor.u32 %v11317_v2, %v1430_v56  ;;  %v1554_v36 = vand.u32 16777215, %v1522_v6 }
  0x3f   :  { %v1652_v29 = vsel %vm1588_vm13, %v14325_v13, 0.0  ;;  %v1277_v7 = vmul.u32 2654435769, %v1245_v17  ;;  %v1305_v41 = vadd.s32 %v1273_v20, %v14169_v12  ;;  %v14385_v43 = vmul.f32 1.1111112, %v1201_v15 }
  0x40   :  { %v1879_v34 = vand.u32 4294901760, %v1652_v29  ;;  %v14382_v42 = vsub.f32 %v1648_v1, %v1875_v18  ;;  %v1558_v45 = vand.u32 16777215, %v1526_v14  ;;  %vm1586_vm14 = vcmp.ge.s32.totalorder %v1554_v36, 1677722 }
  0x41   :  { %v1309_v47 = vadd.s32 %v1277_v7, %v14169_v12  ;;  %v1275_v58 = vmul.u32 2654435769, %v1243_v0  ;;  %v1650_v49 = vsel %vm1586_vm14, %v1618_v50, 0.0  ;;  %v11288_v59 = vshrl.u32 %v1305_v41, 16 }
  0x42   :  { %v14391_v13 = vpack.c.bf16 %v1879_v34, %v1875_v18  ;;  %v14393_v48 = vsub.f32 %v1652_v29, %v1879_v34  ;;  %vm1590_vm15 = vcmp.ge.s32.totalorder %v1558_v45, 1677722  ;;  %v5609_v56 = vand.u32 4294901760, %v1650_v49  ;;  %v1196_v18 = vld [vmem:[%s18260_s2 + $0x80] sm:$0xff] }
  0x43   :  { %v11292_v57 = vshrl.u32 %v1309_v47, 16  ;;  %v1279_v25 = vmul.u32 2654435769, %v1247_v21  ;;  %v1654_v62 = vsel %vm1590_vm15, %v1622_v51, 0.0  ;;  %v1401_v1 = vxor.u32 %v11288_v59, %v1305_v41  ;;  %v1200_v51 = vld [vmem:[%s18260_s2 + $0xa0] sm:$0xff] }
  0x44   :  { %18768 = vst [vmem:[#allocation15_spill] sm:$0xff] %v14391_v13  ;;  %11598 = vmatpush1.bf16.msra.mxu0 %v14391_v13  ;;  %v1307_v0 = vadd.s32 %v1275_v58, %v14169_v12  ;;  %v14400_v2 = vmul.f32 1.1111112, %v1199_v44  ;;  %v5613_v6 = vand.u32 4294901760, %v1654_v62  ;;  %v14402_v15 = vsub.f32 %v1650_v49, %v5609_v56 }
  0x45   :  { %v1405_v50 = vxor.u32 %v11292_v57, %v1309_v47  ;;  %v1311_v17 = vadd.s32 %v1279_v25, %v14169_v12  ;;  %v1433_v20 = vmul.u32 2146121005, %v1401_v1  ;;  %v1631_v29 = vmul.f32 1.1111112, %v1203_v55 }
  0x46   :  { %v11290_v21 = vshrl.u32 %v1307_v0, 16  ;;  %v1240_v14 = vadd.s32 %v14185_v19, %v14337_v3  ;;  %v14413_v36 = vpack.c.bf16 %v5613_v6, %v5609_v56  ;;  %v14415_v7 = vsub.f32 %v1654_v62, %v5613_v6 }
  0x47   :  { %v1437_v34 = vmul.u32 2146121005, %v1405_v50  ;;  %v11294_v41 = vshrl.u32 %v1311_v17, 16  ;;  %v11320_v44 = vshrl.u32 %v1433_v20, 15  ;;  %v1244_v47 = vadd.s32 %v14185_v19, %v14364_v54 }
  0x48   :  { %18769 = vst [vmem:[#allocation16_spill] sm:$0xff] %v14413_v36  ;;  %v1403_v45 = vxor.u32 %v11290_v21, %v1307_v0  ;;  %v1272_v58 = vmul.u32 2654435769, %v1240_v14  ;;  %11694 = vmatpush1.bf16.msra.mxu1 %v14413_v36  ;;  %v14420_v55 = vmul.f32 1.1111112, %v1196_v18  ;;  %v1242_v0 = vadd.s32 %v14211_v31, %v14337_v3 }
  0x49   :  { %v11324_v49 = vshrl.u32 %v1437_v34, 15  ;;  %v1407_v59 = vxor.u32 %v11294_v41, %v1311_v17  ;;  %v14422_v57 = vmul.f32 1.1111112, %v1200_v51  ;;  %v1529_v56 = vxor.u32 %v11320_v44, %v1433_v20 }
  0x4a   :  { %v1435_v25 = vmul.u32 2146121005, %v1403_v45  ;;  %v1276_v62 = vmul.u32 2654435769, %v1244_v47  ;;  %v1304_v1 = vadd.s32 %v1272_v58, %v14169_v12  ;;  %v1246_v21 = vadd.s32 %v14211_v31, %v14364_v54 }
  0x4b   :  { %v1533_v6 = vxor.u32 %v11324_v49, %v1437_v34  ;;  %v1439_v50 = vmul.u32 2146121005, %v1407_v59  ;;  %v1561_v14 = vand.u32 16777215, %v1529_v56  ;;  %v1274_v20 = vmul.u32 2654435769, %v1242_v0 }
  0x4c   :  { %v11322_v22 = vshrl.u32 %v1435_v25, 15  ;;  %v1308_v17 = vadd.s32 %v1276_v62, %v14169_v12  ;;  %v11287_v18 = vshrl.u32 %v1304_v1, 16  ;;  %v14431_v44 = vadd.s32 48, %v14158_v8 }
  0x4d   :  { %v1565_v51 = vand.u32 16777215, %v1533_v6  ;;  %v11326_v41 = vshrl.u32 %v1439_v50, 15  ;;  %vm1593_vm0 = vcmp.ge.s32.totalorder %v1561_v14, 1677722  ;;  %v1306_v37 = vadd.s32 %v1274_v20, %v14169_v12 }
  0x4e   :  { %v1531_v34 = vxor.u32 %v11322_v22, %v1435_v25  ;;  %v11291_v45 = vshrl.u32 %v1308_v17, 16  ;;  %v1400_v47 = vxor.u32 %v11287_v18, %v1304_v1  ;;  %v1657_v58 = vsel %vm1593_vm0, %v14369_v63, 0.0  ;;  %v1198_v63 = vld [vmem:[%s18260_s2 + $0x90] sm:$0xff] }
  0x4f   :  { %vm1597_vm1 = vcmp.ge.s32.totalorder %v1565_v51, 1677722  ;;  %v1535_v49 = vxor.u32 %v11326_v41, %v1439_v50  ;;  %v1278_v59 = vmul.u32 2654435769, %v1246_v21  ;;  %v1881_v36 = vand.u32 4294901760, %v1657_v58  ;;  %v1202_v21 = vld [vmem:[%s18260_s2 + $0xb0] sm:$0xff] }
  0x50   :  { %v1661_v56 = vsel %vm1597_vm1, %v14385_v43, 0.0  ;;  %v1563_v62 = vand.u32 16777215, %v1531_v34  ;;  %v1404_v13 = vxor.u32 %v11291_v45, %v1308_v17  ;;  %v1432_v0 = vmul.u32 2146121005, %v1400_v47 }
  0x51   :  { %v1885_v6 = vand.u32 4294901760, %v1661_v56  ;;  %v1567_v52 = vand.u32 16777215, %v1535_v49  ;;  %v14436_v32 = vsub.f32 %v1657_v58, %v1881_v36  ;;  %v1310_v25 = vadd.s32 %v1278_v59, %v14169_v12 }
  0x52   :  { %vm1595_vm2 = vcmp.ge.s32.totalorder %v1563_v62, 1677722  ;;  %v1436_v22 = vmul.u32 2146121005, %v1404_v13  ;;  %v11319_v13 = vshrl.u32 %v1432_v0, 15  ;;  %v11289_v41 = vshrl.u32 %v1306_v37, 16 }
  0x53   :  { %v14442_v1 = vpack.c.bf16 %v1885_v6, %v1881_v36  ;;  %v14444_v43 = vsub.f32 %v1661_v56, %v1885_v6  ;;  %vm1599_vm3 = vcmp.ge.s32.totalorder %v1567_v52, 1677722  ;;  %v1659_v50 = vsel %vm1595_vm2, %v14400_v2, 0.0  ;;  %v1205_v2 = vld [vmem:[%s18260_s2 + $0xc8] sm:$0xff] }
  0x54   :  { %v1663_v14 = vsel %vm1599_vm3, %v1631_v29, 0.0  ;;  %v5615_v17 = vand.u32 4294901760, %v1659_v50  ;;  %v11323_v18 = vshrl.u32 %v1436_v22, 15  ;;  %v11293_v20 = vshrl.u32 %v1310_v25, 16 }
  0x55   :  { %18770 = vst [vmem:[#allocation17_spill] sm:$0xff] %v14442_v1  ;;  %11600 = vmatprep.subr.bf16.mxu0 %v14442_v1  ;;  %v5619_v51 = vand.u32 4294901760, %v1663_v14  ;;  %v1626_v36 = vmul.f32 1.1111112, %v1198_v63  ;;  %v1528_v45 = vxor.u32 %v11319_v13, %v1432_v0  ;;  %v1630_v47 = vmul.f32 1.1111112, %v1202_v21 }
  0x56   :  { %v14451_v34 = vsub.f32 %v1659_v50, %v5615_v17  ;;  %v1532_v52 = vxor.u32 %v11323_v18, %v1436_v22  ;;  %v1402_v49 = vxor.u32 %v11289_v41, %v1306_v37  ;;  %v1406_v59 = vxor.u32 %v11293_v20, %v1310_v25  ;;  %v1209_v0 = vld [vmem:[%s18260_s2 + $0xe8] sm:$0xff] }
  0x57   :  { %v14456_v58 = vpack.c.bf16 %v5619_v51, %v5615_v17  ;;  %v14458_v29 = vsub.f32 %v1663_v14, %v5619_v51  ;;  %v1560_v56 = vand.u32 16777215, %v1528_v45  ;;  %v14461_v6 = vadd.s32 56, %v14158_v8 }
  0x58   :  { %v1564_v62 = vand.u32 16777215, %v1532_v52  ;;  %v1249_v22 = vadd.s32 %v14203_v27, %v14431_v44  ;;  %v1434_v63 = vmul.u32 2146121005, %v1402_v49  ;;  %v1438_v50 = vmul.u32 2146121005, %v1406_v59 }
  0x59   :  { %18771 = vst [vmem:[#allocation18_spill] sm:$0xff] %v14456_v58  ;;  %11696 = vmatprep.subr.bf16.mxu1 %v14456_v58  ;;  %v14469_v21 = vmul.f32 1.1111112, %v1205_v2  ;;  %v1251_v37 = vadd.s32 %v14205_v28, %v14431_v44  ;;  %vm1592_vm4 = vcmp.ge.s32.totalorder %v1560_v56, 1677722  ;;  %v1253_v25 = vadd.s32 %v14203_v27, %v14461_v6 }
  0x5a   :  { %vm1596_vm5 = vcmp.ge.s32.totalorder %v1564_v62, 1677722  ;;  %v1281_v14 = vmul.u32 2654435769, %v1249_v22  ;;  %v1656_v17 = vsel %vm1592_vm4, %v14420_v55, 0.0  ;;  %v11321_v18 = vshrl.u32 %v1434_v63, 15 }
  0x5b   :  { %v1660_v13 = vsel %vm1596_vm5, %v14422_v57, 0.0  ;;  %v11325_v51 = vshrl.u32 %v1438_v50, 15  ;;  %v1883_v41 = vand.u32 4294901760, %v1656_v17  ;;  %v1285_v45 = vmul.u32 2654435769, %v1253_v25  ;;  %v1207_v22 = vld [vmem:[%s18260_s2 + $0xd8] sm:$0xff] }
  0x5c   :  { %v1887_v20 = vand.u32 4294901760, %v1660_v13  ;;  %v1313_v52 = vadd.s32 %v1281_v14, %v14169_v12  ;;  %v1530_v2 = vxor.u32 %v11321_v18, %v1434_v63  ;;  %v14478_v59 = vmul.f32 1.1111112, %v1209_v0  ;;  %v1211_v14 = vld [vmem:[%s18260_s2 + $0xf8] sm:$0xff] }
  0x5d   :  { %v1534_v49 = vxor.u32 %v11325_v51, %v1438_v50  ;;  %v1255_v56 = vadd.s32 %v14205_v28, %v14461_v6  ;;  %v14484_v62 = vsub.f32 %v1656_v17, %v1883_v41  ;;  %v1317_v57 = vadd.s32 %v1285_v45, %v14169_v12 }
  0x5e   :  { %v14482_v27 = vpack.c.bf16 %v1887_v20, %v1883_v41  ;;  %v14486_v55 = vsub.f32 %v1660_v13, %v1887_v20  ;;  %v1562_v25 = vand.u32 16777215, %v1530_v2  ;;  %v11296_v50 = vshrl.u32 %v1313_v52, 16 }
  0x5f   :  { %18773 = vst [vmem:[#allocation20_spill] sm:$0xff] %v14484_v62  ;;  %v1566_v63 = vand.u32 16777215, %v1534_v49  ;;  %v1248_v0 = vadd.s32 %v14185_v19, %v14431_v44  ;;  %v11300_v28 = vshrl.u32 %v1317_v57, 16  ;;  %v1283_v17 = vmul.u32 2654435769, %v1251_v37 }
  0x60   :  { %18772 = vst [vmem:[#allocation19_spill] sm:$0xff] %v14482_v27  ;;  %18774 = vst [vmem:[#allocation21_spill] sm:$0xff] %v14486_v55  ;;  %11602 = vmatpush1.bf16.msra.mxu0 %v14482_v27  ;;  %v1287_v13 = vmul.u32 2654435769, %v1255_v56  ;;  %v1252_v18 = vadd.s32 %v14185_v19, %v14461_v6  ;;  %vm1594_vm6 = vcmp.ge.s32.totalorder %v1562_v25, 1677722  ;;  %v1409_v51 = vxor.u32 %v11296_v50, %v1313_v52 }
  0x61   :  { %vm1598_vm7 = vcmp.ge.s32.totalorder %v1566_v63, 1677722  ;;  %v14500_v41 = vmul.f32 1.1111112, %v1207_v22  ;;  %v1658_v20 = vsel %vm1594_vm6, %v1626_v36, 0.0  ;;  %v1413_v2 = vxor.u32 %v11300_v28, %v1317_v57  ;;  %v1204_v37 = vld [vmem:[%s18260_s2 + $0xc0] sm:$0xff] }
  0x62   :  { %v1662_v45 = vsel %vm1598_vm7, %v1630_v47, 0.0  ;;  %v1315_v49 = vadd.s32 %v1283_v17, %v14169_v12  ;;  %v5617_v27 = vand.u32 4294901760, %v1658_v20  ;;  %v1441_v1 = vmul.u32 2146121005, %v1409_v51  ;;  %v1208_v36 = vld [vmem:[%s18260_s2 + $0xe0] sm:$0xff] }
  0x63   :  { %v5621_v58 = vand.u32 4294901760, %v1662_v45  ;;  %v1319_v39 = vadd.s32 %v1287_v13, %v14169_v12  ;;  %v1445_v19 = vmul.u32 2146121005, %v1413_v2  ;;  %v14507_v25 = vmul.f32 1.1111112, %v1211_v14 }
  0x64   :  { %v11298_v56 = vshrl.u32 %v1315_v49, 16  ;;  %v1250_v47 = vadd.s32 %v14211_v31, %v14431_v44  ;;  %v14516_v57 = vsub.f32 %v1658_v20, %v5617_v27  ;;  %v11328_v63 = vshrl.u32 %v1441_v1, 15 }
  0x65   :  { %v14514_v52 = vpack.c.bf16 %v5621_v58, %v5617_v27  ;;  %v14518_v22 = vsub.f32 %v1662_v45, %v5621_v58  ;;  %v11332_v50 = vshrl.u32 %v1445_v19, 15  ;;  %v11302_v28 = vshrl.u32 %v1319_v39, 16 }
  0x66   :  { %18776 = vst [vmem:[#allocation23_spill] sm:$0xff] %v14516_v57  ;;  %v1411_v17 = vxor.u32 %v11298_v56, %v1315_v49  ;;  %v1280_v13 = vmul.u32 2654435769, %v1248_v0  ;;  %v1537_v14 = vxor.u32 %v11328_v63, %v1441_v1  ;;  %v1284_v51 = vmul.u32 2654435769, %v1252_v18 }
  0x67   :  { %18775 = vst [vmem:[#allocation22_spill] sm:$0xff] %v14514_v52  ;;  %18777 = vst [vmem:[#allocation24_spill] sm:$0xff] %v14518_v22  ;;  %11698 = vmatpush1.bf16.msra.mxu1 %v14514_v52  ;;  %v14521_v2 = vmul.f32 1.1111112, %v1204_v37  ;;  %v14523_v11 = vmul.f32 1.1111112, %v1208_v36  ;;  %v1541_v24 = vxor.u32 %v11332_v50, %v1445_v19  ;;  %v1415_v55 = vxor.u32 %v11302_v28, %v1319_v39 }
  0x68   :  { %v1443_v62 = vmul.u32 2146121005, %v1411_v17  ;;  %v1312_v27 = vadd.s32 %v1280_v13, %v14169_v12  ;;  %v1569_v58 = vand.u32 16777215, %v1537_v14  ;;  %v1316_v20 = vadd.s32 %v1284_v51, %v14169_v12 }
  0x69   :  { %v1254_v45 = vadd.s32 %v14211_v31, %v14461_v6  ;;  %v1282_v0 = vmul.u32 2654435769, %v1250_v47  ;;  %v1573_v49 = vand.u32 16777215, %v1541_v24  ;;  %v1447_v56 = vmul.u32 2146121005, %v1415_v55 }
  0x6a   :  { %v11330_v1 = vshrl.u32 %v1443_v62, 15  ;;  %v11295_v18 = vshrl.u32 %v1312_v27, 16  ;;  %vm1601_vm8 = vcmp.ge.s32.totalorder %v1569_v58, 1677722  ;;  %v11299_v37 = vshrl.u32 %v1316_v20, 16 }
  0x6b   :  { %v1286_v36 = vmul.u32 2654435769, %v1254_v45  ;;  %v1314_v19 = vadd.s32 %v1282_v0, %v14169_v12  ;;  %vm1605_vm9 = vcmp.ge.s32.totalorder %v1573_v49, 1677722  ;;  %v1665_v39 = vsel %vm1601_vm8, %v14469_v21, 0.0  ;;  %v1206_v21 = vld [vmem:[%s18260_s2 + $0xd0] sm:$0xff] }
  0x6c   :  { %v11334_v63 = vshrl.u32 %v1447_v56, 15  ;;  %v1539_v50 = vxor.u32 %v11330_v1, %v1443_v62  ;;  %v1669_v28 = vsel %vm1605_vm9, %v14478_v59, 0.0  ;;  %v1889_v17 = vand.u32 4294901760, %v1665_v39  ;;  %v1210_v1 = vld [vmem:[%s18260_s2 + $0xf0] sm:$0xff] }
  0x6d   :  { %v1408_v13 = vxor.u32 %v11295_v18, %v1312_v27  ;;  %v1412_v31 = vxor.u32 %v11299_v37, %v1316_v20  ;;  %v1893_v47 = vand.u32 4294901760, %v1669_v28  ;;  %v1318_v14 = vadd.s32 %v1286_v36, %v14169_v12 }
  0x6e   :  { %v1543_v24 = vxor.u32 %v11334_v63, %v1447_v56  ;;  %v1571_v55 = vand.u32 16777215, %v1539_v50  ;;  %v14533_v51 = vsub.f32 %v1665_v39, %v1889_v17  ;;  %v11297_v0 = vshrl.u32 %v1314_v19, 16 }
  0x6f   :  { %v1440_v58 = vmul.u32 2146121005, %v1408_v13  ;;  %v1444_v45 = vmul.u32 2146121005, %v1412_v31  ;;  %v14538_v62 = vpack.c.bf16 %v1893_v47, %v1889_v17  ;;  %v14540_v59 = vsub.f32 %v1669_v28, %v1893_v47 }
  0x70   :  { %v1575_v27 = vand.u32 16777215, %v1543_v24  ;;  %vm1603_vm10 = vcmp.ge.s32.totalorder %v1571_v55, 1677722  ;;  %v11301_v18 = vshrl.u32 %v1318_v14, 16  ;;  %v1410_v36 = vxor.u32 %v11297_v0, %v1314_v19 }
  0x71   :  { %18778 = vst [vmem:[#allocation25_spill] sm:$0xff] %v14538_v62  ;;  %18779 = vst [vmem:[#allocation26_spill] sm:$0xff] %v14540_v59  ;;  %v1667_v20 = vsel %vm1603_vm10, %v14500_v41, 0.0  ;;  %v11327_v49 = vshrl.u32 %v1440_v58, 15  ;;  %v11331_v56 = vshrl.u32 %v1444_v45, 15  ;;  %11604 = vmatprep.subr.bf16.mxu0 %v14538_v62  ;;  %v214_v19 = vmul.u32 64, %v14158_v8 }
  0x72   :  { %vm1607_vm11 = vcmp.ge.s32.totalorder %v1575_v27, 1677722  ;;  %v5623_v37 = vand.u32 4294901760, %v1667_v20  ;;  %v1634_v39 = vmul.f32 1.1111112, %v1206_v21  ;;  %v1414_v17 = vxor.u32 %v11301_v18, %v1318_v14 }
  0x73   :  { %v1671_v63 = vsel %vm1607_vm11, %v14507_v25, 0.0  ;;  %v1536_v50 = vxor.u32 %v11327_v49, %v1440_v58  ;;  %v1540_v28 = vxor.u32 %v11331_v56, %v1444_v45  ;;  %v1442_v31 = vmul.u32 2146121005, %v1410_v36  ;;  %v17_v25 = vld [vmem:[%s18259_s1] sm:$0xff] }
  0x74   :  { %v5627_v13 = vand.u32 4294901760, %v1671_v63  ;;  %v14548_v41 = vsub.f32 %v1667_v20, %v5623_v37  ;;  %v1638_v47 = vmul.f32 1.1111112, %v1210_v1  ;;  %v1446_v52 = vmul.u32 2146121005, %v1414_v17 }
  0x75   :  { %v1568_v24 = vand.u32 16777215, %v1536_v50  ;;  %v1572_v55 = vand.u32 16777215, %v1540_v28  ;;  %v11329_v27 = vshrl.u32 %v1442_v31, 15  ;;  %v278_v0 = vadd.s32 %v214_v19, %v14160_v9 }
  0x76   :  { %v14550_v59 = vpack.c.bf16 %v5627_v13, %v5623_v37  ;;  %v14552_v62 = vsub.f32 %v1671_v63, %v5627_v13  ;;  %v11333_v14 = vshrl.u32 %v1446_v52, 15  ;;  %v14562_v1 = vmul.f32 1.1111112, %v17_v25 }
  0x77   :  { %vm1600_vm12 = vcmp.ge.s32.totalorder %v1568_v24, 1677722  ;;  %vm1604_vm13 = vcmp.ge.s32.totalorder %v1572_v55, 1677722  ;;  %v1538_v21 = vxor.u32 %v11329_v27, %v1442_v31  ;;  %v342_v37 = vmul.u32 2654435769, %v278_v0 }
  0x78   :  { %18780 = vst [vmem:[#allocation27_spill] sm:$0xff] %v14550_v59  ;;  %11700 = vmatprep.subr.bf16.mxu1 %v14550_v59  ;;  %v1664_v58 = vsel %vm1600_vm12, %v14521_v2, 0.0  ;;  %v1668_v45 = vsel %vm1604_vm13, %v14523_v11, 0.0  ;;  %v1542_v56 = vxor.u32 %v11333_v14, %v1446_v52  ;;  %v18300_v36 = vand.u32 4294901760, %v14266_v4 }
  0x79   :  { %v1891_v20 = vand.u32 4294901760, %v1664_v58  ;;  %v1895_v49 = vand.u32 4294901760, %v1668_v45  ;;  %v1570_v18 = vand.u32 16777215, %v1538_v21  ;;  %v18299_v63 = vand.u32 4294901760, %v14268_v5 }
  0x7a   :  { %v1574_v11 = vand.u32 16777215, %v1542_v56  ;;  %v407_v17 = vadd.s32 %v14169_v12, %v342_v37  ;;  %v2653_v52 = vsub.f32 %v14266_v4, %v18300_v36  ;;  %v18296_v24 = vand.u32 4294901760, %v14275_v30  ;;  %v18_v56 = vld [vmem:[%s18259_s1 + $0x8] sm:$0xff] }
  0x7b   :  { %v14566_v50 = vpack.c.bf16 %v1895_v49, %v1891_v20  ;;  %v14568_v28 = vsub.f32 %v1664_v58, %v1891_v20  ;;  %v14570_v2 = vsub.f32 %v1668_v45, %v1895_v49  ;;  %vm1602_vm14 = vcmp.ge.s32.totalorder %v1570_v18, 1677722 }
  0x7c   :  { %v2665_v13 = vsub.f32 %v14268_v5, %v18299_v63  ;;  %vm1606_vm15 = vcmp.ge.s32.totalorder %v1574_v11, 1677722  ;;  %v1666_v31 = vsel %vm1602_vm14, %v1634_v39, 0.0  ;;  %v18293_v55 = vand.u32 4294901760, %v14277_v35 }
  0x7d   :  { %18781 = vst [vmem:[#allocation28_spill] sm:$0xff] %v14566_v50  ;;  %11606 = vmatpush1.bf16.msra.mxu0 %v14566_v50  ;;  %v1670_v27 = vsel %vm1606_vm15, %v1638_v47, 0.0  ;;  %v5625_v25 = vand.u32 4294901760, %v1666_v31  ;;  %v11143_v19 = vshrl.u32 %v407_v17, 16  ;;  %v2654_v14 = vand.u32 4294901760, %v2653_v52 }
  0x7e   :  { %v5629_v58 = vand.u32 4294901760, %v1670_v27  ;;  %v2666_v45 = vand.u32 4294901760, %v2665_v13  ;;  %v6387_v21 = vsub.f32 %v14275_v30, %v18296_v24  ;;  %v6399_v0 = vsub.f32 %v14277_v35, %v18293_v55 }
  0x7f   :  { %v14588_v20 = vsub.f32 %v1666_v31, %v5625_v25  ;;  %v599_v39 = vxor.u32 %v11143_v19, %v407_v17  ;;  %v18295_v49 = vand.u32 4294901760, %v14280_v23  ;;  %v18294_v47 = vand.u32 4294901760, %v14286_v40 }
  0x80   :  { %v14595_v18 = vpack.c.bf16 %v5629_v58, %v5625_v25  ;;  %v14597_v37 = vsub.f32 %v1670_v27, %v5629_v58  ;;  %vm1672_vm0 = vcmask 523264   ;;  %v11607_v11 = vpack.c.bf16 %v2666_v45, %v2654_v14  ;;  %v19_v58 = vld [vmem:[%s18259_s1 + $0x10] sm:$0xff] }
  0x81   :  { %v6388_v52 = vand.u32 4294901760, %v6387_v21  ;;  %v663_v13 = vmul.u32 2146121005, %v599_v39  ;;  %v6400_v55 = vand.u32 4294901760, %v6399_v0  ;;  %v2659_v17 = vsub.f32 %v14280_v23, %v18295_v49  ;;  %v20_v49 = vld [vmem:[%s18259_s1 + $0x18] sm:$0xff] }
  0x82   :  { %18782 = vst [vmem:[#allocation29_spill] sm:$0xff] %v14595_v18  ;;  %18783 = vst [vmem:[#allocation30_spill] sm:$0xff] %v14597_v37  ;;  %v2671_v31 = vsub.f32 %v14286_v40, %v18294_v47  ;;  %11702 = vmatpush1.bf16.msra.mxu1 %v14595_v18  ;;  %11608 = vmatprep.subr.bf16.mxu0 %v11607_v11  ;;  %v18298_v25 = vand.u32 4294901760, %v14314_v60  ;;  %v18297_v27 = vand.u32 4294901760, %v14316_v61  ;;  %v215_v19 = vmul.u32 64, %v14180_v16 }
  0x83   :  { %v14609_v14 = vmul.f32 1.1111112, %v18_v56  ;;  %v11207_v45 = vshrl.u32 %v663_v13, 15  ;;  %v11703_v21 = vpack.c.bf16 %v6400_v55, %v6388_v52  ;;  %v2660_v0 = vand.u32 4294901760, %v2659_v17 }
  0x84   :  { %v2672_v39 = vand.u32 4294901760, %v2671_v31  ;;  %v6393_v11 = vsub.f32 %v14314_v60, %v18298_v25  ;;  %v6405_v47 = vsub.f32 %v14316_v61, %v18297_v27  ;;  %v279_v16 = vadd.s32 %v215_v19, %v14160_v9  ;;  %v21_v31 = vld [vmem:[%s18259_s1 + $0x20] sm:$0xff] }
  0x85   :  { %v216_v56 = vmul.u32 64, %v14201_v26  ;;  %v855_v24 = vxor.u32 %v11207_v45, %v663_v13  ;;  %11704 = vmatprep.subr.bf16.mxu1 %v11703_v21  ;;  %v14627_v52 = vmul.f32 1.1111112, %v19_v58  ;;  %v217_v17 = vmul.u32 64, %v14216_v33  ;;  %v22_v33 = vld [vmem:[%s18259_s1 + $0x28] sm:$0xff] }
  0x86   :  { %v14625_v55 = vpack.c.bf16 %v2672_v39, %v2660_v0  ;;  %v6394_v27 = vand.u32 4294901760, %v6393_v11  ;;  %v6406_v19 = vand.u32 4294901760, %v6405_v47  ;;  %v343_v25 = vmul.u32 2654435769, %v279_v16 }
  0x87   :  { %v280_v26 = vadd.s32 %v216_v56, %v14160_v9  ;;  %v919_v63 = vand.u32 16777215, %v855_v24  ;;  %v281_v36 = vadd.s32 %v217_v17, %v14160_v9  ;;  %v14635_v13 = vmul.f32 1.1111112, %v20_v49 }
  0x88   :  { %v218_v45 = vmul.u32 64, %v14337_v3  ;;  %v14641_v58 = vpack.c.bf16 %v6406_v19, %v6394_v27  ;;  %v408_v21 = vadd.s32 %v14169_v12, %v343_v25  ;;  %v14644_v47 = vmul.f32 1.1111112, %v21_v31  ;;  %v23_v25 = vld [vmem:[%s18259_s1 + $0x30] sm:$0xff] }
  0x89   :  { %v344_v0 = vmul.u32 2654435769, %v280_v26  ;;  %vm983_vm1 = vcmp.ge.s32.totalorder %v919_v63, 1677722  ;;  %v345_v39 = vmul.u32 2654435769, %v281_v36 }
  0x8a   :  { %v282_v24 = vadd.s32 %v218_v45, %v14160_v9  ;;  %v219_v49 = vmul.u32 64, %v14364_v54  ;;  %v1111_v11 = vsel %vm983_vm1, %v14562_v1, 0.0  ;;  %v11144_v3 = vshrl.u32 %v408_v21, 16 }
  0x8b   :  { %v409_v16 = vadd.s32 %v14169_v12, %v344_v0  ;;  %v14650_v56 = vmul.f32 1.1111112, %v22_v33  ;;  %v1674_v27 = vsel %vm1672_vm0, %v1111_v11, 0  ;;  %v410_v63 = vadd.s32 %v14169_v12, %v345_v39 }
  0x8c   :  { %v346_v36 = vmul.u32 2654435769, %v282_v24  ;;  %v283_v17 = vadd.s32 %v219_v49, %v14160_v9  ;;  %v14658_v31 = vand.u32 4294901760, %v1674_v27  ;;  %v600_v54 = vxor.u32 %v11144_v3, %v408_v21 }
  0x8d   :  { %v11145_v1 = vshrl.u32 %v409_v16, 16  ;;  %v220_v19 = vmul.u32 64, %v14431_v44  ;;  %v11146_v26 = vshrl.u32 %v410_v63, 16  ;;  %v14662_v0 = vmul.f32 1.1111112, %v23_v25 }
  0x8e   :  { %18784 = vst [vmem:[#allocation31_spill] sm:$0xff] %v14658_v31  ;;  %v411_v45 = vadd.s32 %v14169_v12, %v346_v36  ;;  %v347_v33 = vmul.u32 2654435769, %v283_v17  ;;  %v14665_v18 = vsub.f32 %v1674_v27, %v14658_v31  ;;  %v664_v11 = vmul.u32 2146121005, %v600_v54 }
  0x8f   :  { %v601_v39 = vxor.u32 %v11145_v1, %v409_v16  ;;  %v284_v24 = vadd.s32 %v220_v19, %v14160_v9  ;;  %v602_v49 = vxor.u32 %v11146_v26, %v410_v63  ;;  %v221_v3 = vmul.u32 64, %v14461_v6 }
  0x90   :  { %18785 = vst [vmem:[#allocation32_spill] sm:$0xff] %v14665_v18  ;;  %v11147_v50 = vshrl.u32 %v411_v45, 16  ;;  %v412_v21 = vadd.s32 %v14169_v12, %v347_v33  ;;  %v14671_v44 = vand.u32 4294901760, %v14665_v18  ;;  %v11208_v36 = vshrl.u32 %v664_v11, 15 }
  0x91   :  { %v665_v17 = vmul.u32 2146121005, %v601_v39  ;;  %v348_v25 = vmul.u32 2654435769, %v284_v24  ;;  %v285_v54 = vadd.s32 %v221_v3, %v14160_v9  ;;  %v24_v39 = vld [vmem:[%s18259_s1 + $0x38] sm:$0xff] }
  0x92   :  { %18786 = vst [vmem:[#allocation33_spill] sm:$0xff] %v14671_v44  ;;  %v666_v59 = vmul.u32 2146121005, %v602_v49  ;;  %v603_v61 = vxor.u32 %v11147_v50, %v411_v45  ;;  %v11148_v27 = vshrl.u32 %v412_v21, 16  ;;  %v1949_v16 = vsub.f32 %v14665_v18, %v14671_v44 }
  0x93   :  { %v856_v63 = vxor.u32 %v11208_v36, %v664_v11  ;;  %v11209_v1 = vshrl.u32 %v665_v17, 15  ;;  %v413_v19 = vadd.s32 %v14169_v12, %v348_v25  ;;  %v349_v24 = vmul.u32 2654435769, %v285_v54 }
  0x94   :  { %v11210_v26 = vshrl.u32 %v666_v59, 15  ;;  %v667_v6 = vmul.u32 2146121005, %v603_v61  ;;  %v604_v33 = vxor.u32 %v11148_v27, %v412_v21  ;;  %v1950_v49 = vand.u32 4294901760, %v1949_v16 }
  0x95   :  { %v920_v50 = vand.u32 16777215, %v856_v63  ;;  %v857_v45 = vxor.u32 %v11209_v1, %v665_v17  ;;  %v11149_v31 = vshrl.u32 %v413_v19, 16  ;;  %v414_v11 = vadd.s32 %v14169_v12, %v349_v24 }
  0x96   :  { %v858_v3 = vxor.u32 %v11210_v26, %v666_v59  ;;  %v11211_v60 = vshrl.u32 %v667_v6, 15  ;;  %v668_v40 = vmul.u32 2146121005, %v604_v33  ;;  %1951 = vmatmul.mubr.f32.vlgmr.msra.gmra.mrb[0].mxu0 %v1950_v49  ;;  %5685 = vmatmul.mubr.f32.vlgmr.msra.gmra.mrb[0].mxu1 %v1950_v49  ;;  %v14681_v21 = vmul.f32 1.1111112, %v24_v39 }
  0x97   :  { %vm984_vm2 = vcmp.ge.s32.totalorder %v920_v50, 1677722  ;;  %v921_v36 = vand.u32 16777215, %v857_v45  ;;  %v605_v61 = vxor.u32 %v11149_v31, %v413_v19  ;;  %11610 = vmatpush1.bf16.msra.mxu0 %v14625_v55  ;;  %11706 = vmatpush1.bf16.msra.mxu1 %v14641_v58  ;;  %v18787_v54 = vmov 0.0  }
  0x98   :  { %v1112_v25 = vsel %vm984_vm2, %v14609_v14, 0.0  ;;  %v922_v17 = vand.u32 16777215, %v858_v3  ;;  %v859_v27 = vxor.u32 %v11211_v60, %v667_v6  ;;  %v11212_v59 = vshrl.u32 %v668_v40, 15  ;;  %1956 = vmatprep.mubr.f32.mxu0 %v18787_v54  ;;  %5690 = vmatprep.mubr.f32.mxu1 %v18787_v54 }
  0x99   :  { %v1677_v16 = vsel %vm1672_vm0, %v1112_v25, 0  ;;  %vm985_vm3 = vcmp.ge.s32.totalorder %v921_v36, 1677722  ;;  %v669_v63 = vmul.u32 2146121005, %v605_v61  ;;  %v11150_v31 = vshrl.u32 %v414_v11, 16 }
  0x9a   :  { %v14689_v1 = vand.u32 4294901760, %v1677_v16  ;;  %v1113_v55 = vsel %vm985_vm3, %v14627_v52, 0.0  ;;  %vm986_vm4 = vcmp.ge.s32.totalorder %v922_v17, 1677722  ;;  %v923_v58 = vand.u32 16777215, %v859_v27 }
  0x9b   :  { %v1680_v14 = vsel %vm1672_vm0, %v1113_v55, 0  ;;  %v1114_v60 = vsel %vm986_vm4, %v14635_v13, 0.0  ;;  %v860_v19 = vxor.u32 %v11212_v59, %v668_v40  ;;  %v11213_v26 = vshrl.u32 %v669_v63, 15 }
  0x9c   :  { %18788 = vst [vmem:[#allocation34_spill] sm:$0xff] %v14689_v1  ;;  %v14695_v6 = vsub.f32 %v1677_v16, %v14689_v1  ;;  %v14697_v33 = vand.u32 4294901760, %v1680_v14  ;;  %v1683_v39 = vsel %vm1672_vm0, %v1114_v60, 0  ;;  %vm987_vm5 = vcmp.ge.s32.totalorder %v923_v58, 1677722 }
  0x9d   :  { %v14700_v24 = vand.u32 4294901760, %v1683_v39  ;;  %v1115_v52 = vsel %vm987_vm5, %v14644_v47, 0.0  ;;  %v924_v49 = vand.u32 16777215, %v860_v19  ;;  %v861_v50 = vxor.u32 %v11213_v26, %v669_v63 }
  0x9e   :  { %18789 = vst [vmem:[#allocation35_spill] sm:$0xff] %v14695_v6  ;;  %18790 = vst [vmem:[#allocation36_spill] sm:$0xff] %v14697_v33  ;;  %v14704_v45 = vand.u32 4294901760, %v14695_v6  ;;  %v14707_v40 = vsub.f32 %v1680_v14, %v14697_v33  ;;  %v1686_v13 = vsel %vm1672_vm0, %v1115_v52, 0  ;;  %v606_v3 = vxor.u32 %v11150_v31, %v414_v11 }
  0x9f   :  { %18791 = vst [vmem:[#allocation37_spill] sm:$0xff] %v14700_v24  ;;  %v14711_v36 = vsub.f32 %v1683_v39, %v14700_v24  ;;  %v14713_v61 = vand.u32 4294901760, %v1686_v13  ;;  %vm988_vm6 = vcmp.ge.s32.totalorder %v924_v49, 1677722  ;;  %v925_v25 = vand.u32 16777215, %v861_v50 }
  0xa0   :  { %18792 = vst [vmem:[#allocation38_spill] sm:$0xff] %v14704_v45  ;;  %18793 = vst [vmem:[#allocation39_spill] sm:$0xff] %v14707_v40  ;;  %v1960_v47 = vsub.f32 %v14695_v6, %v14704_v45  ;;  %v14718_v17 = vand.u32 4294901760, %v14707_v40  ;;  %v1116_v27 = vsel %vm988_vm6, %v14650_v56, 0.0  ;;  %v670_v59 = vmul.u32 2146121005, %v606_v3 }
  0xa1   :  { %18794 = vst [vmem:[#allocation40_spill] sm:$0xff] %v14711_v36  ;;  %18795 = vst [vmem:[#allocation41_spill] sm:$0xff] %v14713_v61  ;;  %v14722_v16 = vand.u32 4294901760, %v14711_v36  ;;  %v14725_v11 = vsub.f32 %v1686_v13, %v14713_v61  ;;  %v1689_v63 = vsel %vm1672_vm0, %v1116_v27, 0  ;;  %vm989_vm7 = vcmp.ge.s32.totalorder %v925_v25, 1677722 }
  0xa2   :  { %18796 = vst [vmem:[#allocation42_spill] sm:$0xff] %v14718_v17  ;;  %v1961_v31 = vand.u32 4294901760, %v1960_v47  ;;  %v1971_v55 = vsub.f32 %v14707_v40, %v14718_v17  ;;  %v14730_v58 = vand.u32 4294901760, %v1689_v63  ;;  %v1117_v14 = vsel %vm989_vm7, %v14662_v0, 0.0  ;;  %v25_v56 = vld [vmem:[%s18259_s1 + $0x40] sm:$0xff]  ;;  %v26_v13 = vld [vmem:[%s18259_s1 + $0x48] sm:$0xff] }
  0xa3   :  { %18797 = vst [vmem:[#allocation43_spill] sm:$0xff] %v14722_v16  ;;  %18798 = vst [vmem:[#allocation44_spill] sm:$0xff] %v14725_v11  ;;  %v1982_v60 = vsub.f32 %v14711_v36, %v14722_v16  ;;  %v14739_v19 = vand.u32 4294901760, %v14725_v11  ;;  %v1692_v26 = vsel %vm1672_vm0, %v1117_v14, 0  ;;  %v11214_v39 = vshrl.u32 %v670_v59, 15  ;;  %v27_v16 = vld [vmem:[%s18259_s1 + $0x50] sm:$0xff] }
  0xa4   :  { %18799 = vst [vmem:[#allocation45_spill] sm:$0xff] %v14730_v58  ;;  %1962 = vmatmul.mubr.f32.gmra.mrb[2].mxu0 %v1961_v31  ;;  %5696 = vmatmul.mubr.f32.gmra.mrb[2].mxu1 %v1961_v31  ;;  %v1972_v52 = vand.u32 4294901760, %v1971_v55  ;;  %v14743_v49 = vsub.f32 %v1689_v63, %v14730_v58  ;;  %v14745_v0 = vand.u32 4294901760, %v1692_v26  ;;  %v90_v50 = vadd.s32 64, %v14158_v8 }
  0xa5   :  { %18800 = vst [vmem:[#allocation46_spill] sm:$0xff] %v14739_v19  ;;  %1967 = vmatprep.mubr.f32.mxu0 %v18787_v54  ;;  %5701 = vmatprep.mubr.f32.mxu1 %v18787_v54  ;;  %v1983_v3 = vand.u32 4294901760, %v1982_v60  ;;  %v1993_v25 = vsub.f32 %v14725_v11, %v14739_v19  ;;  %v862_v47 = vxor.u32 %v11214_v39, %v670_v59  ;;  %v14755_v27 = vmul.f32 1.1111112, %v25_v56 }
  0xa6   :  { %18801 = vst [vmem:[#allocation47_spill] sm:$0xff] %v14743_v49  ;;  %18802 = vst [vmem:[#allocation48_spill] sm:$0xff] %v14745_v0  ;;  %v14758_v63 = vand.u32 4294901760, %v14743_v49  ;;  %v14761_v31 = vsub.f32 %v1692_v26, %v14745_v0  ;;  %v222_v55 = vmul.u32 64, %v90_v50  ;;  %v91_v14 = vadd.s32 72, %v14158_v8  ;;  %v31_v0 = vld [vmem:[%s18259_s1 + $0x70] sm:$0xff] }
  0xa7   :  { %v1994_v60 = vand.u32 4294901760, %v1993_v25  ;;  %v926_v17 = vand.u32 16777215, %v862_v47  ;;  %v14767_v45 = vmul.f32 1.1111112, %v26_v13  ;;  %v92_v59 = vadd.s32 80, %v14158_v8 }
  0xa8   :  { %18803 = vst [vmem:[#allocation49_spill] sm:$0xff] %v14758_v63  ;;  %18804 = vst [vmem:[#allocation50_spill] sm:$0xff] %v14761_v31  ;;  %1973 = vmatmul.mubr.f32.gmra.mrb[4].mxu0 %v1972_v52  ;;  %5707 = vmatmul.mubr.f32.gmra.mrb[4].mxu1 %v1972_v52  ;;  %v2004_v56 = vsub.f32 %v14743_v49, %v14758_v63  ;;  %v14773_v26 = vand.u32 4294901760, %v14761_v31  ;;  %v286_v39 = vadd.s32 %v222_v55, %v14160_v9  ;;  %v28_v25 = vld [vmem:[%s18259_s1 + $0x58] sm:$0xff] }
  0xa9   :  { %v223_v50 = vmul.u32 64, %v91_v14  ;;  %1978 = vmatprep.mubr.f32.mxu0 %v18787_v54  ;;  %5712 = vmatprep.mubr.f32.mxu1 %v18787_v54  ;;  %vm990_vm8 = vcmp.ge.s32.totalorder %v926_v17, 1677722  ;;  %v224_v13 = vmul.u32 64, %v92_v59  ;;  %v14781_v52 = vmul.f32 1.1111112, %v27_v16 }
  0xaa   :  { %18805 = vst [vmem:[#allocation51_spill] sm:$0xff] %v14773_v26  ;;  %v93_v47 = vadd.s32 88, %v14158_v8  ;;  %v2005_v63 = vand.u32 4294901760, %v2004_v56  ;;  %v2015_v19 = vsub.f32 %v14761_v31, %v14773_v26  ;;  %v1118_v55 = vsel %vm990_vm8, %v14681_v21, 0.0  ;;  %v29_v17 = vld [vmem:[%s18259_s1 + $0x60] sm:$0xff] }
  0xab   :  { %v350_v14 = vmul.u32 2654435769, %v286_v39  ;;  %v1695_v44 = vsel %vm1672_vm0, %v1118_v55, 0  ;;  %v287_v49 = vadd.s32 %v223_v50, %v14160_v9  ;;  %v288_v11 = vadd.s32 %v224_v13, %v14160_v9 }
  0xac   :  { %v225_v36 = vmul.u32 64, %v93_v47  ;;  %1984 = vmatmul.mubr.f32.gmra.mrb[6].mxu0 %v1983_v3  ;;  %5718 = vmatmul.mubr.f32.gmra.mrb[6].mxu1 %v1983_v3  ;;  %v2016_v16 = vand.u32 4294901760, %v2015_v19  ;;  %v14793_v59 = vand.u32 4294901760, %v1695_v44  ;;  %v14796_v21 = vmul.f32 1.1111112, %v28_v25  ;;  %v30_v19 = vld [vmem:[%s18259_s1 + $0x68] sm:$0xff] }
  0xad   :  { %v415_v56 = vadd.s32 %v14169_v12, %v350_v14  ;;  %1989 = vmatprep.mubr.f32.mxu0 %v18787_v54  ;;  %5723 = vmatprep.mubr.f32.mxu1 %v18787_v54  ;;  %v351_v39 = vmul.u32 2654435769, %v287_v49  ;;  %v352_v50 = vmul.u32 2654435769, %v288_v11  ;;  %v94_v47 = vadd.s32 96, %v14158_v8 }
  0xae   :  { %18806 = vst [vmem:[#allocation52_spill] sm:$0xff] %v14793_v59  ;;  %v289_v13 = vadd.s32 %v225_v36, %v14160_v9  ;;  %v14806_v3 = vsub.f32 %v1695_v44, %v14793_v59  ;;  %v14808_v25 = vmul.f32 1.1111112, %v29_v17  ;;  %v95_v14 = vadd.s32 104, %v14158_v8 }
  0xaf   :  { %v11151_v55 = vshrl.u32 %v415_v56, 16  ;;  %v416_v26 = vadd.s32 %v14169_v12, %v351_v39  ;;  %v417_v11 = vadd.s32 %v14169_v12, %v352_v50  ;;  %v226_v36 = vmul.u32 64, %v94_v47 }
  0xb0   :  { %18807 = vst [vmem:[#allocation53_spill] sm:$0xff] %v14806_v3  ;;  %v353_v49 = vmul.u32 2654435769, %v289_v13  ;;  %1995 = vmatmul.mubr.f32.gmra.mrb[8].mxu0 %v1994_v60  ;;  %5729 = vmatmul.mubr.f32.gmra.mrb[8].mxu1 %v1994_v60  ;;  %v14814_v31 = vand.u32 4294901760, %v14806_v3  ;;  %v227_v6 = vmul.u32 64, %v95_v14 }
  0xb1   :  { %v607_v40 = vxor.u32 %v11151_v55, %v415_v56  ;;  %v14816_v44 = vmul.f32 1.1111112, %v30_v19  ;;  %2000 = vmatprep.mubr.f32.mxu0 %v18787_v54  ;;  %5734 = vmatprep.mubr.f32.mxu1 %v18787_v54  ;;  %v11152_v17 = vshrl.u32 %v416_v26, 16  ;;  %v11153_v18 = vshrl.u32 %v417_v11, 16 }
  0xb2   :  { %18808 = vst [vmem:[#allocation54_spill] sm:$0xff] %v14814_v31  ;;  %v418_v39 = vadd.s32 %v14169_v12, %v353_v49  ;;  %v290_v50 = vadd.s32 %v226_v36, %v14160_v9  ;;  %v2026_v60 = vsub.f32 %v14806_v3, %v14814_v31  ;;  %v291_v47 = vadd.s32 %v227_v6, %v14160_v9 }
  0xb3   :  { %v671_v13 = vmul.u32 2146121005, %v607_v40  ;;  %v96_v56 = vadd.s32 112, %v14158_v8  ;;  %v608_v19 = vxor.u32 %v11152_v17, %v416_v26  ;;  %v609_v55 = vxor.u32 %v11153_v18, %v417_v11 }
  0xb4   :  { %v11154_v14 = vshrl.u32 %v418_v39, 16  ;;  %v354_v59 = vmul.u32 2654435769, %v290_v50  ;;  %2006 = vmatmul.mubr.f32.gmra.mrb[10].mxu0 %v2005_v63  ;;  %5740 = vmatmul.mubr.f32.gmra.mrb[10].mxu1 %v2005_v63  ;;  %v2027_v49 = vand.u32 4294901760, %v2026_v60  ;;  %v355_v58 = vmul.u32 2654435769, %v291_v47 }
  0xb5   :  { %v11215_v36 = vshrl.u32 %v671_v13, 15  ;;  %v228_v61 = vmul.u32 64, %v96_v56  ;;  %2011 = vmatprep.mubr.f32.mxu0 %v18787_v54  ;;  %5745 = vmatprep.mubr.f32.mxu1 %v18787_v54  ;;  %v672_v6 = vmul.u32 2146121005, %v608_v19  ;;  %v14834_v31 = vmul.f32 1.1111112, %v31_v0 }
  0xb6   :  { %v673_v40 = vmul.u32 2146121005, %v609_v55  ;;  %v610_v26 = vxor.u32 %v11154_v14, %v418_v39  ;;  %v419_v18 = vadd.s32 %v14169_v12, %v354_v59  ;;  %v420_v17 = vadd.s32 %v14169_v12, %v355_v58 }
  0xb7   :  { %v863_v11 = vxor.u32 %v11215_v36, %v671_v13  ;;  %v292_v50 = vadd.s32 %v228_v61, %v14160_v9  ;;  %v11216_v63 = vshrl.u32 %v672_v6, 15  ;;  %v97_v39 = vadd.s32 120, %v14158_v8 }
  0xb8   :  { %v11217_v60 = vshrl.u32 %v673_v40, 15  ;;  %v674_v47 = vmul.u32 2146121005, %v610_v26  ;;  %v11155_v56 = vshrl.u32 %v419_v18, 16  ;;  %2017 = vmatmul.mubr.f32.gmra.mrb[12].mxu0 %v2016_v16  ;;  %5751 = vmatmul.mubr.f32.gmra.mrb[12].mxu1 %v2016_v16  ;;  %v11156_v24 = vshrl.u32 %v420_v17, 16 }
  0xb9   :  { %v927_v3 = vand.u32 16777215, %v863_v11  ;;  %v356_v19 = vmul.u32 2654435769, %v292_v50  ;;  %2022 = vmatprep.mubr.f32.mxu0 %v18787_v54  ;;  %5756 = vmatprep.mubr.f32.mxu1 %v18787_v54  ;;  %v864_v58 = vxor.u32 %v11216_v63, %v672_v6  ;;  %v229_v14 = vmul.u32 64, %v97_v39 }
  0xba   :  { %v865_v59 = vxor.u32 %v11217_v60, %v673_v40  ;;  %v11218_v61 = vshrl.u32 %v674_v47, 15  ;;  %v611_v0 = vxor.u32 %v11155_v56, %v419_v18  ;;  %v612_v13 = vxor.u32 %v11156_v24, %v420_v17 }
  0xbb   :  { %vm991_vm9 = vcmp.ge.s32.totalorder %v927_v3, 1677722  ;;  %v421_v55 = vadd.s32 %v14169_v12, %v356_v19  ;;  %v928_v36 = vand.u32 16777215, %v864_v58 }
  0xbc   :  { %v1119_v16 = vsel %vm991_vm9, %v14755_v27, 0.0  ;;  %v929_v26 = vand.u32 16777215, %v865_v59  ;;  %v866_v11 = vxor.u32 %v11218_v61, %v674_v47  ;;  %2028 = vmatmul.mubr.f32.gmra.mrb[14].mxu0 %v2027_v49  ;;  %5762 = vmatmul.mubr.f32.gmra.mrb[14].mxu1 %v2027_v49  ;;  %v675_v33 = vmul.u32 2146121005, %v611_v0 }
  0xbd   :  { %v1698_v50 = vsel %vm1672_vm0, %v1119_v16, 0  ;;  %v676_v1 = vmul.u32 2146121005, %v612_v13  ;;  %v11157_v6 = vshrl.u32 %v421_v55, 16  ;;  %2033 = vmatprep.mubr.f32.mxu0 %v18787_v54  ;;  %5767 = vmatprep.mubr.f32.mxu1 %v18787_v54  ;;  %vm992_vm10 = vcmp.ge.s32.totalorder %v928_v36, 1677722 }
  0xbe   :  { %v14844_v24 = vand.u32 4294901760, %v1698_v50  ;;  %vm993_vm11 = vcmp.ge.s32.totalorder %v929_v26, 1677722  ;;  %v293_v27 = vadd.s32 %v229_v14, %v14160_v9  ;;  %v1120_v3 = vsel %vm992_vm10, %v14767_v45, 0.0 }
  0xbf   :  { %v1121_v40 = vsel %vm993_vm11, %v14781_v52, 0.0  ;;  %v930_v49 = vand.u32 16777215, %v866_v11  ;;  %v11219_v18 = vshrl.u32 %v675_v33, 15  ;;  %v1701_v63 = vsel %vm1672_vm0, %v1120_v3, 0 }
  0xc0   :  { %18809 = vst [vmem:[#allocation55_spill] sm:$0xff] %v14844_v24  ;;  %v14850_v17 = vsub.f32 %v1698_v50, %v14844_v24  ;;  %v1704_v60 = vsel %vm1672_vm0, %v1121_v40, 0  ;;  %v11220_v47 = vshrl.u32 %v676_v1, 15  ;;  %v14854_v56 = vand.u32 4294901760, %v1701_v63 }
  0xc1   :  { %v14856_v19 = vand.u32 4294901760, %v1704_v60  ;;  %vm994_vm12 = vcmp.ge.s32.totalorder %v930_v49, 1677722  ;;  %v867_v39 = vxor.u32 %v11219_v18, %v675_v33  ;;  %v613_v59 = vxor.u32 %v11157_v6, %v421_v55 }
  0xc2   :  { %18810 = vst [vmem:[#allocation56_spill] sm:$0xff] %v14850_v17  ;;  %18811 = vst [vmem:[#allocation57_spill] sm:$0xff] %v14854_v56  ;;  %v14859_v45 = vand.u32 4294901760, %v14850_v17  ;;  %v1122_v52 = vsel %vm994_vm12, %v14796_v21, 0.0  ;;  %v868_v58 = vxor.u32 %v11220_v47, %v676_v1  ;;  %v14863_v61 = vsub.f32 %v1701_v63, %v14854_v56 }
  0xc3   :  { %18812 = vst [vmem:[#allocation58_spill] sm:$0xff] %v14856_v19  ;;  %v14866_v0 = vsub.f32 %v1704_v60, %v14856_v19  ;;  %v1707_v13 = vsel %vm1672_vm0, %v1122_v52, 0  ;;  %v931_v14 = vand.u32 16777215, %v867_v39  ;;  %v677_v26 = vmul.u32 2146121005, %v613_v59 }
  0xc4   :  { %18813 = vst [vmem:[#allocation59_spill] sm:$0xff] %v14859_v45  ;;  %18814 = vst [vmem:[#allocation60_spill] sm:$0xff] %v14863_v61  ;;  %v2037_v16 = vsub.f32 %v14850_v17, %v14859_v45  ;;  %v14871_v33 = vand.u32 4294901760, %v1707_v13  ;;  %v932_v36 = vand.u32 16777215, %v868_v58  ;;  %v14874_v21 = vand.u32 4294901760, %v14863_v61 }
  0xc5   :  { %18815 = vst [vmem:[#allocation61_spill] sm:$0xff] %v14866_v0  ;;  %v14877_v1 = vand.u32 4294901760, %v14866_v0  ;;  %vm995_vm13 = vcmp.ge.s32.totalorder %v931_v14, 1677722  ;;  %v357_v55 = vmul.u32 2654435769, %v293_v27 }
  0xc6   :  { %18816 = vst [vmem:[#allocation62_spill] sm:$0xff] %v14871_v33  ;;  %18817 = vst [vmem:[#allocation63_spill] sm:$0xff] %v14874_v21  ;;  %v2038_v11 = vand.u32 4294901760, %v2037_v16  ;;  %v14880_v50 = vsub.f32 %v1707_v13, %v14871_v33  ;;  %v1123_v6 = vsel %vm995_vm13, %v14808_v25, 0.0  ;;  %vm996_vm14 = vcmp.ge.s32.totalorder %v932_v36, 1677722 }
  0xc7   :  { %18818 = vst [vmem:[#allocation64_spill] sm:$0xff] %v14877_v1  ;;  %v2048_v3 = vsub.f32 %v14863_v61, %v14874_v21  ;;  %v2059_v40 = vsub.f32 %v14866_v0, %v14877_v1  ;;  %v1710_v49 = vsel %vm1672_vm0, %v1123_v6, 0  ;;  %v1124_v18 = vsel %vm996_vm14, %v14816_v44, 0.0  ;;  %v32_v27 = vld [vmem:[%s18259_s1 + $0x78] sm:$0xff]  ;;  %v33_v39 = vld [vmem:[%s18259_s1 + $0x80] sm:$0xff] }
  0xc8   :  { %18819 = vst [vmem:[#allocation65_spill] sm:$0xff] %v14880_v50  ;;  %2039 = vmatmul.mubr.f32.gmra.mrb[16].mxu0 %v2038_v11  ;;  %5773 = vmatmul.mubr.f32.gmra.mrb[16].mxu1 %v2038_v11  ;;  %v14893_v63 = vand.u32 4294901760, %v14880_v50  ;;  %v14895_v25 = vand.u32 4294901760, %v1710_v49  ;;  %v1713_v60 = vsel %vm1672_vm0, %v1124_v18, 0  ;;  %v11221_v47 = vshrl.u32 %v677_v26, 15 }
  0xc9   :  { %2044 = vmatprep.mubr.f32.mxu0 %v18787_v54  ;;  %5778 = vmatprep.mubr.f32.mxu1 %v18787_v54  ;;  %v2049_v44 = vand.u32 4294901760, %v2048_v3  ;;  %v2060_v52 = vand.u32 4294901760, %v2059_v40  ;;  %v14903_v58 = vand.u32 4294901760, %v1713_v60  ;;  %v422_v59 = vadd.s32 %v14169_v12, %v357_v55 }
  0xca   :  { %18820 = vst [vmem:[#allocation66_spill] sm:$0xff] %v14893_v63  ;;  %18821 = vst [vmem:[#allocation67_spill] sm:$0xff] %v14895_v25  ;;  %v2070_v13 = vsub.f32 %v14880_v50, %v14893_v63  ;;  %v14909_v14 = vsub.f32 %v1710_v49, %v14895_v25  ;;  %v869_v16 = vxor.u32 %v11221_v47, %v677_v26  ;;  %v14911_v36 = vmul.f32 1.1111112, %v32_v27 }
  0xcb   :  { %18822 = vst [vmem:[#allocation68_spill] sm:$0xff] %v14903_v58  ;;  %v14914_v11 = vsub.f32 %v1713_v60, %v14903_v58  ;;  %v11158_v6 = vshrl.u32 %v422_v59, 16  ;;  %v98_v3 = vadd.s32 128, %v14158_v8  ;;  %v14917_v40 = vmul.f32 1.1111112, %v33_v39 }
  0xcc   :  { %18823 = vst [vmem:[#allocation69_spill] sm:$0xff] %v14909_v14  ;;  %2050 = vmatmul.mubr.f32.gmra.mrb[18].mxu0 %v2049_v44  ;;  %5784 = vmatmul.mubr.f32.gmra.mrb[18].mxu1 %v2049_v44  ;;  %v2071_v55 = vand.u32 4294901760, %v2070_v13  ;;  %v14920_v18 = vand.u32 4294901760, %v14909_v14  ;;  %v933_v63 = vand.u32 16777215, %v869_v16  ;;  %v18367_v49 = vand.u32 4294901760, %v14340_v10 }
  0xcd   :  { %18824 = vst [vmem:[#allocation70_spill] sm:$0xff] %v14914_v11  ;;  %2055 = vmatprep.mubr.f32.mxu0 %v18787_v54  ;;  %5789 = vmatprep.mubr.f32.mxu1 %v18787_v54  ;;  %v14926_v26 = vand.u32 4294901760, %v14914_v11  ;;  %v614_v27 = vxor.u32 %v11158_v6, %v422_v59  ;;  %v230_v60 = vmul.u32 64, %v98_v3  ;;  %v18370_v47 = vand.u32 4294901760, %v14350_v38 }
  0xce   :  { %18825 = vst [vmem:[#allocation71_spill] sm:$0xff] %v14920_v18  ;;  %v2081_v39 = vsub.f32 %v14909_v14, %v14920_v18  ;;  %vm997_vm15 = vcmp.ge.s32.totalorder %v933_v63, 1677722  ;;  %v2677_v44 = vsub.f32 %v14340_v10, %v18367_v49 }
  0xcf   :  { %18826 = vst [vmem:[#allocation72_spill] sm:$0xff] %v14926_v26  ;;  %v2092_v16 = vsub.f32 %v14914_v11, %v14926_v26  ;;  %v1125_v1 = vsel %vm997_vm15, %v14834_v31, 0.0  ;;  %v678_v21 = vmul.u32 2146121005, %v614_v27  ;;  %v294_v59 = vadd.s32 %v230_v60, %v14160_v9 }
  0xd0   :  { %2061 = vmatmul.mubr.f32.gmra.mrb[20].mxu0 %v2060_v52  ;;  %5795 = vmatmul.mubr.f32.gmra.mrb[20].mxu1 %v2060_v52  ;;  %v2082_v6 = vand.u32 4294901760, %v2081_v39  ;;  %v1716_v3 = vsel %vm1672_vm0, %v1125_v1, 0  ;;  %v2678_v63 = vand.u32 4294901760, %v2677_v44  ;;  %v2689_v49 = vsub.f32 %v14350_v38, %v18370_v47 }
  0xd1   :  { %2066 = vmatprep.mubr.f32.mxu0 %v18787_v54  ;;  %5800 = vmatprep.mubr.f32.mxu1 %v18787_v54  ;;  %v2093_v13 = vand.u32 4294901760, %v2092_v16  ;;  %v14945_v26 = vand.u32 4294901760, %v1716_v3  ;;  %v11222_v31 = vshrl.u32 %v678_v21, 15  ;;  %v358_v27 = vmul.u32 2654435769, %v294_v59 }
  0xd2   :  { %v2690_v60 = vand.u32 4294901760, %v2689_v49  ;;  %v18828_v52 = vand.u32 4294901760, %v14357_v46  ;;  %v18378_v1 = vand.u32 4294901760, %v14361_v53  ;;  %v18377_v44 = vand.u32 4294901760, %v14382_v42 }
  0xd3   :  { %18827 = vst [vmem:[#allocation73_spill] sm:$0xff] %v14945_v26  ;;  %v14953_v47 = vsub.f32 %v1716_v3, %v14945_v26  ;;  %v870_v18 = vxor.u32 %v11222_v31, %v678_v21  ;;  %v423_v45 = vadd.s32 %v14169_v12, %v358_v27  ;;  %v18385_v16 = vand.u32 4294901760, %v14393_v48 }
  0xd4   :  { %v6411_v39 = vsub.f32 %v14357_v46, %v18828_v52  ;;  %2072 = vmatmul.mubr.f32.gmra.mrb[22].mxu0 %v2071_v55  ;;  %5806 = vmatmul.mubr.f32.gmra.mrb[22].mxu1 %v2071_v55  ;;  %v11611_v59 = vpack.c.bf16 %v2690_v60, %v2678_v63  ;;  %v6423_v52 = vsub.f32 %v14361_v53, %v18378_v1  ;;  %v18384_v60 = vand.u32 4294901760, %v14402_v15 }
  0xd5   :  { %18829 = vst [vmem:[#allocation74_spill] sm:$0xff] %v14953_v47  ;;  %v2683_v11 = vsub.f32 %v14382_v42, %v18377_v44  ;;  %2077 = vmatprep.mubr.f32.mxu0 %v18787_v54  ;;  %5811 = vmatprep.mubr.f32.mxu1 %v18787_v54  ;;  %v14966_v21 = vand.u32 4294901760, %v14953_v47  ;;  %v934_v3 = vand.u32 16777215, %v870_v18  ;;  %v11159_v31 = vshrl.u32 %v423_v45, 16 }
  0xd6   :  { %v6412_v49 = vand.u32 4294901760, %v6411_v39  ;;  %v2695_v55 = vsub.f32 %v14393_v48, %v18385_v16  ;;  %11612 = vmatprep.subr.bf16.mxu0 %v11611_v59  ;;  %v6424_v63 = vand.u32 4294901760, %v6423_v52  ;;  %v18383_v39 = vand.u32 4294901760, %v14415_v7  ;;  %v34_v52 = vld [vmem:[%s18259_s1 + $0x88] sm:$0xff]  ;;  %v37_v16 = vld [vmem:[%s18259_s1 + $0xa0] sm:$0xff] }
  0xd7   :  { %18830 = vst [vmem:[#allocation75_spill] sm:$0xff] %v14966_v21  ;;  %v2684_v27 = vand.u32 4294901760, %v2683_v11  ;;  %v2103_v44 = vsub.f32 %v14953_v47, %v14966_v21  ;;  %vm998_vm1 = vcmp.ge.s32.totalorder %v934_v3, 1677722  ;;  %v615_v1 = vxor.u32 %v11159_v31, %v423_v45  ;;  %v35_v45 = vld [vmem:[%s18259_s1 + $0x90] sm:$0xff] }
  0xd8   :  { %v2696_v14 = vand.u32 4294901760, %v2695_v55  ;;  %2083 = vmatmul.mubr.f32.gmra.mrb[24].mxu0 %v2082_v6  ;;  %5817 = vmatmul.mubr.f32.gmra.mrb[24].mxu1 %v2082_v6  ;;  %v1126_v18 = vsel %vm998_vm1, %v14911_v36, 0.0  ;;  %v11707_v50 = vpack.c.bf16 %v6424_v63, %v6412_v49  ;;  %v6417_v59 = vsub.f32 %v14402_v15, %v18384_v60  ;;  %v36_v60 = vld [vmem:[%s18259_s1 + $0x98] sm:$0xff] }
  0xd9   :  { %v6429_v11 = vsub.f32 %v14415_v7, %v18383_v39  ;;  %2088 = vmatprep.mubr.f32.mxu0 %v18787_v54  ;;  %5822 = vmatprep.mubr.f32.mxu1 %v18787_v54  ;;  %v2104_v36 = vand.u32 4294901760, %v2103_v44  ;;  %v1719_v6 = vsel %vm1672_vm0, %v1126_v18, 0  ;;  %v679_v49 = vmul.u32 2146121005, %v615_v1 }
  0xda   :  { %v11613_v3 = vpack.c.bf16 %v2696_v14, %v2684_v27  ;;  %v14991_v31 = vand.u32 4294901760, %v1719_v6  ;;  %11708 = vmatprep.subr.bf16.mxu1 %v11707_v50  ;;  %v6418_v55 = vand.u32 4294901760, %v6417_v59  ;;  %v99_v39 = vadd.s32 136, %v14158_v8 }
  0xdb   :  { %v6430_v63 = vand.u32 4294901760, %v6429_v11  ;;  %v11223_v44 = vshrl.u32 %v679_v49, 15  ;;  %v15000_v18 = vmul.f32 1.1111112, %v34_v52  ;;  %v100_v14 = vadd.s32 144, %v14158_v8 }
  0xdc   :  { %18831 = vst [vmem:[#allocation76_spill] sm:$0xff] %v14991_v31  ;;  %11614 = vmatpush1.bf16.msra.mxu0 %v11613_v3  ;;  %v15003_v1 = vmul.f32 1.1111112, %v35_v45  ;;  %5828 = vmatmul.mubr.f32.gmra.mrb[26].mxu1 %v2093_v13  ;;  %v15006_v50 = vsub.f32 %v1719_v6, %v14991_v31  ;;  %v231_v59 = vmul.u32 64, %v99_v39  ;;  %v101_v11 = vadd.s32 152, %v14158_v8 }
  0xdd   :  { %2094 = vmatmul.mubr.f32.gmra.mrb[26].mxu0 %v2093_v13  ;;  %v11709_v27 = vpack.c.bf16 %v6430_v63, %v6418_v55  ;;  %5833 = vmatprep.mubr.f32.mxu1 %v18787_v54  ;;  %v871_v3 = vxor.u32 %v11223_v44, %v679_v49  ;;  %v232_v52 = vmul.u32 64, %v100_v14  ;;  %v15011_v21 = vmul.f32 1.1111112, %v36_v60  ;;  %v38_v13 = vld [vmem:[%s18259_s1 + $0xa8] sm:$0xff] }
  0xde   :  { %18832 = vst [vmem:[#allocation77_spill] sm:$0xff] %v15006_v50  ;;  %2099 = vmatprep.mubr.f32.mxu0 %v18787_v54  ;;  %v102_v45 = vadd.s32 160, %v14158_v8  ;;  %v15018_v6 = vand.u32 4294901760, %v15006_v50  ;;  %v295_v39 = vadd.s32 %v231_v59, %v14160_v9  ;;  %v233_v55 = vmul.u32 64, %v101_v11 }
  0xdf   :  { %11710 = vmatpush1.bf16.msra.mxu1 %v11709_v27  ;;  %v15021_v63 = vmul.f32 1.1111112, %v37_v16  ;;  %v935_v47 = vand.u32 16777215, %v871_v3  ;;  %v296_v49 = vadd.s32 %v232_v52, %v14160_v9  ;;  %v103_v44 = vadd.s32 168, %v14158_v8 }
  0xe0   :  { %18833 = vst [vmem:[#allocation78_spill] sm:$0xff] %v15018_v6  ;;  %v234_v60 = vmul.u32 64, %v102_v45  ;;  %5839 = vmatmul.mubr.f32.gmra.mrb[28].mxu1 %v2104_v36  ;;  %v2114_v14 = vsub.f32 %v15006_v50, %v15018_v6  ;;  %v359_v0 = vmul.u32 2654435769, %v295_v39  ;;  %v297_v61 = vadd.s32 %v233_v55, %v14160_v9 }
  0xe1   :  { %2105 = vmatmul.mubr.f32.gmra.mrb[28].mxu0 %v2104_v36  ;;  %v15028_v27 = vmul.f32 1.1111112, %v38_v13  ;;  %5844 = vmatprep.mubr.f32.mxu1 %v18787_v54  ;;  %vm999_vm2 = vcmp.ge.s32.totalorder %v935_v47, 1677722  ;;  %v360_v16 = vmul.u32 2654435769, %v296_v49 }
  0xe2   :  { %2110 = vmatprep.mubr.f32.mxu0 %v18787_v54  ;;  %v298_v59 = vadd.s32 %v234_v60, %v14160_v9  ;;  %v235_v11 = vmul.u32 64, %v103_v44  ;;  %v2115_v3 = vand.u32 4294901760, %v2114_v14  ;;  %v1127_v36 = vsel %vm999_vm2, %v14917_v40, 0.0  ;;  %v39_v13 = vld [vmem:[%s18259_s1 + $0xb0] sm:$0xff] }
  0xe3   :  { %v424_v52 = vadd.s32 %v14169_v12, %v359_v0  ;;  %v361_v45 = vmul.u32 2654435769, %v297_v61  ;;  %v1722_v39 = vsel %vm1672_vm0, %v1127_v36, 0  ;;  %v425_v55 = vadd.s32 %v14169_v12, %v360_v16 }
  0xe4   :  { %v362_v6 = vmul.u32 2654435769, %v298_v59  ;;  %v299_v47 = vadd.s32 %v235_v11, %v14160_v9  ;;  %5850 = vmatmul.mubr.f32.gmra.mrb[30].mxu1 %v2115_v3  ;;  %v15041_v49 = vand.u32 4294901760, %v1722_v39  ;;  %v104_v61 = vadd.s32 176, %v14158_v8 }
  0xe5   :  { %2116 = vmatmul.mubr.f32.gmra.mrb[30].mxu0 %v2115_v3  ;;  %v11160_v60 = vshrl.u32 %v424_v52, 16  ;;  %v426_v40 = vadd.s32 %v14169_v12, %v361_v45  ;;  %5855 = vmatprep.mubr.f32.mxu1 %v18787_v54  ;;  %v11161_v0 = vshrl.u32 %v425_v55, 16  ;;  %v15048_v16 = vmul.f32 1.1111112, %v39_v13 }
  0xe6   :  { %18834 = vst [vmem:[#allocation79_spill] sm:$0xff] %v15041_v49  ;;  %2121 = vmatprep.mubr.f32.mxu0 %v18787_v54  ;;  %v427_v44 = vadd.s32 %v14169_v12, %v362_v6  ;;  %v363_v14 = vmul.u32 2654435769, %v299_v47  ;;  %v15051_v59 = vsub.f32 %v1722_v39, %v15041_v49  ;;  %v236_v36 = vmul.u32 64, %v104_v61 }
  0xe7   :  { %v616_v11 = vxor.u32 %v11160_v60, %v424_v52  ;;  %v11162_v3 = vshrl.u32 %v426_v40, 16  ;;  %v617_v50 = vxor.u32 %v11161_v0, %v425_v55  ;;  %v105_v31 = vadd.s32 184, %v14158_v8 }
  0xe8   :  { %18835 = vst [vmem:[#allocation80_spill] sm:$0xff] %v15051_v59  ;;  %v11163_v45 = vshrl.u32 %v427_v44, 16  ;;  %v428_v17 = vadd.s32 %v14169_v12, %v363_v14  ;;  %v15056_v26 = vand.u32 4294901760, %v15051_v59  ;;  %v300_v13 = vadd.s32 %v236_v36, %v14160_v9 }
  0xe9   :  { %v680_v58 = vmul.u32 2146121005, %v616_v11  ;;  %v618_v6 = vxor.u32 %v11162_v3, %v426_v40  ;;  %v681_v47 = vmul.u32 2146121005, %v617_v50  ;;  %v40_v11 = vld [vmem:[%s18259_s1 + $0xb8] sm:$0xff] }
  0xea   :  { %18836 = vst [vmem:[#allocation81_spill] sm:$0xff] %v15056_v26  ;;  %v619_v25 = vxor.u32 %v11163_v45, %v427_v44  ;;  %v11164_v39 = vshrl.u32 %v428_v17, 16  ;;  %v237_v49 = vmul.u32 64, %v105_v31  ;;  %v2125_v52 = vsub.f32 %v15051_v59, %v15056_v26 }
  0xeb   :  { %v11224_v55 = vshrl.u32 %v680_v58, 15  ;;  %v682_v60 = vmul.u32 2146121005, %v618_v6  ;;  %v364_v61 = vmul.u32 2654435769, %v300_v13  ;;  %v11225_v0 = vshrl.u32 %v681_v47, 15 }
  0xec   :  { %v683_v14 = vmul.u32 2146121005, %v619_v25  ;;  %v620_v33 = vxor.u32 %v11164_v39, %v428_v17  ;;  %v301_v40 = vadd.s32 %v237_v49, %v14160_v9  ;;  %v2126_v3 = vand.u32 4294901760, %v2125_v52 }
  0xed   :  { %v872_v50 = vxor.u32 %v11224_v55, %v680_v58  ;;  %v11226_v44 = vshrl.u32 %v682_v60, 15  ;;  %v429_v31 = vadd.s32 %v14169_v12, %v364_v61  ;;  %v873_v36 = vxor.u32 %v11225_v0, %v681_v47 }
  0xee   :  { %v11227_v45 = vshrl.u32 %v683_v14, 15  ;;  %v684_v26 = vmul.u32 2146121005, %v620_v33  ;;  %v365_v59 = vmul.u32 2654435769, %v301_v40  ;;  %2127 = vmatmul.mubr.f32.gmra.mrb[32].mxu0 %v2126_v3  ;;  %5861 = vmatmul.mubr.f32.gmra.mrb[32].mxu1 %v2126_v3  ;;  %v106_v55 = vadd.s32 192, %v14158_v8 }
  0xef   :  { %v936_v6 = vand.u32 16777215, %v872_v50  ;;  %v874_v25 = vxor.u32 %v11226_v44, %v682_v60  ;;  %v11165_v17 = vshrl.u32 %v429_v31, 16  ;;  %v15066_v13 = vmul.f32 1.1111112, %v40_v11  ;;  %2132 = vmatprep.mubr.f32.mxu0 %v18787_v54  ;;  %5866 = vmatprep.mubr.f32.mxu1 %v18787_v54 }
  0xf0   :  { %v937_v49 = vand.u32 16777215, %v873_v36  ;;  %v875_v58 = vxor.u32 %v11227_v45, %v683_v14  ;;  %v11228_v39 = vshrl.u32 %v684_v26, 15  ;;  %v430_v52 = vadd.s32 %v14169_v12, %v365_v59 }
  0xf1   :  { %vm1000_vm3 = vcmp.ge.s32.totalorder %v936_v6, 1677722  ;;  %v938_v47 = vand.u32 16777215, %v874_v25  ;;  %v621_v33 = vxor.u32 %v11165_v17, %v429_v31 }
  0xf2   :  { %v1128_v61 = vsel %vm1000_vm3, %v15000_v18, 0.0  ;;  %vm1001_vm4 = vcmp.ge.s32.totalorder %v937_v49, 1677722  ;;  %v939_v60 = vand.u32 16777215, %v875_v58  ;;  %v876_v0 = vxor.u32 %v11228_v39, %v684_v26 }
  0xf3   :  { %v1725_v11 = vsel %vm1672_vm0, %v1128_v61, 0  ;;  %v1129_v40 = vsel %vm1001_vm4, %v15003_v1, 0.0  ;;  %vm1002_vm5 = vcmp.ge.s32.totalorder %v938_v47, 1677722  ;;  %v685_v3 = vmul.u32 2146121005, %v621_v33 }
  0xf4   :  { %v15075_v14 = vand.u32 4294901760, %v1725_v11  ;;  %v1728_v59 = vsel %vm1672_vm0, %v1129_v40, 0  ;;  %v1130_v50 = vsel %vm1002_vm5, %v15011_v21, 0.0  ;;  %vm1003_vm6 = vcmp.ge.s32.totalorder %v939_v60, 1677722 }
  0xf5   :  { %v15079_v44 = vand.u32 4294901760, %v1728_v59  ;;  %v1731_v18 = vsel %vm1672_vm0, %v1130_v50, 0  ;;  %v1131_v31 = vsel %vm1003_vm6, %v15021_v63, 0.0  ;;  %v940_v26 = vand.u32 16777215, %v876_v0 }
  0xf6   :  { %18837 = vst [vmem:[#allocation82_spill] sm:$0xff] %v15075_v14  ;;  %v15084_v36 = vsub.f32 %v1725_v11, %v15075_v14  ;;  %v15086_v1 = vand.u32 4294901760, %v1731_v18  ;;  %v1734_v45 = vsel %vm1672_vm0, %v1131_v31, 0  ;;  %v11229_v6 = vshrl.u32 %v685_v3, 15 }
  0xf7   :  { %18838 = vst [vmem:[#allocation83_spill] sm:$0xff] %v15079_v44  ;;  %v15090_v25 = vsub.f32 %v1728_v59, %v15079_v44  ;;  %v15092_v21 = vand.u32 4294901760, %v1734_v45  ;;  %vm1004_vm7 = vcmp.ge.s32.totalorder %v940_v26, 1677722  ;;  %v11166_v17 = vshrl.u32 %v430_v52, 16 }
  0xf8   :  { %18839 = vst [vmem:[#allocation84_spill] sm:$0xff] %v15084_v36  ;;  %18840 = vst [vmem:[#allocation85_spill] sm:$0xff] %v15086_v1  ;;  %v15095_v49 = vand.u32 4294901760, %v15084_v36  ;;  %v15098_v63 = vsub.f32 %v1731_v18, %v15086_v1  ;;  %v1132_v58 = vsel %vm1004_vm7, %v15028_v27, 0.0  ;;  %v877_v39 = vxor.u32 %v11229_v6, %v685_v3 }
  0xf9   :  { %18841 = vst [vmem:[#allocation86_spill] sm:$0xff] %v15090_v25  ;;  %18842 = vst [vmem:[#allocation87_spill] sm:$0xff] %v15092_v21  ;;  %v15102_v47 = vand.u32 4294901760, %v15090_v25  ;;  %v15105_v33 = vsub.f32 %v1734_v45, %v15092_v21  ;;  %v1737_v61 = vsel %vm1672_vm0, %v1132_v58, 0  ;;  %v622_v60 = vxor.u32 %v11166_v17, %v430_v52  ;;  %v41_v45 = vld [vmem:[%s18259_s1 + $0xc0] sm:$0xff] }
  0xfa   :  { %18843 = vst [vmem:[#allocation88_spill] sm:$0xff] %v15095_v49  ;;  %18844 = vst [vmem:[#allocation89_spill] sm:$0xff] %v15098_v63  ;;  %v2136_v0 = vsub.f32 %v15084_v36, %v15095_v49  ;;  %v15111_v11 = vand.u32 4294901760, %v15098_v63  ;;  %v15113_v40 = vand.u32 4294901760, %v1737_v61  ;;  %v941_v59 = vand.u32 16777215, %v877_v39 }
  0xfb   :  { %18845 = vst [vmem:[#allocation90_spill] sm:$0xff] %v15102_v47  ;;  %18846 = vst [vmem:[#allocation91_spill] sm:$0xff] %v15105_v33  ;;  %v2147_v27 = vsub.f32 %v15090_v25, %v15102_v47  ;;  %v15118_v3 = vand.u32 4294901760, %v15105_v33  ;;  %v686_v50 = vmul.u32 2146121005, %v622_v60  ;;  %v238_v18 = vmul.u32 64, %v106_v55 }
  0xfc   :  { %18847 = vst [vmem:[#allocation92_spill] sm:$0xff] %v15111_v11  ;;  %18848 = vst [vmem:[#allocation93_spill] sm:$0xff] %v15113_v40  ;;  %v2137_v31 = vand.u32 4294901760, %v2136_v0  ;;  %v2158_v52 = vsub.f32 %v15098_v63, %v15111_v11  ;;  %v15123_v26 = vsub.f32 %v1737_v61, %v15113_v40  ;;  %vm1005_vm8 = vcmp.ge.s32.totalorder %v941_v59, 1677722  ;;  %v42_v55 = vld [vmem:[%s18259_s1 + $0xc8] sm:$0xff] }
  0xfd   :  { %18849 = vst [vmem:[#allocation94_spill] sm:$0xff] %v15118_v3  ;;  %v2148_v6 = vand.u32 4294901760, %v2147_v27  ;;  %v2169_v17 = vsub.f32 %v15105_v33, %v15118_v3  ;;  %v1133_v58 = vsel %vm1005_vm8, %v15048_v16, 0.0  ;;  %v11230_v39 = vshrl.u32 %v686_v50, 15  ;;  %v43_v27 = vld [vmem:[%s18259_s1 + $0xd0] sm:$0xff]  ;;  %v44_v49 = vld [vmem:[%s18259_s1 + $0xd8] sm:$0xff] }
  0xfe   :  { %18850 = vst [vmem:[#allocation95_spill] sm:$0xff] %v15123_v26  ;;  %2138 = vmatmul.mubr.f32.gmra.mrb[34].mxu0 %v2137_v31  ;;  %5872 = vmatmul.mubr.f32.gmra.mrb[34].mxu1 %v2137_v31  ;;  %v2159_v61 = vand.u32 4294901760, %v2158_v52  ;;  %v15135_v60 = vand.u32 4294901760, %v15123_v26  ;;  %v1740_v0 = vsel %vm1672_vm0, %v1133_v58, 0  ;;  %v302_v59 = vadd.s32 %v238_v18, %v14160_v9  ;;  %v46_v36 = vld [vmem:[%s18259_s1 + $0xe8] sm:$0xff] }
  0xff   :  { %2143 = vmatprep.mubr.f32.mxu0 %v18787_v54  ;;  %5877 = vmatprep.mubr.f32.mxu1 %v18787_v54  ;;  %v2170_v16 = vand.u32 4294901760, %v2169_v17  ;;  %v15144_v3 = vand.u32 4294901760, %v1740_v0  ;;  %v878_v31 = vxor.u32 %v11230_v39, %v686_v50  ;;  %v15146_v52 = vmul.f32 1.1111112, %v41_v45 }
 0x100   :  { %18851 = vst [vmem:[#allocation96_spill] sm:$0xff] %v15135_v60  ;;  %v2180_v11 = vsub.f32 %v15123_v26, %v15135_v60  ;;  %v366_v58 = vmul.u32 2654435769, %v302_v59  ;;  %v107_v18 = vadd.s32 200, %v14158_v8  ;;  %v15151_v47 = vmul.f32 1.1111112, %v42_v55 }
 0x101   :  { %18852 = vst [vmem:[#allocation97_spill] sm:$0xff] %v15144_v3  ;;  %v15157_v33 = vsub.f32 %v1740_v0, %v15144_v3  ;;  %v942_v17 = vand.u32 16777215, %v878_v31  ;;  %v108_v50 = vadd.s32 208, %v14158_v8  ;;  %v15160_v45 = vmul.f32 1.1111112, %v43_v27 }
 0x102   :  { %2149 = vmatmul.mubr.f32.gmra.mrb[36].mxu0 %v2148_v6  ;;  %5883 = vmatmul.mubr.f32.gmra.mrb[36].mxu1 %v2148_v6  ;;  %v2181_v39 = vand.u32 4294901760, %v2180_v11  ;;  %v431_v59 = vadd.s32 %v14169_v12, %v366_v58  ;;  %v239_v60 = vmul.u32 64, %v107_v18  ;;  %v109_v55 = vadd.s32 216, %v14158_v8  ;;  %v45_v18 = vld [vmem:[%s18259_s1 + $0xe0] sm:$0xff] }
 0x103   :  { %18853 = vst [vmem:[#allocation98_spill] sm:$0xff] %v15157_v33  ;;  %2154 = vmatprep.mubr.f32.mxu0 %v18787_v54  ;;  %5888 = vmatprep.mubr.f32.mxu1 %v18787_v54  ;;  %v15167_v0 = vand.u32 4294901760, %v15157_v33  ;;  %vm1006_vm9 = vcmp.ge.s32.totalorder %v942_v17, 1677722  ;;  %v240_v31 = vmul.u32 64, %v108_v50  ;;  %v111_v40 = vadd.s32 232, %v14158_v8 }
 0x104   :  { %v15169_v26 = vmul.f32 1.1111112, %v44_v49  ;;  %v1134_v27 = vsel %vm1006_vm9, %v15066_v13, 0.0  ;;  %v11167_v6 = vshrl.u32 %v431_v59, 16  ;;  %v303_v11 = vadd.s32 %v239_v60, %v14160_v9 }
 0x105   :  { %18854 = vst [vmem:[#allocation99_spill] sm:$0xff] %v15167_v0  ;;  %v241_v58 = vmul.u32 64, %v109_v55  ;;  %v2191_v63 = vsub.f32 %v15157_v33, %v15167_v0  ;;  %v1743_v25 = vsel %vm1672_vm0, %v1134_v27, 0  ;;  %v304_v17 = vadd.s32 %v240_v31, %v14160_v9 }
 0x106   :  { %v110_v49 = vadd.s32 224, %v14158_v8  ;;  %2160 = vmatmul.mubr.f32.gmra.mrb[38].mxu0 %v2159_v61  ;;  %5894 = vmatmul.mubr.f32.gmra.mrb[38].mxu1 %v2159_v61  ;;  %v15181_v13 = vand.u32 4294901760, %v1743_v25  ;;  %v623_v50 = vxor.u32 %v11167_v6, %v431_v59  ;;  %v367_v60 = vmul.u32 2654435769, %v303_v11 }
 0x107   :  { %v305_v55 = vadd.s32 %v241_v58, %v14160_v9  ;;  %2165 = vmatprep.mubr.f32.mxu0 %v18787_v54  ;;  %5899 = vmatprep.mubr.f32.mxu1 %v18787_v54  ;;  %v2192_v27 = vand.u32 4294901760, %v2191_v63  ;;  %v368_v31 = vmul.u32 2654435769, %v304_v17  ;;  %v15189_v33 = vmul.f32 1.1111112, %v45_v18 }
 0x108   :  { %18855 = vst [vmem:[#allocation100_spill] sm:$0xff] %v15181_v13  ;;  %v242_v0 = vmul.u32 64, %v110_v49  ;;  %v15192_v61 = vsub.f32 %v1743_v25, %v15181_v13  ;;  %v687_v59 = vmul.u32 2146121005, %v623_v50  ;;  %v432_v6 = vadd.s32 %v14169_v12, %v367_v60 }
 0x109   :  { %v369_v11 = vmul.u32 2654435769, %v305_v55  ;;  %v433_v58 = vadd.s32 %v14169_v12, %v368_v31  ;;  %v15198_v21 = vmul.f32 1.1111112, %v46_v36  ;;  %v112_v60 = vadd.s32 240, %v14158_v8 }
 0x10a   :  { %18856 = vst [vmem:[#allocation101_spill] sm:$0xff] %v15192_v61  ;;  %v306_v3 = vadd.s32 %v242_v0, %v14160_v9  ;;  %2171 = vmatmul.mubr.f32.gmra.mrb[40].mxu0 %v2170_v16  ;;  %5905 = vmatmul.mubr.f32.gmra.mrb[40].mxu1 %v2170_v16  ;;  %v15201_v63 = vand.u32 4294901760, %v15192_v61  ;;  %v11231_v18 = vshrl.u32 %v687_v59, 15  ;;  %v11168_v25 = vshrl.u32 %v432_v6, 16 }
 0x10b   :  { %v434_v17 = vadd.s32 %v14169_v12, %v369_v11  ;;  %2176 = vmatprep.mubr.f32.mxu0 %v18787_v54  ;;  %5910 = vmatprep.mubr.f32.mxu1 %v18787_v54  ;;  %v11169_v49 = vshrl.u32 %v433_v58, 16  ;;  %v243_v0 = vmul.u32 64, %v111_v40  ;;  %v244_v44 = vmul.u32 64, %v112_v60  ;;  %v47_v60 = vld [vmem:[%s18259_s1 + $0xf0] sm:$0xff] }
 0x10c   :  { %18857 = vst [vmem:[#allocation102_spill] sm:$0xff] %v15201_v63  ;;  %v370_v50 = vmul.u32 2654435769, %v306_v3  ;;  %v2202_v36 = vsub.f32 %v15192_v61, %v15201_v63  ;;  %v879_v16 = vxor.u32 %v11231_v18, %v687_v59  ;;  %v624_v55 = vxor.u32 %v11168_v25, %v432_v6 }
 0x10d   :  { %v11170_v31 = vshrl.u32 %v434_v17, 16  ;;  %v625_v13 = vxor.u32 %v11169_v49, %v433_v58  ;;  %v307_v11 = vadd.s32 %v243_v0, %v14160_v9  ;;  %v308_v58 = vadd.s32 %v244_v44, %v14160_v9 }
 0x10e   :  { %v435_v1 = vadd.s32 %v14169_v12, %v370_v50  ;;  %2182 = vmatmul.mubr.f32.gmra.mrb[42].mxu0 %v2181_v39  ;;  %5916 = vmatmul.mubr.f32.gmra.mrb[42].mxu1 %v2181_v39  ;;  %v2203_v14 = vand.u32 4294901760, %v2202_v36  ;;  %v943_v19 = vand.u32 16777215, %v879_v16  ;;  %v688_v3 = vmul.u32 2146121005, %v624_v55 }
 0x10f   :  { %v626_v40 = vxor.u32 %v11170_v31, %v434_v17  ;;  %2187 = vmatprep.mubr.f32.mxu0 %v18787_v54  ;;  %5921 = vmatprep.mubr.f32.mxu1 %v18787_v54  ;;  %v689_v63 = vmul.u32 2146121005, %v625_v13  ;;  %v371_v6 = vmul.u32 2654435769, %v307_v11  ;;  %v113_v49 = vadd.s32 248, %v14158_v8 }
 0x110   :  { %v11171_v59 = vshrl.u32 %v435_v1, 16  ;;  %vm1007_vm10 = vcmp.ge.s32.totalorder %v943_v19, 1677722  ;;  %v11232_v18 = vshrl.u32 %v688_v3, 15  ;;  %v372_v36 = vmul.u32 2654435769, %v308_v58 }
 0x111   :  { %v690_v25 = vmul.u32 2146121005, %v626_v40  ;;  %v1135_v39 = vsel %vm1007_vm10, %v15146_v52, 0.0  ;;  %v11233_v50 = vshrl.u32 %v689_v63, 15  ;;  %v436_v17 = vadd.s32 %v14169_v12, %v371_v6 }
 0x112   :  { %v627_v0 = vxor.u32 %v11171_v59, %v435_v1  ;;  %2193 = vmatmul.mubr.f32.gmra.mrb[44].mxu0 %v2192_v27  ;;  %5927 = vmatmul.mubr.f32.gmra.mrb[44].mxu1 %v2192_v27  ;;  %v1746_v13 = vsel %vm1672_vm0, %v1135_v39, 0  ;;  %v880_v44 = vxor.u32 %v11232_v18, %v688_v3  ;;  %v437_v40 = vadd.s32 %v14169_v12, %v372_v36 }
 0x113   :  { %v11234_v19 = vshrl.u32 %v690_v25, 15  ;;  %2198 = vmatprep.mubr.f32.mxu0 %v18787_v54  ;;  %5932 = vmatprep.mubr.f32.mxu1 %v18787_v54  ;;  %v15223_v52 = vand.u32 4294901760, %v1746_v13  ;;  %v881_v1 = vxor.u32 %v11233_v50, %v689_v63  ;;  %v11172_v55 = vshrl.u32 %v436_v17, 16 }
 0x114   :  { %v691_v16 = vmul.u32 2146121005, %v627_v0  ;;  %v944_v31 = vand.u32 16777215, %v880_v44  ;;  %v15226_v59 = vmul.f32 1.1111112, %v47_v60 }
 0x115   :  { %18858 = vst [vmem:[#allocation103_spill] sm:$0xff] %v15223_v52  ;;  %v882_v11 = vxor.u32 %v11234_v19, %v690_v25  ;;  %v15229_v27 = vsub.f32 %v1746_v13, %v15223_v52  ;;  %v945_v3 = vand.u32 16777215, %v881_v1  ;;  %v628_v58 = vxor.u32 %v11172_v55, %v436_v17 }
 0x116   :  { %v11235_v6 = vshrl.u32 %v691_v16, 15  ;;  %2204 = vmatmul.mubr.f32.gmra.mrb[46].mxu0 %v2203_v14  ;;  %5938 = vmatmul.mubr.f32.gmra.mrb[46].mxu1 %v2203_v14  ;;  %vm1008_vm11 = vcmp.ge.s32.totalorder %v944_v31, 1677722  ;;  %v11173_v39 = vshrl.u32 %v437_v40, 16  ;;  %v245_v63 = vmul.u32 64, %v113_v49 }
 0x117   :  { %18859 = vst [vmem:[#allocation104_spill] sm:$0xff] %v15229_v27  ;;  %v946_v18 = vand.u32 16777215, %v882_v11  ;;  %2209 = vmatprep.mubr.f32.mxu0 %v18787_v54  ;;  %5943 = vmatprep.mubr.f32.mxu1 %v18787_v54  ;;  %v15234_v25 = vand.u32 4294901760, %v15229_v27  ;;  %v1136_v50 = vsel %vm1008_vm11, %v15151_v47, 0.0 }
 0x118   :  { %vm1009_vm12 = vcmp.ge.s32.totalorder %v945_v3, 1677722  ;;  %v883_v0 = vxor.u32 %v11235_v6, %v691_v16  ;;  %v1749_v60 = vsel %vm1672_vm0, %v1136_v50, 0  ;;  %v692_v14 = vmul.u32 2146121005, %v628_v58 }
 0x119   :  { %18860 = vst [vmem:[#allocation105_spill] sm:$0xff] %v15234_v25  ;;  %v1137_v17 = vsel %vm1009_vm12, %v15160_v45, 0.0  ;;  %vm1010_vm13 = vcmp.ge.s32.totalorder %v946_v18, 1677722  ;;  %v2213_v49 = vsub.f32 %v15229_v27, %v15234_v25  ;;  %v15241_v13 = vand.u32 4294901760, %v1749_v60 }
 0x11a   :  { %v1752_v44 = vsel %vm1672_vm0, %v1137_v17, 0  ;;  %v1138_v19 = vsel %vm1010_vm13, %v15169_v26, 0.0  ;;  %v947_v1 = vand.u32 16777215, %v883_v0  ;;  %v11236_v16 = vshrl.u32 %v692_v14, 15 }
 0x11b   :  { %18861 = vst [vmem:[#allocation106_spill] sm:$0xff] %v15241_v13  ;;  %v15245_v36 = vand.u32 4294901760, %v1752_v44  ;;  %v1755_v47 = vsel %vm1672_vm0, %v1138_v19, 0  ;;  %v2214_v55 = vand.u32 4294901760, %v2213_v49  ;;  %v15249_v45 = vsub.f32 %v1749_v60, %v15241_v13 }
 0x11c   :  { %v15251_v31 = vand.u32 4294901760, %v1755_v47  ;;  %v629_v11 = vxor.u32 %v11173_v39, %v437_v40  ;;  %vm1011_vm14 = vcmp.ge.s32.totalorder %v947_v1, 1677722  ;;  %v884_v6 = vxor.u32 %v11236_v16, %v692_v14  ;;  %v48_v40 = vld [vmem:[%s18259_s1 + $0xf8] sm:$0xff] }
 0x11d   :  { %18862 = vst [vmem:[#allocation107_spill] sm:$0xff] %v15245_v36  ;;  %18863 = vst [vmem:[#allocation108_spill] sm:$0xff] %v15249_v45  ;;  %v15254_v3 = vsub.f32 %v1752_v44, %v15245_v36  ;;  %v309_v26 = vadd.s32 %v245_v63, %v14160_v9  ;;  %2215 = vmatmul.mubr.f32.gmra.mrb[48].mxu0 %v2214_v55  ;;  %5949 = vmatmul.mubr.f32.gmra.mrb[48].mxu1 %v2214_v55  ;;  %v15258_v58 = vand.u32 4294901760, %v15249_v45 }
 0x11e   :  { %18864 = vst [vmem:[#allocation109_spill] sm:$0xff] %v15251_v31  ;;  %v15261_v18 = vsub.f32 %v1755_v47, %v15251_v31  ;;  %v1139_v50 = vsel %vm1011_vm14, %v15189_v33, 0.0  ;;  %v693_v0 = vmul.u32 2146121005, %v629_v11  ;;  %2220 = vmatprep.mubr.f32.mxu0 %v18787_v54  ;;  %5954 = vmatprep.mubr.f32.mxu1 %v18787_v54  ;;  %v948_v60 = vand.u32 16777215, %v884_v6 }
 0x11f   :  { %18865 = vst [vmem:[#allocation110_spill] sm:$0xff] %v15254_v3  ;;  %18866 = vst [vmem:[#allocation111_spill] sm:$0xff] %v15258_v58  ;;  %v15270_v39 = vand.u32 4294901760, %v15254_v3  ;;  %v1758_v63 = vsel %vm1672_vm0, %v1139_v50, 0  ;;  %v373_v17 = vmul.u32 2654435769, %v309_v26  ;;  %v2224_v14 = vsub.f32 %v15249_v45, %v15258_v58 }
 0x120   :  { %18867 = vst [vmem:[#allocation112_spill] sm:$0xff] %v15261_v18  ;;  %v15276_v33 = vand.u32 4294901760, %v15261_v18  ;;  %v15278_v49 = vand.u32 4294901760, %v1758_v63  ;;  %v11237_v44 = vshrl.u32 %v693_v0, 15  ;;  %vm1012_vm15 = vcmp.ge.s32.totalorder %v948_v60, 1677722 }
 0x121   :  { %18868 = vst [vmem:[#allocation113_spill] sm:$0xff] %v15270_v39  ;;  %v2235_v19 = vsub.f32 %v15254_v3, %v15270_v39  ;;  %v438_v47 = vadd.s32 %v14169_v12, %v373_v17  ;;  %v15283_v1 = vmul.f32 1.1111112, %v48_v40  ;;  %v2225_v16 = vand.u32 4294901760, %v2224_v14  ;;  %v49_v26 = vld [vmem:[%s18259_s1 + $0x100] sm:$0xff]  ;;  %v18878_v3 = vld [vmem:[#allocation20_spill] sm:$0xff] }
 0x122   :  { %18869 = vst [vmem:[#allocation114_spill] sm:$0xff] %v15276_v33  ;;  %18870 = vst [vmem:[#allocation115_spill] sm:$0xff] %v15278_v49  ;;  %v2246_v55 = vsub.f32 %v15261_v18, %v15276_v33  ;;  %v15288_v11 = vsub.f32 %v1758_v63, %v15278_v49  ;;  %v1140_v6 = vsel %vm1012_vm15, %v15198_v21, 0.0  ;;  %v885_v39 = vxor.u32 %v11237_v44, %v693_v0 }
 0x123   :  { %v2236_v50 = vand.u32 4294901760, %v2235_v19  ;;  %v1761_v60 = vsel %vm1672_vm0, %v1140_v6, 0  ;;  %v11174_v17 = vshrl.u32 %v438_v47, 16  ;;  %2226 = vmatmul.mubr.f32.gmra.mrb[50].mxu0 %v2225_v16  ;;  %5960 = vmatmul.mubr.f32.gmra.mrb[50].mxu1 %v2225_v16  ;;  %v114_v63 = vadd.s32 256, %v14158_v8 }
 0x124   :  { %18871 = vst [vmem:[#allocation116_spill] sm:$0xff] %v15288_v11  ;;  %v2247_v40 = vand.u32 4294901760, %v2246_v55  ;;  %v15296_v14 = vand.u32 4294901760, %v15288_v11  ;;  %v15298_v33 = vand.u32 4294901760, %v1761_v60  ;;  %2231 = vmatprep.mubr.f32.mxu0 %v18787_v54  ;;  %5965 = vmatprep.mubr.f32.mxu1 %v18787_v54  ;;  %v949_v21 = vand.u32 16777215, %v885_v39 }
 0x125   :  { %v630_v19 = vxor.u32 %v11174_v17, %v438_v47  ;;  %v15303_v58 = vmul.f32 1.1111112, %v49_v26  ;;  %v18466_v0 = vand.u32 4294901760, %v14436_v32  ;;  %v246_v55 = vmul.u32 64, %v114_v63 }
 0x126   :  { %18872 = vst [vmem:[#allocation117_spill] sm:$0xff] %v15296_v14  ;;  %18873 = vst [vmem:[#allocation118_spill] sm:$0xff] %v15298_v33  ;;  %v2257_v44 = vsub.f32 %v15288_v11, %v15296_v14  ;;  %v15309_v16 = vsub.f32 %v1761_v60, %v15298_v33  ;;  %v18477_v6 = vand.u32 4294901760, %v14444_v43  ;;  %vm1013_vm1 = vcmp.ge.s32.totalorder %v949_v21, 1677722 }
 0x127   :  { %v694_v25 = vmul.u32 2146121005, %v630_v19  ;;  %v2701_v39 = vsub.f32 %v14436_v32, %v18466_v0  ;;  %2237 = vmatmul.mubr.f32.gmra.mrb[52].mxu0 %v2236_v50  ;;  %5971 = vmatmul.mubr.f32.gmra.mrb[52].mxu1 %v2236_v50  ;;  %v1141_v60 = vsel %vm1013_vm1, %v15226_v59, 0.0  ;;  %v310_v63 = vadd.s32 %v246_v55, %v14160_v9 }
 0x128   :  { %18874 = vst [vmem:[#allocation119_spill] sm:$0xff] %v15309_v16  ;;  %v2258_v26 = vand.u32 4294901760, %v2257_v44  ;;  %v15317_v17 = vand.u32 4294901760, %v15309_v16  ;;  %2242 = vmatprep.mubr.f32.mxu0 %v18787_v54  ;;  %5976 = vmatprep.mubr.f32.mxu1 %v18787_v54  ;;  %v1764_v21 = vsel %vm1672_vm0, %v1141_v60, 0  ;;  %v2713_v50 = vsub.f32 %v14444_v43, %v18477_v6 }
 0x129   :  { %v11238_v19 = vshrl.u32 %v694_v25, 15  ;;  %v2702_v0 = vand.u32 4294901760, %v2701_v39  ;;  %v15329_v47 = vand.u32 4294901760, %v1764_v21  ;;  %v374_v59 = vmul.u32 2654435769, %v310_v63 }
 0x12a   :  { %18875 = vst [vmem:[#allocation120_spill] sm:$0xff] %v15317_v17  ;;  %v2268_v44 = vsub.f32 %v15309_v16, %v15317_v17  ;;  %v18877_v55 = vand.u32 4294901760, %v14451_v34  ;;  %v2714_v18 = vand.u32 4294901760, %v2713_v50  ;;  %v18483_v60 = vand.u32 4294901760, %v14458_v29 }
 0x12b   :  { %18876 = vst [vmem:[#allocation121_spill] sm:$0xff] %v15329_v47  ;;  %v886_v11 = vxor.u32 %v11238_v19, %v694_v25  ;;  %v18482_v39 = vand.u32 4294901760, %v18878_v3  ;;  %2248 = vmatmul.mubr.f32.gmra.mrb[54].mxu0 %v2247_v40  ;;  %5982 = vmatmul.mubr.f32.gmra.mrb[54].mxu1 %v2247_v40  ;;  %v15337_v6 = vsub.f32 %v1764_v21, %v15329_v47 }
 0x12c   :  { %v6435_v14 = vsub.f32 %v14451_v34, %v18877_v55  ;;  %v2269_v45 = vand.u32 4294901760, %v2268_v44  ;;  %v439_v17 = vadd.s32 %v14169_v12, %v374_v59  ;;  %2253 = vmatprep.mubr.f32.mxu0 %v18787_v54  ;;  %5987 = vmatprep.mubr.f32.mxu1 %v18787_v54  ;;  %v11615_v25 = vpack.c.bf16 %v2714_v18, %v2702_v0  ;;  %v18881_v44 = vld [vmem:[#allocation21_spill] sm:$0xff] }
 0x12d   :  { %18879 = vst [vmem:[#allocation20_spill] sm:$0xff] %v15337_v6  ;;  %v950_v63 = vand.u32 16777215, %v886_v11  ;;  %v6447_v19 = vsub.f32 %v14458_v29, %v18483_v60  ;;  %v2707_v40 = vsub.f32 %v18878_v3, %v18482_v39  ;;  %v15349_v21 = vand.u32 4294901760, %v15337_v6 }
 0x12e   :  { %v6436_v16 = vand.u32 4294901760, %v6435_v14  ;;  %v11175_v50 = vshrl.u32 %v439_v17, 16  ;;  %v18486_v14 = vand.u32 4294901760, %v18881_v44  ;;  %v18492_v59 = vand.u32 4294901760, %v14516_v57  ;;  %11616 = vmatprep.subr.bf16.mxu0 %v11615_v25 }
 0x12f   :  { %18880 = vst [vmem:[#allocation122_spill] sm:$0xff] %v15349_v21  ;;  %vm1014_vm2 = vcmp.ge.s32.totalorder %v950_v63, 1677722  ;;  %v6448_v11 = vand.u32 4294901760, %v6447_v19  ;;  %v2708_v18 = vand.u32 4294901760, %v2707_v40  ;;  %v18491_v0 = vand.u32 4294901760, %v14518_v22  ;;  %2259 = vmatmul.mubr.f32.gmra.mrb[56].mxu0 %v2258_v26  ;;  %5993 = vmatmul.mubr.f32.gmra.mrb[56].mxu1 %v2258_v26 }
 0x130   :  { %v2279_v55 = vsub.f32 %v15337_v6, %v15349_v21  ;;  %v1142_v39 = vsel %vm1014_vm2, %v15283_v1, 0.0  ;;  %v631_v60 = vxor.u32 %v11175_v50, %v439_v17  ;;  %v2719_v27 = vsub.f32 %v18881_v44, %v18486_v14  ;;  %v50_v63 = vld [vmem:[%s18259_s1 + $0x108] sm:$0xff]  ;;  %2264 = vmatprep.mubr.f32.mxu0 %v18787_v54  ;;  %5998 = vmatprep.mubr.f32.mxu1 %v18787_v54  ;;  %v51_v21 = vld [vmem:[%s18259_s1 + $0x110] sm:$0xff] }
 0x131   :  { %v1767_v26 = vsel %vm1672_vm0, %v1142_v39, 0  ;;  %v11711_v25 = vpack.c.bf16 %v6448_v11, %v6436_v16  ;;  %v6441_v1 = vsub.f32 %v14516_v57, %v18492_v59  ;;  %v6453_v17 = vsub.f32 %v14518_v22, %v18491_v0  ;;  %v52_v0 = vld [vmem:[%s18259_s1 + $0x118] sm:$0xff] }
 0x132   :  { %v2280_v19 = vand.u32 4294901760, %v2279_v55  ;;  %v15372_v40 = vand.u32 4294901760, %v1767_v26  ;;  %v695_v50 = vmul.u32 2146121005, %v631_v60  ;;  %v2720_v14 = vand.u32 4294901760, %v2719_v27 }
 0x133   :  { %11712 = vmatprep.subr.bf16.mxu1 %v11711_v25  ;;  %v6442_v39 = vand.u32 4294901760, %v6441_v1  ;;  %v6454_v16 = vand.u32 4294901760, %v6453_v17  ;;  %v115_v11 = vadd.s32 264, %v14158_v8  ;;  %v15378_v6 = vmul.f32 1.1111112, %v50_v63  ;;  %2270 = vmatmul.mubr.f32.gmra.mrb[58].mxu0 %v2269_v45  ;;  %v53_v25 = vld [vmem:[%s18259_s1 + $0x120] sm:$0xff] }
 0x134   :  { %18882 = vst [vmem:[#allocation21_spill] sm:$0xff] %v15372_v40  ;;  %6004 = vmatmul.mubr.f32.gmra.mrb[58].mxu1 %v2269_v45  ;;  %v15384_v60 = vsub.f32 %v1767_v26, %v15372_v40  ;;  %v11239_v27 = vshrl.u32 %v695_v50, 15  ;;  %v11617_v55 = vpack.c.bf16 %v2720_v14, %v2708_v18  ;;  %v116_v59 = vadd.s32 272, %v14158_v8  ;;  %2275 = vmatprep.mubr.f32.mxu0 %v18787_v54  ;;  %v54_v40 = vld [vmem:[%s18259_s1 + $0x128] sm:$0xff] }
 0x135   :  { %6009 = vmatprep.mubr.f32.mxu1 %v18787_v54  ;;  %v11713_v63 = vpack.c.bf16 %v6454_v16, %v6442_v39  ;;  %v247_v1 = vmul.u32 64, %v115_v11  ;;  %v15392_v17 = vmul.f32 1.1111112, %v51_v21  ;;  %v117_v45 = vadd.s32 280, %v14158_v8 }
 0x136   :  { %18883 = vst [vmem:[#allocation123_spill] sm:$0xff] %v15384_v60  ;;  %v15396_v26 = vand.u32 4294901760, %v15384_v60  ;;  %v887_v14 = vxor.u32 %v11239_v27, %v695_v50  ;;  %11618 = vmatpush1.bf16.msra.mxu0 %v11617_v55  ;;  %v248_v18 = vmul.u32 64, %v116_v59  ;;  %v15398_v61 = vmul.f32 1.1111112, %v52_v0 }
 0x137   :  { %11714 = vmatpush1.bf16.msra.mxu1 %v11713_v63  ;;  %v311_v39 = vadd.s32 %v247_v1, %v14160_v9  ;;  %v249_v16 = vmul.u32 64, %v117_v45  ;;  %v118_v21 = vadd.s32 288, %v14158_v8  ;;  %v15405_v11 = vmul.f32 1.1111112, %v53_v25  ;;  %2281 = vmatmul.mubr.f32.gmra.mrb[60].mxu0 %v2280_v19 }
 0x138   :  { %18884 = vst [vmem:[#allocation124_spill] sm:$0xff] %v15396_v26  ;;  %6015 = vmatmul.mubr.f32.gmra.mrb[60].mxu1 %v2280_v19  ;;  %v2290_v50 = vsub.f32 %v15384_v60, %v15396_v26  ;;  %v951_v59 = vand.u32 16777215, %v887_v14  ;;  %v312_v0 = vadd.s32 %v248_v18, %v14160_v9  ;;  %v119_v27 = vadd.s32 296, %v14158_v8  ;;  %2286 = vmatprep.mubr.f32.mxu0 %v18787_v54 }
 0x139   :  { %6020 = vmatprep.mubr.f32.mxu1 %v18787_v54  ;;  %v375_v55 = vmul.u32 2654435769, %v311_v39  ;;  %v313_v63 = vadd.s32 %v249_v16, %v14160_v9  ;;  %v250_v1 = vmul.u32 64, %v118_v21  ;;  %v15414_v25 = vmul.f32 1.1111112, %v54_v40  ;;  %v55_v39 = vld [vmem:[%s18259_s1 + $0x130] sm:$0xff] }
 0x13a   :  { %v2291_v45 = vand.u32 4294901760, %v2290_v50  ;;  %vm1015_vm3 = vcmp.ge.s32.totalorder %v951_v59, 1677722  ;;  %v376_v19 = vmul.u32 2654435769, %v312_v0  ;;  %v251_v47 = vmul.u32 64, %v119_v27 }
 0x13b   :  { %v1143_v14 = vsel %vm1015_vm3, %v15303_v58, 0.0  ;;  %v440_v18 = vadd.s32 %v14169_v12, %v375_v55  ;;  %v377_v26 = vmul.u32 2654435769, %v313_v63  ;;  %v314_v60 = vadd.s32 %v250_v1, %v14160_v9 }
 0x13c   :  { %2292 = vmatmul.mubr.f32.gmra.mrb[62].mxu0 %v2291_v45  ;;  %6026 = vmatmul.mubr.f32.gmra.mrb[62].mxu1 %v2291_v45  ;;  %v1770_v40 = vsel %vm1672_vm0, %v1143_v14, 0  ;;  %v441_v16 = vadd.s32 %v14169_v12, %v376_v19  ;;  %v315_v21 = vadd.s32 %v251_v47, %v14160_v9  ;;  %v120_v50 = vadd.s32 304, %v14158_v8 }
 0x13d   :  { %2297 = vmatprep.mubr.f32.mxu0 %v18787_v54  ;;  %6031 = vmatprep.mubr.f32.mxu1 %v18787_v54  ;;  %v15428_v58 = vand.u32 4294901760, %v1770_v40  ;;  %v11176_v59 = vshrl.u32 %v440_v18, 16  ;;  %v442_v0 = vadd.s32 %v14169_v12, %v377_v26  ;;  %v378_v27 = vmul.u32 2654435769, %v314_v60 }
 0x13e   :  { %v11177_v55 = vshrl.u32 %v441_v16, 16  ;;  %v379_v63 = vmul.u32 2654435769, %v315_v21  ;;  %v252_v1 = vmul.u32 64, %v120_v50  ;;  %v15431_v45 = vmul.f32 1.1111112, %v55_v39 }
 0x13f   :  { %18885 = vst [vmem:[#allocation125_spill] sm:$0xff] %v15428_v58  ;;  %v15434_v19 = vsub.f32 %v1770_v40, %v15428_v58  ;;  %v632_v47 = vxor.u32 %v11176_v59, %v440_v18  ;;  %v11178_v14 = vshrl.u32 %v442_v0, 16  ;;  %v443_v33 = vadd.s32 %v14169_v12, %v378_v27 }
 0x140   :  { %v633_v49 = vxor.u32 %v11177_v55, %v441_v16  ;;  %v444_v31 = vadd.s32 %v14169_v12, %v379_v63  ;;  %v316_v36 = vadd.s32 %v252_v1, %v14160_v9  ;;  %v121_v26 = vadd.s32 312, %v14158_v8 }
 0x141   :  { %18886 = vst [vmem:[#allocation126_spill] sm:$0xff] %v15434_v19  ;;  %v15441_v60 = vand.u32 4294901760, %v15434_v19  ;;  %v696_v21 = vmul.u32 2146121005, %v632_v47  ;;  %v634_v39 = vxor.u32 %v11178_v14, %v442_v0  ;;  %v11179_v50 = vshrl.u32 %v443_v33, 16  ;;  %v56_v0 = vld [vmem:[%s18259_s1 + $0x138] sm:$0xff] }
 0x142   :  { %v697_v13 = vmul.u32 2146121005, %v633_v49  ;;  %v11180_v40 = vshrl.u32 %v444_v31, 16  ;;  %v380_v58 = vmul.u32 2654435769, %v316_v36  ;;  %v15444_v18 = vadd.s32 320, %v14158_v8 }
 0x143   :  { %18887 = vst [vmem:[#allocation127_spill] sm:$0xff] %v15441_v60  ;;  %v2301_v16 = vsub.f32 %v15434_v19, %v15441_v60  ;;  %v11240_v59 = vshrl.u32 %v696_v21, 15  ;;  %v698_v27 = vmul.u32 2146121005, %v634_v39  ;;  %v635_v55 = vxor.u32 %v11179_v50, %v443_v33 }
 0x144   :  { %v11241_v63 = vshrl.u32 %v697_v13, 15  ;;  %v636_v1 = vxor.u32 %v11180_v40, %v444_v31  ;;  %v445_v52 = vadd.s32 %v14169_v12, %v380_v58  ;;  %v253_v49 = vmul.u32 64, %v121_v26 }
 0x145   :  { %v2302_v47 = vand.u32 4294901760, %v2301_v16  ;;  %v888_v36 = vxor.u32 %v11240_v59, %v696_v21  ;;  %v11242_v14 = vshrl.u32 %v698_v27, 15  ;;  %v699_v56 = vmul.u32 2146121005, %v635_v55 }
 0x146   :  { %v889_v24 = vxor.u32 %v11241_v63, %v697_v13  ;;  %v700_v22 = vmul.u32 2146121005, %v636_v1  ;;  %v11181_v57 = vshrl.u32 %v445_v52, 16  ;;  %v317_v60 = vadd.s32 %v253_v49, %v14160_v9 }
 0x147   :  { %2303 = vmatmul.mubr.f32.gmra.mrb[64].mxu0 %v2302_v47  ;;  %6037 = vmatmul.mubr.f32.gmra.mrb[64].mxu1 %v2302_v47  ;;  %v952_v33 = vand.u32 16777215, %v888_v36  ;;  %v890_v31 = vxor.u32 %v11242_v14, %v698_v27  ;;  %v11243_v39 = vshrl.u32 %v699_v56, 15  ;;  %v15453_v58 = vmul.f32 1.1111112, %v56_v0 }
 0x148   :  { %2308 = vmatprep.mubr.f32.mxu0 %v18787_v54  ;;  %6042 = vmatprep.mubr.f32.mxu1 %v18787_v54  ;;  %v953_v26 = vand.u32 16777215, %v889_v24  ;;  %v11244_v21 = vshrl.u32 %v700_v22, 15  ;;  %v637_v50 = vxor.u32 %v11181_v57, %v445_v52  ;;  %v381_v40 = vmul.u32 2654435769, %v317_v60 }
 0x149   :  { %vm1016_vm4 = vcmp.ge.s32.totalorder %v952_v33, 1677722  ;;  %v954_v13 = vand.u32 16777215, %v890_v31  ;;  %v891_v16 = vxor.u32 %v11243_v39, %v699_v56  ;;  %v254_v59 = vmul.u32 64, %v15444_v18 }
 0x14a   :  { %v1144_v55 = vsel %vm1016_vm4, %v15378_v6, 0.0  ;;  %vm1017_vm5 = vcmp.ge.s32.totalorder %v953_v26, 1677722  ;;  %v892_v27 = vxor.u32 %v11244_v21, %v700_v22  ;;  %v701_v63 = vmul.u32 2146121005, %v637_v50 }
 0x14b   :  { %v1773_v1 = vsel %vm1672_vm0, %v1144_v55, 0  ;;  %v1145_v0 = vsel %vm1017_vm5, %v15392_v17, 0.0  ;;  %vm1018_vm6 = vcmp.ge.s32.totalorder %v954_v13, 1677722  ;;  %v955_v49 = vand.u32 16777215, %v891_v16 }
 0x14c   :  { %v15461_v24 = vand.u32 4294901760, %v1773_v1  ;;  %v1776_v57 = vsel %vm1672_vm0, %v1145_v0, 0  ;;  %v1146_v52 = vsel %vm1018_vm6, %v15398_v61, 0.0  ;;  %v956_v56 = vand.u32 16777215, %v892_v27 }
 0x14d   :  { %v15465_v60 = vand.u32 4294901760, %v1776_v57  ;;  %v1779_v6 = vsel %vm1672_vm0, %v1146_v52, 0  ;;  %vm1019_vm7 = vcmp.ge.s32.totalorder %v955_v49, 1677722  ;;  %v11245_v22 = vshrl.u32 %v701_v63, 15 }
 0x14e   :  { %18888 = vst [vmem:[#allocation128_spill] sm:$0xff] %v15461_v24  ;;  %v15469_v18 = vsub.f32 %v1773_v1, %v15461_v24  ;;  %v15471_v47 = vand.u32 4294901760, %v1779_v6  ;;  %v1147_v17 = vsel %vm1019_vm7, %v15405_v11, 0.0  ;;  %vm1020_vm8 = vcmp.ge.s32.totalorder %v956_v56, 1677722 }
 0x14f   :  { %18889 = vst [vmem:[#allocation129_spill] sm:$0xff] %v15465_v60  ;;  %v15475_v36 = vsub.f32 %v1776_v57, %v15465_v60  ;;  %v1782_v61 = vsel %vm1672_vm0, %v1147_v17, 0  ;;  %v1148_v14 = vsel %vm1020_vm8, %v15414_v25, 0.0  ;;  %v893_v33 = vxor.u32 %v11245_v22, %v701_v63 }
 0x150   :  { %18890 = vst [vmem:[#allocation130_spill] sm:$0xff] %v15469_v18  ;;  %18891 = vst [vmem:[#allocation131_spill] sm:$0xff] %v15471_v47  ;;  %v15480_v31 = vand.u32 4294901760, %v15469_v18  ;;  %v15483_v39 = vsub.f32 %v1779_v6, %v15471_v47  ;;  %v15485_v26 = vand.u32 4294901760, %v1782_v61  ;;  %v1785_v21 = vsel %vm1672_vm0, %v1148_v14, 0  ;;  %v58_v14 = vld [vmem:[%s18259_s1 + $0x148] sm:$0xff] }
 0x151   :  { %18892 = vst [vmem:[#allocation132_spill] sm:$0xff] %v15475_v36  ;;  %v15489_v11 = vand.u32 4294901760, %v15475_v36  ;;  %v15491_v50 = vand.u32 4294901760, %v1785_v21  ;;  %v957_v13 = vand.u32 16777215, %v893_v33  ;;  %v446_v16 = vadd.s32 %v14169_v12, %v381_v40 }
 0x152   :  { %18893 = vst [vmem:[#allocation133_spill] sm:$0xff] %v15480_v31  ;;  %18894 = vst [vmem:[#allocation134_spill] sm:$0xff] %v15483_v39  ;;  %v2312_v25 = vsub.f32 %v15469_v18, %v15480_v31  ;;  %v15497_v55 = vand.u32 4294901760, %v15483_v39  ;;  %v15500_v27 = vsub.f32 %v1782_v61, %v15485_v26  ;;  %v318_v63 = vadd.s32 %v254_v59, %v14160_v9  ;;  %v57_v59 = vld [vmem:[%s18259_s1 + $0x140] sm:$0xff] }
 0x153   :  { %18895 = vst [vmem:[#allocation135_spill] sm:$0xff] %v15485_v26  ;;  %18896 = vst [vmem:[#allocation136_spill] sm:$0xff] %v15489_v11  ;;  %v2323_v1 = vsub.f32 %v15475_v36, %v15489_v11  ;;  %v15506_v0 = vsub.f32 %v1785_v21, %v15491_v50  ;;  %vm1021_vm9 = vcmp.ge.s32.totalorder %v957_v13, 1677722  ;;  %v11182_v49 = vshrl.u32 %v446_v16, 16 }
 0x154   :  { %18897 = vst [vmem:[#allocation137_spill] sm:$0xff] %v15491_v50  ;;  %18898 = vst [vmem:[#allocation138_spill] sm:$0xff] %v15497_v55  ;;  %v2313_v40 = vand.u32 4294901760, %v2312_v25  ;;  %v2334_v57 = vsub.f32 %v15483_v39, %v15497_v55  ;;  %v15511_v52 = vand.u32 4294901760, %v15500_v27  ;;  %v1149_v56 = vsel %vm1021_vm9, %v15431_v45, 0.0 }
 0x155   :  { %18899 = vst [vmem:[#allocation139_spill] sm:$0xff] %v15500_v27  ;;  %18900 = vst [vmem:[#allocation140_spill] sm:$0xff] %v15506_v0  ;;  %v2324_v6 = vand.u32 4294901760, %v2323_v1  ;;  %v15518_v22 = vand.u32 4294901760, %v15506_v0  ;;  %v1788_v17 = vsel %vm1672_vm0, %v1149_v56, 0  ;;  %v638_v61 = vxor.u32 %v11182_v49, %v446_v16 }
 0x156   :  { %18901 = vst [vmem:[#allocation141_spill] sm:$0xff] %v15511_v52  ;;  %2314 = vmatmul.mubr.f32.gmra.mrb[66].mxu0 %v2313_v40  ;;  %6048 = vmatmul.mubr.f32.gmra.mrb[66].mxu1 %v2313_v40  ;;  %v2335_v33 = vand.u32 4294901760, %v2334_v57  ;;  %v2345_v45 = vsub.f32 %v15500_v27, %v15511_v52  ;;  %v15526_v21 = vand.u32 4294901760, %v1788_v17  ;;  %v382_v13 = vmul.u32 2654435769, %v318_v63  ;;  %v59_v40 = vld [vmem:[%s18259_s1 + $0x150] sm:$0xff] }
 0x157   :  { %18902 = vst [vmem:[#allocation142_spill] sm:$0xff] %v15518_v22  ;;  %2319 = vmatprep.mubr.f32.mxu0 %v18787_v54  ;;  %6053 = vmatprep.mubr.f32.mxu1 %v18787_v54  ;;  %v2356_v16 = vsub.f32 %v15506_v0, %v15518_v22  ;;  %v702_v25 = vmul.u32 2146121005, %v638_v61  ;;  %v15532_v1 = vmul.f32 1.1111112, %v57_v59  ;;  %v123_v49 = vadd.s32 328, %v14158_v8 }
 0x158   :  { %18903 = vst [vmem:[#allocation143_spill] sm:$0xff] %v15526_v21  ;;  %v2346_v57 = vand.u32 4294901760, %v2345_v45  ;;  %v15539_v56 = vsub.f32 %v1788_v17, %v15526_v21  ;;  %v447_v63 = vadd.s32 %v14169_v12, %v382_v13  ;;  %v15542_v52 = vmul.f32 1.1111112, %v58_v14  ;;  %v60_v61 = vld [vmem:[%s18259_s1 + $0x158] sm:$0xff]  ;;  %v61_v13 = vld [vmem:[%s18259_s1 + $0x160] sm:$0xff] }
 0x159   :  { %v15547_v59 = vand.u32 4294901760, %v2356_v16  ;;  %v11246_v22 = vshrl.u32 %v702_v25, 15  ;;  %v255_v55 = vmul.u32 64, %v123_v49  ;;  %v124_v11 = vadd.s32 336, %v14158_v8 }
 0x15a   :  { %18904 = vst [vmem:[#allocation144_spill] sm:$0xff] %v15539_v56  ;;  %2325 = vmatmul.mubr.f32.gmra.mrb[68].mxu0 %v2324_v6  ;;  %6059 = vmatmul.mubr.f32.gmra.mrb[68].mxu1 %v2324_v6  ;;  %v15551_v45 = vand.u32 4294901760, %v15539_v56  ;;  %v11183_v17 = vshrl.u32 %v447_v63, 16  ;;  %v15553_v31 = vmul.f32 1.1111112, %v59_v40  ;;  %v125_v14 = vadd.s32 344, %v14158_v8 }
 0x15b   :  { %2330 = vmatprep.mubr.f32.mxu0 %v18787_v54  ;;  %6064 = vmatprep.mubr.f32.mxu1 %v18787_v54  ;;  %v894_v16 = vxor.u32 %v11246_v22, %v702_v25  ;;  %v319_v49 = vadd.s32 %v255_v55, %v14160_v9  ;;  %v256_v6 = vmul.u32 64, %v124_v11  ;;  %v15562_v0 = vmul.f32 1.1111112, %v60_v61 }
 0x15c   :  { %18905 = vst [vmem:[#allocation145_spill] sm:$0xff] %v15551_v45  ;;  %v2367_v40 = vsub.f32 %v15539_v56, %v15551_v45  ;;  %v639_v27 = vxor.u32 %v11183_v17, %v447_v63  ;;  %v257_v39 = vmul.u32 64, %v125_v14  ;;  %v126_v36 = vadd.s32 352, %v14158_v8 }
 0x15d   :  { %v958_v18 = vand.u32 16777215, %v894_v16  ;;  %v383_v19 = vmul.u32 2654435769, %v319_v49  ;;  %v320_v21 = vadd.s32 %v256_v6, %v14160_v9  ;;  %v15568_v50 = vmul.f32 1.1111112, %v61_v13 }
 0x15e   :  { %2336 = vmatmul.mubr.f32.gmra.mrb[70].mxu0 %v2335_v33  ;;  %6070 = vmatmul.mubr.f32.gmra.mrb[70].mxu1 %v2335_v33  ;;  %v2368_v22 = vand.u32 4294901760, %v2367_v40  ;;  %v703_v55 = vmul.u32 2146121005, %v639_v27  ;;  %v321_v11 = vadd.s32 %v257_v39, %v14160_v9  ;;  %v258_v25 = vmul.u32 64, %v126_v36  ;;  %v62_v36 = vld [vmem:[%s18259_s1 + $0x168] sm:$0xff] }
 0x15f   :  { %2341 = vmatprep.mubr.f32.mxu0 %v18787_v54  ;;  %6075 = vmatprep.mubr.f32.mxu1 %v18787_v54  ;;  %vm1022_vm10 = vcmp.ge.s32.totalorder %v958_v18, 1677722  ;;  %v448_v63 = vadd.s32 %v14169_v12, %v383_v19  ;;  %v384_v61 = vmul.u32 2654435769, %v320_v21  ;;  %v127_v17 = vadd.s32 360, %v14158_v8 }
 0x160   :  { %v1150_v14 = vsel %vm1022_vm10, %v15453_v58, 0.0  ;;  %v11247_v13 = vshrl.u32 %v703_v55, 15  ;;  %v385_v16 = vmul.u32 2654435769, %v321_v11  ;;  %v322_v33 = vadd.s32 %v258_v25, %v14160_v9 }
 0x161   :  { %v1791_v39 = vsel %vm1672_vm0, %v1150_v14, 0  ;;  %v11184_v27 = vshrl.u32 %v448_v63, 16  ;;  %v449_v18 = vadd.s32 %v14169_v12, %v384_v61  ;;  %v259_v49 = vmul.u32 64, %v127_v17 }
 0x162   :  { %2347 = vmatmul.mubr.f32.gmra.mrb[72].mxu0 %v2346_v57  ;;  %6081 = vmatmul.mubr.f32.gmra.mrb[72].mxu1 %v2346_v57  ;;  %v15582_v19 = vand.u32 4294901760, %v1791_v39  ;;  %v895_v21 = vxor.u32 %v11247_v13, %v703_v55  ;;  %v450_v58 = vadd.s32 %v14169_v12, %v385_v16  ;;  %v386_v6 = vmul.u32 2654435769, %v322_v33 }
 0x163   :  { %2352 = vmatprep.mubr.f32.mxu0 %v18787_v54  ;;  %6086 = vmatprep.mubr.f32.mxu1 %v18787_v54  ;;  %v640_v40 = vxor.u32 %v11184_v27, %v448_v63  ;;  %v11185_v11 = vshrl.u32 %v449_v18, 16  ;;  %v323_v25 = vadd.s32 %v259_v49, %v14160_v9  ;;  %v15588_v14 = vmul.f32 1.1111112, %v62_v36 }
 0x164   :  { %18906 = vst [vmem:[#allocation146_spill] sm:$0xff] %v15582_v19  ;;  %v15591_v61 = vsub.f32 %v1791_v39, %v15582_v19  ;;  %v959_v57 = vand.u32 16777215, %v895_v21  ;;  %v11186_v17 = vshrl.u32 %v450_v58, 16  ;;  %v451_v55 = vadd.s32 %v14169_v12, %v386_v6 }
 0x165   :  { %v704_v13 = vmul.u32 2146121005, %v640_v40  ;;  %v641_v16 = vxor.u32 %v11185_v11, %v449_v18  ;;  %v387_v33 = vmul.u32 2654435769, %v323_v25  ;;  %v128_v45 = vadd.s32 368, %v14158_v8 }
 0x166   :  { %18907 = vst [vmem:[#allocation147_spill] sm:$0xff] %v15591_v61  ;;  %2358 = vmatmul.mubr.f32.gmra.mrb[74].mxu0 %v15547_v59  ;;  %6092 = vmatmul.mubr.f32.gmra.mrb[74].mxu1 %v15547_v59  ;;  %v15598_v63 = vand.u32 4294901760, %v15591_v61  ;;  %vm1023_vm11 = vcmp.ge.s32.totalorder %v959_v57, 1677722  ;;  %v642_v36 = vxor.u32 %v11186_v17, %v450_v58  ;;  %v11187_v39 = vshrl.u32 %v451_v55, 16 }
 0x167   :  { %2363 = vmatprep.mubr.f32.mxu0 %v18787_v54  ;;  %6097 = vmatprep.mubr.f32.mxu1 %v18787_v54  ;;  %v1151_v27 = vsel %vm1023_vm11, %v15532_v1, 0.0  ;;  %v11248_v18 = vshrl.u32 %v704_v13, 15  ;;  %v705_v49 = vmul.u32 2146121005, %v641_v16  ;;  %v452_v21 = vadd.s32 %v14169_v12, %v387_v33  ;;  %v63_v1 = vld [vmem:[%s18259_s1 + $0x170] sm:$0xff] }
 0x168   :  { %18908 = vst [vmem:[#allocation148_spill] sm:$0xff] %v15598_v63  ;;  %v2378_v6 = vsub.f32 %v15591_v61, %v15598_v63  ;;  %v1794_v59 = vsel %vm1672_vm0, %v1151_v27, 0  ;;  %v706_v40 = vmul.u32 2146121005, %v642_v36  ;;  %v643_v11 = vxor.u32 %v11187_v39, %v451_v55 }
 0x169   :  { %v15607_v25 = vand.u32 4294901760, %v1794_v59  ;;  %v896_v58 = vxor.u32 %v11248_v18, %v704_v13  ;;  %v11249_v57 = vshrl.u32 %v705_v49, 15  ;;  %v11188_v17 = vshrl.u32 %v452_v21, 16 }
 0x16a   :  { %2369 = vmatmul.mubr.f32.gmra.mrb[76].mxu0 %v2368_v22  ;;  %6103 = vmatmul.mubr.f32.gmra.mrb[76].mxu1 %v2368_v22  ;;  %v2379_v16 = vand.u32 4294901760, %v2378_v6  ;;  %v11250_v33 = vshrl.u32 %v706_v40, 15  ;;  %v707_v56 = vmul.u32 2146121005, %v643_v11  ;;  %v260_v19 = vmul.u32 64, %v128_v45 }
 0x16b   :  { %18909 = vst [vmem:[#allocation149_spill] sm:$0xff] %v15607_v25  ;;  %2374 = vmatprep.mubr.f32.mxu0 %v18787_v54  ;;  %6108 = vmatprep.mubr.f32.mxu1 %v18787_v54  ;;  %v15615_v55 = vsub.f32 %v1794_v59, %v15607_v25  ;;  %v960_v13 = vand.u32 16777215, %v896_v58  ;;  %v897_v36 = vxor.u32 %v11249_v57, %v705_v49  ;;  %v15618_v61 = vmul.f32 1.1111112, %v63_v1 }
 0x16c   :  { %v644_v39 = vxor.u32 %v11188_v17, %v452_v21  ;;  %v898_v27 = vxor.u32 %v11250_v33, %v706_v40  ;;  %v11251_v18 = vshrl.u32 %v707_v56, 15  ;;  %v324_v63 = vadd.s32 %v260_v19, %v14160_v9 }
 0x16d   :  { %18910 = vst [vmem:[#allocation150_spill] sm:$0xff] %v15615_v55  ;;  %v15621_v22 = vand.u32 4294901760, %v15615_v55  ;;  %vm1024_vm12 = vcmp.ge.s32.totalorder %v960_v13, 1677722  ;;  %v961_v45 = vand.u32 16777215, %v897_v36 }
 0x16e   :  { %v129_v6 = vadd.s32 376, %v14158_v8  ;;  %2380 = vmatmul.mubr.f32.gmra.mrb[78].mxu0 %v2379_v16  ;;  %6114 = vmatmul.mubr.f32.gmra.mrb[78].mxu1 %v2379_v16  ;;  %v1152_v59 = vsel %vm1024_vm12, %v15542_v52, 0.0  ;;  %v962_v11 = vand.u32 16777215, %v898_v27  ;;  %v899_v49 = vxor.u32 %v11251_v18, %v707_v56 }
 0x16f   :  { %18911 = vst [vmem:[#allocation151_spill] sm:$0xff] %v15621_v22  ;;  %v708_v21 = vmul.u32 2146121005, %v644_v39  ;;  %2385 = vmatprep.mubr.f32.mxu0 %v18787_v54  ;;  %6119 = vmatprep.mubr.f32.mxu1 %v18787_v54  ;;  %v2389_v19 = vsub.f32 %v15615_v55, %v15621_v22  ;;  %v1797_v40 = vsel %vm1672_vm0, %v1152_v59, 0  ;;  %vm1025_vm13 = vcmp.ge.s32.totalorder %v961_v45, 1677722 }
 0x170   :  { %v388_v58 = vmul.u32 2654435769, %v324_v63  ;;  %v15630_v57 = vand.u32 4294901760, %v1797_v40  ;;  %v1153_v17 = vsel %vm1025_vm13, %v15553_v31, 0.0  ;;  %vm1026_vm14 = vcmp.ge.s32.totalorder %v962_v11, 1677722 }
 0x171   :  { %v963_v52 = vand.u32 16777215, %v899_v49  ;;  %v2390_v1 = vand.u32 4294901760, %v2389_v19  ;;  %v1800_v56 = vsel %vm1672_vm0, %v1153_v17, 0  ;;  %v1154_v16 = vsel %vm1026_vm14, %v15562_v0, 0.0  ;;  %v64_v0 = vld [vmem:[%s18259_s1 + $0x178] sm:$0xff] }
 0x172   :  { %18912 = vst [vmem:[#allocation152_spill] sm:$0xff] %v15630_v57  ;;  %v11252_v33 = vshrl.u32 %v708_v21, 15  ;;  %v15636_v13 = vsub.f32 %v1797_v40, %v15630_v57  ;;  %v15638_v36 = vand.u32 4294901760, %v1800_v56  ;;  %v1803_v39 = vsel %vm1672_vm0, %v1154_v16, 0 }
 0x173   :  { %vm1027_vm15 = vcmp.ge.s32.totalorder %v963_v52, 1677722  ;;  %2391 = vmatmul.mubr.f32.gmra.mrb[80].mxu0 %v2390_v1  ;;  %6125 = vmatmul.mubr.f32.gmra.mrb[80].mxu1 %v2390_v1  ;;  %v15641_v63 = vand.u32 4294901760, %v1803_v39  ;;  %v453_v18 = vadd.s32 %v14169_v12, %v388_v58  ;;  %v15668_v1 = vmul.f32 1.1111112, %v64_v0  ;;  %v65_v0 = vld [vmem:[%s18259_s1 + $0x180] sm:$0xff] }
 0x174   :  { %18913 = vst [vmem:[#allocation153_spill] sm:$0xff] %v15636_v13  ;;  %18914 = vst [vmem:[#allocation154_spill] sm:$0xff] %v15638_v36  ;;  %v1155_v31 = vsel %vm1027_vm15, %v15568_v50, 0.0  ;;  %v900_v27 = vxor.u32 %v11252_v33, %v708_v21  ;;  %2396 = vmatprep.mubr.f32.mxu0 %v18787_v54  ;;  %6130 = vmatprep.mubr.f32.mxu1 %v18787_v54  ;;  %v15651_v45 = vand.u32 4294901760, %v15636_v13  ;;  %v261_v50 = vmul.u32 64, %v129_v6 }
 0x175   :  { %18915 = vst [vmem:[#allocation155_spill] sm:$0xff] %v15641_v63  ;;  %v15654_v59 = vsub.f32 %v1800_v56, %v15638_v36  ;;  %v1806_v11 = vsel %vm1672_vm0, %v1155_v31, 0  ;;  %v15658_v49 = vsub.f32 %v1803_v39, %v15641_v63  ;;  %v11189_v40 = vshrl.u32 %v453_v18, 16 }
 0x176   :  { %18916 = vst [vmem:[#allocation156_spill] sm:$0xff] %v15651_v45  ;;  %v15660_v21 = vand.u32 4294901760, %v1806_v11  ;;  %v964_v19 = vand.u32 16777215, %v900_v27  ;;  %v2400_v58 = vsub.f32 %v15636_v13, %v15651_v45  ;;  %v325_v52 = vadd.s32 %v261_v50, %v14160_v9 }
 0x177   :  { %18917 = vst [vmem:[#allocation157_spill] sm:$0xff] %v15654_v59  ;;  %18918 = vst [vmem:[#allocation158_spill] sm:$0xff] %v15658_v49  ;;  %v15665_v17 = vand.u32 4294901760, %v15654_v59  ;;  %v15671_v56 = vand.u32 4294901760, %v15658_v49  ;;  %v645_v16 = vxor.u32 %v11189_v40, %v453_v18  ;;  %v18585_v55 = vand.u32 4294901760, %v14548_v41 }
 0x178   :  { %18919 = vst [vmem:[#allocation159_spill] sm:$0xff] %v15660_v21  ;;  %v15674_v6 = vsub.f32 %v1806_v11, %v15660_v21  ;;  %vm1028_vm1 = vcmp.ge.s32.totalorder %v964_v19, 1677722  ;;  %v2401_v33 = vand.u32 4294901760, %v2400_v58  ;;  %v389_v27 = vmul.u32 2654435769, %v325_v52 }
 0x179   :  { %18920 = vst [vmem:[#allocation160_spill] sm:$0xff] %v15665_v17  ;;  %18921 = vst [vmem:[#allocation161_spill] sm:$0xff] %v15671_v56  ;;  %v2411_v39 = vsub.f32 %v15654_v59, %v15665_v17  ;;  %v1156_v31 = vsel %vm1028_vm1, %v15588_v14, 0.0  ;;  %v2422_v50 = vsub.f32 %v15658_v49, %v15671_v56  ;;  %v709_v18 = vmul.u32 2146121005, %v645_v16  ;;  %v18926_v59 = vld [vmem:[#allocation26_spill] sm:$0xff] }
 0x17a   :  { %18922 = vst [vmem:[#allocation162_spill] sm:$0xff] %v15674_v6  ;;  %v15685_v45 = vand.u32 4294901760, %v15674_v6  ;;  %v1809_v11 = vsel %vm1672_vm0, %v1156_v31, 0  ;;  %2402 = vmatmul.mubr.f32.gmra.mrb[82].mxu0 %v2401_v33  ;;  %6136 = vmatmul.mubr.f32.gmra.mrb[82].mxu1 %v2401_v33  ;;  %v454_v14 = vadd.s32 %v14169_v12, %v389_v27  ;;  %v130_v58 = vadd.s32 384, %v14158_v8 }
 0x17b   :  { %v2412_v19 = vand.u32 4294901760, %v2411_v39  ;;  %v15688_v40 = vand.u32 4294901760, %v1809_v11  ;;  %2407 = vmatprep.mubr.f32.mxu0 %v18787_v54  ;;  %6141 = vmatprep.mubr.f32.mxu1 %v18787_v54  ;;  %v2423_v52 = vand.u32 4294901760, %v2422_v50  ;;  %v11253_v17 = vshrl.u32 %v709_v18, 15 }
 0x17c   :  { %18923 = vst [vmem:[#allocation163_spill] sm:$0xff] %v15685_v45  ;;  %v2433_v56 = vsub.f32 %v15674_v6, %v15685_v45  ;;  %v15696_v31 = vmul.f32 1.1111112, %v65_v0  ;;  %v11190_v33 = vshrl.u32 %v454_v14, 16  ;;  %v262_v39 = vmul.u32 64, %v130_v58 }
 0x17d   :  { %18924 = vst [vmem:[#allocation164_spill] sm:$0xff] %v15688_v40  ;;  %v15699_v16 = vsub.f32 %v1809_v11, %v15688_v40  ;;  %v18581_v27 = vand.u32 4294901760, %v14533_v51  ;;  %v901_v49 = vxor.u32 %v11253_v17, %v709_v18  ;;  %v18584_v13 = vand.u32 4294901760, %v18926_v59 }
 0x17e   :  { %v2434_v22 = vand.u32 4294901760, %v2433_v56  ;;  %2413 = vmatmul.mubr.f32.gmra.mrb[84].mxu0 %v2412_v19  ;;  %6147 = vmatmul.mubr.f32.gmra.mrb[84].mxu1 %v2412_v19  ;;  %v646_v0 = vxor.u32 %v11190_v33, %v454_v14  ;;  %v326_v45 = vadd.s32 %v262_v39, %v14160_v9  ;;  %v6459_v18 = vsub.f32 %v14548_v41, %v18585_v55 }
 0x17f   :  { %18925 = vst [vmem:[#allocation165_spill] sm:$0xff] %v15699_v16  ;;  %v15705_v50 = vand.u32 4294901760, %v15699_v16  ;;  %v2725_v11 = vsub.f32 %v14533_v51, %v18581_v27  ;;  %2418 = vmatprep.mubr.f32.mxu0 %v18787_v54  ;;  %6152 = vmatprep.mubr.f32.mxu1 %v18787_v54  ;;  %v965_v17 = vand.u32 16777215, %v901_v49  ;;  %v2737_v56 = vsub.f32 %v18926_v59, %v18584_v13 }
 0x180   :  { %v18590_v19 = vand.u32 4294901760, %v14552_v62  ;;  %v710_v58 = vmul.u32 2146121005, %v646_v0  ;;  %v390_v33 = vmul.u32 2654435769, %v326_v45  ;;  %v6460_v6 = vand.u32 4294901760, %v6459_v18 }
 0x181   :  { %18927 = vst [vmem:[#allocation26_spill] sm:$0xff] %v15705_v50  ;;  %v2444_v14 = vsub.f32 %v15699_v16, %v15705_v50  ;;  %v2726_v39 = vand.u32 4294901760, %v2725_v11  ;;  %vm1029_vm2 = vcmp.ge.s32.totalorder %v965_v17, 1677722  ;;  %v2738_v27 = vand.u32 4294901760, %v2737_v56 }
 0x182   :  { %v6471_v49 = vsub.f32 %v14552_v62, %v18590_v19  ;;  %2424 = vmatmul.mubr.f32.gmra.mrb[86].mxu0 %v2423_v52  ;;  %6158 = vmatmul.mubr.f32.gmra.mrb[86].mxu1 %v2423_v52  ;;  %v1157_v55 = vsel %vm1029_vm2, %v15618_v61, 0.0  ;;  %v11254_v40 = vshrl.u32 %v710_v58, 15  ;;  %v455_v21 = vadd.s32 %v14169_v12, %v390_v33 }
 0x183   :  { %v2445_v13 = vand.u32 4294901760, %v2444_v14  ;;  %2429 = vmatprep.mubr.f32.mxu0 %v18787_v54  ;;  %6163 = vmatprep.mubr.f32.mxu1 %v18787_v54  ;;  %v1812_v45 = vsel %vm1672_vm0, %v1157_v55, 0  ;;  %v11619_v0 = vpack.c.bf16 %v2738_v27, %v2726_v39  ;;  %v18594_v17 = vand.u32 4294901760, %v14568_v28 }
 0x184   :  { %v6472_v11 = vand.u32 4294901760, %v6471_v49  ;;  %v15731_v56 = vand.u32 4294901760, %v1812_v45  ;;  %v902_v18 = vxor.u32 %v11254_v40, %v710_v58  ;;  %v11191_v52 = vshrl.u32 %v455_v21, 16 }
 0x185   :  { %v18592_v14 = vand.u32 4294901760, %v14570_v2  ;;  %11620 = vmatprep.subr.bf16.mxu0 %v11619_v0  ;;  %v2731_v33 = vsub.f32 %v14568_v28, %v18594_v17  ;;  %v18591_v19 = vand.u32 4294901760, %v14588_v20  ;;  %v18593_v55 = vand.u32 4294901760, %v14597_v37 }
 0x186   :  { %18928 = vst [vmem:[#allocation166_spill] sm:$0xff] %v15731_v56  ;;  %v11715_v61 = vpack.c.bf16 %v6472_v11, %v6460_v6  ;;  %2435 = vmatmul.mubr.f32.gmra.mrb[88].mxu0 %v2434_v22  ;;  %6169 = vmatmul.mubr.f32.gmra.mrb[88].mxu1 %v2434_v22  ;;  %v15740_v27 = vsub.f32 %v1812_v45, %v15731_v56  ;;  %v966_v39 = vand.u32 16777215, %v902_v18  ;;  %v131_v45 = vadd.s32 392, %v14158_v8 }
 0x187   :  { %v647_v40 = vxor.u32 %v11191_v52, %v455_v21  ;;  %v2743_v58 = vsub.f32 %v14570_v2, %v18592_v14  ;;  %2440 = vmatprep.mubr.f32.mxu0 %v18787_v54  ;;  %6174 = vmatprep.mubr.f32.mxu1 %v18787_v54  ;;  %v2732_v6 = vand.u32 4294901760, %v2731_v33  ;;  %v6465_v49 = vsub.f32 %v14588_v20, %v18591_v19  ;;  %v66_v21 = vld [vmem:[%s18259_s1 + $0x188] sm:$0xff] }
 0x188   :  { %18929 = vst [vmem:[#allocation167_spill] sm:$0xff] %v15740_v27  ;;  %v6477_v22 = vsub.f32 %v14597_v37, %v18593_v55  ;;  %v15758_v0 = vand.u32 4294901760, %v15740_v27  ;;  %vm1030_vm3 = vcmp.ge.s32.totalorder %v966_v39, 1677722  ;;  %11716 = vmatprep.subr.bf16.mxu1 %v11715_v61  ;;  %v263_v14 = vmul.u32 64, %v131_v45  ;;  %v67_v55 = vld [vmem:[%s18259_s1 + $0x190] sm:$0xff] }
 0x189   :  { %v711_v11 = vmul.u32 2146121005, %v647_v40  ;;  %v2744_v18 = vand.u32 4294901760, %v2743_v58  ;;  %v1158_v52 = vsel %vm1030_vm3, %v15668_v1, 0.0  ;;  %v6466_v33 = vand.u32 4294901760, %v6465_v49  ;;  %v68_v1 = vld [vmem:[%s18259_s1 + $0x198] sm:$0xff] }
 0x18a   :  { %18930 = vst [vmem:[#allocation168_spill] sm:$0xff] %v15758_v0  ;;  %v6478_v19 = vand.u32 4294901760, %v6477_v22  ;;  %2446 = vmatmul.mubr.f32.gmra.mrb[90].mxu0 %v2445_v13  ;;  %6180 = vmatmul.mubr.f32.gmra.mrb[90].mxu1 %v2445_v13  ;;  %v2455_v17 = vsub.f32 %v15740_v27, %v15758_v0  ;;  %v1815_v50 = vsel %vm1672_vm0, %v1158_v52, 0  ;;  %v327_v13 = vadd.s32 %v263_v14, %v14160_v9  ;;  %v69_v22 = vld [vmem:[%s18259_s1 + $0x1a0] sm:$0xff] }
 0x18b   :  { %v11255_v39 = vshrl.u32 %v711_v11, 15  ;;  %v11621_v40 = vpack.c.bf16 %v2744_v18, %v2732_v6  ;;  %2451 = vmatprep.mubr.f32.mxu0 %v18787_v54  ;;  %6185 = vmatprep.mubr.f32.mxu1 %v18787_v54  ;;  %v15772_v61 = vand.u32 4294901760, %v1815_v50  ;;  %v15775_v49 = vmul.f32 1.1111112, %v66_v21 }
 0x18c   :  { %v11717_v58 = vpack.c.bf16 %v6478_v19, %v6466_v33  ;;  %v2456_v6 = vand.u32 4294901760, %v2455_v17  ;;  %v132_v18 = vadd.s32 400, %v14158_v8  ;;  %v15781_v52 = vmul.f32 1.1111112, %v67_v55  ;;  %v70_v33 = vld [vmem:[%s18259_s1 + $0x1a8] sm:$0xff] }
 0x18d   :  { %18931 = vst [vmem:[#allocation169_spill] sm:$0xff] %v15772_v61  ;;  %v903_v45 = vxor.u32 %v11255_v39, %v711_v11  ;;  %11622 = vmatpush1.bf16.msra.mxu0 %v11621_v40  ;;  %v15784_v0 = vsub.f32 %v1815_v50, %v15772_v61  ;;  %v391_v19 = vmul.u32 2654435769, %v327_v13  ;;  %v133_v14 = vadd.s32 408, %v14158_v8 }
 0x18e   :  { %11718 = vmatpush1.bf16.msra.mxu1 %v11717_v58  ;;  %v15787_v21 = vmul.f32 1.1111112, %v68_v1  ;;  %2457 = vmatmul.mubr.f32.gmra.mrb[92].mxu0 %v2456_v6  ;;  %v264_v11 = vmul.u32 64, %v132_v18  ;;  %v134_v55 = vadd.s32 416, %v14158_v8  ;;  %v15793_v39 = vmul.f32 1.1111112, %v69_v22 }
 0x18f   :  { %18932 = vst [vmem:[#allocation170_spill] sm:$0xff] %v15784_v0  ;;  %6191 = vmatmul.mubr.f32.gmra.mrb[92].mxu1 %v2456_v6  ;;  %v967_v17 = vand.u32 16777215, %v903_v45  ;;  %2462 = vmatprep.mubr.f32.mxu0 %v18787_v54  ;;  %v15798_v50 = vand.u32 4294901760, %v15784_v0  ;;  %v456_v40 = vadd.s32 %v14169_v12, %v391_v19  ;;  %v265_v1 = vmul.u32 64, %v133_v14 }
 0x190   :  { %6196 = vmatprep.mubr.f32.mxu1 %v18787_v54  ;;  %v135_v58 = vadd.s32 424, %v14158_v8  ;;  %v328_v13 = vadd.s32 %v264_v11, %v14160_v9  ;;  %v266_v6 = vmul.u32 64, %v134_v55  ;;  %v15803_v45 = vmul.f32 1.1111112, %v70_v33 }
 0x191   :  { %18933 = vst [vmem:[#allocation171_spill] sm:$0xff] %v15798_v50  ;;  %vm1031_vm4 = vcmp.ge.s32.totalorder %v967_v17, 1677722  ;;  %v2466_v22 = vsub.f32 %v15784_v0, %v15798_v50  ;;  %v11192_v27 = vshrl.u32 %v456_v40, 16  ;;  %v329_v16 = vadd.s32 %v265_v1, %v14160_v9  ;;  %v71_v17 = vld [vmem:[%s18259_s1 + $0x1b0] sm:$0xff] }
 0x192   :  { %v1159_v18 = vsel %vm1031_vm4, %v15696_v31, 0.0  ;;  %v392_v19 = vmul.u32 2654435769, %v328_v13  ;;  %v330_v14 = vadd.s32 %v266_v6, %v14160_v9  ;;  %v267_v56 = vmul.u32 64, %v135_v58 }
 0x193   :  { %v1818_v61 = vsel %vm1672_vm0, %v1159_v18, 0  ;;  %v2467_v33 = vand.u32 4294901760, %v2466_v22  ;;  %v648_v55 = vxor.u32 %v11192_v27, %v456_v40  ;;  %v393_v50 = vmul.u32 2654435769, %v329_v16 }
 0x194   :  { %v15814_v11 = vand.u32 4294901760, %v1818_v61  ;;  %v457_v31 = vadd.s32 %v14169_v12, %v392_v19  ;;  %v394_v0 = vmul.u32 2654435769, %v330_v14  ;;  %v331_v1 = vadd.s32 %v267_v56, %v14160_v9 }
 0x195   :  { %v136_v18 = vadd.s32 432, %v14158_v8  ;;  %2468 = vmatmul.mubr.f32.gmra.mrb[94].mxu0 %v2467_v33  ;;  %6202 = vmatmul.mubr.f32.gmra.mrb[94].mxu1 %v2467_v33  ;;  %v712_v13 = vmul.u32 2146121005, %v648_v55  ;;  %v458_v6 = vadd.s32 %v14169_v12, %v393_v50  ;;  %v15823_v22 = vmul.f32 1.1111112, %v71_v17 }
 0x196   :  { %18934 = vst [vmem:[#allocation172_spill] sm:$0xff] %v15814_v11  ;;  %v15820_v58 = vsub.f32 %v1818_v61, %v15814_v11  ;;  %2473 = vmatprep.mubr.f32.mxu0 %v18787_v54  ;;  %6207 = vmatprep.mubr.f32.mxu1 %v18787_v54  ;;  %v11193_v16 = vshrl.u32 %v457_v31, 16  ;;  %v459_v27 = vadd.s32 %v14169_v12, %v394_v0  ;;  %v395_v56 = vmul.u32 2654435769, %v331_v1 }
 0x197   :  { %v268_v40 = vmul.u32 64, %v136_v18  ;;  %v11256_v14 = vshrl.u32 %v712_v13, 15  ;;  %v11194_v61 = vshrl.u32 %v458_v6, 16  ;;  %v137_v33 = vadd.s32 440, %v14158_v8 }
 0x198   :  { %18935 = vst [vmem:[#allocation173_spill] sm:$0xff] %v15820_v58  ;;  %v15829_v19 = vand.u32 4294901760, %v15820_v58  ;;  %v649_v55 = vxor.u32 %v11193_v16, %v457_v31  ;;  %v11195_v50 = vshrl.u32 %v459_v27, 16  ;;  %v460_v17 = vadd.s32 %v14169_v12, %v395_v56 }
 0x199   :  { %v332_v11 = vadd.s32 %v268_v40, %v14160_v9  ;;  %v904_v36 = vxor.u32 %v11256_v14, %v712_v13  ;;  %v650_v0 = vxor.u32 %v11194_v61, %v458_v6  ;;  %v269_v1 = vmul.u32 64, %v137_v33 }
 0x19a   :  { %18936 = vst [vmem:[#allocation174_spill] sm:$0xff] %v15829_v19  ;;  %v2477_v63 = vsub.f32 %v15820_v58, %v15829_v19  ;;  %v713_v18 = vmul.u32 2146121005, %v649_v55  ;;  %v651_v57 = vxor.u32 %v11195_v50, %v459_v27  ;;  %v11196_v25 = vshrl.u32 %v460_v17, 16 }
 0x19b   :  { %v396_v26 = vmul.u32 2654435769, %v332_v11  ;;  %v968_v60 = vand.u32 16777215, %v904_v36  ;;  %v714_v24 = vmul.u32 2146121005, %v650_v0  ;;  %v333_v31 = vadd.s32 %v269_v1, %v14160_v9 }
 0x19c   :  { %v2478_v47 = vand.u32 4294901760, %v2477_v63  ;;  %v11257_v16 = vshrl.u32 %v713_v18, 15  ;;  %v715_v37 = vmul.u32 2146121005, %v651_v57  ;;  %v652_v56 = vxor.u32 %v11196_v25, %v460_v17 }
 0x19d   :  { %v461_v40 = vadd.s32 %v14169_v12, %v396_v26  ;;  %vm1032_vm5 = vcmp.ge.s32.totalorder %v968_v60, 1677722  ;;  %v11258_v13 = vshrl.u32 %v714_v24, 15  ;;  %v397_v6 = vmul.u32 2654435769, %v333_v31 }
 0x19e   :  { %2479 = vmatmul.mubr.f32.gmra.mrb[96].mxu0 %v2478_v47  ;;  %6213 = vmatmul.mubr.f32.gmra.mrb[96].mxu1 %v2478_v47  ;;  %v1160_v63 = vsel %vm1032_vm5, %v15775_v49, 0.0  ;;  %v905_v36 = vxor.u32 %v11257_v16, %v713_v18  ;;  %v11259_v11 = vshrl.u32 %v715_v37, 15  ;;  %v716_v27 = vmul.u32 2146121005, %v652_v56 }
 0x19f   :  { %2484 = vmatprep.mubr.f32.mxu0 %v18787_v54  ;;  %6218 = vmatprep.mubr.f32.mxu1 %v18787_v54  ;;  %v1821_v14 = vsel %vm1672_vm0, %v1160_v63, 0  ;;  %v906_v57 = vxor.u32 %v11258_v13, %v714_v24  ;;  %v11197_v25 = vshrl.u32 %v461_v40, 16  ;;  %v462_v26 = vadd.s32 %v14169_v12, %v397_v6 }
 0x1a0   :  { %v15843_v61 = vand.u32 4294901760, %v1821_v14  ;;  %v969_v60 = vand.u32 16777215, %v905_v36  ;;  %v907_v47 = vxor.u32 %v11259_v11, %v715_v37  ;;  %v11260_v33 = vshrl.u32 %v716_v27, 15 }
 0x1a1   :  { %v970_v55 = vand.u32 16777215, %v906_v57  ;;  %v653_v50 = vxor.u32 %v11197_v25, %v461_v40  ;;  %v11198_v17 = vshrl.u32 %v462_v26, 16  ;;  %v138_v0 = vadd.s32 448, %v14158_v8 }
 0x1a2   :  { %18937 = vst [vmem:[#allocation175_spill] sm:$0xff] %v15843_v61  ;;  %v15847_v49 = vsub.f32 %v1821_v14, %v15843_v61  ;;  %vm1033_vm6 = vcmp.ge.s32.totalorder %v969_v60, 1677722  ;;  %v971_v1 = vand.u32 16777215, %v907_v47  ;;  %v908_v18 = vxor.u32 %v11260_v33, %v716_v27  ;;  %v72_v33 = vld [vmem:[%s18259_s1 + $0x1b8] sm:$0xff] }
 0x1a3   :  { %v1161_v24 = vsel %vm1033_vm6, %v15781_v52, 0.0  ;;  %vm1034_vm7 = vcmp.ge.s32.totalorder %v970_v55, 1677722  ;;  %v717_v31 = vmul.u32 2146121005, %v653_v50  ;;  %v654_v16 = vxor.u32 %v11198_v17, %v462_v26 }
 0x1a4   :  { %18938 = vst [vmem:[#allocation176_spill] sm:$0xff] %v15847_v49  ;;  %v15851_v56 = vand.u32 4294901760, %v15847_v49  ;;  %v1824_v37 = vsel %vm1672_vm0, %v1161_v24, 0  ;;  %v1162_v40 = vsel %vm1034_vm7, %v15787_v21, 0.0  ;;  %vm1035_vm8 = vcmp.ge.s32.totalorder %v971_v1, 1677722 }
 0x1a5   :  { %v15855_v13 = vand.u32 4294901760, %v1824_v37  ;;  %v1827_v6 = vsel %vm1672_vm0, %v1162_v40, 0  ;;  %v1163_v63 = vsel %vm1035_vm8, %v15793_v39, 0.0  ;;  %v972_v36 = vand.u32 16777215, %v908_v18 }
 0x1a6   :  { %18939 = vst [vmem:[#allocation177_spill] sm:$0xff] %v15851_v56  ;;  %v2488_v52 = vsub.f32 %v15847_v49, %v15851_v56  ;;  %v15861_v11 = vand.u32 4294901760, %v1827_v6  ;;  %v1830_v27 = vsel %vm1672_vm0, %v1163_v63, 0  ;;  %v11261_v14 = vshrl.u32 %v717_v31, 15  ;;  %v73_v63 = vld [vmem:[%s18259_s1 + $0x1c0] sm:$0xff] }
 0x1a7   :  { %18940 = vst [vmem:[#allocation178_spill] sm:$0xff] %v15855_v13  ;;  %v15865_v57 = vsub.f32 %v1824_v37, %v15855_v13  ;;  %v15867_v21 = vand.u32 4294901760, %v1830_v27  ;;  %vm1036_vm9 = vcmp.ge.s32.totalorder %v972_v36, 1677722  ;;  %v718_v25 = vmul.u32 2146121005, %v654_v16 }
 0x1a8   :  { %18941 = vst [vmem:[#allocation179_spill] sm:$0xff] %v15861_v11  ;;  %v2489_v26 = vand.u32 4294901760, %v2488_v52  ;;  %v15870_v60 = vsub.f32 %v1827_v6, %v15861_v11  ;;  %v1164_v39 = vsel %vm1036_vm9, %v15803_v45, 0.0  ;;  %v909_v47 = vxor.u32 %v11261_v14, %v717_v31 }
 0x1a9   :  { %18942 = vst [vmem:[#allocation180_spill] sm:$0xff] %v15865_v57  ;;  %18943 = vst [vmem:[#allocation181_spill] sm:$0xff] %v15867_v21  ;;  %v15877_v55 = vand.u32 4294901760, %v15865_v57  ;;  %v15880_v50 = vsub.f32 %v1830_v27, %v15867_v21  ;;  %v1833_v17 = vsel %vm1672_vm0, %v1164_v39, 0  ;;  %v11262_v1 = vshrl.u32 %v718_v25, 15 }
 0x1aa   :  { %18944 = vst [vmem:[#allocation182_spill] sm:$0xff] %v15870_v60  ;;  %2490 = vmatmul.mubr.f32.gmra.mrb[98].mxu0 %v2489_v26  ;;  %6224 = vmatmul.mubr.f32.gmra.mrb[98].mxu1 %v2489_v26  ;;  %v15884_v18 = vand.u32 4294901760, %v15870_v60  ;;  %v15886_v45 = vand.u32 4294901760, %v1833_v17  ;;  %v973_v24 = vand.u32 16777215, %v909_v47  ;;  %v270_v31 = vmul.u32 64, %v138_v0 }
 0x1ab   :  { %18945 = vst [vmem:[#allocation183_spill] sm:$0xff] %v15877_v55  ;;  %18946 = vst [vmem:[#allocation184_spill] sm:$0xff] %v15880_v50  ;;  %2495 = vmatprep.mubr.f32.mxu0 %v18787_v54  ;;  %6229 = vmatprep.mubr.f32.mxu1 %v18787_v54  ;;  %v2499_v16 = vsub.f32 %v15865_v57, %v15877_v55  ;;  %v15893_v37 = vand.u32 4294901760, %v15880_v50  ;;  %v910_v40 = vxor.u32 %v11262_v1, %v718_v25 }
 0x1ac   :  { %18947 = vst [vmem:[#allocation185_spill] sm:$0xff] %v15884_v18  ;;  %18948 = vst [vmem:[#allocation186_spill] sm:$0xff] %v15886_v45  ;;  %v1102_v6 = vmul.f32 1.1111112, %v72_v33  ;;  %v2510_v36 = vsub.f32 %v15870_v60, %v15884_v18  ;;  %v15901_v0 = vsub.f32 %v1833_v17, %v15886_v45  ;;  %vm1037_vm10 = vcmp.ge.s32.totalorder %v973_v24, 1677722 }
 0x1ad   :  { %18949 = vst [vmem:[#allocation187_spill] sm:$0xff] %v15893_v37  ;;  %v334_v52 = vadd.s32 %v270_v31, %v14160_v9  ;;  %v2500_v27 = vand.u32 4294901760, %v2499_v16  ;;  %v2521_v14 = vsub.f32 %v15880_v50, %v15893_v37  ;;  %v1165_v25 = vsel %vm1037_vm10, %v15823_v22, 0.0  ;;  %v74_v31 = vld [vmem:[%s18259_s1 + $0x1c8] sm:$0xff] }
 0x1ae   :  { %18950 = vst [vmem:[#allocation188_spill] sm:$0xff] %v15901_v0  ;;  %v974_v26 = vand.u32 16777215, %v910_v40  ;;  %v15908_v39 = vand.u32 4294901760, %v15901_v0  ;;  %v1836_v47 = vsel %vm1672_vm0, %v1165_v25, 0  ;;  %v2511_v17 = vand.u32 4294901760, %v2510_v36 }
 0x1af   :  { %v398_v33 = vmul.u32 2654435769, %v334_v52  ;;  %v15911_v1 = vmul.f32 1.1111112, %v73_v63  ;;  %2501 = vmatmul.mubr.f32.gmra.mrb[100].mxu0 %v2500_v27  ;;  %6235 = vmatmul.mubr.f32.gmra.mrb[100].mxu1 %v2500_v27  ;;  %v15913_v24 = vand.u32 4294901760, %v1836_v47  ;;  %v139_v22 = vadd.s32 456, %v14158_v8 }
 0x1b0   :  { %18951 = vst [vmem:[#allocation189_spill] sm:$0xff] %v15908_v39  ;;  %vm1038_vm11 = vcmp.ge.s32.totalorder %v974_v26, 1677722  ;;  %2506 = vmatprep.mubr.f32.mxu0 %v18787_v54  ;;  %6240 = vmatprep.mubr.f32.mxu1 %v18787_v54  ;;  %v2522_v16 = vand.u32 4294901760, %v2521_v14  ;;  %v2532_v40 = vsub.f32 %v15901_v0, %v15908_v39  ;;  %v75_v26 = vld [vmem:[%s18259_s1 + $0x1d0] sm:$0xff]  ;;  %v140_v37 = vadd.s32 464, %v14158_v8 }
 0x1b1   :  { %18952 = vst [vmem:[#allocation190_spill] sm:$0xff] %v15913_v24  ;;  %v1166_v63 = vsel %vm1038_vm11, %v1102_v6, 0.0  ;;  %v463_v36 = vadd.s32 %v14169_v12, %v398_v33  ;;  %v15925_v52 = vsub.f32 %v1836_v47, %v15913_v24  ;;  %v271_v25 = vmul.u32 64, %v139_v22  ;;  %v76_v22 = vld [vmem:[%s18259_s1 + $0x1d8] sm:$0xff] }
 0x1b2   :  { %v1839_v27 = vsel %vm1672_vm0, %v1166_v63, 0  ;;  %v2533_v18 = vand.u32 4294901760, %v2532_v40  ;;  %v15934_v39 = vmul.f32 1.1111112, %v74_v31  ;;  %v272_v33 = vmul.u32 64, %v140_v37  ;;  %v77_v37 = vld [vmem:[%s18259_s1 + $0x1e0] sm:$0xff] }
 0x1b3   :  { %18953 = vst [vmem:[#allocation191_spill] sm:$0xff] %v15925_v52  ;;  %v15932_v14 = vand.u32 4294901760, %v1839_v27  ;;  %v11199_v55 = vshrl.u32 %v463_v36, 16  ;;  %2512 = vmatmul.mubr.f32.gmra.mrb[102].mxu0 %v2511_v17  ;;  %6246 = vmatmul.mubr.f32.gmra.mrb[102].mxu1 %v2511_v17  ;;  %v15937_v6 = vand.u32 4294901760, %v15925_v52  ;;  %v335_v47 = vadd.s32 %v271_v25, %v14160_v9 }
 0x1b4   :  { %v141_v63 = vadd.s32 472, %v14158_v8  ;;  %2517 = vmatprep.mubr.f32.mxu0 %v18787_v54  ;;  %6251 = vmatprep.mubr.f32.mxu1 %v18787_v54  ;;  %v15949_v40 = vmul.f32 1.1111112, %v75_v26  ;;  %v142_v25 = vadd.s32 480, %v14158_v8  ;;  %v336_v0 = vadd.s32 %v272_v33, %v14160_v9 }
 0x1b5   :  { %18954 = vst [vmem:[#allocation192_spill] sm:$0xff] %v15932_v14  ;;  %18955 = vst [vmem:[#allocation193_spill] sm:$0xff] %v15937_v6  ;;  %v15947_v31 = vsub.f32 %v1839_v27, %v15932_v14  ;;  %v655_v17 = vxor.u32 %v11199_v55, %v463_v36  ;;  %v2543_v56 = vsub.f32 %v15925_v52, %v15937_v6  ;;  %v399_v19 = vmul.u32 2654435769, %v335_v47  ;;  %v78_v47 = vld [vmem:[%s18259_s1 + $0x1e8] sm:$0xff] }
 0x1b6   :  { %v273_v50 = vmul.u32 64, %v141_v63  ;;  %v15961_v55 = vmul.f32 1.1111112, %v76_v22  ;;  %v274_v36 = vmul.u32 64, %v142_v25  ;;  %v15965_v58 = vmul.f32 1.1111112, %v77_v37 }
 0x1b7   :  { %18956 = vst [vmem:[#allocation194_spill] sm:$0xff] %v15947_v31  ;;  %v15959_v60 = vand.u32 4294901760, %v15947_v31  ;;  %v719_v27 = vmul.u32 2146121005, %v655_v17  ;;  %2523 = vmatmul.mubr.f32.gmra.mrb[104].mxu0 %v2522_v16  ;;  %6257 = vmatmul.mubr.f32.gmra.mrb[104].mxu1 %v2522_v16  ;;  %v464_v26 = vadd.s32 %v14169_v12, %v399_v19  ;;  %v400_v57 = vmul.u32 2654435769, %v336_v0 }
 0x1b8   :  { %v337_v49 = vadd.s32 %v273_v50, %v14160_v9  ;;  %2528 = vmatprep.mubr.f32.mxu0 %v18787_v54  ;;  %6262 = vmatprep.mubr.f32.mxu1 %v18787_v54  ;;  %v338_v16 = vadd.s32 %v274_v36, %v14160_v9  ;;  %v143_v19 = vadd.s32 488, %v14158_v8  ;;  %v2544_v0 = vand.u32 4294901760, %v2543_v56 }
 0x1b9   :  { %18957 = vst [vmem:[#allocation195_spill] sm:$0xff] %v15959_v60  ;;  %v2554_v33 = vsub.f32 %v15947_v31, %v15959_v60  ;;  %v11263_v22 = vshrl.u32 %v719_v27, 15  ;;  %v11200_v50 = vshrl.u32 %v464_v26, 16  ;;  %v465_v63 = vadd.s32 %v14169_v12, %v400_v57 }
 0x1ba   :  { %v401_v17 = vmul.u32 2654435769, %v337_v49  ;;  %v402_v25 = vmul.u32 2654435769, %v338_v16  ;;  %v15977_v52 = vmul.f32 1.1111112, %v78_v47 }
 0x1bb   :  { %v911_v37 = vxor.u32 %v11263_v22, %v719_v27  ;;  %v275_v6 = vmul.u32 64, %v143_v19  ;;  %2534 = vmatmul.mubr.f32.gmra.mrb[106].mxu0 %v2533_v18  ;;  %6268 = vmatmul.mubr.f32.gmra.mrb[106].mxu1 %v2533_v18  ;;  %v656_v14 = vxor.u32 %v11200_v50, %v464_v26  ;;  %v11201_v24 = vshrl.u32 %v465_v63, 16 }
 0x1bc   :  { %v466_v60 = vadd.s32 %v14169_v12, %v401_v17  ;;  %v144_v36 = vadd.s32 496, %v14158_v8  ;;  %2539 = vmatprep.mubr.f32.mxu0 %v18787_v54  ;;  %6273 = vmatprep.mubr.f32.mxu1 %v18787_v54  ;;  %v2555_v56 = vand.u32 4294901760, %v2554_v33  ;;  %v467_v49 = vadd.s32 %v14169_v12, %v402_v25 }
 0x1bd   :  { %v975_v57 = vand.u32 16777215, %v911_v37  ;;  %v339_v27 = vadd.s32 %v275_v6, %v14160_v9  ;;  %v720_v47 = vmul.u32 2146121005, %v656_v14  ;;  %v657_v22 = vxor.u32 %v11201_v24, %v465_v63 }
 0x1be   :  { %v11202_v16 = vshrl.u32 %v466_v60, 16  ;;  %v276_v18 = vmul.u32 64, %v144_v36  ;;  %v11203_v26 = vshrl.u32 %v467_v49, 16  ;;  %v15986_v50 = vadd.s32 504, %v14158_v8 }
 0x1bf   :  { %vm1039_vm12 = vcmp.ge.s32.totalorder %v975_v57, 1677722  ;;  %v403_v19 = vmul.u32 2654435769, %v339_v27  ;;  %2545 = vmatmul.mubr.f32.gmra.mrb[108].mxu0 %v2544_v0  ;;  %6279 = vmatmul.mubr.f32.gmra.mrb[108].mxu1 %v2544_v0  ;;  %v11264_v33 = vshrl.u32 %v720_v47, 15 }
 0x1c0   :  { %v1167_v17 = vsel %vm1039_vm12, %v15911_v1, 0.0  ;;  %v721_v37 = vmul.u32 2146121005, %v657_v22  ;;  %v658_v31 = vxor.u32 %v11202_v16, %v466_v60  ;;  %2550 = vmatprep.mubr.f32.mxu0 %v18787_v54  ;;  %6284 = vmatprep.mubr.f32.mxu1 %v18787_v54  ;;  %v659_v14 = vxor.u32 %v11203_v26, %v467_v49 }
 0x1c1   :  { %v1842_v24 = vsel %vm1672_vm0, %v1167_v17, 0  ;;  %v468_v6 = vadd.s32 %v14169_v12, %v403_v19  ;;  %v340_v63 = vadd.s32 %v276_v18, %v14160_v9  ;;  %v912_v25 = vxor.u32 %v11264_v33, %v720_v47 }
 0x1c2   :  { %v15994_v8 = vand.u32 4294901760, %v1842_v24  ;;  %v11265_v0 = vshrl.u32 %v721_v37, 15  ;;  %v722_v36 = vmul.u32 2146121005, %v658_v31  ;;  %v723_v1 = vmul.u32 2146121005, %v659_v14 }
 0x1c3   :  { %v11204_v57 = vshrl.u32 %v468_v6, 16  ;;  %v404_v27 = vmul.u32 2654435769, %v340_v63  ;;  %v11623_v60 = vpack.c.bf16 %v14268_v5, %v14266_v4  ;;  %2556 = vmatmul.mubr.f32.gmra.mrb[110].mxu0 %v2555_v56  ;;  %6290 = vmatmul.mubr.f32.gmra.mrb[110].mxu1 %v2555_v56  ;;  %v976_v49 = vand.u32 16777215, %v912_v25 }
 0x1c4   :  { %18958 = vst [vmem:[#allocation196_spill] sm:$0xff] %v15994_v8  ;;  %v15999_v22 = vsub.f32 %v1842_v24, %v15994_v8  ;;  %v913_v16 = vxor.u32 %v11265_v0, %v721_v37  ;;  %v11266_v26 = vshrl.u32 %v722_v36, 15  ;;  %2561 = vmatprep.mubr.f32.mxu0 %v18787_v54  ;;  %6295 = vmatprep.mubr.f32.mxu1 %v18787_v54  ;;  %v11267_v47 = vshrl.u32 %v723_v1, 15 }
 0x1c5   :  { %v660_v31 = vxor.u32 %v11204_v57, %v468_v6  ;;  %v469_v18 = vadd.s32 %v14169_v12, %v404_v27  ;;  %v277_v19 = vmul.u32 64, %v15986_v50  ;;  %vm1040_vm13 = vcmp.ge.s32.totalorder %v976_v49, 1677722  ;;  %11624 = vmatprep.subr.bf16.mxu0 %v11623_v60 }
 0x1c6   :  { %v16006_v17 = vand.u32 4294901760, %v15999_v22  ;;  %v977_v56 = vand.u32 16777215, %v913_v16  ;;  %v914_v33 = vxor.u32 %v11266_v26, %v722_v36  ;;  %v1168_v37 = vsel %vm1040_vm13, %v15934_v39, 0.0 }
 0x1c7   :  { %v915_v24 = vxor.u32 %v11267_v47, %v723_v1  ;;  %v724_v14 = vmul.u32 2146121005, %v660_v31  ;;  %v11205_v63 = vshrl.u32 %v469_v18, 16  ;;  %v1845_v6 = vsel %vm1672_vm0, %v1168_v37, 0 }
 0x1c8   :  { %v2565_v25 = vsub.f32 %v15999_v22, %v16006_v17  ;;  %vm1041_vm14 = vcmp.ge.s32.totalorder %v977_v56, 1677722  ;;  %v978_v0 = vand.u32 16777215, %v914_v33  ;;  %v16012_v50 = vand.u32 4294901760, %v1845_v6  ;;  %v79_v56 = vld [vmem:[%s18259_s1 + $0x1f0] sm:$0xff] }
 0x1c9   :  { %v1169_v57 = vsel %vm1041_vm14, %v15949_v40, 0.0  ;;  %v979_v27 = vand.u32 16777215, %v915_v24  ;;  %v11268_v49 = vshrl.u32 %v724_v14, 15  ;;  %v661_v39 = vxor.u32 %v11205_v63, %v469_v18 }
 0x1ca   :  { %18959 = vst [vmem:[#allocation197_spill] sm:$0xff] %v16012_v50  ;;  %v2566_v36 = vand.u32 4294901760, %v2565_v25  ;;  %v1848_v60 = vsel %vm1672_vm0, %v1169_v57, 0  ;;  %vm1042_vm15 = vcmp.ge.s32.totalorder %v978_v0, 1677722  ;;  %v16017_v1 = vsub.f32 %v1845_v6, %v16012_v50 }
 0x1cb   :  { %v16019_v16 = vand.u32 4294901760, %v1848_v60  ;;  %v1170_v26 = vsel %vm1042_vm15, %v15961_v55, 0.0  ;;  %vm1043_vm1 = vcmp.ge.s32.totalorder %v979_v27, 1677722  ;;  %v916_v31 = vxor.u32 %v11268_v49, %v724_v14 }
 0x1cc   :  { %2567 = vmatmul.mubr.f32.gmra.mrb[112].mxu0 %v2566_v36  ;;  %6301 = vmatmul.mubr.f32.gmra.mrb[112].mxu1 %v2566_v36  ;;  %v1851_v47 = vsel %vm1672_vm0, %v1170_v26, 0  ;;  %v1171_v40 = vsel %vm1043_vm1, %v15965_v58, 0.0  ;;  %v725_v18 = vmul.u32 2146121005, %v661_v39  ;;  %v16030_v33 = vand.u32 4294901760, %v16017_v1 }
 0x1cd   :  { %18960 = vst [vmem:[#allocation198_spill] sm:$0xff] %v16019_v16  ;;  %2572 = vmatprep.mubr.f32.mxu0 %v18787_v54  ;;  %6306 = vmatprep.mubr.f32.mxu1 %v18787_v54  ;;  %v16033_v55 = vsub.f32 %v1848_v60, %v16019_v16  ;;  %v16035_v37 = vand.u32 4294901760, %v1851_v47  ;;  %v1854_v58 = vsel %vm1672_vm0, %v1171_v40, 0  ;;  %v980_v14 = vand.u32 16777215, %v916_v31 }
 0x1ce   :  { %v16038_v24 = vand.u32 4294901760, %v1854_v58  ;;  %v11269_v63 = vshrl.u32 %v725_v18, 15  ;;  %v341_v25 = vadd.s32 %v277_v19, %v14160_v9  ;;  %v2576_v6 = vsub.f32 %v16017_v1, %v16030_v33 }
 0x1cf   :  { %18961 = vst [vmem:[#allocation199_spill] sm:$0xff] %v16035_v37  ;;  %v16044_v0 = vand.u32 4294901760, %v16033_v55  ;;  %v16047_v57 = vsub.f32 %v1851_v47, %v16035_v37  ;;  %v1109_v27 = vmul.f32 1.1111112, %v79_v56  ;;  %vm1044_vm2 = vcmp.ge.s32.totalorder %v980_v14, 1677722 }
 0x1d0   :  { %18962 = vst [vmem:[#allocation200_spill] sm:$0xff] %v16038_v24  ;;  %v16050_v49 = vsub.f32 %v1854_v58, %v16038_v24  ;;  %v917_v36 = vxor.u32 %v11269_v63, %v725_v18  ;;  %v405_v60 = vmul.u32 2654435769, %v341_v25  ;;  %v2577_v39 = vand.u32 4294901760, %v2576_v6 }
 0x1d1   :  { %18963 = vst [vmem:[#allocation201_spill] sm:$0xff] %v16044_v0  ;;  %v2587_v9 = vsub.f32 %v16033_v55, %v16044_v0  ;;  %v16055_v19 = vand.u32 4294901760, %v16047_v57  ;;  %v1172_v26 = vsel %vm1044_vm2, %v15977_v52, 0.0  ;;  %v11719_v63 = vpack.c.bf16 %v14277_v35, %v14275_v30  ;;  %v18998_v0 = vld [vmem:[#allocation83_spill] sm:$0xff] }
 0x1d2   :  { %v16059_v40 = vand.u32 4294901760, %v16050_v49  ;;  %v1857_v47 = vsel %vm1672_vm0, %v1172_v26, 0  ;;  %v981_v31 = vand.u32 16777215, %v917_v36  ;;  %v470_v56 = vadd.s32 %v14169_v12, %v405_v60  ;;  %2578 = vmatmul.mubr.f32.gmra.mrb[114].mxu0 %v2577_v39  ;;  %6312 = vmatmul.mubr.f32.gmra.mrb[114].mxu1 %v2577_v39 }
 0x1d3   :  { %18964 = vst [vmem:[#allocation202_spill] sm:$0xff] %v16055_v19  ;;  %v2588_v18 = vand.u32 4294901760, %v2587_v9  ;;  %v2598_v58 = vsub.f32 %v16047_v57, %v16055_v19  ;;  %v16065_v14 = vand.u32 4294901760, %v1857_v47  ;;  %2583 = vmatprep.mubr.f32.mxu0 %v18787_v54  ;;  %6317 = vmatprep.mubr.f32.mxu1 %v18787_v54  ;;  %v18979_v19 = vld [vmem:[#allocation36_spill] sm:$0xff] }
 0x1d4   :  { %18965 = vst [vmem:[#allocation203_spill] sm:$0xff] %v16059_v40  ;;  %vm1045_vm3 = vcmp.ge.s32.totalorder %v981_v31, 1677722  ;;  %v11206_v52 = vshrl.u32 %v470_v56, 16  ;;  %11720 = vmatprep.subr.bf16.mxu1 %v11719_v63  ;;  %v2609_v39 = vsub.f32 %v16050_v49, %v16059_v40  ;;  %v80_v31 = vld [vmem:[%s18259_s1 + $0x1f8] sm:$0xff]  ;;  %s14116_s1 = smov [#allocation3]  }
 0x1d5   :  { %18966 = vst [vmem:[#allocation204_spill] sm:$0xff] %v16065_v14  ;;  %v16072_v25 = vsub.f32 %v1857_v47, %v16065_v14  ;;  %v1173_v12 = vsel %vm1045_vm3, %v1109_v27, 0.0  ;;  %v2599_v60 = vand.u32 4294901760, %v2598_v58  ;;  %s11130_s5 = sshll.u32 %s14116_s1, 4  ;;  %s11131_s5 = int_to_ptr.vmem [resolvable:$true] %s11130_s5 }
 0x1d6   :  { %v1860_v6 = vsel %vm1672_vm0, %v1173_v12, 0  ;;  %v662_v36 = vxor.u32 %v11206_v52, %v470_v56  ;;  %2589 = vmatmul.mubr.f32.gmra.mrb[116].mxu0 %v2588_v18  ;;  %6323 = vmatmul.mubr.f32.gmra.mrb[116].mxu1 %v2588_v18  ;;  %v2610_v18 = vand.u32 4294901760, %v2609_v39  ;;  %v1110_v12 = vmul.f32 1.1111112, %v80_v31  ;;  %s14091_s6 = scalar_lea.vmem %s11131_s5, 32768  ;;  %p14096_p1 = scmp.lt.s32.totalorder %s11131_s5, %s11131_s5 }
 0x1d7   :  { %v16078_v9 = vand.u32 4294901760, %v16072_v25  ;;  %v16080_v26 = vand.u32 4294901760, %v1860_v6  ;;  %2594 = vmatprep.mubr.f32.mxu0 %v18787_v54  ;;  %6328 = vmatprep.mubr.f32.mxu1 %v18787_v54  ;;  %p14092_p0 = scmp.ne.s32.totalorder %s11131_s5, %s14091_s6  ;;  %p14097_p2 = scmp.lt.s32.totalorder %s14091_s6, %s14091_s6 }
 0x1d8   :  { %v726_v27 = vmul.u32 2146121005, %v662_v36 }
 0x1d9   :  { %18967 = vst [vmem:[#allocation205_spill] sm:$0xff] %v16078_v9  ;;  %18968 = vst [vmem:[#allocation206_spill] sm:$0xff] %v16080_v26  ;;  %v16085_v47 = vsub.f32 %v1860_v6, %v16080_v26  ;;  %v2620_v58 = vsub.f32 %v16072_v25, %v16078_v9  ;;  %p14098_p3 = por %p14097_p2, %p14096_p1 }
 0x1da   :  { %v11270_v56 = vshrl.u32 %v726_v27, 15  ;;  %2600 = vmatmul.mubr.f32.gmra.mrb[118].mxu0 %v2599_v60  ;;  %6334 = vmatmul.mubr.f32.gmra.mrb[118].mxu1 %v2599_v60 }
 0x1db   :  { %v16093_v63 = vand.u32 4294901760, %v16085_v47  ;;  %2605 = vmatprep.mubr.f32.mxu0 %v18787_v54  ;;  %6339 = vmatprep.mubr.f32.mxu1 %v18787_v54  ;;  %v2621_v36 = vand.u32 4294901760, %v2620_v58  ;;  %p14099_p4 = pnand %p14098_p3, %p14092_p0 }
 0x1dc   :  { %v918_v52 = vxor.u32 %v11270_v56, %v726_v27 }
 0x1dd   :  { %18969 = vst [vmem:[#allocation207_spill] sm:$0xff] %v16093_v63  ;;  %v2631_v60 = vsub.f32 %v16085_v47, %v16093_v63 }
 0x1de   :  { %v982_v6 = vand.u32 16777215, %v918_v52  ;;  %2611 = vmatmul.mubr.f32.gmra.mrb[120].mxu0 %v2610_v18  ;;  %6345 = vmatmul.mubr.f32.gmra.mrb[120].mxu1 %v2610_v18  ;;  %v18973_v52 = vld [vmem:[#allocation11_spill] sm:$0xff] }
 0x1df   :  { %2616 = vmatprep.mubr.f32.mxu0 %v18787_v54  ;;  %6350 = vmatprep.mubr.f32.mxu1 %v18787_v54  ;;  %v2632_v40 = vand.u32 4294901760, %v2631_v60  ;;  %v11723_v60 = vpack.c.bf16 %v14361_v53, %v14357_v46 }
 0x1e0   :  { %vm1046_vm4 = vcmp.ge.s32.totalorder %v982_v6, 1677722 }
 0x1e1   :  { %v1174_v39 = vsel %vm1046_vm4, %v1110_v12, 0.0  ;;  %v18974_v12 = vld [vmem:[#allocation12_spill] sm:$0xff] }
 0x1e2   :  { %v1863_v9 = vsel %vm1672_vm0, %v1174_v39, 0  ;;  %2622 = vmatmul.mubr.f32.gmra.mrb[122].mxu0 %v2621_v36  ;;  %6356 = vmatmul.mubr.f32.gmra.mrb[122].mxu1 %v2621_v36  ;;  %v11721_v6 = vpack.c.bf16 %v18974_v12, %v18973_v52  ;;  %v11627_v36 = vpack.c.bf16 %v14350_v38, %v14340_v10  ;;  %v18975_v39 = vld [vmem:[#allocation31_spill] sm:$0xff] }
 0x1e3   :  { %v16102_v27 = vand.u32 4294901760, %v1863_v9  ;;  %2627 = vmatprep.mubr.f32.mxu0 %v18787_v54  ;;  %6361 = vmatprep.mubr.f32.mxu1 %v18787_v54 }
 0x1e5   :  { %18970 = vst [vmem:[#allocation208_spill] sm:$0xff] %v16102_v27  ;;  %v16107_v31 = vsub.f32 %v1863_v9, %v16102_v27  ;;  %v18972_v9 = vld [vmem:[#allocation9_spill] sm:$0xff] }
 0x1e6   :  { %2633 = vmatmul.mubr.f32.gmra.mrb[124].mxu0 %v2632_v40  ;;  %6367 = vmatmul.mubr.f32.gmra.mrb[124].mxu1 %v2632_v40  ;;  %v11625_v40 = vpack.c.bf16 %v18972_v9, %v14280_v23 }
 0x1e7   :  { %v16110_v56 = vand.u32 4294901760, %v16107_v31  ;;  %2638 = vmatprep.mubr.f32.mxu0 %v18787_v54  ;;  %6372 = vmatprep.mubr.f32.mxu1 %v18787_v54 }
 0x1e9   :  { %18971 = vst [vmem:[#allocation209_spill] sm:$0xff] %v16110_v56  ;;  %v2642_v18 = vsub.f32 %v16107_v31, %v16110_v56  ;;  %v11631_v56 = vpack.c.bf16 %v14444_v43, %v14436_v32 }
 0x1eb   :  { %v2643_v58 = vand.u32 4294901760, %v2642_v18  ;;  %v11629_v18 = vpack.c.bf16 %v14393_v48, %v14382_v42 }
 0x1ed   :  { %2644 = vmatmul.mubr.f32.gmra.mrb[126].mxu0 %v2643_v58  ;;  %6378 = vmatmul.mubr.f32.gmra.mrb[126].mxu1 %v2643_v58  ;;  %v11725_v58 = vpack.c.bf16 %v14415_v7, %v14402_v15 }
 0x1ee   :  { %2794 = vmatprep.mubr.f32.mxu0 %v18787_v54  ;;  %6528 = vmatprep.mubr.f32.mxu1 %v18787_v54 }
 0x1f1   :  { %2796 = vmatmul.mubr.f32.vlgmr.msra.gmra.mrb[0].mxu0 %v18975_v39  ;;  %6530 = vmatmul.mubr.f32.vlgmr.msra.gmra.mrb[0].mxu1 %v18975_v39  ;;  %v11727_v39 = vpack.c.bf16 %v14458_v29, %v14451_v34 }
 0x1f2   :  { %11626 = vmatpush1.bf16.msra.mxu0 %v11625_v40  ;;  %11722 = vmatpush1.bf16.msra.mxu1 %v11721_v6  ;;  %v18976_v40 = vld [vmem:[#allocation34_spill] sm:$0xff]  ;;  %v11633_v6 = vpack.c.bf16 %v18881_v44, %v18878_v3 }
 0x1f3   :  { %2801 = vmatprep.mubr.f32.mxu0 %v18787_v54  ;;  %6535 = vmatprep.mubr.f32.mxu1 %v18787_v54 }
 0x1f4   :  { %11628 = vmatprep.subr.bf16.mxu0 %v11627_v36  ;;  %11724 = vmatprep.subr.bf16.mxu1 %v11723_v60  ;;  %v18977_v36 = vld [vmem:[#allocation23_spill] sm:$0xff]  ;;  %v18978_v60 = vld [vmem:[#allocation24_spill] sm:$0xff] }
 0x1f5   :  { %2803 = vmatmul.mubr.f32.gmra.mrb[2].mxu0 %v18976_v40  ;;  %6537 = vmatmul.mubr.f32.gmra.mrb[2].mxu1 %v18976_v40  ;;  %v11729_v63 = vpack.c.bf16 %v18978_v60, %v18977_v36  ;;  %v18997_v40 = vld [vmem:[#allocation7_spill] sm:$0xff] }
 0x1f6   :  { %2808 = vmatprep.mubr.f32.mxu0 %v18787_v54  ;;  %6542 = vmatprep.mubr.f32.mxu1 %v18787_v54 }
 0x1f7   :  { %11630 = vmatpush1.bf16.msra.mxu0 %v11629_v18  ;;  %11726 = vmatpush1.bf16.msra.mxu1 %v11725_v58  ;;  %v18980_v18 = vld [vmem:[#allocation37_spill] sm:$0xff]  ;;  %v18984_v58 = vld [vmem:[#allocation52_spill] sm:$0xff] }
 0x1f8   :  { %11632 = vmatprep.subr.bf16.mxu0 %v11631_v56  ;;  %11728 = vmatprep.subr.bf16.mxu1 %v11727_v39  ;;  %v18981_v56 = vld [vmem:[#allocation41_spill] sm:$0xff] }
 0x1f9   :  { %2810 = vmatmul.mubr.f32.gmra.mrb[4].mxu0 %v18979_v19  ;;  %6544 = vmatmul.mubr.f32.gmra.mrb[4].mxu1 %v18979_v19  ;;  %v18982_v39 = vld [vmem:[#allocation45_spill] sm:$0xff]  ;;  %v18996_v19 = vld [vmem:[#allocation6_spill] sm:$0xff] }
 0x1fa   :  { %2815 = vmatprep.mubr.f32.mxu0 %v18787_v54  ;;  %6549 = vmatprep.mubr.f32.mxu1 %v18787_v54 }
 0x1fb   :  { %11634 = vmatpush1.bf16.msra.mxu0 %v11633_v6  ;;  %11730 = vmatpush1.bf16.msra.mxu1 %v11729_v63  ;;  %v18983_v63 = vld [vmem:[#allocation48_spill] sm:$0xff]  ;;  %v18985_v6 = vld [vmem:[#allocation55_spill] sm:$0xff] }
 0x1fd   :  { %2817 = vmatmul.mubr.f32.gmra.mrb[6].mxu0 %v18980_v18  ;;  %6551 = vmatmul.mubr.f32.gmra.mrb[6].mxu1 %v18980_v18 }
 0x1fe   :  { %2822 = vmatprep.mubr.f32.mxu0 %v18787_v54  ;;  %6556 = vmatprep.mubr.f32.mxu1 %v18787_v54 }
 0x201   :  { %2824 = vmatmul.mubr.f32.gmra.mrb[8].mxu0 %v18981_v56  ;;  %6558 = vmatmul.mubr.f32.gmra.mrb[8].mxu1 %v18981_v56  ;;  %v11637_v56 = vpack.c.bf16 %v14570_v2, %v14568_v28 }
 0x202   :  { %2829 = vmatprep.mubr.f32.mxu0 %v18787_v54  ;;  %6563 = vmatprep.mubr.f32.mxu1 %v18787_v54 }
 0x205   :  { %2831 = vmatmul.mubr.f32.gmra.mrb[10].mxu0 %v18982_v39  ;;  %6565 = vmatmul.mubr.f32.gmra.mrb[10].mxu1 %v18982_v39  ;;  %v11635_v39 = vpack.c.bf16 %v18926_v59, %v14533_v51 }
 0x206   :  { %2836 = vmatprep.mubr.f32.mxu0 %v18787_v54  ;;  %6570 = vmatprep.mubr.f32.mxu1 %v18787_v54 }
 0x207   :  { %11636 = vmatprep.subr.bf16.mxu0 %v11635_v39  ;;  %v19001_v39 = vld [vmem:[#allocation93_spill] sm:$0xff] }
 0x208   :  { %11638 = vmatpush1.bf16.msra.mxu0 %v11637_v56  ;;  %v19000_v56 = vld [vmem:[#allocation87_spill] sm:$0xff] }
 0x209   :  { %2838 = vmatmul.mubr.f32.gmra.mrb[12].mxu0 %v18983_v63  ;;  %6572 = vmatmul.mubr.f32.gmra.mrb[12].mxu1 %v18983_v63  ;;  %v18986_v63 = vld [vmem:[#allocation57_spill] sm:$0xff] }
 0x20a   :  { %2843 = vmatprep.mubr.f32.mxu0 %v18787_v54  ;;  %6577 = vmatprep.mubr.f32.mxu1 %v18787_v54 }
 0x20b   :  { %11640 = vmatprep.subr.bf16.mxu0 %v18996_v19 }
 0x20d   :  { %2845 = vmatmul.mubr.f32.gmra.mrb[14].mxu0 %v18984_v58  ;;  %6579 = vmatmul.mubr.f32.gmra.mrb[14].mxu1 %v18984_v58  ;;  %v18987_v58 = vld [vmem:[#allocation58_spill] sm:$0xff] }
 0x20e   :  { %2850 = vmatprep.mubr.f32.mxu0 %v18787_v54  ;;  %6584 = vmatprep.mubr.f32.mxu1 %v18787_v54 }
 0x211   :  { %2852 = vmatmul.mubr.f32.gmra.mrb[16].mxu0 %v18985_v6  ;;  %6586 = vmatmul.mubr.f32.gmra.mrb[16].mxu1 %v18985_v6  ;;  %v18988_v6 = vld [vmem:[#allocation62_spill] sm:$0xff] }
 0x212   :  { %2857 = vmatprep.mubr.f32.mxu0 %v18787_v54  ;;  %6591 = vmatprep.mubr.f32.mxu1 %v18787_v54 }
 0x215   :  { %2859 = vmatmul.mubr.f32.gmra.mrb[18].mxu0 %v18986_v63  ;;  %6593 = vmatmul.mubr.f32.gmra.mrb[18].mxu1 %v18986_v63  ;;  %v18989_v63 = vld [vmem:[#allocation67_spill] sm:$0xff] }
 0x216   :  { %2864 = vmatprep.mubr.f32.mxu0 %v18787_v54  ;;  %6598 = vmatprep.mubr.f32.mxu1 %v18787_v54 }
 0x219   :  { %2866 = vmatmul.mubr.f32.gmra.mrb[20].mxu0 %v18987_v58  ;;  %6600 = vmatmul.mubr.f32.gmra.mrb[20].mxu1 %v18987_v58  ;;  %v18990_v58 = vld [vmem:[#allocation68_spill] sm:$0xff] }
 0x21a   :  { %2871 = vmatprep.mubr.f32.mxu0 %v18787_v54  ;;  %6605 = vmatprep.mubr.f32.mxu1 %v18787_v54 }
 0x21d   :  { %2873 = vmatmul.mubr.f32.gmra.mrb[22].mxu0 %v18988_v6  ;;  %6607 = vmatmul.mubr.f32.gmra.mrb[22].mxu1 %v18988_v6  ;;  %v18991_v6 = vld [vmem:[#allocation73_spill] sm:$0xff] }
 0x21e   :  { %2878 = vmatprep.mubr.f32.mxu0 %v18787_v54  ;;  %6612 = vmatprep.mubr.f32.mxu1 %v18787_v54 }
 0x221   :  { %2880 = vmatmul.mubr.f32.gmra.mrb[24].mxu0 %v18989_v63  ;;  %6614 = vmatmul.mubr.f32.gmra.mrb[24].mxu1 %v18989_v63  ;;  %v18992_v63 = vld [vmem:[#allocation76_spill] sm:$0xff] }
 0x222   :  { %2885 = vmatprep.mubr.f32.mxu0 %v18787_v54  ;;  %6619 = vmatprep.mubr.f32.mxu1 %v18787_v54 }
 0x225   :  { %2887 = vmatmul.mubr.f32.gmra.mrb[26].mxu0 %v18990_v58  ;;  %6621 = vmatmul.mubr.f32.gmra.mrb[26].mxu1 %v18990_v58  ;;  %v18993_v58 = vld [vmem:[#allocation79_spill] sm:$0xff] }
 0x226   :  { %2892 = vmatprep.mubr.f32.mxu0 %v18787_v54  ;;  %6626 = vmatprep.mubr.f32.mxu1 %v18787_v54 }
 0x229   :  { %2894 = vmatmul.mubr.f32.gmra.mrb[28].mxu0 %v18991_v6  ;;  %6628 = vmatmul.mubr.f32.gmra.mrb[28].mxu1 %v18991_v6  ;;  %v11731_v6 = vpack.c.bf16 %v14552_v62, %v14548_v41 }
 0x22a   :  { %2899 = vmatprep.mubr.f32.mxu0 %v18787_v54  ;;  %6633 = vmatprep.mubr.f32.mxu1 %v18787_v54 }
 0x22b   :  { %11732 = vmatprep.subr.bf16.mxu1 %v11731_v6  ;;  %v19002_v6 = vld [vmem:[#allocation97_spill] sm:$0xff] }
 0x22d   :  { %2901 = vmatmul.mubr.f32.gmra.mrb[30].mxu0 %v18992_v63  ;;  %6635 = vmatmul.mubr.f32.gmra.mrb[30].mxu1 %v18992_v63  ;;  %v18994_v63 = vld [vmem:[#allocation30_spill] sm:$0xff] }
 0x22e   :  { %2906 = vmatprep.mubr.f32.mxu0 %v18787_v54  ;;  %6640 = vmatprep.mubr.f32.mxu1 %v18787_v54  ;;  %v11733_v18 = vpack.c.bf16 %v18994_v63, %v14588_v20 }
 0x230   :  { %11734 = vmatpush1.bf16.msra.mxu1 %v11733_v18  ;;  %v18999_v18 = vld [vmem:[#allocation85_spill] sm:$0xff] }
 0x231   :  { %2908 = vmatmul.mubr.f32.gmra.mrb[32].mxu0 %v18993_v58  ;;  %6642 = vmatmul.mubr.f32.gmra.mrb[32].mxu1 %v18993_v58  ;;  %v18995_v58 = vld [vmem:[#allocation82_spill] sm:$0xff] }
 0x232   :  { %2913 = vmatprep.mubr.f32.mxu0 %v18787_v54  ;;  %6647 = vmatprep.mubr.f32.mxu1 %v18787_v54 }
 0x233   :  { %11736 = vmatprep.subr.bf16.mxu1 %v18997_v40 }
 0x235   :  { %2915 = vmatmul.mubr.f32.gmra.mrb[34].mxu0 %v18995_v58  ;;  %6649 = vmatmul.mubr.f32.gmra.mrb[34].mxu1 %v18995_v58 }
 0x236   :  { %2920 = vmatprep.mubr.f32.mxu0 %v18787_v54  ;;  %6654 = vmatprep.mubr.f32.mxu1 %v18787_v54 }
 0x239   :  { %2922 = vmatmul.mubr.f32.gmra.mrb[36].mxu0 %v18998_v0  ;;  %6656 = vmatmul.mubr.f32.gmra.mrb[36].mxu1 %v18998_v0  ;;  %v19078_v0 = vand.u32 4294901760, %v14266_v4  ;;  %v19083_v4 = vld [vmem:[#allocation132_spill] sm:$0xff] }
 0x23a   :  { %2927 = vmatprep.mubr.f32.mxu0 %v18787_v54  ;;  %6661 = vmatprep.mubr.f32.mxu1 %v18787_v54 }
 0x23d   :  { %2929 = vmatmul.mubr.f32.gmra.mrb[38].mxu0 %v18999_v18  ;;  %6663 = vmatmul.mubr.f32.gmra.mrb[38].mxu1 %v18999_v18  ;;  %v19050_v18 = vld [vmem:[#allocation47_spill] sm:$0xff] }
 0x23e   :  { %2934 = vmatprep.mubr.f32.mxu0 %v18787_v54  ;;  %6668 = vmatprep.mubr.f32.mxu1 %v18787_v54 }
 0x241   :  { %2936 = vmatmul.mubr.f32.gmra.mrb[40].mxu0 %v19000_v56  ;;  %6670 = vmatmul.mubr.f32.gmra.mrb[40].mxu1 %v19000_v56  ;;  %v19003_v56 = vld [vmem:[#allocation100_spill] sm:$0xff] }
 0x242   :  { %2941 = vmatprep.mubr.f32.mxu0 %v18787_v54  ;;  %6675 = vmatprep.mubr.f32.mxu1 %v18787_v54 }
 0x245   :  { %2943 = vmatmul.mubr.f32.gmra.mrb[42].mxu0 %v19001_v39  ;;  %6677 = vmatmul.mubr.f32.gmra.mrb[42].mxu1 %v19001_v39  ;;  %v19004_v39 = vld [vmem:[#allocation103_spill] sm:$0xff] }
 0x246   :  { %2948 = vmatprep.mubr.f32.mxu0 %v18787_v54  ;;  %6682 = vmatprep.mubr.f32.mxu1 %v18787_v54 }
 0x249   :  { %2950 = vmatmul.mubr.f32.gmra.mrb[44].mxu0 %v19002_v6  ;;  %6684 = vmatmul.mubr.f32.gmra.mrb[44].mxu1 %v19002_v6  ;;  %v19005_v6 = vld [vmem:[#allocation106_spill] sm:$0xff] }
 0x24a   :  { %2955 = vmatprep.mubr.f32.mxu0 %v18787_v54  ;;  %6689 = vmatprep.mubr.f32.mxu1 %v18787_v54 }
 0x24d   :  { %2957 = vmatmul.mubr.f32.gmra.mrb[46].mxu0 %v19003_v56  ;;  %6691 = vmatmul.mubr.f32.gmra.mrb[46].mxu1 %v19003_v56  ;;  %v19006_v56 = vld [vmem:[#allocation107_spill] sm:$0xff] }
 0x24e   :  { %2962 = vmatprep.mubr.f32.mxu0 %v18787_v54  ;;  %6696 = vmatprep.mubr.f32.mxu1 %v18787_v54 }
 0x251   :  { %2964 = vmatmul.mubr.f32.gmra.mrb[48].mxu0 %v19004_v39  ;;  %6698 = vmatmul.mubr.f32.gmra.mrb[48].mxu1 %v19004_v39  ;;  %v19007_v39 = vld [vmem:[#allocation109_spill] sm:$0xff] }
 0x252   :  { %2969 = vmatprep.mubr.f32.mxu0 %v18787_v54  ;;  %6703 = vmatprep.mubr.f32.mxu1 %v18787_v54 }
 0x255   :  { %2971 = vmatmul.mubr.f32.gmra.mrb[50].mxu0 %v19005_v6  ;;  %6705 = vmatmul.mubr.f32.gmra.mrb[50].mxu1 %v19005_v6  ;;  %v19008_v6 = vld [vmem:[#allocation115_spill] sm:$0xff] }
 0x256   :  { %2976 = vmatprep.mubr.f32.mxu0 %v18787_v54  ;;  %6710 = vmatprep.mubr.f32.mxu1 %v18787_v54 }
 0x259   :  { %2978 = vmatmul.mubr.f32.gmra.mrb[52].mxu0 %v19006_v56  ;;  %6712 = vmatmul.mubr.f32.gmra.mrb[52].mxu1 %v19006_v56  ;;  %v19009_v56 = vld [vmem:[#allocation118_spill] sm:$0xff] }
 0x25a   :  { %2983 = vmatprep.mubr.f32.mxu0 %v18787_v54  ;;  %6717 = vmatprep.mubr.f32.mxu1 %v18787_v54 }
 0x25d   :  { %2985 = vmatmul.mubr.f32.gmra.mrb[54].mxu0 %v19007_v39  ;;  %6719 = vmatmul.mubr.f32.gmra.mrb[54].mxu1 %v19007_v39  ;;  %v19010_v39 = vld [vmem:[#allocation121_spill] sm:$0xff] }
 0x25e   :  { %2990 = vmatprep.mubr.f32.mxu0 %v18787_v54  ;;  %6724 = vmatprep.mubr.f32.mxu1 %v18787_v54 }
 0x261   :  { %2992 = vmatmul.mubr.f32.gmra.mrb[56].mxu0 %v19008_v6  ;;  %6726 = vmatmul.mubr.f32.gmra.mrb[56].mxu1 %v19008_v6  ;;  %v19011_v6 = vld [vmem:[#allocation21_spill] sm:$0xff] }
 0x262   :  { %2997 = vmatprep.mubr.f32.mxu0 %v18787_v54  ;;  %6731 = vmatprep.mubr.f32.mxu1 %v18787_v54 }
 0x265   :  { %2999 = vmatmul.mubr.f32.gmra.mrb[58].mxu0 %v19009_v56  ;;  %6733 = vmatmul.mubr.f32.gmra.mrb[58].mxu1 %v19009_v56  ;;  %v19012_v56 = vld [vmem:[#allocation125_spill] sm:$0xff] }
 0x266   :  { %3004 = vmatprep.mubr.f32.mxu0 %v18787_v54  ;;  %6738 = vmatprep.mubr.f32.mxu1 %v18787_v54 }
 0x269   :  { %3006 = vmatmul.mubr.f32.gmra.mrb[60].mxu0 %v19010_v39  ;;  %6740 = vmatmul.mubr.f32.gmra.mrb[60].mxu1 %v19010_v39  ;;  %v19013_v39 = vld [vmem:[#allocation128_spill] sm:$0xff] }
 0x26a   :  { %3011 = vmatprep.mubr.f32.mxu0 %v18787_v54  ;;  %6745 = vmatprep.mubr.f32.mxu1 %v18787_v54 }
 0x26d   :  { %3013 = vmatmul.mubr.f32.gmra.mrb[62].mxu0 %v19011_v6  ;;  %6747 = vmatmul.mubr.f32.gmra.mrb[62].mxu1 %v19011_v6  ;;  %v19014_v6 = vld [vmem:[#allocation129_spill] sm:$0xff] }
 0x26e   :  { %3018 = vmatprep.mubr.f32.mxu0 %v18787_v54  ;;  %6752 = vmatprep.mubr.f32.mxu1 %v18787_v54 }
 0x271   :  { %3020 = vmatmul.mubr.f32.gmra.mrb[64].mxu0 %v19012_v56  ;;  %6754 = vmatmul.mubr.f32.gmra.mrb[64].mxu1 %v19012_v56  ;;  %v19015_v56 = vld [vmem:[#allocation131_spill] sm:$0xff] }
 0x272   :  { %3025 = vmatprep.mubr.f32.mxu0 %v18787_v54  ;;  %6759 = vmatprep.mubr.f32.mxu1 %v18787_v54 }
 0x275   :  { %3027 = vmatmul.mubr.f32.gmra.mrb[66].mxu0 %v19013_v39  ;;  %6761 = vmatmul.mubr.f32.gmra.mrb[66].mxu1 %v19013_v39  ;;  %v19016_v39 = vld [vmem:[#allocation135_spill] sm:$0xff] }
 0x276   :  { %3032 = vmatprep.mubr.f32.mxu0 %v18787_v54  ;;  %6766 = vmatprep.mubr.f32.mxu1 %v18787_v54 }
 0x279   :  { %3034 = vmatmul.mubr.f32.gmra.mrb[68].mxu0 %v19014_v6  ;;  %6768 = vmatmul.mubr.f32.gmra.mrb[68].mxu1 %v19014_v6  ;;  %v19017_v6 = vld [vmem:[#allocation137_spill] sm:$0xff] }
 0x27a   :  { %3039 = vmatprep.mubr.f32.mxu0 %v18787_v54  ;;  %6773 = vmatprep.mubr.f32.mxu1 %v18787_v54 }
 0x27d   :  { %3041 = vmatmul.mubr.f32.gmra.mrb[70].mxu0 %v19015_v56  ;;  %6775 = vmatmul.mubr.f32.gmra.mrb[70].mxu1 %v19015_v56  ;;  %v19018_v56 = vld [vmem:[#allocation143_spill] sm:$0xff] }
 0x27e   :  { %3046 = vmatprep.mubr.f32.mxu0 %v18787_v54  ;;  %6780 = vmatprep.mubr.f32.mxu1 %v18787_v54 }
 0x281   :  { %3048 = vmatmul.mubr.f32.gmra.mrb[72].mxu0 %v19016_v39  ;;  %6782 = vmatmul.mubr.f32.gmra.mrb[72].mxu1 %v19016_v39  ;;  %v19019_v39 = vld [vmem:[#allocation146_spill] sm:$0xff] }
 0x282   :  { %3053 = vmatprep.mubr.f32.mxu0 %v18787_v54  ;;  %6787 = vmatprep.mubr.f32.mxu1 %v18787_v54 }
 0x285   :  { %3055 = vmatmul.mubr.f32.gmra.mrb[74].mxu0 %v19017_v6  ;;  %6789 = vmatmul.mubr.f32.gmra.mrb[74].mxu1 %v19017_v6  ;;  %v19020_v6 = vld [vmem:[#allocation149_spill] sm:$0xff] }
 0x286   :  { %3060 = vmatprep.mubr.f32.mxu0 %v18787_v54  ;;  %6794 = vmatprep.mubr.f32.mxu1 %v18787_v54 }
 0x289   :  { %3062 = vmatmul.mubr.f32.gmra.mrb[76].mxu0 %v19018_v56  ;;  %6796 = vmatmul.mubr.f32.gmra.mrb[76].mxu1 %v19018_v56  ;;  %v19021_v56 = vld [vmem:[#allocation152_spill] sm:$0xff] }
 0x28a   :  { %3067 = vmatprep.mubr.f32.mxu0 %v18787_v54  ;;  %6801 = vmatprep.mubr.f32.mxu1 %v18787_v54 }
 0x28d   :  { %3069 = vmatmul.mubr.f32.gmra.mrb[78].mxu0 %v19019_v39  ;;  %6803 = vmatmul.mubr.f32.gmra.mrb[78].mxu1 %v19019_v39  ;;  %v19022_v39 = vld [vmem:[#allocation154_spill] sm:$0xff] }
 0x28e   :  { %3074 = vmatprep.mubr.f32.mxu0 %v18787_v54  ;;  %6808 = vmatprep.mubr.f32.mxu1 %v18787_v54 }
 0x291   :  { %3076 = vmatmul.mubr.f32.gmra.mrb[80].mxu0 %v19020_v6  ;;  %6810 = vmatmul.mubr.f32.gmra.mrb[80].mxu1 %v19020_v6  ;;  %v19023_v6 = vld [vmem:[#allocation155_spill] sm:$0xff] }
 0x292   :  { %3081 = vmatprep.mubr.f32.mxu0 %v18787_v54  ;;  %6815 = vmatprep.mubr.f32.mxu1 %v18787_v54 }
 0x295   :  { %3083 = vmatmul.mubr.f32.gmra.mrb[82].mxu0 %v19021_v56  ;;  %6817 = vmatmul.mubr.f32.gmra.mrb[82].mxu1 %v19021_v56  ;;  %v19024_v56 = vld [vmem:[#allocation159_spill] sm:$0xff] }
 0x296   :  { %3088 = vmatprep.mubr.f32.mxu0 %v18787_v54  ;;  %6822 = vmatprep.mubr.f32.mxu1 %v18787_v54 }
 0x299   :  { %3090 = vmatmul.mubr.f32.gmra.mrb[84].mxu0 %v19022_v39  ;;  %6824 = vmatmul.mubr.f32.gmra.mrb[84].mxu1 %v19022_v39  ;;  %v19025_v39 = vld [vmem:[#allocation164_spill] sm:$0xff] }
 0x29a   :  { %3095 = vmatprep.mubr.f32.mxu0 %v18787_v54  ;;  %6829 = vmatprep.mubr.f32.mxu1 %v18787_v54 }
 0x29d   :  { %3097 = vmatmul.mubr.f32.gmra.mrb[86].mxu0 %v19023_v6  ;;  %6831 = vmatmul.mubr.f32.gmra.mrb[86].mxu1 %v19023_v6  ;;  %v19026_v6 = vld [vmem:[#allocation166_spill] sm:$0xff] }
 0x29e   :  { %3102 = vmatprep.mubr.f32.mxu0 %v18787_v54  ;;  %6836 = vmatprep.mubr.f32.mxu1 %v18787_v54 }
 0x2a1   :  { %3104 = vmatmul.mubr.f32.gmra.mrb[88].mxu0 %v19024_v56  ;;  %6838 = vmatmul.mubr.f32.gmra.mrb[88].mxu1 %v19024_v56  ;;  %v19027_v56 = vld [vmem:[#allocation169_spill] sm:$0xff] }
 0x2a2   :  { %3109 = vmatprep.mubr.f32.mxu0 %v18787_v54  ;;  %6843 = vmatprep.mubr.f32.mxu1 %v18787_v54 }
 0x2a5   :  { %3111 = vmatmul.mubr.f32.gmra.mrb[90].mxu0 %v19025_v39  ;;  %6845 = vmatmul.mubr.f32.gmra.mrb[90].mxu1 %v19025_v39  ;;  %v19028_v39 = vld [vmem:[#allocation172_spill] sm:$0xff] }
 0x2a6   :  { %3116 = vmatprep.mubr.f32.mxu0 %v18787_v54  ;;  %6850 = vmatprep.mubr.f32.mxu1 %v18787_v54 }
 0x2a9   :  { %3118 = vmatmul.mubr.f32.gmra.mrb[92].mxu0 %v19026_v6  ;;  %6852 = vmatmul.mubr.f32.gmra.mrb[92].mxu1 %v19026_v6  ;;  %v19049_v6 = vld [vmem:[#allocation44_spill] sm:$0xff] }
 0x2aa   :  { %3123 = vmatprep.mubr.f32.mxu0 %v18787_v54  ;;  %6857 = vmatprep.mubr.f32.mxu1 %v18787_v54 }
 0x2ad   :  { %3125 = vmatmul.mubr.f32.gmra.mrb[94].mxu0 %v19027_v56  ;;  %6859 = vmatmul.mubr.f32.gmra.mrb[94].mxu1 %v19027_v56  ;;  %v19048_v56 = vld [vmem:[#allocation29_spill] sm:$0xff] }
 0x2ae   :  { %3130 = vmatprep.mubr.f32.mxu0 %v18787_v54  ;;  %6864 = vmatprep.mubr.f32.mxu1 %v18787_v54 }
 0x2b1   :  { %3132 = vmatmul.mubr.f32.gmra.mrb[96].mxu0 %v19028_v39  ;;  %6866 = vmatmul.mubr.f32.gmra.mrb[96].mxu1 %v19028_v39  ;;  %v19046_v39 = vld [vmem:[#allocation40_spill] sm:$0xff] }
 0x2b2   :  { %3137 = vmatprep.mubr.f32.mxu0 %v18787_v54  ;;  %6871 = vmatprep.mubr.f32.mxu1 %v18787_v54 }
 0x2b5   :  { %3139 = vmatmul.mubr.f32.gmra.mrb[98].mxu0 %v15843_v61  ;;  %6873 = vmatmul.mubr.f32.gmra.mrb[98].mxu1 %v15843_v61  ;;  %v19045_v61 = vld [vmem:[#allocation27_spill] sm:$0xff] }
 0x2b6   :  { %3144 = vmatprep.mubr.f32.mxu0 %v18787_v54  ;;  %6878 = vmatprep.mubr.f32.mxu1 %v18787_v54 }
 0x2b9   :  { %3146 = vmatmul.mubr.f32.gmra.mrb[100].mxu0 %v15855_v13  ;;  %6880 = vmatmul.mubr.f32.gmra.mrb[100].mxu1 %v15855_v13  ;;  %v19044_v13 = vld [vmem:[#allocation25_spill] sm:$0xff] }
 0x2ba   :  { %3151 = vmatprep.mubr.f32.mxu0 %v18787_v54  ;;  %6885 = vmatprep.mubr.f32.mxu1 %v18787_v54 }
 0x2bd   :  { %3153 = vmatmul.mubr.f32.gmra.mrb[102].mxu0 %v15861_v11  ;;  %6887 = vmatmul.mubr.f32.gmra.mrb[102].mxu1 %v15861_v11  ;;  %v19029_v11 = vld [vmem:[#allocation190_spill] sm:$0xff] }
 0x2be   :  { %3158 = vmatprep.mubr.f32.mxu0 %v18787_v54  ;;  %6892 = vmatprep.mubr.f32.mxu1 %v18787_v54 }
 0x2c1   :  { %3160 = vmatmul.mubr.f32.gmra.mrb[104].mxu0 %v15867_v21  ;;  %6894 = vmatmul.mubr.f32.gmra.mrb[104].mxu1 %v15867_v21  ;;  %v19030_v21 = vld [vmem:[#allocation192_spill] sm:$0xff] }
 0x2c2   :  { %3165 = vmatprep.mubr.f32.mxu0 %v18787_v54  ;;  %6899 = vmatprep.mubr.f32.mxu1 %v18787_v54 }
 0x2c5   :  { %3167 = vmatmul.mubr.f32.gmra.mrb[106].mxu0 %v15886_v45  ;;  %6901 = vmatmul.mubr.f32.gmra.mrb[106].mxu1 %v15886_v45  ;;  %v19043_v45 = vld [vmem:[#allocation22_spill] sm:$0xff] }
 0x2c6   :  { %3172 = vmatprep.mubr.f32.mxu0 %v18787_v54  ;;  %6906 = vmatprep.mubr.f32.mxu1 %v18787_v54 }
 0x2c9   :  { %3174 = vmatmul.mubr.f32.gmra.mrb[108].mxu0 %v19029_v11  ;;  %6908 = vmatmul.mubr.f32.gmra.mrb[108].mxu1 %v19029_v11  ;;  %v19041_v11 = vld [vmem:[#allocation39_spill] sm:$0xff] }
 0x2ca   :  { %3179 = vmatprep.mubr.f32.mxu0 %v18787_v54  ;;  %6913 = vmatprep.mubr.f32.mxu1 %v18787_v54 }
 0x2cd   :  { %3181 = vmatmul.mubr.f32.gmra.mrb[110].mxu0 %v19030_v21  ;;  %6915 = vmatmul.mubr.f32.gmra.mrb[110].mxu1 %v19030_v21  ;;  %v19040_v21 = vld [vmem:[#allocation18_spill] sm:$0xff] }
 0x2ce   :  { %3186 = vmatprep.mubr.f32.mxu0 %v18787_v54  ;;  %6920 = vmatprep.mubr.f32.mxu1 %v18787_v54 }
 0x2d1   :  { %3188 = vmatmul.mubr.f32.gmra.mrb[112].mxu0 %v15994_v8  ;;  %6922 = vmatmul.mubr.f32.gmra.mrb[112].mxu1 %v15994_v8  ;;  %v19039_v8 = vld [vmem:[#allocation17_spill] sm:$0xff] }
 0x2d2   :  { %3193 = vmatprep.mubr.f32.mxu0 %v18787_v54  ;;  %6927 = vmatprep.mubr.f32.mxu1 %v18787_v54 }
 0x2d5   :  { %3195 = vmatmul.mubr.f32.gmra.mrb[114].mxu0 %v16012_v50  ;;  %6929 = vmatmul.mubr.f32.gmra.mrb[114].mxu1 %v16012_v50  ;;  %v19038_v50 = vld [vmem:[#allocation16_spill] sm:$0xff] }
 0x2d6   :  { %3200 = vmatprep.mubr.f32.mxu0 %v18787_v54  ;;  %6934 = vmatprep.mubr.f32.mxu1 %v18787_v54 }
 0x2d9   :  { %3202 = vmatmul.mubr.f32.gmra.mrb[116].mxu0 %v16019_v16  ;;  %6936 = vmatmul.mubr.f32.gmra.mrb[116].mxu1 %v16019_v16  ;;  %v19035_v16 = vld [vmem:[#allocation14_spill] sm:$0xff] }
 0x2da   :  { %3207 = vmatprep.mubr.f32.mxu0 %v18787_v54  ;;  %6941 = vmatprep.mubr.f32.mxu1 %v18787_v54 }
 0x2dd   :  { %3209 = vmatmul.mubr.f32.gmra.mrb[118].mxu0 %v16035_v37  ;;  %6943 = vmatmul.mubr.f32.gmra.mrb[118].mxu1 %v16035_v37  ;;  %v19033_v37 = vld [vmem:[#allocation10_spill] sm:$0xff] }
 0x2de   :  { %3214 = vmatprep.mubr.f32.mxu0 %v18787_v54  ;;  %6948 = vmatprep.mubr.f32.mxu1 %v18787_v54 }
 0x2e1   :  { %3216 = vmatmul.mubr.f32.gmra.mrb[120].mxu0 %v16038_v24  ;;  %6950 = vmatmul.mubr.f32.gmra.mrb[120].mxu1 %v16038_v24  ;;  %v19032_v24 = vld [vmem:[#allocation8_spill] sm:$0xff] }
 0x2e2   :  { %3221 = vmatprep.mubr.f32.mxu0 %v18787_v54  ;;  %6955 = vmatprep.mubr.f32.mxu1 %v18787_v54 }
 0x2e5   :  { %3223 = vmatmul.mubr.f32.gmra.mrb[122].mxu0 %v16065_v14  ;;  %6957 = vmatmul.mubr.f32.gmra.mrb[122].mxu1 %v16065_v14  ;;  %v19031_v14 = vld [vmem:[#allocation32_spill] sm:$0xff] }
 0x2e6   :  { %3228 = vmatprep.mubr.f32.mxu0 %v18787_v54  ;;  %6962 = vmatprep.mubr.f32.mxu1 %v18787_v54 }
 0x2e9   :  { %3230 = vmatmul.mubr.f32.gmra.mrb[124].mxu0 %v16080_v26  ;;  %6964 = vmatmul.mubr.f32.gmra.mrb[124].mxu1 %v16080_v26  ;;  %v19034_v26 = vld [vmem:[#allocation13_spill] sm:$0xff] }
 0x2ea   :  { %3235 = vmatprep.mubr.f32.mxu0 %v18787_v54  ;;  %6969 = vmatprep.mubr.f32.mxu1 %v18787_v54 }
 0x2ed   :  { %3237 = vmatmul.mubr.f32.gmra.mrb[126].mxu0 %v16102_v27  ;;  %6971 = vmatmul.mubr.f32.gmra.mrb[126].mxu1 %v16102_v27  ;;  %v19036_v27 = vld [vmem:[#allocation35_spill] sm:$0xff] }
 0x2ee   :  { %3339 = vmatprep.mubr.f32.mxu0 %v18787_v54  ;;  %7073 = vmatprep.mubr.f32.mxu1 %v18787_v54 }
 0x2f1   :  { %3342 = vmatmul.mubr.f32.vlgmr.msra.gmra.mrb[0].mxu0 %v19031_v14  ;;  %7076 = vmatmul.mubr.f32.vlgmr.msra.gmra.mrb[0].mxu1 %v19031_v14  ;;  %v19037_v14 = vld [vmem:[#allocation15_spill] sm:$0xff] }
 0x2f2   :  { %11642 = vmatpush1.bf16.msra.mxu0 %v19032_v24  ;;  %11738 = vmatpush1.bf16.msra.mxu1 %v19033_v37 }
 0x2f3   :  { %3347 = vmatprep.mubr.f32.mxu0 %v18787_v54  ;;  %7081 = vmatprep.mubr.f32.mxu1 %v18787_v54 }
 0x2f4   :  { %11644 = vmatprep.subr.bf16.mxu0 %v19034_v26  ;;  %11740 = vmatprep.subr.bf16.mxu1 %v19035_v16 }
 0x2f5   :  { %3350 = vmatmul.mubr.f32.gmra.mrb[2].mxu0 %v19036_v27  ;;  %7084 = vmatmul.mubr.f32.gmra.mrb[2].mxu1 %v19036_v27  ;;  %v19042_v27 = vld [vmem:[#allocation19_spill] sm:$0xff] }
 0x2f6   :  { %3355 = vmatprep.mubr.f32.mxu0 %v18787_v54  ;;  %7089 = vmatprep.mubr.f32.mxu1 %v18787_v54 }
 0x2f7   :  { %11646 = vmatpush1.bf16.msra.mxu0 %v19037_v14  ;;  %11742 = vmatpush1.bf16.msra.mxu1 %v19038_v50 }
 0x2f8   :  { %11648 = vmatprep.subr.bf16.mxu0 %v19039_v8  ;;  %11744 = vmatprep.subr.bf16.mxu1 %v19040_v21 }
 0x2f9   :  { %3358 = vmatmul.mubr.f32.gmra.mrb[4].mxu0 %v19041_v11  ;;  %7092 = vmatmul.mubr.f32.gmra.mrb[4].mxu1 %v19041_v11  ;;  %v19047_v11 = vld [vmem:[#allocation28_spill] sm:$0xff] }
 0x2fa   :  { %3363 = vmatprep.mubr.f32.mxu0 %v18787_v54  ;;  %7097 = vmatprep.mubr.f32.mxu1 %v18787_v54 }
 0x2fb   :  { %11650 = vmatpush1.bf16.msra.mxu0 %v19042_v27  ;;  %11746 = vmatpush1.bf16.msra.mxu1 %v19043_v45 }
 0x2fc   :  { %11652 = vmatprep.subr.bf16.mxu0 %v19044_v13  ;;  %11748 = vmatprep.subr.bf16.mxu1 %v19045_v61 }
 0x2fd   :  { %3366 = vmatmul.mubr.f32.gmra.mrb[6].mxu0 %v19046_v39  ;;  %7100 = vmatmul.mubr.f32.gmra.mrb[6].mxu1 %v19046_v39  ;;  %v19051_v39 = vld [vmem:[#allocation50_spill] sm:$0xff] }
 0x2fe   :  { %3371 = vmatprep.mubr.f32.mxu0 %v18787_v54  ;;  %7105 = vmatprep.mubr.f32.mxu1 %v18787_v54 }
 0x2ff   :  { %11654 = vmatpush1.bf16.msra.mxu0 %v19047_v11  ;;  %11750 = vmatpush1.bf16.msra.mxu1 %v19048_v56  ;;  %v19080_v56 = vand.u32 4294901760, %v14275_v30  ;;  %v19081_v11 = vand.u32 4294901760, %v14277_v35  ;;  %v19085_v30 = vld [vmem:[#allocation139_spill] sm:$0xff]  ;;  %v19086_v35 = vld [vmem:[#allocation140_spill] sm:$0xff] }
 0x301   :  { %3374 = vmatmul.mubr.f32.gmra.mrb[8].mxu0 %v19049_v6  ;;  %7108 = vmatmul.mubr.f32.gmra.mrb[8].mxu1 %v19049_v6  ;;  %v19052_v6 = vld [vmem:[#allocation53_spill] sm:$0xff]  ;;  %v11751_v61 = vpack.c.bf16 %v19081_v11, %v19080_v56 }
 0x302   :  { %3379 = vmatprep.mubr.f32.mxu0 %v18787_v54  ;;  %7113 = vmatprep.mubr.f32.mxu1 %v18787_v54  ;;  %v19090_v56 = vld [vmem:[#allocation153_spill] sm:$0xff] }
 0x303   :  { %11752 = vmatprep.subr.bf16.mxu1 %v11751_v61  ;;  %v19087_v61 = vld [vmem:[#allocation144_spill] sm:$0xff]  ;;  %v19091_v11 = vld [vmem:[#allocation157_spill] sm:$0xff] }
 0x305   :  { %3382 = vmatmul.mubr.f32.gmra.mrb[10].mxu0 %v19050_v18  ;;  %7116 = vmatmul.mubr.f32.gmra.mrb[10].mxu1 %v19050_v18  ;;  %v19053_v18 = vld [vmem:[#allocation56_spill] sm:$0xff] }
 0x306   :  { %3387 = vmatprep.mubr.f32.mxu0 %v18787_v54  ;;  %7121 = vmatprep.mubr.f32.mxu1 %v18787_v54 }
 0x309   :  { %3390 = vmatmul.mubr.f32.gmra.mrb[12].mxu0 %v19051_v39  ;;  %7124 = vmatmul.mubr.f32.gmra.mrb[12].mxu1 %v19051_v39  ;;  %v19054_v39 = vld [vmem:[#allocation60_spill] sm:$0xff] }
 0x30a   :  { %3395 = vmatprep.mubr.f32.mxu0 %v18787_v54  ;;  %7129 = vmatprep.mubr.f32.mxu1 %v18787_v54 }
 0x30d   :  { %3398 = vmatmul.mubr.f32.gmra.mrb[14].mxu0 %v19052_v6  ;;  %7132 = vmatmul.mubr.f32.gmra.mrb[14].mxu1 %v19052_v6  ;;  %v19055_v6 = vld [vmem:[#allocation61_spill] sm:$0xff] }
 0x30e   :  { %3403 = vmatprep.mubr.f32.mxu0 %v18787_v54  ;;  %7137 = vmatprep.mubr.f32.mxu1 %v18787_v54 }
 0x311   :  { %3406 = vmatmul.mubr.f32.gmra.mrb[16].mxu0 %v19053_v18  ;;  %7140 = vmatmul.mubr.f32.gmra.mrb[16].mxu1 %v19053_v18  ;;  %v19056_v18 = vld [vmem:[#allocation65_spill] sm:$0xff] }
 0x312   :  { %3411 = vmatprep.mubr.f32.mxu0 %v18787_v54  ;;  %7145 = vmatprep.mubr.f32.mxu1 %v18787_v54 }
 0x315   :  { %3414 = vmatmul.mubr.f32.gmra.mrb[18].mxu0 %v19054_v39  ;;  %7148 = vmatmul.mubr.f32.gmra.mrb[18].mxu1 %v19054_v39  ;;  %v19057_v39 = vld [vmem:[#allocation69_spill] sm:$0xff] }
 0x316   :  { %3419 = vmatprep.mubr.f32.mxu0 %v18787_v54  ;;  %7153 = vmatprep.mubr.f32.mxu1 %v18787_v54 }
 0x319   :  { %3422 = vmatmul.mubr.f32.gmra.mrb[20].mxu0 %v19055_v6  ;;  %7156 = vmatmul.mubr.f32.gmra.mrb[20].mxu1 %v19055_v6  ;;  %v19058_v6 = vld [vmem:[#allocation70_spill] sm:$0xff] }
 0x31a   :  { %3427 = vmatprep.mubr.f32.mxu0 %v18787_v54  ;;  %7161 = vmatprep.mubr.f32.mxu1 %v18787_v54 }
 0x31d   :  { %3430 = vmatmul.mubr.f32.gmra.mrb[22].mxu0 %v19056_v18  ;;  %7164 = vmatmul.mubr.f32.gmra.mrb[22].mxu1 %v19056_v18  ;;  %v19059_v18 = vld [vmem:[#allocation74_spill] sm:$0xff] }
 0x31e   :  { %3435 = vmatprep.mubr.f32.mxu0 %v18787_v54  ;;  %7169 = vmatprep.mubr.f32.mxu1 %v18787_v54 }
 0x321   :  { %3438 = vmatmul.mubr.f32.gmra.mrb[24].mxu0 %v19057_v39  ;;  %7172 = vmatmul.mubr.f32.gmra.mrb[24].mxu1 %v19057_v39  ;;  %v19060_v39 = vld [vmem:[#allocation77_spill] sm:$0xff] }
 0x322   :  { %3443 = vmatprep.mubr.f32.mxu0 %v18787_v54  ;;  %7177 = vmatprep.mubr.f32.mxu1 %v18787_v54 }
 0x325   :  { %3446 = vmatmul.mubr.f32.gmra.mrb[26].mxu0 %v19058_v6  ;;  %7180 = vmatmul.mubr.f32.gmra.mrb[26].mxu1 %v19058_v6  ;;  %v19061_v6 = vld [vmem:[#allocation80_spill] sm:$0xff] }
 0x326   :  { %3451 = vmatprep.mubr.f32.mxu0 %v18787_v54  ;;  %7185 = vmatprep.mubr.f32.mxu1 %v18787_v54 }
 0x329   :  { %3454 = vmatmul.mubr.f32.gmra.mrb[28].mxu0 %v19059_v18  ;;  %7188 = vmatmul.mubr.f32.gmra.mrb[28].mxu1 %v19059_v18  ;;  %v19062_v18 = vld [vmem:[#allocation84_spill] sm:$0xff] }
 0x32a   :  { %3459 = vmatprep.mubr.f32.mxu0 %v18787_v54  ;;  %7193 = vmatprep.mubr.f32.mxu1 %v18787_v54 }
 0x32d   :  { %3462 = vmatmul.mubr.f32.gmra.mrb[30].mxu0 %v19060_v39  ;;  %7196 = vmatmul.mubr.f32.gmra.mrb[30].mxu1 %v19060_v39  ;;  %v19063_v39 = vld [vmem:[#allocation86_spill] sm:$0xff] }
 0x32e   :  { %3467 = vmatprep.mubr.f32.mxu0 %v18787_v54  ;;  %7201 = vmatprep.mubr.f32.mxu1 %v18787_v54 }
 0x331   :  { %3470 = vmatmul.mubr.f32.gmra.mrb[32].mxu0 %v19061_v6  ;;  %7204 = vmatmul.mubr.f32.gmra.mrb[32].mxu1 %v19061_v6  ;;  %v19064_v6 = vld [vmem:[#allocation89_spill] sm:$0xff] }
 0x332   :  { %3475 = vmatprep.mubr.f32.mxu0 %v18787_v54  ;;  %7209 = vmatprep.mubr.f32.mxu1 %v18787_v54 }
 0x335   :  { %3478 = vmatmul.mubr.f32.gmra.mrb[34].mxu0 %v19062_v18  ;;  %7212 = vmatmul.mubr.f32.gmra.mrb[34].mxu1 %v19062_v18  ;;  %v19065_v18 = vld [vmem:[#allocation91_spill] sm:$0xff] }
 0x336   :  { %3483 = vmatprep.mubr.f32.mxu0 %v18787_v54  ;;  %7217 = vmatprep.mubr.f32.mxu1 %v18787_v54 }
 0x339   :  { %3486 = vmatmul.mubr.f32.gmra.mrb[36].mxu0 %v19063_v39  ;;  %7220 = vmatmul.mubr.f32.gmra.mrb[36].mxu1 %v19063_v39  ;;  %v19066_v39 = vld [vmem:[#allocation95_spill] sm:$0xff] }
 0x33a   :  { %3491 = vmatprep.mubr.f32.mxu0 %v18787_v54  ;;  %7225 = vmatprep.mubr.f32.mxu1 %v18787_v54 }
 0x33d   :  { %3494 = vmatmul.mubr.f32.gmra.mrb[38].mxu0 %v19064_v6  ;;  %7228 = vmatmul.mubr.f32.gmra.mrb[38].mxu1 %v19064_v6  ;;  %v19067_v6 = vld [vmem:[#allocation98_spill] sm:$0xff] }
 0x33e   :  { %3499 = vmatprep.mubr.f32.mxu0 %v18787_v54  ;;  %7233 = vmatprep.mubr.f32.mxu1 %v18787_v54 }
 0x341   :  { %3502 = vmatmul.mubr.f32.gmra.mrb[40].mxu0 %v19065_v18  ;;  %7236 = vmatmul.mubr.f32.gmra.mrb[40].mxu1 %v19065_v18  ;;  %v19068_v18 = vld [vmem:[#allocation101_spill] sm:$0xff] }
 0x342   :  { %3507 = vmatprep.mubr.f32.mxu0 %v18787_v54  ;;  %7241 = vmatprep.mubr.f32.mxu1 %v18787_v54 }
 0x345   :  { %3510 = vmatmul.mubr.f32.gmra.mrb[42].mxu0 %v19066_v39  ;;  %7244 = vmatmul.mubr.f32.gmra.mrb[42].mxu1 %v19066_v39  ;;  %v19069_v39 = vld [vmem:[#allocation104_spill] sm:$0xff] }
 0x346   :  { %3515 = vmatprep.mubr.f32.mxu0 %v18787_v54  ;;  %7249 = vmatprep.mubr.f32.mxu1 %v18787_v54 }
 0x349   :  { %3518 = vmatmul.mubr.f32.gmra.mrb[44].mxu0 %v19067_v6  ;;  %7252 = vmatmul.mubr.f32.gmra.mrb[44].mxu1 %v19067_v6  ;;  %v19070_v6 = vld [vmem:[#allocation108_spill] sm:$0xff] }
 0x34a   :  { %3523 = vmatprep.mubr.f32.mxu0 %v18787_v54  ;;  %7257 = vmatprep.mubr.f32.mxu1 %v18787_v54 }
 0x34d   :  { %3526 = vmatmul.mubr.f32.gmra.mrb[46].mxu0 %v19068_v18  ;;  %7260 = vmatmul.mubr.f32.gmra.mrb[46].mxu1 %v19068_v18  ;;  %v19071_v18 = vld [vmem:[#allocation110_spill] sm:$0xff] }
 0x34e   :  { %3531 = vmatprep.mubr.f32.mxu0 %v18787_v54  ;;  %7265 = vmatprep.mubr.f32.mxu1 %v18787_v54 }
 0x351   :  { %3534 = vmatmul.mubr.f32.gmra.mrb[48].mxu0 %v19069_v39  ;;  %7268 = vmatmul.mubr.f32.gmra.mrb[48].mxu1 %v19069_v39  ;;  %v19072_v39 = vld [vmem:[#allocation112_spill] sm:$0xff] }
 0x352   :  { %3539 = vmatprep.mubr.f32.mxu0 %v18787_v54  ;;  %7273 = vmatprep.mubr.f32.mxu1 %v18787_v54 }
 0x355   :  { %3542 = vmatmul.mubr.f32.gmra.mrb[50].mxu0 %v19070_v6  ;;  %7276 = vmatmul.mubr.f32.gmra.mrb[50].mxu1 %v19070_v6  ;;  %v19073_v6 = vld [vmem:[#allocation116_spill] sm:$0xff] }
 0x356   :  { %3547 = vmatprep.mubr.f32.mxu0 %v18787_v54  ;;  %7281 = vmatprep.mubr.f32.mxu1 %v18787_v54 }
 0x359   :  { %3550 = vmatmul.mubr.f32.gmra.mrb[52].mxu0 %v19071_v18  ;;  %7284 = vmatmul.mubr.f32.gmra.mrb[52].mxu1 %v19071_v18  ;;  %v19074_v18 = vld [vmem:[#allocation119_spill] sm:$0xff] }
 0x35a   :  { %3555 = vmatprep.mubr.f32.mxu0 %v18787_v54  ;;  %7289 = vmatprep.mubr.f32.mxu1 %v18787_v54 }
 0x35d   :  { %3558 = vmatmul.mubr.f32.gmra.mrb[54].mxu0 %v19072_v39  ;;  %7292 = vmatmul.mubr.f32.gmra.mrb[54].mxu1 %v19072_v39  ;;  %v19075_v39 = vld [vmem:[#allocation20_spill] sm:$0xff] }
 0x35e   :  { %3563 = vmatprep.mubr.f32.mxu0 %v18787_v54  ;;  %7297 = vmatprep.mubr.f32.mxu1 %v18787_v54 }
 0x361   :  { %3566 = vmatmul.mubr.f32.gmra.mrb[56].mxu0 %v19073_v6  ;;  %7300 = vmatmul.mubr.f32.gmra.mrb[56].mxu1 %v19073_v6  ;;  %v19076_v6 = vld [vmem:[#allocation123_spill] sm:$0xff] }
 0x362   :  { %3571 = vmatprep.mubr.f32.mxu0 %v18787_v54  ;;  %7305 = vmatprep.mubr.f32.mxu1 %v18787_v54 }
 0x365   :  { %3574 = vmatmul.mubr.f32.gmra.mrb[58].mxu0 %v19074_v18  ;;  %7308 = vmatmul.mubr.f32.gmra.mrb[58].mxu1 %v19074_v18  ;;  %v19077_v18 = vld [vmem:[#allocation126_spill] sm:$0xff] }
 0x366   :  { %3579 = vmatprep.mubr.f32.mxu0 %v18787_v54  ;;  %7313 = vmatprep.mubr.f32.mxu1 %v18787_v54 }
 0x369   :  { %3582 = vmatmul.mubr.f32.gmra.mrb[60].mxu0 %v19075_v39  ;;  %7316 = vmatmul.mubr.f32.gmra.mrb[60].mxu1 %v19075_v39  ;;  %v19079_v39 = vand.u32 4294901760, %v14268_v5  ;;  %v19084_v5 = vld [vmem:[#allocation134_spill] sm:$0xff] }
 0x36a   :  { %3587 = vmatprep.mubr.f32.mxu0 %v18787_v54  ;;  %7321 = vmatprep.mubr.f32.mxu1 %v18787_v54 }
 0x36b   :  { %v11655_v58 = vpack.c.bf16 %v19079_v39, %v19078_v0  ;;  %v19088_v0 = vld [vmem:[#allocation147_spill] sm:$0xff]  ;;  %v19093_v39 = vld [vmem:[#allocation162_spill] sm:$0xff] }
 0x36d   :  { %3590 = vmatmul.mubr.f32.gmra.mrb[62].mxu0 %v19076_v6  ;;  %7324 = vmatmul.mubr.f32.gmra.mrb[62].mxu1 %v19076_v6  ;;  %v19082_v6 = vld [vmem:[#allocation130_spill] sm:$0xff] }
 0x36e   :  { %3595 = vmatprep.mubr.f32.mxu0 %v18787_v54  ;;  %7329 = vmatprep.mubr.f32.mxu1 %v18787_v54 }
 0x36f   :  { %11656 = vmatprep.subr.bf16.mxu0 %v11655_v58  ;;  %v19089_v58 = vld [vmem:[#allocation150_spill] sm:$0xff] }
 0x371   :  { %3598 = vmatmul.mubr.f32.gmra.mrb[64].mxu0 %v19077_v18  ;;  %7332 = vmatmul.mubr.f32.gmra.mrb[64].mxu1 %v19077_v18  ;;  %v19092_v18 = vld [vmem:[#allocation158_spill] sm:$0xff] }
 0x372   :  { %3603 = vmatprep.mubr.f32.mxu0 %v18787_v54  ;;  %7337 = vmatprep.mubr.f32.mxu1 %v18787_v54 }
 0x375   :  { %3606 = vmatmul.mubr.f32.gmra.mrb[66].mxu0 %v19082_v6  ;;  %7340 = vmatmul.mubr.f32.gmra.mrb[66].mxu1 %v19082_v6  ;;  %v19094_v6 = vld [vmem:[#allocation165_spill] sm:$0xff] }
 0x376   :  { %3611 = vmatprep.mubr.f32.mxu0 %v18787_v54  ;;  %7345 = vmatprep.mubr.f32.mxu1 %v18787_v54 }
 0x379   :  { %3614 = vmatmul.mubr.f32.gmra.mrb[68].mxu0 %v19083_v4  ;;  %7348 = vmatmul.mubr.f32.gmra.mrb[68].mxu1 %v19083_v4  ;;  %v19095_v4 = vld [vmem:[#allocation167_spill] sm:$0xff] }
 0x37a   :  { %3619 = vmatprep.mubr.f32.mxu0 %v18787_v54  ;;  %7353 = vmatprep.mubr.f32.mxu1 %v18787_v54 }
 0x37d   :  { %3622 = vmatmul.mubr.f32.gmra.mrb[70].mxu0 %v19084_v5  ;;  %7356 = vmatmul.mubr.f32.gmra.mrb[70].mxu1 %v19084_v5  ;;  %v19096_v5 = vld [vmem:[#allocation170_spill] sm:$0xff] }
 0x37e   :  { %3627 = vmatprep.mubr.f32.mxu0 %v18787_v54  ;;  %7361 = vmatprep.mubr.f32.mxu1 %v18787_v54 }
 0x381   :  { %3630 = vmatmul.mubr.f32.gmra.mrb[72].mxu0 %v19085_v30  ;;  %7364 = vmatmul.mubr.f32.gmra.mrb[72].mxu1 %v19085_v30  ;;  %v19097_v30 = vld [vmem:[#allocation173_spill] sm:$0xff] }
 0x382   :  { %3635 = vmatprep.mubr.f32.mxu0 %v18787_v54  ;;  %7369 = vmatprep.mubr.f32.mxu1 %v18787_v54 }
 0x385   :  { %3638 = vmatmul.mubr.f32.gmra.mrb[74].mxu0 %v19086_v35  ;;  %7372 = vmatmul.mubr.f32.gmra.mrb[74].mxu1 %v19086_v35  ;;  %v19098_v35 = vld [vmem:[#allocation176_spill] sm:$0xff] }
 0x386   :  { %3643 = vmatprep.mubr.f32.mxu0 %v18787_v54  ;;  %7377 = vmatprep.mubr.f32.mxu1 %v18787_v54 }
 0x389   :  { %3646 = vmatmul.mubr.f32.gmra.mrb[76].mxu0 %v19087_v61  ;;  %7380 = vmatmul.mubr.f32.gmra.mrb[76].mxu1 %v19087_v61  ;;  %v19099_v61 = vld [vmem:[#allocation180_spill] sm:$0xff] }
 0x38a   :  { %3651 = vmatprep.mubr.f32.mxu0 %v18787_v54  ;;  %7385 = vmatprep.mubr.f32.mxu1 %v18787_v54 }
 0x38d   :  { %3654 = vmatmul.mubr.f32.gmra.mrb[78].mxu0 %v19088_v0  ;;  %7388 = vmatmul.mubr.f32.gmra.mrb[78].mxu1 %v19088_v0  ;;  %v19100_v0 = vld [vmem:[#allocation182_spill] sm:$0xff] }
 0x38e   :  { %3659 = vmatprep.mubr.f32.mxu0 %v18787_v54  ;;  %7393 = vmatprep.mubr.f32.mxu1 %v18787_v54 }
 0x391   :  { %3662 = vmatmul.mubr.f32.gmra.mrb[80].mxu0 %v19089_v58  ;;  %7396 = vmatmul.mubr.f32.gmra.mrb[80].mxu1 %v19089_v58  ;;  %v19101_v58 = vld [vmem:[#allocation184_spill] sm:$0xff] }
 0x392   :  { %3667 = vmatprep.mubr.f32.mxu0 %v18787_v54  ;;  %7401 = vmatprep.mubr.f32.mxu1 %v18787_v54 }
 0x395   :  { %3670 = vmatmul.mubr.f32.gmra.mrb[82].mxu0 %v19090_v56  ;;  %7404 = vmatmul.mubr.f32.gmra.mrb[82].mxu1 %v19090_v56  ;;  %v19102_v56 = vld [vmem:[#allocation188_spill] sm:$0xff] }
 0x396   :  { %3675 = vmatprep.mubr.f32.mxu0 %v18787_v54  ;;  %7409 = vmatprep.mubr.f32.mxu1 %v18787_v54 }
 0x399   :  { %3678 = vmatmul.mubr.f32.gmra.mrb[84].mxu0 %v19091_v11  ;;  %7412 = vmatmul.mubr.f32.gmra.mrb[84].mxu1 %v19091_v11  ;;  %v19103_v11 = vld [vmem:[#allocation191_spill] sm:$0xff] }
 0x39a   :  { %3683 = vmatprep.mubr.f32.mxu0 %v18787_v54  ;;  %7417 = vmatprep.mubr.f32.mxu1 %v18787_v54 }
 0x39d   :  { %3686 = vmatmul.mubr.f32.gmra.mrb[86].mxu0 %v19092_v18  ;;  %7420 = vmatmul.mubr.f32.gmra.mrb[86].mxu1 %v19092_v18  ;;  %v19104_v18 = vld [vmem:[#allocation194_spill] sm:$0xff] }
 0x39e   :  { %3691 = vmatprep.mubr.f32.mxu0 %v18787_v54  ;;  %7425 = vmatprep.mubr.f32.mxu1 %v18787_v54 }
 0x3a1   :  { %3694 = vmatmul.mubr.f32.gmra.mrb[88].mxu0 %v19093_v39  ;;  %7428 = vmatmul.mubr.f32.gmra.mrb[88].mxu1 %v19093_v39  ;;  %v19110_v39 = vand.u32 4294901760, %v14350_v38 }
 0x3a2   :  { %3699 = vmatprep.mubr.f32.mxu0 %v18787_v54  ;;  %7433 = vmatprep.mubr.f32.mxu1 %v18787_v54 }
 0x3a5   :  { %3702 = vmatmul.mubr.f32.gmra.mrb[90].mxu0 %v19094_v6  ;;  %7436 = vmatmul.mubr.f32.gmra.mrb[90].mxu1 %v19094_v6 }
 0x3a6   :  { %3707 = vmatprep.mubr.f32.mxu0 %v18787_v54  ;;  %7441 = vmatprep.mubr.f32.mxu1 %v18787_v54 }
 0x3a9   :  { %3710 = vmatmul.mubr.f32.gmra.mrb[92].mxu0 %v19095_v4  ;;  %7444 = vmatmul.mubr.f32.gmra.mrb[92].mxu1 %v19095_v4  ;;  %v19112_v4 = vand.u32 4294901760, %v14361_v53  ;;  %v19117_v53 = vand.u32 4294901760, %v14415_v7  ;;  %v19125_v7 = vand.u32 4294901760, %v18977_v36  ;;  %v19130_v36 = vld [vmem:[#allocation49_spill] sm:$0xff] }
 0x3aa   :  { %3715 = vmatprep.mubr.f32.mxu0 %v18787_v54  ;;  %7449 = vmatprep.mubr.f32.mxu1 %v18787_v54 }
 0x3ad   :  { %3718 = vmatmul.mubr.f32.gmra.mrb[94].mxu0 %v19096_v5  ;;  %7452 = vmatmul.mubr.f32.gmra.mrb[94].mxu1 %v19096_v5 }
 0x3ae   :  { %3723 = vmatprep.mubr.f32.mxu0 %v18787_v54  ;;  %7457 = vmatprep.mubr.f32.mxu1 %v18787_v54 }
 0x3b1   :  { %3726 = vmatmul.mubr.f32.gmra.mrb[96].mxu0 %v19097_v30  ;;  %7460 = vmatmul.mubr.f32.gmra.mrb[96].mxu1 %v19097_v30  ;;  %v19113_v30 = vld [vmem:[#allocation33_spill] sm:$0xff] }
 0x3b2   :  { %3731 = vmatprep.mubr.f32.mxu0 %v18787_v54  ;;  %7465 = vmatprep.mubr.f32.mxu1 %v18787_v54 }
 0x3b5   :  { %3734 = vmatmul.mubr.f32.gmra.mrb[98].mxu0 %v19098_v35  ;;  %7468 = vmatmul.mubr.f32.gmra.mrb[98].mxu1 %v19098_v35 }
 0x3b6   :  { %3739 = vmatprep.mubr.f32.mxu0 %v18787_v54  ;;  %7473 = vmatprep.mubr.f32.mxu1 %v18787_v54 }
 0x3b9   :  { %3742 = vmatmul.mubr.f32.gmra.mrb[100].mxu0 %v19099_v61  ;;  %7476 = vmatmul.mubr.f32.gmra.mrb[100].mxu1 %v19099_v61  ;;  %v19120_v61 = vand.u32 4294901760, %v14451_v34 }
 0x3ba   :  { %3747 = vmatprep.mubr.f32.mxu0 %v18787_v54  ;;  %7481 = vmatprep.mubr.f32.mxu1 %v18787_v54 }
 0x3bd   :  { %3750 = vmatmul.mubr.f32.gmra.mrb[102].mxu0 %v19100_v0  ;;  %7484 = vmatmul.mubr.f32.gmra.mrb[102].mxu1 %v19100_v0  ;;  %v19121_v0 = vand.u32 4294901760, %v14458_v29  ;;  %v19127_v29 = vld [vmem:[#allocation42_spill] sm:$0xff] }
 0x3be   :  { %3755 = vmatprep.mubr.f32.mxu0 %v18787_v54  ;;  %7489 = vmatprep.mubr.f32.mxu1 %v18787_v54 }
 0x3c1   :  { %3758 = vmatmul.mubr.f32.gmra.mrb[104].mxu0 %v19101_v58  ;;  %7492 = vmatmul.mubr.f32.gmra.mrb[104].mxu1 %v19101_v58  ;;  %v19122_v58 = vld [vmem:[#allocation38_spill] sm:$0xff] }
 0x3c2   :  { %3763 = vmatprep.mubr.f32.mxu0 %v18787_v54  ;;  %7497 = vmatprep.mubr.f32.mxu1 %v18787_v54 }
 0x3c5   :  { %3766 = vmatmul.mubr.f32.gmra.mrb[106].mxu0 %v19102_v56  ;;  %7500 = vmatmul.mubr.f32.gmra.mrb[106].mxu1 %v19102_v56  ;;  %v19132_v56 = vld [vmem:[#allocation54_spill] sm:$0xff] }
 0x3c6   :  { %3771 = vmatprep.mubr.f32.mxu0 %v18787_v54  ;;  %7505 = vmatprep.mubr.f32.mxu1 %v18787_v54 }
 0x3c9   :  { %3774 = vmatmul.mubr.f32.gmra.mrb[108].mxu0 %v19103_v11  ;;  %7508 = vmatmul.mubr.f32.gmra.mrb[108].mxu1 %v19103_v11  ;;  %v19133_v11 = vld [vmem:[#allocation59_spill] sm:$0xff] }
 0x3ca   :  { %3779 = vmatprep.mubr.f32.mxu0 %v18787_v54  ;;  %7513 = vmatprep.mubr.f32.mxu1 %v18787_v54 }
 0x3cd   :  { %3782 = vmatmul.mubr.f32.gmra.mrb[110].mxu0 %v19104_v18  ;;  %7516 = vmatmul.mubr.f32.gmra.mrb[110].mxu1 %v19104_v18  ;;  %v19134_v18 = vld [vmem:[#allocation63_spill] sm:$0xff] }
 0x3ce   :  { %3787 = vmatprep.mubr.f32.mxu0 %v18787_v54  ;;  %7521 = vmatprep.mubr.f32.mxu1 %v18787_v54 }
 0x3d1   :  { %3790 = vmatmul.mubr.f32.gmra.mrb[112].mxu0 %v15999_v22  ;;  %7524 = vmatmul.mubr.f32.gmra.mrb[112].mxu1 %v15999_v22  ;;  %v19105_v22 = vand.u32 4294901760, %v14280_v23  ;;  %v19114_v23 = vand.u32 4294901760, %v14382_v42  ;;  %v11759_v42 = vpack.c.bf16 %v19121_v0, %v19120_v61  ;;  %v19163_v61 = vld [vmem:[#allocation122_spill] sm:$0xff]  ;;  %v19164_v0 = vld [vmem:[#allocation124_spill] sm:$0xff] }
 0x3d2   :  { %3795 = vmatprep.mubr.f32.mxu0 %v18787_v54  ;;  %7529 = vmatprep.mubr.f32.mxu1 %v18787_v54 }
 0x3d5   :  { %3798 = vmatmul.mubr.f32.gmra.mrb[114].mxu0 %v16017_v1  ;;  %7532 = vmatmul.mubr.f32.gmra.mrb[114].mxu1 %v16017_v1  ;;  %v19106_v1 = vand.u32 4294901760, %v18972_v9 }
 0x3d6   :  { %3803 = vmatprep.mubr.f32.mxu0 %v18787_v54  ;;  %7537 = vmatprep.mubr.f32.mxu1 %v18787_v54 }
 0x3d9   :  { %3806 = vmatmul.mubr.f32.gmra.mrb[116].mxu0 %v16033_v55  ;;  %7540 = vmatmul.mubr.f32.gmra.mrb[116].mxu1 %v16033_v55  ;;  %v11657_v55 = vpack.c.bf16 %v19106_v1, %v19105_v22  ;;  %v19135_v22 = vld [vmem:[#allocation64_spill] sm:$0xff]  ;;  %v19136_v1 = vld [vmem:[#allocation66_spill] sm:$0xff] }
 0x3da   :  { %3811 = vmatprep.mubr.f32.mxu0 %v18787_v54  ;;  %7545 = vmatprep.mubr.f32.mxu1 %v18787_v54 }
 0x3dd   :  { %3814 = vmatmul.mubr.f32.gmra.mrb[118].mxu0 %v16047_v57  ;;  %7548 = vmatmul.mubr.f32.gmra.mrb[118].mxu1 %v16047_v57  ;;  %v19107_v57 = vand.u32 4294901760, %v18973_v52  ;;  %v19118_v52 = vand.u32 4294901760, %v14436_v32  ;;  %v19123_v32 = vand.u32 4294901760, %v18878_v3  ;;  %v19128_v3 = vld [vmem:[#allocation43_spill] sm:$0xff] }
 0x3de   :  { %3819 = vmatprep.mubr.f32.mxu0 %v18787_v54  ;;  %7553 = vmatprep.mubr.f32.mxu1 %v18787_v54 }
 0x3e1   :  { %3822 = vmatmul.mubr.f32.gmra.mrb[120].mxu0 %v16050_v49  ;;  %7556 = vmatmul.mubr.f32.gmra.mrb[120].mxu1 %v16050_v49  ;;  %v19108_v49 = vand.u32 4294901760, %v18974_v12  ;;  %v19119_v12 = vand.u32 4294901760, %v14444_v43  ;;  %v19126_v43 = vand.u32 4294901760, %v18978_v60  ;;  %v19131_v60 = vld [vmem:[#allocation51_spill] sm:$0xff] }
 0x3e2   :  { %3827 = vmatprep.mubr.f32.mxu0 %v18787_v54  ;;  %7561 = vmatprep.mubr.f32.mxu1 %v18787_v54 }
 0x3e3   :  { %v11663_v35 = vpack.c.bf16 %v19119_v12, %v19118_v52  ;;  %v11761_v34 = vpack.c.bf16 %v19126_v43, %v19125_v7  ;;  %v19160_v52 = vld [vmem:[#allocation114_spill] sm:$0xff]  ;;  %v19161_v12 = vld [vmem:[#allocation117_spill] sm:$0xff] }
 0x3e4   :  { %v19170_v7 = vld [vmem:[#allocation142_spill] sm:$0xff]  ;;  %v19171_v43 = vld [vmem:[#allocation145_spill] sm:$0xff] }
 0x3e5   :  { %3830 = vmatmul.mubr.f32.gmra.mrb[122].mxu0 %v16072_v25  ;;  %7564 = vmatmul.mubr.f32.gmra.mrb[122].mxu1 %v16072_v25  ;;  %v11753_v25 = vpack.c.bf16 %v19108_v49, %v19107_v57  ;;  %v19138_v57 = vld [vmem:[#allocation72_spill] sm:$0xff]  ;;  %v19139_v49 = vld [vmem:[#allocation75_spill] sm:$0xff] }
 0x3e6   :  { %3835 = vmatprep.mubr.f32.mxu0 %v18787_v54  ;;  %7569 = vmatprep.mubr.f32.mxu1 %v18787_v54 }
 0x3e9   :  { %3838 = vmatmul.mubr.f32.gmra.mrb[124].mxu0 %v16085_v47  ;;  %7572 = vmatmul.mubr.f32.gmra.mrb[124].mxu1 %v16085_v47  ;;  %v19109_v47 = vand.u32 4294901760, %v14340_v10  ;;  %v19115_v10 = vand.u32 4294901760, %v14393_v48  ;;  %v19124_v48 = vand.u32 4294901760, %v18881_v44  ;;  %v19129_v44 = vld [vmem:[#allocation46_spill] sm:$0xff] }
 0x3ea   :  { %3843 = vmatprep.mubr.f32.mxu0 %v18787_v54  ;;  %7577 = vmatprep.mubr.f32.mxu1 %v18787_v54 }
 0x3eb   :  { %v11659_v6 = vpack.c.bf16 %v19110_v39, %v19109_v47  ;;  %v11661_v38 = vpack.c.bf16 %v19115_v10, %v19114_v23  ;;  %v19141_v47 = vld [vmem:[#allocation81_spill] sm:$0xff]  ;;  %v19142_v39 = vand.u32 4294901760, %v14533_v51  ;;  %v19146_v23 = vand.u32 4294901760, %v14568_v28  ;;  %v19152_v28 = vld [vmem:[#allocation92_spill] sm:$0xff] }
 0x3ec   :  { %v19147_v10 = vand.u32 4294901760, %v14570_v2  ;;  %v19149_v51 = vand.u32 4294901760, %v18994_v63  ;;  %v19153_v2 = vld [vmem:[#allocation94_spill] sm:$0xff]  ;;  %v19157_v63 = vld [vmem:[#allocation105_spill] sm:$0xff] }
 0x3ed   :  { %3846 = vmatmul.mubr.f32.gmra.mrb[126].mxu0 %v16107_v31  ;;  %7580 = vmatmul.mubr.f32.gmra.mrb[126].mxu1 %v16107_v31  ;;  %v19111_v31 = vand.u32 4294901760, %v14357_v46  ;;  %v19116_v46 = vand.u32 4294901760, %v14402_v15  ;;  %v11665_v15 = vpack.c.bf16 %v19124_v48, %v19123_v32  ;;  %v19167_v32 = vld [vmem:[#allocation136_spill] sm:$0xff]  ;;  %v19168_v48 = vld [vmem:[#allocation138_spill] sm:$0xff] }
 0x3ee   :  { %3932 = vmatprep.mubr.f32.mxu0 %v18787_v54  ;;  %7666 = vmatprep.mubr.f32.mxu1 %v18787_v54 }
 0x3ef   :  { %v11755_v5 = vpack.c.bf16 %v19112_v4, %v19111_v31  ;;  %v11757_v9 = vpack.c.bf16 %v19117_v53, %v19116_v46  ;;  %v19144_v4 = vand.u32 4294901760, %v14548_v41  ;;  %v19148_v46 = vand.u32 4294901760, %v14588_v20  ;;  %v19151_v41 = vld [vmem:[#allocation90_spill] sm:$0xff]  ;;  %v19154_v20 = vld [vmem:[#allocation96_spill] sm:$0xff]  ;;  %v19158_v53 = vld [vmem:[#allocation111_spill] sm:$0xff] }
 0x3f1   :  { %3936 = vmatmul.mubr.f32.vlgmr.msra.gmra.mrb[0].mxu0 %v19113_v30  ;;  %7670 = vmatmul.mubr.f32.vlgmr.msra.gmra.mrb[0].mxu1 %v19113_v30 }
 0x3f2   :  { %11658 = vmatpush1.bf16.msra.mxu0 %v11657_v55  ;;  %11754 = vmatpush1.bf16.msra.mxu1 %v11753_v25  ;;  %v19137_v55 = vld [vmem:[#allocation71_spill] sm:$0xff]  ;;  %v19140_v25 = vld [vmem:[#allocation78_spill] sm:$0xff] }
 0x3f3   :  { %3941 = vmatprep.mubr.f32.mxu0 %v18787_v54  ;;  %7675 = vmatprep.mubr.f32.mxu1 %v18787_v54 }
 0x3f4   :  { %11660 = vmatprep.subr.bf16.mxu0 %v11659_v6  ;;  %11756 = vmatprep.subr.bf16.mxu1 %v11755_v5  ;;  %v19143_v6 = vand.u32 4294901760, %v18926_v59  ;;  %v19145_v5 = vand.u32 4294901760, %v14552_v62  ;;  %v11765_v59 = vpack.c.bf16 %v19149_v51, %v19148_v46  ;;  %v19150_v62 = vld [vmem:[#allocation88_spill] sm:$0xff]  ;;  %v19210_v46 = vld [vmem:[#allocation67_spill] sm:$0xff] }
 0x3f5   :  { %3945 = vmatmul.mubr.f32.gmra.mrb[2].mxu0 %v19122_v58  ;;  %7679 = vmatmul.mubr.f32.gmra.mrb[2].mxu1 %v19122_v58  ;;  %v19166_v58 = vld [vmem:[#allocation133_spill] sm:$0xff]  ;;  %v19211_v51 = vld [vmem:[#allocation68_spill] sm:$0xff] }
 0x3f6   :  { %3950 = vmatprep.mubr.f32.mxu0 %v18787_v54  ;;  %7684 = vmatprep.mubr.f32.mxu1 %v18787_v54  ;;  %v11667_v31 = vpack.c.bf16 %v19143_v6, %v19142_v39  ;;  %v11763_v30 = vpack.c.bf16 %v19145_v5, %v19144_v4  ;;  %v19188_v39 = vld [vmem:[#allocation195_spill] sm:$0xff]  ;;  %v19189_v6 = vld [vmem:[#allocation201_spill] sm:$0xff] }
 0x3f7   :  { %11662 = vmatpush1.bf16.msra.mxu0 %v11661_v38  ;;  %11758 = vmatpush1.bf16.msra.mxu1 %v11757_v9  ;;  %v11669_v38 = vpack.c.bf16 %v19147_v10, %v19146_v23  ;;  %v19159_v9 = vld [vmem:[#allocation113_spill] sm:$0xff]  ;;  %v19193_v4 = vld [vmem:[#allocation207_spill] sm:$0xff]  ;;  %v19196_v23 = vld [vmem:[#allocation34_spill] sm:$0xff] }
 0x3f8   :  { %11664 = vmatprep.subr.bf16.mxu0 %v11663_v35  ;;  %11760 = vmatprep.subr.bf16.mxu1 %v11759_v42  ;;  %v19162_v35 = vld [vmem:[#allocation120_spill] sm:$0xff]  ;;  %v19165_v42 = vld [vmem:[#allocation127_spill] sm:$0xff]  ;;  %v19194_v5 = vld [vmem:[#allocation209_spill] sm:$0xff] }
 0x3f9   :  { %3954 = vmatmul.mubr.f32.gmra.mrb[4].mxu0 %v19127_v29  ;;  %7688 = vmatmul.mubr.f32.gmra.mrb[4].mxu1 %v19127_v29  ;;  %v19173_v29 = vld [vmem:[#allocation151_spill] sm:$0xff]  ;;  %v19208_v10 = vld [vmem:[#allocation58_spill] sm:$0xff] }
 0x3fa   :  { %3959 = vmatprep.mubr.f32.mxu0 %v18787_v54  ;;  %7693 = vmatprep.mubr.f32.mxu1 %v18787_v54 }
 0x3fb   :  { %11666 = vmatpush1.bf16.msra.mxu0 %v11665_v15  ;;  %11762 = vmatpush1.bf16.msra.mxu1 %v11761_v34  ;;  %v19169_v15 = vld [vmem:[#allocation141_spill] sm:$0xff]  ;;  %v19172_v34 = vld [vmem:[#allocation148_spill] sm:$0xff] }
 0x3fc   :  { %11668 = vmatprep.subr.bf16.mxu0 %v11667_v31  ;;  %11764 = vmatprep.subr.bf16.mxu1 %v11763_v30  ;;  %v19192_v31 = vld [vmem:[#allocation205_spill] sm:$0xff]  ;;  %v19195_v30 = vld [vmem:[#allocation31_spill] sm:$0xff] }
 0x3fd   :  { %3963 = vmatmul.mubr.f32.gmra.mrb[6].mxu0 %v19128_v3  ;;  %7697 = vmatmul.mubr.f32.gmra.mrb[6].mxu1 %v19128_v3  ;;  %v19174_v3 = vld [vmem:[#allocation156_spill] sm:$0xff] }
 0x3fe   :  { %3968 = vmatprep.mubr.f32.mxu0 %v18787_v54  ;;  %7702 = vmatprep.mubr.f32.mxu1 %v18787_v54 }
 0x3ff   :  { %11670 = vmatpush1.bf16.msra.mxu0 %v11669_v38  ;;  %11766 = vmatpush1.bf16.msra.mxu1 %v11765_v59  ;;  %v19209_v38 = vld [vmem:[#allocation62_spill] sm:$0xff]  ;;  %v19212_v59 = vld [vmem:[#allocation73_spill] sm:$0xff] }
 0x400   :  { %11672 = vmatprep.subr.bf16.mxu0 %v18996_v19  ;;  %11768 = vmatprep.subr.bf16.mxu1 %v18997_v40  ;;  %v19155_v19 = vld [vmem:[#allocation99_spill] sm:$0xff]  ;;  %v19156_v40 = vld [vmem:[#allocation102_spill] sm:$0xff] }
 0x401   :  { %3972 = vmatmul.mubr.f32.gmra.mrb[8].mxu0 %v19129_v44  ;;  %7706 = vmatmul.mubr.f32.gmra.mrb[8].mxu1 %v19129_v44  ;;  %v19175_v44 = vld [vmem:[#allocation160_spill] sm:$0xff] }
 0x402   :  { %3977 = vmatprep.mubr.f32.mxu0 %v18787_v54  ;;  %7711 = vmatprep.mubr.f32.mxu1 %v18787_v54 }
 0x405   :  { %3981 = vmatmul.mubr.f32.gmra.mrb[10].mxu0 %v19130_v36  ;;  %7715 = vmatmul.mubr.f32.gmra.mrb[10].mxu1 %v19130_v36  ;;  %v19176_v36 = vld [vmem:[#allocation161_spill] sm:$0xff] }
 0x406   :  { %3986 = vmatprep.mubr.f32.mxu0 %v18787_v54  ;;  %7720 = vmatprep.mubr.f32.mxu1 %v18787_v54 }
 0x409   :  { %3990 = vmatmul.mubr.f32.gmra.mrb[12].mxu0 %v19131_v60  ;;  %7724 = vmatmul.mubr.f32.gmra.mrb[12].mxu1 %v19131_v60  ;;  %v19177_v60 = vld [vmem:[#allocation163_spill] sm:$0xff] }
 0x40a   :  { %3995 = vmatprep.mubr.f32.mxu0 %v18787_v54  ;;  %7729 = vmatprep.mubr.f32.mxu1 %v18787_v54 }
 0x40d   :  { %3999 = vmatmul.mubr.f32.gmra.mrb[14].mxu0 %v19132_v56  ;;  %7733 = vmatmul.mubr.f32.gmra.mrb[14].mxu1 %v19132_v56  ;;  %v19178_v56 = vld [vmem:[#allocation26_spill] sm:$0xff] }
 0x40e   :  { %4004 = vmatprep.mubr.f32.mxu0 %v18787_v54  ;;  %7738 = vmatprep.mubr.f32.mxu1 %v18787_v54 }
 0x411   :  { %4008 = vmatmul.mubr.f32.gmra.mrb[16].mxu0 %v19133_v11  ;;  %7742 = vmatmul.mubr.f32.gmra.mrb[16].mxu1 %v19133_v11  ;;  %v19179_v11 = vld [vmem:[#allocation168_spill] sm:$0xff] }
 0x412   :  { %4013 = vmatprep.mubr.f32.mxu0 %v18787_v54  ;;  %7747 = vmatprep.mubr.f32.mxu1 %v18787_v54 }
 0x415   :  { %4017 = vmatmul.mubr.f32.gmra.mrb[18].mxu0 %v19134_v18  ;;  %7751 = vmatmul.mubr.f32.gmra.mrb[18].mxu1 %v19134_v18  ;;  %v19180_v18 = vld [vmem:[#allocation171_spill] sm:$0xff] }
 0x416   :  { %4022 = vmatprep.mubr.f32.mxu0 %v18787_v54  ;;  %7756 = vmatprep.mubr.f32.mxu1 %v18787_v54 }
 0x419   :  { %4026 = vmatmul.mubr.f32.gmra.mrb[20].mxu0 %v19135_v22  ;;  %7760 = vmatmul.mubr.f32.gmra.mrb[20].mxu1 %v19135_v22  ;;  %v19181_v22 = vld [vmem:[#allocation174_spill] sm:$0xff] }
 0x41a   :  { %4031 = vmatprep.mubr.f32.mxu0 %v18787_v54  ;;  %7765 = vmatprep.mubr.f32.mxu1 %v18787_v54 }
 0x41d   :  { %4035 = vmatmul.mubr.f32.gmra.mrb[22].mxu0 %v19136_v1  ;;  %7769 = vmatmul.mubr.f32.gmra.mrb[22].mxu1 %v19136_v1  ;;  %v19182_v1 = vld [vmem:[#allocation177_spill] sm:$0xff] }
 0x41e   :  { %4040 = vmatprep.mubr.f32.mxu0 %v18787_v54  ;;  %7774 = vmatprep.mubr.f32.mxu1 %v18787_v54 }
 0x421   :  { %4044 = vmatmul.mubr.f32.gmra.mrb[24].mxu0 %v19137_v55  ;;  %7778 = vmatmul.mubr.f32.gmra.mrb[24].mxu1 %v19137_v55  ;;  %v19183_v55 = vld [vmem:[#allocation183_spill] sm:$0xff] }
 0x422   :  { %4049 = vmatprep.mubr.f32.mxu0 %v18787_v54  ;;  %7783 = vmatprep.mubr.f32.mxu1 %v18787_v54 }
 0x425   :  { %4053 = vmatmul.mubr.f32.gmra.mrb[26].mxu0 %v19138_v57  ;;  %7787 = vmatmul.mubr.f32.gmra.mrb[26].mxu1 %v19138_v57  ;;  %v19184_v57 = vld [vmem:[#allocation185_spill] sm:$0xff] }
 0x426   :  { %4058 = vmatprep.mubr.f32.mxu0 %v18787_v54  ;;  %7792 = vmatprep.mubr.f32.mxu1 %v18787_v54 }
 0x429   :  { %4062 = vmatmul.mubr.f32.gmra.mrb[28].mxu0 %v19139_v49  ;;  %7796 = vmatmul.mubr.f32.gmra.mrb[28].mxu1 %v19139_v49  ;;  %v19185_v49 = vld [vmem:[#allocation187_spill] sm:$0xff] }
 0x42a   :  { %4067 = vmatprep.mubr.f32.mxu0 %v18787_v54  ;;  %7801 = vmatprep.mubr.f32.mxu1 %v18787_v54 }
 0x42d   :  { %4071 = vmatmul.mubr.f32.gmra.mrb[30].mxu0 %v19140_v25  ;;  %7805 = vmatmul.mubr.f32.gmra.mrb[30].mxu1 %v19140_v25  ;;  %v19186_v25 = vld [vmem:[#allocation189_spill] sm:$0xff] }
 0x42e   :  { %4076 = vmatprep.mubr.f32.mxu0 %v18787_v54  ;;  %7810 = vmatprep.mubr.f32.mxu1 %v18787_v54 }
 0x431   :  { %4080 = vmatmul.mubr.f32.gmra.mrb[32].mxu0 %v19141_v47  ;;  %7814 = vmatmul.mubr.f32.gmra.mrb[32].mxu1 %v19141_v47  ;;  %v19187_v47 = vld [vmem:[#allocation193_spill] sm:$0xff] }
 0x432   :  { %4085 = vmatprep.mubr.f32.mxu0 %v18787_v54  ;;  %7819 = vmatprep.mubr.f32.mxu1 %v18787_v54 }
 0x435   :  { %4089 = vmatmul.mubr.f32.gmra.mrb[34].mxu0 %v19150_v62  ;;  %7823 = vmatmul.mubr.f32.gmra.mrb[34].mxu1 %v19150_v62  ;;  %v19213_v62 = vld [vmem:[#allocation76_spill] sm:$0xff] }
 0x436   :  { %4094 = vmatprep.mubr.f32.mxu0 %v18787_v54  ;;  %7828 = vmatprep.mubr.f32.mxu1 %v18787_v54 }
 0x439   :  { %4098 = vmatmul.mubr.f32.gmra.mrb[36].mxu0 %v19151_v41  ;;  %7832 = vmatmul.mubr.f32.gmra.mrb[36].mxu1 %v19151_v41  ;;  %v19214_v41 = vld [vmem:[#allocation79_spill] sm:$0xff] }
 0x43a   :  { %4103 = vmatprep.mubr.f32.mxu0 %v18787_v54  ;;  %7837 = vmatprep.mubr.f32.mxu1 %v18787_v54 }
 0x43d   :  { %4107 = vmatmul.mubr.f32.gmra.mrb[38].mxu0 %v19152_v28  ;;  %7841 = vmatmul.mubr.f32.gmra.mrb[38].mxu1 %v19152_v28  ;;  %v19215_v28 = vld [vmem:[#allocation82_spill] sm:$0xff] }
 0x43e   :  { %4112 = vmatprep.mubr.f32.mxu0 %v18787_v54  ;;  %7846 = vmatprep.mubr.f32.mxu1 %v18787_v54 }
 0x441   :  { %4116 = vmatmul.mubr.f32.gmra.mrb[40].mxu0 %v19153_v2  ;;  %7850 = vmatmul.mubr.f32.gmra.mrb[40].mxu1 %v19153_v2  ;;  %v19216_v2 = vld [vmem:[#allocation83_spill] sm:$0xff] }
 0x442   :  { %4121 = vmatprep.mubr.f32.mxu0 %v18787_v54  ;;  %7855 = vmatprep.mubr.f32.mxu1 %v18787_v54 }
 0x445   :  { %4125 = vmatmul.mubr.f32.gmra.mrb[42].mxu0 %v19154_v20  ;;  %7859 = vmatmul.mubr.f32.gmra.mrb[42].mxu1 %v19154_v20  ;;  %v19217_v20 = vld [vmem:[#allocation85_spill] sm:$0xff] }
 0x446   :  { %4130 = vmatprep.mubr.f32.mxu0 %v18787_v54  ;;  %7864 = vmatprep.mubr.f32.mxu1 %v18787_v54 }
 0x449   :  { %4134 = vmatmul.mubr.f32.gmra.mrb[44].mxu0 %v19155_v19  ;;  %7868 = vmatmul.mubr.f32.gmra.mrb[44].mxu1 %v19155_v19  ;;  %v19218_v19 = vld [vmem:[#allocation87_spill] sm:$0xff] }
 0x44a   :  { %4139 = vmatprep.mubr.f32.mxu0 %v18787_v54  ;;  %7873 = vmatprep.mubr.f32.mxu1 %v18787_v54 }
 0x44d   :  { %4143 = vmatmul.mubr.f32.gmra.mrb[46].mxu0 %v19156_v40  ;;  %7877 = vmatmul.mubr.f32.gmra.mrb[46].mxu1 %v19156_v40  ;;  %v19219_v40 = vld [vmem:[#allocation93_spill] sm:$0xff] }
 0x44e   :  { %4148 = vmatprep.mubr.f32.mxu0 %v18787_v54  ;;  %7882 = vmatprep.mubr.f32.mxu1 %v18787_v54 }
 0x451   :  { %4152 = vmatmul.mubr.f32.gmra.mrb[48].mxu0 %v19157_v63  ;;  %7886 = vmatmul.mubr.f32.gmra.mrb[48].mxu1 %v19157_v63  ;;  %v19220_v63 = vld [vmem:[#allocation97_spill] sm:$0xff] }
 0x452   :  { %4157 = vmatprep.mubr.f32.mxu0 %v18787_v54  ;;  %7891 = vmatprep.mubr.f32.mxu1 %v18787_v54 }
 0x455   :  { %4161 = vmatmul.mubr.f32.gmra.mrb[50].mxu0 %v19158_v53  ;;  %7895 = vmatmul.mubr.f32.gmra.mrb[50].mxu1 %v19158_v53  ;;  %v19221_v53 = vld [vmem:[#allocation100_spill] sm:$0xff] }
 0x456   :  { %4166 = vmatprep.mubr.f32.mxu0 %v18787_v54  ;;  %7900 = vmatprep.mubr.f32.mxu1 %v18787_v54 }
 0x459   :  { %4170 = vmatmul.mubr.f32.gmra.mrb[52].mxu0 %v19159_v9  ;;  %7904 = vmatmul.mubr.f32.gmra.mrb[52].mxu1 %v19159_v9  ;;  %v19222_v9 = vld [vmem:[#allocation103_spill] sm:$0xff] }
 0x45a   :  { %4175 = vmatprep.mubr.f32.mxu0 %v18787_v54  ;;  %7909 = vmatprep.mubr.f32.mxu1 %v18787_v54 }
 0x45d   :  { %4179 = vmatmul.mubr.f32.gmra.mrb[54].mxu0 %v19160_v52  ;;  %7913 = vmatmul.mubr.f32.gmra.mrb[54].mxu1 %v19160_v52  ;;  %v19223_v52 = vld [vmem:[#allocation106_spill] sm:$0xff] }
 0x45e   :  { %4184 = vmatprep.mubr.f32.mxu0 %v18787_v54  ;;  %7918 = vmatprep.mubr.f32.mxu1 %v18787_v54 }
 0x461   :  { %4188 = vmatmul.mubr.f32.gmra.mrb[56].mxu0 %v19161_v12  ;;  %7922 = vmatmul.mubr.f32.gmra.mrb[56].mxu1 %v19161_v12  ;;  %v19224_v12 = vld [vmem:[#allocation107_spill] sm:$0xff] }
 0x462   :  { %4193 = vmatprep.mubr.f32.mxu0 %v18787_v54  ;;  %7927 = vmatprep.mubr.f32.mxu1 %v18787_v54 }
 0x465   :  { %4197 = vmatmul.mubr.f32.gmra.mrb[58].mxu0 %v19162_v35  ;;  %7931 = vmatmul.mubr.f32.gmra.mrb[58].mxu1 %v19162_v35  ;;  %v19225_v35 = vld [vmem:[#allocation109_spill] sm:$0xff] }
 0x466   :  { %4202 = vmatprep.mubr.f32.mxu0 %v18787_v54  ;;  %7936 = vmatprep.mubr.f32.mxu1 %v18787_v54 }
 0x469   :  { %4206 = vmatmul.mubr.f32.gmra.mrb[60].mxu0 %v19163_v61  ;;  %7940 = vmatmul.mubr.f32.gmra.mrb[60].mxu1 %v19163_v61  ;;  %v19226_v61 = vld [vmem:[#allocation115_spill] sm:$0xff] }
 0x46a   :  { %4211 = vmatprep.mubr.f32.mxu0 %v18787_v54  ;;  %7945 = vmatprep.mubr.f32.mxu1 %v18787_v54 }
 0x46d   :  { %4215 = vmatmul.mubr.f32.gmra.mrb[62].mxu0 %v19164_v0  ;;  %7949 = vmatmul.mubr.f32.gmra.mrb[62].mxu1 %v19164_v0  ;;  %v19227_v0 = vld [vmem:[#allocation118_spill] sm:$0xff] }
 0x46e   :  { %4220 = vmatprep.mubr.f32.mxu0 %v18787_v54  ;;  %7954 = vmatprep.mubr.f32.mxu1 %v18787_v54 }
 0x471   :  { %4224 = vmatmul.mubr.f32.gmra.mrb[64].mxu0 %v19165_v42  ;;  %7958 = vmatmul.mubr.f32.gmra.mrb[64].mxu1 %v19165_v42  ;;  %v19228_v42 = vld [vmem:[#allocation121_spill] sm:$0xff] }
 0x472   :  { %4229 = vmatprep.mubr.f32.mxu0 %v18787_v54  ;;  %7963 = vmatprep.mubr.f32.mxu1 %v18787_v54 }
 0x475   :  { %4233 = vmatmul.mubr.f32.gmra.mrb[66].mxu0 %v19166_v58  ;;  %7967 = vmatmul.mubr.f32.gmra.mrb[66].mxu1 %v19166_v58  ;;  %v19229_v58 = vld [vmem:[#allocation21_spill] sm:$0xff] }
 0x476   :  { %4238 = vmatprep.mubr.f32.mxu0 %v18787_v54  ;;  %7972 = vmatprep.mubr.f32.mxu1 %v18787_v54 }
 0x479   :  { %4242 = vmatmul.mubr.f32.gmra.mrb[68].mxu0 %v19167_v32  ;;  %7976 = vmatmul.mubr.f32.gmra.mrb[68].mxu1 %v19167_v32  ;;  %v19230_v32 = vld [vmem:[#allocation125_spill] sm:$0xff] }
 0x47a   :  { %4247 = vmatprep.mubr.f32.mxu0 %v18787_v54  ;;  %7981 = vmatprep.mubr.f32.mxu1 %v18787_v54 }
 0x47d   :  { %4251 = vmatmul.mubr.f32.gmra.mrb[70].mxu0 %v19168_v48  ;;  %7985 = vmatmul.mubr.f32.gmra.mrb[70].mxu1 %v19168_v48  ;;  %v19231_v48 = vld [vmem:[#allocation128_spill] sm:$0xff] }
 0x47e   :  { %4256 = vmatprep.mubr.f32.mxu0 %v18787_v54  ;;  %7990 = vmatprep.mubr.f32.mxu1 %v18787_v54 }
 0x481   :  { %4260 = vmatmul.mubr.f32.gmra.mrb[72].mxu0 %v19169_v15  ;;  %7994 = vmatmul.mubr.f32.gmra.mrb[72].mxu1 %v19169_v15  ;;  %v19232_v15 = vld [vmem:[#allocation129_spill] sm:$0xff] }
 0x482   :  { %4265 = vmatprep.mubr.f32.mxu0 %v18787_v54  ;;  %7999 = vmatprep.mubr.f32.mxu1 %v18787_v54 }
 0x485   :  { %4269 = vmatmul.mubr.f32.gmra.mrb[74].mxu0 %v19170_v7  ;;  %8003 = vmatmul.mubr.f32.gmra.mrb[74].mxu1 %v19170_v7  ;;  %v19233_v7 = vld [vmem:[#allocation131_spill] sm:$0xff] }
 0x486   :  { %4274 = vmatprep.mubr.f32.mxu0 %v18787_v54  ;;  %8008 = vmatprep.mubr.f32.mxu1 %v18787_v54 }
 0x489   :  { %4278 = vmatmul.mubr.f32.gmra.mrb[76].mxu0 %v19171_v43  ;;  %8012 = vmatmul.mubr.f32.gmra.mrb[76].mxu1 %v19171_v43  ;;  %v19234_v43 = vld [vmem:[#allocation135_spill] sm:$0xff] }
 0x48a   :  { %4283 = vmatprep.mubr.f32.mxu0 %v18787_v54  ;;  %8017 = vmatprep.mubr.f32.mxu1 %v18787_v54 }
 0x48d   :  { %4287 = vmatmul.mubr.f32.gmra.mrb[78].mxu0 %v19172_v34  ;;  %8021 = vmatmul.mubr.f32.gmra.mrb[78].mxu1 %v19172_v34  ;;  %v19235_v34 = vld [vmem:[#allocation137_spill] sm:$0xff] }
 0x48e   :  { %4292 = vmatprep.mubr.f32.mxu0 %v18787_v54  ;;  %8026 = vmatprep.mubr.f32.mxu1 %v18787_v54 }
 0x491   :  { %4296 = vmatmul.mubr.f32.gmra.mrb[80].mxu0 %v19173_v29  ;;  %8030 = vmatmul.mubr.f32.gmra.mrb[80].mxu1 %v19173_v29  ;;  %v19236_v29 = vld [vmem:[#allocation143_spill] sm:$0xff] }
 0x492   :  { %4301 = vmatprep.mubr.f32.mxu0 %v18787_v54  ;;  %8035 = vmatprep.mubr.f32.mxu1 %v18787_v54 }
 0x495   :  { %4305 = vmatmul.mubr.f32.gmra.mrb[82].mxu0 %v19174_v3  ;;  %8039 = vmatmul.mubr.f32.gmra.mrb[82].mxu1 %v19174_v3  ;;  %v19237_v3 = vld [vmem:[#allocation146_spill] sm:$0xff] }
 0x496   :  { %4310 = vmatprep.mubr.f32.mxu0 %v18787_v54  ;;  %8044 = vmatprep.mubr.f32.mxu1 %v18787_v54 }
 0x499   :  { %4314 = vmatmul.mubr.f32.gmra.mrb[84].mxu0 %v19175_v44  ;;  %8048 = vmatmul.mubr.f32.gmra.mrb[84].mxu1 %v19175_v44  ;;  %v19238_v44 = vld [vmem:[#allocation149_spill] sm:$0xff] }
 0x49a   :  { %4319 = vmatprep.mubr.f32.mxu0 %v18787_v54  ;;  %8053 = vmatprep.mubr.f32.mxu1 %v18787_v54 }
 0x49d   :  { %4323 = vmatmul.mubr.f32.gmra.mrb[86].mxu0 %v19176_v36  ;;  %8057 = vmatmul.mubr.f32.gmra.mrb[86].mxu1 %v19176_v36  ;;  %v19239_v36 = vld [vmem:[#allocation152_spill] sm:$0xff] }
 0x49e   :  { %4328 = vmatprep.mubr.f32.mxu0 %v18787_v54  ;;  %8062 = vmatprep.mubr.f32.mxu1 %v18787_v54 }
 0x4a1   :  { %4332 = vmatmul.mubr.f32.gmra.mrb[88].mxu0 %v19177_v60  ;;  %8066 = vmatmul.mubr.f32.gmra.mrb[88].mxu1 %v19177_v60  ;;  %v19240_v60 = vld [vmem:[#allocation154_spill] sm:$0xff] }
 0x4a2   :  { %4337 = vmatprep.mubr.f32.mxu0 %v18787_v54  ;;  %8071 = vmatprep.mubr.f32.mxu1 %v18787_v54 }
 0x4a5   :  { %4341 = vmatmul.mubr.f32.gmra.mrb[90].mxu0 %v19178_v56  ;;  %8075 = vmatmul.mubr.f32.gmra.mrb[90].mxu1 %v19178_v56  ;;  %v19241_v56 = vld [vmem:[#allocation155_spill] sm:$0xff] }
 0x4a6   :  { %4346 = vmatprep.mubr.f32.mxu0 %v18787_v54  ;;  %8080 = vmatprep.mubr.f32.mxu1 %v18787_v54 }
 0x4a9   :  { %4350 = vmatmul.mubr.f32.gmra.mrb[92].mxu0 %v19179_v11  ;;  %8084 = vmatmul.mubr.f32.gmra.mrb[92].mxu1 %v19179_v11  ;;  %v19242_v11 = vld [vmem:[#allocation159_spill] sm:$0xff] }
 0x4aa   :  { %4355 = vmatprep.mubr.f32.mxu0 %v18787_v54  ;;  %8089 = vmatprep.mubr.f32.mxu1 %v18787_v54 }
 0x4ad   :  { %4359 = vmatmul.mubr.f32.gmra.mrb[94].mxu0 %v19180_v18  ;;  %8093 = vmatmul.mubr.f32.gmra.mrb[94].mxu1 %v19180_v18  ;;  %v19243_v18 = vld [vmem:[#allocation164_spill] sm:$0xff] }
 0x4ae   :  { %4364 = vmatprep.mubr.f32.mxu0 %v18787_v54  ;;  %8098 = vmatprep.mubr.f32.mxu1 %v18787_v54 }
 0x4b1   :  { %4368 = vmatmul.mubr.f32.gmra.mrb[96].mxu0 %v19181_v22  ;;  %8102 = vmatmul.mubr.f32.gmra.mrb[96].mxu1 %v19181_v22  ;;  %v19244_v22 = vld [vmem:[#allocation166_spill] sm:$0xff] }
 0x4b2   :  { %4373 = vmatprep.mubr.f32.mxu0 %v18787_v54  ;;  %8107 = vmatprep.mubr.f32.mxu1 %v18787_v54 }
 0x4b5   :  { %4377 = vmatmul.mubr.f32.gmra.mrb[98].mxu0 %v19182_v1  ;;  %8111 = vmatmul.mubr.f32.gmra.mrb[98].mxu1 %v19182_v1  ;;  %v19245_v1 = vld [vmem:[#allocation169_spill] sm:$0xff] }
 0x4b6   :  { %4382 = vmatprep.mubr.f32.mxu0 %v18787_v54  ;;  %8116 = vmatprep.mubr.f32.mxu1 %v18787_v54 }
 0x4b9   :  { %4386 = vmatmul.mubr.f32.gmra.mrb[100].mxu0 %v19183_v55  ;;  %8120 = vmatmul.mubr.f32.gmra.mrb[100].mxu1 %v19183_v55  ;;  %v19246_v55 = vld [vmem:[#allocation172_spill] sm:$0xff] }
 0x4ba   :  { %4391 = vmatprep.mubr.f32.mxu0 %v18787_v54  ;;  %8125 = vmatprep.mubr.f32.mxu1 %v18787_v54 }
 0x4bd   :  { %4395 = vmatmul.mubr.f32.gmra.mrb[102].mxu0 %v19184_v57  ;;  %8129 = vmatmul.mubr.f32.gmra.mrb[102].mxu1 %v19184_v57  ;;  %v19247_v57 = vld [vmem:[#allocation175_spill] sm:$0xff] }
 0x4be   :  { %4400 = vmatprep.mubr.f32.mxu0 %v18787_v54  ;;  %8134 = vmatprep.mubr.f32.mxu1 %v18787_v54 }
 0x4c1   :  { %4404 = vmatmul.mubr.f32.gmra.mrb[104].mxu0 %v19185_v49  ;;  %8138 = vmatmul.mubr.f32.gmra.mrb[104].mxu1 %v19185_v49  ;;  %v19248_v49 = vld [vmem:[#allocation178_spill] sm:$0xff] }
 0x4c2   :  { %4409 = vmatprep.mubr.f32.mxu0 %v18787_v54  ;;  %8143 = vmatprep.mubr.f32.mxu1 %v18787_v54 }
 0x4c5   :  { %4413 = vmatmul.mubr.f32.gmra.mrb[106].mxu0 %v19186_v25  ;;  %8147 = vmatmul.mubr.f32.gmra.mrb[106].mxu1 %v19186_v25  ;;  %v19249_v25 = vld [vmem:[#allocation179_spill] sm:$0xff] }
 0x4c6   :  { %4418 = vmatprep.mubr.f32.mxu0 %v18787_v54  ;;  %8152 = vmatprep.mubr.f32.mxu1 %v18787_v54 }
 0x4c9   :  { %4422 = vmatmul.mubr.f32.gmra.mrb[108].mxu0 %v19187_v47  ;;  %8156 = vmatmul.mubr.f32.gmra.mrb[108].mxu1 %v19187_v47  ;;  %v19250_v47 = vld [vmem:[#allocation181_spill] sm:$0xff] }
 0x4ca   :  { %4427 = vmatprep.mubr.f32.mxu0 %v18787_v54  ;;  %8161 = vmatprep.mubr.f32.mxu1 %v18787_v54 }
 0x4cd   :  { %4431 = vmatmul.mubr.f32.gmra.mrb[110].mxu0 %v19188_v39  ;;  %8165 = vmatmul.mubr.f32.gmra.mrb[110].mxu1 %v19188_v39  ;;  %v19251_v39 = vld [vmem:[#allocation186_spill] sm:$0xff] }
 0x4ce   :  { %4436 = vmatprep.mubr.f32.mxu0 %v18787_v54  ;;  %8170 = vmatprep.mubr.f32.mxu1 %v18787_v54 }
 0x4d1   :  { %4440 = vmatmul.mubr.f32.gmra.mrb[112].mxu0 %v16006_v17  ;;  %8174 = vmatmul.mubr.f32.gmra.mrb[112].mxu1 %v16006_v17  ;;  %v19190_v17 = vld [vmem:[#allocation202_spill] sm:$0xff] }
 0x4d2   :  { %4445 = vmatprep.mubr.f32.mxu0 %v18787_v54  ;;  %8179 = vmatprep.mubr.f32.mxu1 %v18787_v54 }
 0x4d5   :  { %4449 = vmatmul.mubr.f32.gmra.mrb[114].mxu0 %v16030_v33  ;;  %8183 = vmatmul.mubr.f32.gmra.mrb[114].mxu1 %v16030_v33  ;;  %v19191_v33 = vld [vmem:[#allocation203_spill] sm:$0xff] }
 0x4d6   :  { %4454 = vmatprep.mubr.f32.mxu0 %v18787_v54  ;;  %8188 = vmatprep.mubr.f32.mxu1 %v18787_v54 }
 0x4d9   :  { %4458 = vmatmul.mubr.f32.gmra.mrb[116].mxu0 %v19189_v6  ;;  %8192 = vmatmul.mubr.f32.gmra.mrb[116].mxu1 %v19189_v6  ;;  %v19252_v6 = vld [vmem:[#allocation190_spill] sm:$0xff] }
 0x4da   :  { %4463 = vmatprep.mubr.f32.mxu0 %v18787_v54  ;;  %8197 = vmatprep.mubr.f32.mxu1 %v18787_v54 }
 0x4dd   :  { %4467 = vmatmul.mubr.f32.gmra.mrb[118].mxu0 %v19190_v17  ;;  %8201 = vmatmul.mubr.f32.gmra.mrb[118].mxu1 %v19190_v17  ;;  %v19253_v17 = vld [vmem:[#allocation192_spill] sm:$0xff] }
 0x4de   :  { %4472 = vmatprep.mubr.f32.mxu0 %v18787_v54  ;;  %8206 = vmatprep.mubr.f32.mxu1 %v18787_v54 }
 0x4e1   :  { %4476 = vmatmul.mubr.f32.gmra.mrb[120].mxu0 %v19191_v33  ;;  %8210 = vmatmul.mubr.f32.gmra.mrb[120].mxu1 %v19191_v33  ;;  %v19254_v33 = vld [vmem:[#allocation196_spill] sm:$0xff] }
 0x4e2   :  { %4481 = vmatprep.mubr.f32.mxu0 %v18787_v54  ;;  %8215 = vmatprep.mubr.f32.mxu1 %v18787_v54 }
 0x4e5   :  { %4485 = vmatmul.mubr.f32.gmra.mrb[122].mxu0 %v19192_v31  ;;  %8219 = vmatmul.mubr.f32.gmra.mrb[122].mxu1 %v19192_v31  ;;  %v19255_v31 = vld [vmem:[#allocation197_spill] sm:$0xff] }
 0x4e6   :  { %4490 = vmatprep.mubr.f32.mxu0 %v18787_v54  ;;  %8224 = vmatprep.mubr.f32.mxu1 %v18787_v54 }
 0x4e9   :  { %4494 = vmatmul.mubr.f32.gmra.mrb[124].mxu0 %v19193_v4  ;;  %8228 = vmatmul.mubr.f32.gmra.mrb[124].mxu1 %v19193_v4  ;;  %v19256_v4 = vld [vmem:[#allocation198_spill] sm:$0xff] }
 0x4ea   :  { %4499 = vmatprep.mubr.f32.mxu0 %v18787_v54  ;;  %8233 = vmatprep.mubr.f32.mxu1 %v18787_v54 }
 0x4ed   :  { %4503 = vmatmul.mubr.f32.gmra.mrb[126].mxu0 %v19194_v5  ;;  %8237 = vmatmul.mubr.f32.gmra.mrb[126].mxu1 %v19194_v5  ;;  %v19257_v5 = vld [vmem:[#allocation199_spill] sm:$0xff] }
 0x4ee   :  { %4621 = vmatprep.mubr.f32.mxu0 %v18787_v54  ;;  %8355 = vmatprep.mubr.f32.mxu1 %v18787_v54 }
 0x4f1   :  { %4623 = vmatmul.mubr.f32.vlgmr.msra.gmra.mrb[0].mxu0 %v19195_v30  ;;  %8357 = vmatmul.mubr.f32.vlgmr.msra.gmra.mrb[0].mxu1 %v19195_v30 }
 0x4f2   :  { %11674 = vmatpush1.bf16.msra.mxu0 %v19032_v24  ;;  %11770 = vmatpush1.bf16.msra.mxu1 %v19033_v37  ;;  %v19197_v37 = vld [vmem:[#allocation36_spill] sm:$0xff]  ;;  %v19202_v24 = vld [vmem:[#allocation41_spill] sm:$0xff] }
 0x4f3   :  { %4628 = vmatprep.mubr.f32.mxu0 %v18787_v54  ;;  %8362 = vmatprep.mubr.f32.mxu1 %v18787_v54 }
 0x4f4   :  { %11676 = vmatprep.subr.bf16.mxu0 %v19034_v26  ;;  %11772 = vmatprep.subr.bf16.mxu1 %v19035_v16  ;;  %v19198_v16 = vld [vmem:[#allocation27_spill] sm:$0xff]  ;;  %v19205_v26 = vld [vmem:[#allocation52_spill] sm:$0xff] }
 0x4f5   :  { %4630 = vmatmul.mubr.f32.gmra.mrb[2].mxu0 %v19196_v23  ;;  %8364 = vmatmul.mubr.f32.gmra.mrb[2].mxu1 %v19196_v23 }
 0x4f6   :  { %4635 = vmatprep.mubr.f32.mxu0 %v18787_v54  ;;  %8369 = vmatprep.mubr.f32.mxu1 %v18787_v54 }
 0x4f7   :  { %11678 = vmatpush1.bf16.msra.mxu0 %v19037_v14  ;;  %11774 = vmatpush1.bf16.msra.mxu1 %v19038_v50  ;;  %v19199_v50 = vld [vmem:[#allocation37_spill] sm:$0xff]  ;;  %v19206_v14 = vld [vmem:[#allocation55_spill] sm:$0xff] }
 0x4f8   :  { %11680 = vmatprep.subr.bf16.mxu0 %v19039_v8  ;;  %11776 = vmatprep.subr.bf16.mxu1 %v19040_v21  ;;  %v19200_v21 = vld [vmem:[#allocation28_spill] sm:$0xff]  ;;  %v19201_v8 = vld [vmem:[#allocation29_spill] sm:$0xff] }
 0x4f9   :  { %4637 = vmatmul.mubr.f32.gmra.mrb[4].mxu0 %v19197_v37  ;;  %8371 = vmatmul.mubr.f32.gmra.mrb[4].mxu1 %v19197_v37 }
 0x4fa   :  { %4642 = vmatprep.mubr.f32.mxu0 %v18787_v54  ;;  %8376 = vmatprep.mubr.f32.mxu1 %v18787_v54 }
 0x4fb   :  { %11682 = vmatpush1.bf16.msra.mxu0 %v19042_v27  ;;  %11778 = vmatpush1.bf16.msra.mxu1 %v19043_v45  ;;  %v19204_v45 = vld [vmem:[#allocation48_spill] sm:$0xff]  ;;  %v19207_v27 = vld [vmem:[#allocation57_spill] sm:$0xff] }
 0x4fc   :  { %11684 = vmatprep.subr.bf16.mxu0 %v19044_v13  ;;  %11780 = vmatprep.subr.bf16.mxu1 %v19198_v16  ;;  %v19203_v13 = vld [vmem:[#allocation45_spill] sm:$0xff]  ;;  %v19258_v16 = vld [vmem:[#allocation200_spill] sm:$0xff] }
 0x4fd   :  { %4644 = vmatmul.mubr.f32.gmra.mrb[6].mxu0 %v19199_v50  ;;  %8378 = vmatmul.mubr.f32.gmra.mrb[6].mxu1 %v19199_v50 }
 0x4fe   :  { %4649 = vmatprep.mubr.f32.mxu0 %v18787_v54  ;;  %8383 = vmatprep.mubr.f32.mxu1 %v18787_v54 }
 0x4ff   :  { %11686 = vmatpush1.bf16.msra.mxu0 %v19200_v21  ;;  %11782 = vmatpush1.bf16.msra.mxu1 %v19201_v8  ;;  %v19259_v21 = vld [vmem:[#allocation204_spill] sm:$0xff]  ;;  %v19260_v8 = vld [vmem:[#allocation206_spill] sm:$0xff] }
 0x501   :  { %4651 = vmatmul.mubr.f32.gmra.mrb[8].mxu0 %v19202_v24  ;;  %8385 = vmatmul.mubr.f32.gmra.mrb[8].mxu1 %v19202_v24 }
 0x502   :  { %4656 = vmatprep.mubr.f32.mxu0 %v18787_v54  ;;  %8390 = vmatprep.mubr.f32.mxu1 %v18787_v54 }
 0x505   :  { %4658 = vmatmul.mubr.f32.gmra.mrb[10].mxu0 %v19203_v13  ;;  %8392 = vmatmul.mubr.f32.gmra.mrb[10].mxu1 %v19203_v13 }
 0x506   :  { %4663 = vmatprep.mubr.f32.mxu0 %v18787_v54  ;;  %8397 = vmatprep.mubr.f32.mxu1 %v18787_v54 }
 0x509   :  { %4665 = vmatmul.mubr.f32.gmra.mrb[12].mxu0 %v19204_v45  ;;  %8399 = vmatmul.mubr.f32.gmra.mrb[12].mxu1 %v19204_v45 }
 0x50a   :  { %4670 = vmatprep.mubr.f32.mxu0 %v18787_v54  ;;  %8404 = vmatprep.mubr.f32.mxu1 %v18787_v54 }
 0x50d   :  { %4672 = vmatmul.mubr.f32.gmra.mrb[14].mxu0 %v19205_v26  ;;  %8406 = vmatmul.mubr.f32.gmra.mrb[14].mxu1 %v19205_v26 }
 0x50e   :  { %4677 = vmatprep.mubr.f32.mxu0 %v18787_v54  ;;  %8411 = vmatprep.mubr.f32.mxu1 %v18787_v54 }
 0x511   :  { %4679 = vmatmul.mubr.f32.gmra.mrb[16].mxu0 %v19206_v14  ;;  %8413 = vmatmul.mubr.f32.gmra.mrb[16].mxu1 %v19206_v14 }
 0x512   :  { %4684 = vmatprep.mubr.f32.mxu0 %v18787_v54  ;;  %8418 = vmatprep.mubr.f32.mxu1 %v18787_v54 }
 0x515   :  { %4686 = vmatmul.mubr.f32.gmra.mrb[18].mxu0 %v19207_v27  ;;  %8420 = vmatmul.mubr.f32.gmra.mrb[18].mxu1 %v19207_v27 }
 0x516   :  { %4691 = vmatprep.mubr.f32.mxu0 %v18787_v54  ;;  %8425 = vmatprep.mubr.f32.mxu1 %v18787_v54 }
 0x519   :  { %4693 = vmatmul.mubr.f32.gmra.mrb[20].mxu0 %v19208_v10  ;;  %8427 = vmatmul.mubr.f32.gmra.mrb[20].mxu1 %v19208_v10 }
 0x51a   :  { %4698 = vmatprep.mubr.f32.mxu0 %v18787_v54  ;;  %8432 = vmatprep.mubr.f32.mxu1 %v18787_v54 }
 0x51d   :  { %4700 = vmatmul.mubr.f32.gmra.mrb[22].mxu0 %v19209_v38  ;;  %8434 = vmatmul.mubr.f32.gmra.mrb[22].mxu1 %v19209_v38 }
 0x51e   :  { %4705 = vmatprep.mubr.f32.mxu0 %v18787_v54  ;;  %8439 = vmatprep.mubr.f32.mxu1 %v18787_v54 }
 0x521   :  { %4707 = vmatmul.mubr.f32.gmra.mrb[24].mxu0 %v19210_v46  ;;  %8441 = vmatmul.mubr.f32.gmra.mrb[24].mxu1 %v19210_v46 }
 0x522   :  { %4712 = vmatprep.mubr.f32.mxu0 %v18787_v54  ;;  %8446 = vmatprep.mubr.f32.mxu1 %v18787_v54 }
 0x525   :  { %4714 = vmatmul.mubr.f32.gmra.mrb[26].mxu0 %v19211_v51  ;;  %8448 = vmatmul.mubr.f32.gmra.mrb[26].mxu1 %v19211_v51 }
 0x526   :  { %4719 = vmatprep.mubr.f32.mxu0 %v18787_v54  ;;  %8453 = vmatprep.mubr.f32.mxu1 %v18787_v54 }
 0x529   :  { %4721 = vmatmul.mubr.f32.gmra.mrb[28].mxu0 %v19212_v59  ;;  %8455 = vmatmul.mubr.f32.gmra.mrb[28].mxu1 %v19212_v59 }
 0x52a   :  { %4726 = vmatprep.mubr.f32.mxu0 %v18787_v54  ;;  %8460 = vmatprep.mubr.f32.mxu1 %v18787_v54 }
 0x52d   :  { %4728 = vmatmul.mubr.f32.gmra.mrb[30].mxu0 %v19213_v62  ;;  %8462 = vmatmul.mubr.f32.gmra.mrb[30].mxu1 %v19213_v62 }
 0x52e   :  { %4733 = vmatprep.mubr.f32.mxu0 %v18787_v54  ;;  %8467 = vmatprep.mubr.f32.mxu1 %v18787_v54 }
 0x531   :  { %4735 = vmatmul.mubr.f32.gmra.mrb[32].mxu0 %v19214_v41  ;;  %8469 = vmatmul.mubr.f32.gmra.mrb[32].mxu1 %v19214_v41 }
 0x532   :  { %4740 = vmatprep.mubr.f32.mxu0 %v18787_v54  ;;  %8474 = vmatprep.mubr.f32.mxu1 %v18787_v54 }
 0x535   :  { %4742 = vmatmul.mubr.f32.gmra.mrb[34].mxu0 %v19215_v28  ;;  %8476 = vmatmul.mubr.f32.gmra.mrb[34].mxu1 %v19215_v28 }
 0x536   :  { %4747 = vmatprep.mubr.f32.mxu0 %v18787_v54  ;;  %8481 = vmatprep.mubr.f32.mxu1 %v18787_v54 }
 0x539   :  { %4749 = vmatmul.mubr.f32.gmra.mrb[36].mxu0 %v19216_v2  ;;  %8483 = vmatmul.mubr.f32.gmra.mrb[36].mxu1 %v19216_v2 }
 0x53a   :  { %4754 = vmatprep.mubr.f32.mxu0 %v18787_v54  ;;  %8488 = vmatprep.mubr.f32.mxu1 %v18787_v54 }
 0x53d   :  { %4756 = vmatmul.mubr.f32.gmra.mrb[38].mxu0 %v19217_v20  ;;  %8490 = vmatmul.mubr.f32.gmra.mrb[38].mxu1 %v19217_v20 }
 0x53e   :  { %4761 = vmatprep.mubr.f32.mxu0 %v18787_v54  ;;  %8495 = vmatprep.mubr.f32.mxu1 %v18787_v54 }
 0x541   :  { %4763 = vmatmul.mubr.f32.gmra.mrb[40].mxu0 %v19218_v19  ;;  %8497 = vmatmul.mubr.f32.gmra.mrb[40].mxu1 %v19218_v19 }
 0x542   :  { %4768 = vmatprep.mubr.f32.mxu0 %v18787_v54  ;;  %8502 = vmatprep.mubr.f32.mxu1 %v18787_v54 }
 0x545   :  { %4770 = vmatmul.mubr.f32.gmra.mrb[42].mxu0 %v19219_v40  ;;  %8504 = vmatmul.mubr.f32.gmra.mrb[42].mxu1 %v19219_v40 }
 0x546   :  { %4775 = vmatprep.mubr.f32.mxu0 %v18787_v54  ;;  %8509 = vmatprep.mubr.f32.mxu1 %v18787_v54 }
 0x549   :  { %4777 = vmatmul.mubr.f32.gmra.mrb[44].mxu0 %v19220_v63  ;;  %8511 = vmatmul.mubr.f32.gmra.mrb[44].mxu1 %v19220_v63 }
 0x54a   :  { %4782 = vmatprep.mubr.f32.mxu0 %v18787_v54  ;;  %8516 = vmatprep.mubr.f32.mxu1 %v18787_v54 }
 0x54d   :  { %4784 = vmatmul.mubr.f32.gmra.mrb[46].mxu0 %v19221_v53  ;;  %8518 = vmatmul.mubr.f32.gmra.mrb[46].mxu1 %v19221_v53 }
 0x54e   :  { %4789 = vmatprep.mubr.f32.mxu0 %v18787_v54  ;;  %8523 = vmatprep.mubr.f32.mxu1 %v18787_v54 }
 0x551   :  { %4791 = vmatmul.mubr.f32.gmra.mrb[48].mxu0 %v19222_v9  ;;  %8525 = vmatmul.mubr.f32.gmra.mrb[48].mxu1 %v19222_v9 }
 0x552   :  { %4796 = vmatprep.mubr.f32.mxu0 %v18787_v54  ;;  %8530 = vmatprep.mubr.f32.mxu1 %v18787_v54 }
 0x555   :  { %4798 = vmatmul.mubr.f32.gmra.mrb[50].mxu0 %v19223_v52  ;;  %8532 = vmatmul.mubr.f32.gmra.mrb[50].mxu1 %v19223_v52 }
 0x556   :  { %4803 = vmatprep.mubr.f32.mxu0 %v18787_v54  ;;  %8537 = vmatprep.mubr.f32.mxu1 %v18787_v54 }
 0x559   :  { %4805 = vmatmul.mubr.f32.gmra.mrb[52].mxu0 %v19224_v12  ;;  %8539 = vmatmul.mubr.f32.gmra.mrb[52].mxu1 %v19224_v12 }
 0x55a   :  { %4810 = vmatprep.mubr.f32.mxu0 %v18787_v54  ;;  %8544 = vmatprep.mubr.f32.mxu1 %v18787_v54 }
 0x55d   :  { %4812 = vmatmul.mubr.f32.gmra.mrb[54].mxu0 %v19225_v35  ;;  %8546 = vmatmul.mubr.f32.gmra.mrb[54].mxu1 %v19225_v35 }
 0x55e   :  { %4817 = vmatprep.mubr.f32.mxu0 %v18787_v54  ;;  %8551 = vmatprep.mubr.f32.mxu1 %v18787_v54 }
 0x561   :  { %4819 = vmatmul.mubr.f32.gmra.mrb[56].mxu0 %v19226_v61  ;;  %8553 = vmatmul.mubr.f32.gmra.mrb[56].mxu1 %v19226_v61 }
 0x562   :  { %4824 = vmatprep.mubr.f32.mxu0 %v18787_v54  ;;  %8558 = vmatprep.mubr.f32.mxu1 %v18787_v54 }
 0x565   :  { %4826 = vmatmul.mubr.f32.gmra.mrb[58].mxu0 %v19227_v0  ;;  %8560 = vmatmul.mubr.f32.gmra.mrb[58].mxu1 %v19227_v0 }
 0x566   :  { %4831 = vmatprep.mubr.f32.mxu0 %v18787_v54  ;;  %8565 = vmatprep.mubr.f32.mxu1 %v18787_v54 }
 0x569   :  { %4833 = vmatmul.mubr.f32.gmra.mrb[60].mxu0 %v19228_v42  ;;  %8567 = vmatmul.mubr.f32.gmra.mrb[60].mxu1 %v19228_v42 }
 0x56a   :  { %4838 = vmatprep.mubr.f32.mxu0 %v18787_v54  ;;  %8572 = vmatprep.mubr.f32.mxu1 %v18787_v54 }
 0x56d   :  { %4840 = vmatmul.mubr.f32.gmra.mrb[62].mxu0 %v19229_v58  ;;  %8574 = vmatmul.mubr.f32.gmra.mrb[62].mxu1 %v19229_v58 }
 0x56e   :  { %4845 = vmatprep.mubr.f32.mxu0 %v18787_v54  ;;  %8579 = vmatprep.mubr.f32.mxu1 %v18787_v54 }
 0x571   :  { %4847 = vmatmul.mubr.f32.gmra.mrb[64].mxu0 %v19230_v32  ;;  %8581 = vmatmul.mubr.f32.gmra.mrb[64].mxu1 %v19230_v32 }
 0x572   :  { %4852 = vmatprep.mubr.f32.mxu0 %v18787_v54  ;;  %8586 = vmatprep.mubr.f32.mxu1 %v18787_v54 }
 0x575   :  { %4854 = vmatmul.mubr.f32.gmra.mrb[66].mxu0 %v19231_v48  ;;  %8588 = vmatmul.mubr.f32.gmra.mrb[66].mxu1 %v19231_v48 }
 0x576   :  { %4859 = vmatprep.mubr.f32.mxu0 %v18787_v54  ;;  %8593 = vmatprep.mubr.f32.mxu1 %v18787_v54 }
 0x579   :  { %4861 = vmatmul.mubr.f32.gmra.mrb[68].mxu0 %v19232_v15  ;;  %8595 = vmatmul.mubr.f32.gmra.mrb[68].mxu1 %v19232_v15 }
 0x57a   :  { %4866 = vmatprep.mubr.f32.mxu0 %v18787_v54  ;;  %8600 = vmatprep.mubr.f32.mxu1 %v18787_v54 }
 0x57d   :  { %4868 = vmatmul.mubr.f32.gmra.mrb[70].mxu0 %v19233_v7  ;;  %8602 = vmatmul.mubr.f32.gmra.mrb[70].mxu1 %v19233_v7 }
 0x57e   :  { %4873 = vmatprep.mubr.f32.mxu0 %v18787_v54  ;;  %8607 = vmatprep.mubr.f32.mxu1 %v18787_v54 }
 0x581   :  { %4875 = vmatmul.mubr.f32.gmra.mrb[72].mxu0 %v19234_v43  ;;  %8609 = vmatmul.mubr.f32.gmra.mrb[72].mxu1 %v19234_v43 }
 0x582   :  { %4880 = vmatprep.mubr.f32.mxu0 %v18787_v54  ;;  %8614 = vmatprep.mubr.f32.mxu1 %v18787_v54 }
 0x585   :  { %4882 = vmatmul.mubr.f32.gmra.mrb[74].mxu0 %v19235_v34  ;;  %8616 = vmatmul.mubr.f32.gmra.mrb[74].mxu1 %v19235_v34 }
 0x586   :  { %4887 = vmatprep.mubr.f32.mxu0 %v18787_v54  ;;  %8621 = vmatprep.mubr.f32.mxu1 %v18787_v54 }
 0x589   :  { %4889 = vmatmul.mubr.f32.gmra.mrb[76].mxu0 %v19236_v29  ;;  %8623 = vmatmul.mubr.f32.gmra.mrb[76].mxu1 %v19236_v29 }
 0x58a   :  { %4894 = vmatprep.mubr.f32.mxu0 %v18787_v54  ;;  %8628 = vmatprep.mubr.f32.mxu1 %v18787_v54 }
 0x58d   :  { %4896 = vmatmul.mubr.f32.gmra.mrb[78].mxu0 %v19237_v3  ;;  %8630 = vmatmul.mubr.f32.gmra.mrb[78].mxu1 %v19237_v3 }
 0x58e   :  { %4901 = vmatprep.mubr.f32.mxu0 %v18787_v54  ;;  %8635 = vmatprep.mubr.f32.mxu1 %v18787_v54 }
 0x591   :  { %4903 = vmatmul.mubr.f32.gmra.mrb[80].mxu0 %v19238_v44  ;;  %8637 = vmatmul.mubr.f32.gmra.mrb[80].mxu1 %v19238_v44 }
 0x592   :  { %4908 = vmatprep.mubr.f32.mxu0 %v18787_v54  ;;  %8642 = vmatprep.mubr.f32.mxu1 %v18787_v54 }
 0x595   :  { %4910 = vmatmul.mubr.f32.gmra.mrb[82].mxu0 %v19239_v36  ;;  %8644 = vmatmul.mubr.f32.gmra.mrb[82].mxu1 %v19239_v36 }
 0x596   :  { %4915 = vmatprep.mubr.f32.mxu0 %v18787_v54  ;;  %8649 = vmatprep.mubr.f32.mxu1 %v18787_v54 }
 0x599   :  { %4917 = vmatmul.mubr.f32.gmra.mrb[84].mxu0 %v19240_v60  ;;  %8651 = vmatmul.mubr.f32.gmra.mrb[84].mxu1 %v19240_v60 }
 0x59a   :  { %4922 = vmatprep.mubr.f32.mxu0 %v18787_v54  ;;  %8656 = vmatprep.mubr.f32.mxu1 %v18787_v54 }
 0x59d   :  { %4924 = vmatmul.mubr.f32.gmra.mrb[86].mxu0 %v19241_v56  ;;  %8658 = vmatmul.mubr.f32.gmra.mrb[86].mxu1 %v19241_v56 }
 0x59e   :  { %4929 = vmatprep.mubr.f32.mxu0 %v18787_v54  ;;  %8663 = vmatprep.mubr.f32.mxu1 %v18787_v54 }
 0x5a1   :  { %4931 = vmatmul.mubr.f32.gmra.mrb[88].mxu0 %v19242_v11  ;;  %8665 = vmatmul.mubr.f32.gmra.mrb[88].mxu1 %v19242_v11 }
 0x5a2   :  { %4936 = vmatprep.mubr.f32.mxu0 %v18787_v54  ;;  %8670 = vmatprep.mubr.f32.mxu1 %v18787_v54 }
 0x5a5   :  { %4938 = vmatmul.mubr.f32.gmra.mrb[90].mxu0 %v19243_v18  ;;  %8672 = vmatmul.mubr.f32.gmra.mrb[90].mxu1 %v19243_v18 }
 0x5a6   :  { %4943 = vmatprep.mubr.f32.mxu0 %v18787_v54  ;;  %8677 = vmatprep.mubr.f32.mxu1 %v18787_v54 }
 0x5a9   :  { %4945 = vmatmul.mubr.f32.gmra.mrb[92].mxu0 %v19244_v22  ;;  %8679 = vmatmul.mubr.f32.gmra.mrb[92].mxu1 %v19244_v22 }
 0x5aa   :  { %4950 = vmatprep.mubr.f32.mxu0 %v18787_v54  ;;  %8684 = vmatprep.mubr.f32.mxu1 %v18787_v54 }
 0x5ad   :  { %4952 = vmatmul.mubr.f32.gmra.mrb[94].mxu0 %v19245_v1  ;;  %8686 = vmatmul.mubr.f32.gmra.mrb[94].mxu1 %v19245_v1 }
 0x5ae   :  { %4957 = vmatprep.mubr.f32.mxu0 %v18787_v54  ;;  %8691 = vmatprep.mubr.f32.mxu1 %v18787_v54 }
 0x5b1   :  { %4959 = vmatmul.mubr.f32.gmra.mrb[96].mxu0 %v19246_v55  ;;  %8693 = vmatmul.mubr.f32.gmra.mrb[96].mxu1 %v19246_v55 }
 0x5b2   :  { %4964 = vmatprep.mubr.f32.mxu0 %v18787_v54  ;;  %8698 = vmatprep.mubr.f32.mxu1 %v18787_v54 }
 0x5b5   :  { %4966 = vmatmul.mubr.f32.gmra.mrb[98].mxu0 %v19247_v57  ;;  %8700 = vmatmul.mubr.f32.gmra.mrb[98].mxu1 %v19247_v57 }
 0x5b6   :  { %4971 = vmatprep.mubr.f32.mxu0 %v18787_v54  ;;  %8705 = vmatprep.mubr.f32.mxu1 %v18787_v54 }
 0x5b9   :  { %4973 = vmatmul.mubr.f32.gmra.mrb[100].mxu0 %v19248_v49  ;;  %8707 = vmatmul.mubr.f32.gmra.mrb[100].mxu1 %v19248_v49 }
 0x5ba   :  { %4978 = vmatprep.mubr.f32.mxu0 %v18787_v54  ;;  %8712 = vmatprep.mubr.f32.mxu1 %v18787_v54 }
 0x5bd   :  { %4980 = vmatmul.mubr.f32.gmra.mrb[102].mxu0 %v19249_v25  ;;  %8714 = vmatmul.mubr.f32.gmra.mrb[102].mxu1 %v19249_v25 }
 0x5be   :  { %4985 = vmatprep.mubr.f32.mxu0 %v18787_v54  ;;  %8719 = vmatprep.mubr.f32.mxu1 %v18787_v54 }
 0x5c1   :  { %4987 = vmatmul.mubr.f32.gmra.mrb[104].mxu0 %v19250_v47  ;;  %8721 = vmatmul.mubr.f32.gmra.mrb[104].mxu1 %v19250_v47 }
 0x5c2   :  { %4992 = vmatprep.mubr.f32.mxu0 %v18787_v54  ;;  %8726 = vmatprep.mubr.f32.mxu1 %v18787_v54 }
 0x5c5   :  { %4994 = vmatmul.mubr.f32.gmra.mrb[106].mxu0 %v19251_v39  ;;  %8728 = vmatmul.mubr.f32.gmra.mrb[106].mxu1 %v19251_v39 }
 0x5c6   :  { %4999 = vmatprep.mubr.f32.mxu0 %v18787_v54  ;;  %8733 = vmatprep.mubr.f32.mxu1 %v18787_v54 }
 0x5c9   :  { %5001 = vmatmul.mubr.f32.gmra.mrb[108].mxu0 %v19252_v6  ;;  %8735 = vmatmul.mubr.f32.gmra.mrb[108].mxu1 %v19252_v6 }
 0x5ca   :  { %5006 = vmatprep.mubr.f32.mxu0 %v18787_v54  ;;  %8740 = vmatprep.mubr.f32.mxu1 %v18787_v54 }
 0x5cd   :  { %5008 = vmatmul.mubr.f32.gmra.mrb[110].mxu0 %v19253_v17  ;;  %8742 = vmatmul.mubr.f32.gmra.mrb[110].mxu1 %v19253_v17 }
 0x5ce   :  { %5013 = vmatprep.mubr.f32.mxu0 %v18787_v54  ;;  %8747 = vmatprep.mubr.f32.mxu1 %v18787_v54 }
 0x5d1   :  { %5015 = vmatmul.mubr.f32.gmra.mrb[112].mxu0 %v19254_v33  ;;  %8749 = vmatmul.mubr.f32.gmra.mrb[112].mxu1 %v19254_v33 }
 0x5d2   :  { %5020 = vmatprep.mubr.f32.mxu0 %v18787_v54  ;;  %8754 = vmatprep.mubr.f32.mxu1 %v18787_v54 }
 0x5d5   :  { %5022 = vmatmul.mubr.f32.gmra.mrb[114].mxu0 %v19255_v31  ;;  %8756 = vmatmul.mubr.f32.gmra.mrb[114].mxu1 %v19255_v31 }
 0x5d6   :  { %5027 = vmatprep.mubr.f32.mxu0 %v18787_v54  ;;  %8761 = vmatprep.mubr.f32.mxu1 %v18787_v54 }
 0x5d9   :  { %5029 = vmatmul.mubr.f32.gmra.mrb[116].mxu0 %v19256_v4  ;;  %8763 = vmatmul.mubr.f32.gmra.mrb[116].mxu1 %v19256_v4 }
 0x5da   :  { %5034 = vmatprep.mubr.f32.mxu0 %v18787_v54  ;;  %8768 = vmatprep.mubr.f32.mxu1 %v18787_v54 }
 0x5dd   :  { %5036 = vmatmul.mubr.f32.gmra.mrb[118].mxu0 %v19257_v5  ;;  %8770 = vmatmul.mubr.f32.gmra.mrb[118].mxu1 %v19257_v5 }
 0x5de   :  { %5041 = vmatprep.mubr.f32.mxu0 %v18787_v54  ;;  %8775 = vmatprep.mubr.f32.mxu1 %v18787_v54 }
 0x5e1   :  { %5043 = vmatmul.mubr.f32.gmra.mrb[120].mxu0 %v19258_v16  ;;  %8777 = vmatmul.mubr.f32.gmra.mrb[120].mxu1 %v19258_v16  ;;  %v19261_v16 = vld [vmem:[#allocation208_spill] sm:$0xff] }
 0x5e2   :  { %5048 = vmatprep.mubr.f32.mxu0 %v18787_v54  ;;  %8782 = vmatprep.mubr.f32.mxu1 %v18787_v54 }
 0x5e5   :  { %5050 = vmatmul.mubr.f32.gmra.mrb[122].mxu0 %v19259_v21  ;;  %8784 = vmatmul.mubr.f32.gmra.mrb[122].mxu1 %v19259_v21 }
 0x5e6   :  { %5055 = vmatprep.mubr.f32.mxu0 %v18787_v54  ;;  %8789 = vmatprep.mubr.f32.mxu1 %v18787_v54 }
 0x5e9   :  { %5057 = vmatmul.mubr.f32.gmra.mrb[124].mxu0 %v19260_v8  ;;  %8791 = vmatmul.mubr.f32.gmra.mrb[124].mxu1 %v19260_v8 }
 0x5ea   :  { %5062 = vmatprep.mubr.f32.mxu0 %v18787_v54  ;;  %8796 = vmatprep.mubr.f32.mxu1 %v18787_v54 }
 0x5ed   :  { %5064 = vmatmul.mubr.f32.gmra.mrb[126].mxu0 %v19261_v16  ;;  %8798 = vmatmul.mubr.f32.gmra.mrb[126].mxu1 %v19261_v16 }
 0x5ee   :  { %5150 = vmatprep.mubr.f32.mxu0 %v18787_v54  ;;  %8884 = vmatprep.mubr.f32.mxu1 %v18787_v54 }
 0x5f1   :  { %5152 = vmatmul.mubr.f32.vlgmr.msra.gmra.mrb[0].mxu0 %v19195_v30  ;;  %8886 = vmatmul.mubr.f32.vlgmr.msra.gmra.mrb[0].mxu1 %v19195_v30 }
 0x5f2   :  { %5157 = vmatprep.mubr.f32.mxu0 %v18787_v54  ;;  %8891 = vmatprep.mubr.f32.mxu1 %v18787_v54 }
 0x5f5   :  { %5159 = vmatmul.mubr.f32.gmra.mrb[2].mxu0 %v19196_v23  ;;  %8893 = vmatmul.mubr.f32.gmra.mrb[2].mxu1 %v19196_v23 }
 0x5f6   :  { %5164 = vmatprep.mubr.f32.mxu0 %v18787_v54  ;;  %8898 = vmatprep.mubr.f32.mxu1 %v18787_v54 }
 0x5f9   :  { %5166 = vmatmul.mubr.f32.gmra.mrb[4].mxu0 %v19197_v37  ;;  %8900 = vmatmul.mubr.f32.gmra.mrb[4].mxu1 %v19197_v37 }
 0x5fa   :  { %5171 = vmatprep.mubr.f32.mxu0 %v18787_v54  ;;  %8905 = vmatprep.mubr.f32.mxu1 %v18787_v54 }
 0x5fd   :  { %5173 = vmatmul.mubr.f32.gmra.mrb[6].mxu0 %v19199_v50  ;;  %8907 = vmatmul.mubr.f32.gmra.mrb[6].mxu1 %v19199_v50 }
 0x5fe   :  { %5178 = vmatprep.mubr.f32.mxu0 %v18787_v54  ;;  %8912 = vmatprep.mubr.f32.mxu1 %v18787_v54 }
 0x601   :  { %5180 = vmatmul.mubr.f32.gmra.mrb[8].mxu0 %v19202_v24  ;;  %8914 = vmatmul.mubr.f32.gmra.mrb[8].mxu1 %v19202_v24 }
 0x602   :  { %5185 = vmatprep.mubr.f32.mxu0 %v18787_v54  ;;  %8919 = vmatprep.mubr.f32.mxu1 %v18787_v54 }
 0x605   :  { %5187 = vmatmul.mubr.f32.gmra.mrb[10].mxu0 %v19203_v13  ;;  %8921 = vmatmul.mubr.f32.gmra.mrb[10].mxu1 %v19203_v13 }
 0x606   :  { %5192 = vmatprep.mubr.f32.mxu0 %v18787_v54  ;;  %8926 = vmatprep.mubr.f32.mxu1 %v18787_v54 }
 0x609   :  { %5194 = vmatmul.mubr.f32.gmra.mrb[12].mxu0 %v19204_v45  ;;  %8928 = vmatmul.mubr.f32.gmra.mrb[12].mxu1 %v19204_v45 }
 0x60a   :  { %5199 = vmatprep.mubr.f32.mxu0 %v18787_v54  ;;  %8933 = vmatprep.mubr.f32.mxu1 %v18787_v54 }
 0x60d   :  { %5201 = vmatmul.mubr.f32.gmra.mrb[14].mxu0 %v19205_v26  ;;  %8935 = vmatmul.mubr.f32.gmra.mrb[14].mxu1 %v19205_v26 }
 0x60e   :  { %5206 = vmatprep.mubr.f32.mxu0 %v18787_v54  ;;  %8940 = vmatprep.mubr.f32.mxu1 %v18787_v54 }
 0x611   :  { %5208 = vmatmul.mubr.f32.gmra.mrb[16].mxu0 %v19206_v14  ;;  %8942 = vmatmul.mubr.f32.gmra.mrb[16].mxu1 %v19206_v14 }
 0x612   :  { %5213 = vmatprep.mubr.f32.mxu0 %v18787_v54  ;;  %8947 = vmatprep.mubr.f32.mxu1 %v18787_v54 }
 0x615   :  { %5215 = vmatmul.mubr.f32.gmra.mrb[18].mxu0 %v19207_v27  ;;  %8949 = vmatmul.mubr.f32.gmra.mrb[18].mxu1 %v19207_v27 }
 0x616   :  { %5220 = vmatprep.mubr.f32.mxu0 %v18787_v54  ;;  %8954 = vmatprep.mubr.f32.mxu1 %v18787_v54 }
 0x619   :  { %5222 = vmatmul.mubr.f32.gmra.mrb[20].mxu0 %v19208_v10  ;;  %8956 = vmatmul.mubr.f32.gmra.mrb[20].mxu1 %v19208_v10 }
 0x61a   :  { %5227 = vmatprep.mubr.f32.mxu0 %v18787_v54  ;;  %8961 = vmatprep.mubr.f32.mxu1 %v18787_v54 }
 0x61d   :  { %5229 = vmatmul.mubr.f32.gmra.mrb[22].mxu0 %v19209_v38  ;;  %8963 = vmatmul.mubr.f32.gmra.mrb[22].mxu1 %v19209_v38 }
 0x61e   :  { %5234 = vmatprep.mubr.f32.mxu0 %v18787_v54  ;;  %8968 = vmatprep.mubr.f32.mxu1 %v18787_v54 }
 0x621   :  { %5236 = vmatmul.mubr.f32.gmra.mrb[24].mxu0 %v19210_v46  ;;  %8970 = vmatmul.mubr.f32.gmra.mrb[24].mxu1 %v19210_v46 }
 0x622   :  { %5241 = vmatprep.mubr.f32.mxu0 %v18787_v54  ;;  %8975 = vmatprep.mubr.f32.mxu1 %v18787_v54 }
 0x625   :  { %5243 = vmatmul.mubr.f32.gmra.mrb[26].mxu0 %v19211_v51  ;;  %8977 = vmatmul.mubr.f32.gmra.mrb[26].mxu1 %v19211_v51 }
 0x626   :  { %5248 = vmatprep.mubr.f32.mxu0 %v18787_v54  ;;  %8982 = vmatprep.mubr.f32.mxu1 %v18787_v54 }
 0x629   :  { %5250 = vmatmul.mubr.f32.gmra.mrb[28].mxu0 %v19212_v59  ;;  %8984 = vmatmul.mubr.f32.gmra.mrb[28].mxu1 %v19212_v59 }
 0x62a   :  { %5255 = vmatprep.mubr.f32.mxu0 %v18787_v54  ;;  %8989 = vmatprep.mubr.f32.mxu1 %v18787_v54 }
 0x62d   :  { %5257 = vmatmul.mubr.f32.gmra.mrb[30].mxu0 %v19213_v62  ;;  %8991 = vmatmul.mubr.f32.gmra.mrb[30].mxu1 %v19213_v62 }
 0x62e   :  { %5262 = vmatprep.mubr.f32.mxu0 %v18787_v54  ;;  %8996 = vmatprep.mubr.f32.mxu1 %v18787_v54 }
 0x631   :  { %5264 = vmatmul.mubr.f32.gmra.mrb[32].mxu0 %v19214_v41  ;;  %8998 = vmatmul.mubr.f32.gmra.mrb[32].mxu1 %v19214_v41 }
 0x632   :  { %5269 = vmatprep.mubr.f32.mxu0 %v18787_v54  ;;  %9003 = vmatprep.mubr.f32.mxu1 %v18787_v54 }
 0x635   :  { %5271 = vmatmul.mubr.f32.gmra.mrb[34].mxu0 %v19215_v28  ;;  %9005 = vmatmul.mubr.f32.gmra.mrb[34].mxu1 %v19215_v28 }
 0x636   :  { %5276 = vmatprep.mubr.f32.mxu0 %v18787_v54  ;;  %9010 = vmatprep.mubr.f32.mxu1 %v18787_v54 }
 0x639   :  { %5278 = vmatmul.mubr.f32.gmra.mrb[36].mxu0 %v19216_v2  ;;  %9012 = vmatmul.mubr.f32.gmra.mrb[36].mxu1 %v19216_v2 }
 0x63a   :  { %5283 = vmatprep.mubr.f32.mxu0 %v18787_v54  ;;  %9017 = vmatprep.mubr.f32.mxu1 %v18787_v54 }
 0x63d   :  { %5285 = vmatmul.mubr.f32.gmra.mrb[38].mxu0 %v19217_v20  ;;  %9019 = vmatmul.mubr.f32.gmra.mrb[38].mxu1 %v19217_v20 }
 0x63e   :  { %5290 = vmatprep.mubr.f32.mxu0 %v18787_v54  ;;  %9024 = vmatprep.mubr.f32.mxu1 %v18787_v54 }
 0x641   :  { %5292 = vmatmul.mubr.f32.gmra.mrb[40].mxu0 %v19218_v19  ;;  %9026 = vmatmul.mubr.f32.gmra.mrb[40].mxu1 %v19218_v19 }
 0x642   :  { %5297 = vmatprep.mubr.f32.mxu0 %v18787_v54  ;;  %9031 = vmatprep.mubr.f32.mxu1 %v18787_v54 }
 0x645   :  { %5299 = vmatmul.mubr.f32.gmra.mrb[42].mxu0 %v19219_v40  ;;  %9033 = vmatmul.mubr.f32.gmra.mrb[42].mxu1 %v19219_v40 }
 0x646   :  { %5304 = vmatprep.mubr.f32.mxu0 %v18787_v54  ;;  %9038 = vmatprep.mubr.f32.mxu1 %v18787_v54 }
 0x649   :  { %5306 = vmatmul.mubr.f32.gmra.mrb[44].mxu0 %v19220_v63  ;;  %9040 = vmatmul.mubr.f32.gmra.mrb[44].mxu1 %v19220_v63 }
 0x64a   :  { %5311 = vmatprep.mubr.f32.mxu0 %v18787_v54  ;;  %9045 = vmatprep.mubr.f32.mxu1 %v18787_v54 }
 0x64d   :  { %5313 = vmatmul.mubr.f32.gmra.mrb[46].mxu0 %v19221_v53  ;;  %9047 = vmatmul.mubr.f32.gmra.mrb[46].mxu1 %v19221_v53 }
 0x64e   :  { %5318 = vmatprep.mubr.f32.mxu0 %v18787_v54  ;;  %9052 = vmatprep.mubr.f32.mxu1 %v18787_v54 }
 0x651   :  { %5320 = vmatmul.mubr.f32.gmra.mrb[48].mxu0 %v19222_v9  ;;  %9054 = vmatmul.mubr.f32.gmra.mrb[48].mxu1 %v19222_v9 }
 0x652   :  { %5325 = vmatprep.mubr.f32.mxu0 %v18787_v54  ;;  %9059 = vmatprep.mubr.f32.mxu1 %v18787_v54 }
 0x655   :  { %5327 = vmatmul.mubr.f32.gmra.mrb[50].mxu0 %v19223_v52  ;;  %9061 = vmatmul.mubr.f32.gmra.mrb[50].mxu1 %v19223_v52 }
 0x656   :  { %5332 = vmatprep.mubr.f32.mxu0 %v18787_v54  ;;  %9066 = vmatprep.mubr.f32.mxu1 %v18787_v54 }
 0x659   :  { %5334 = vmatmul.mubr.f32.gmra.mrb[52].mxu0 %v19224_v12  ;;  %9068 = vmatmul.mubr.f32.gmra.mrb[52].mxu1 %v19224_v12 }
 0x65a   :  { %5339 = vmatprep.mubr.f32.mxu0 %v18787_v54  ;;  %9073 = vmatprep.mubr.f32.mxu1 %v18787_v54 }
 0x65d   :  { %5341 = vmatmul.mubr.f32.gmra.mrb[54].mxu0 %v19225_v35  ;;  %9075 = vmatmul.mubr.f32.gmra.mrb[54].mxu1 %v19225_v35 }
 0x65e   :  { %5346 = vmatprep.mubr.f32.mxu0 %v18787_v54  ;;  %9080 = vmatprep.mubr.f32.mxu1 %v18787_v54 }
 0x661   :  { %5348 = vmatmul.mubr.f32.gmra.mrb[56].mxu0 %v19226_v61  ;;  %9082 = vmatmul.mubr.f32.gmra.mrb[56].mxu1 %v19226_v61 }
 0x662   :  { %5353 = vmatprep.mubr.f32.mxu0 %v18787_v54  ;;  %9087 = vmatprep.mubr.f32.mxu1 %v18787_v54 }
 0x665   :  { %5355 = vmatmul.mubr.f32.gmra.mrb[58].mxu0 %v19227_v0  ;;  %9089 = vmatmul.mubr.f32.gmra.mrb[58].mxu1 %v19227_v0 }
 0x666   :  { %5360 = vmatprep.mubr.f32.mxu0 %v18787_v54  ;;  %9094 = vmatprep.mubr.f32.mxu1 %v18787_v54 }
 0x669   :  { %5362 = vmatmul.mubr.f32.gmra.mrb[60].mxu0 %v19228_v42  ;;  %9096 = vmatmul.mubr.f32.gmra.mrb[60].mxu1 %v19228_v42 }
 0x66a   :  { %5367 = vmatprep.mubr.f32.mxu0 %v18787_v54  ;;  %9101 = vmatprep.mubr.f32.mxu1 %v18787_v54 }
 0x66d   :  { %5369 = vmatmul.mubr.f32.gmra.mrb[62].mxu0 %v19229_v58  ;;  %9103 = vmatmul.mubr.f32.gmra.mrb[62].mxu1 %v19229_v58 }
 0x66e   :  { %5374 = vmatprep.mubr.f32.mxu0 %v18787_v54  ;;  %9108 = vmatprep.mubr.f32.mxu1 %v18787_v54 }
 0x671   :  { %5376 = vmatmul.mubr.f32.gmra.mrb[64].mxu0 %v19230_v32  ;;  %9110 = vmatmul.mubr.f32.gmra.mrb[64].mxu1 %v19230_v32 }
 0x672   :  { %5381 = vmatprep.mubr.f32.mxu0 %v18787_v54  ;;  %9115 = vmatprep.mubr.f32.mxu1 %v18787_v54 }
 0x675   :  { %5383 = vmatmul.mubr.f32.gmra.mrb[66].mxu0 %v19231_v48  ;;  %9117 = vmatmul.mubr.f32.gmra.mrb[66].mxu1 %v19231_v48 }
 0x676   :  { %5388 = vmatprep.mubr.f32.mxu0 %v18787_v54  ;;  %9122 = vmatprep.mubr.f32.mxu1 %v18787_v54 }
 0x679   :  { %5390 = vmatmul.mubr.f32.gmra.mrb[68].mxu0 %v19232_v15  ;;  %9124 = vmatmul.mubr.f32.gmra.mrb[68].mxu1 %v19232_v15 }
 0x67a   :  { %5395 = vmatprep.mubr.f32.mxu0 %v18787_v54  ;;  %9129 = vmatprep.mubr.f32.mxu1 %v18787_v54 }
 0x67d   :  { %5397 = vmatmul.mubr.f32.gmra.mrb[70].mxu0 %v19233_v7  ;;  %9131 = vmatmul.mubr.f32.gmra.mrb[70].mxu1 %v19233_v7 }
 0x67e   :  { %5402 = vmatprep.mubr.f32.mxu0 %v18787_v54  ;;  %9136 = vmatprep.mubr.f32.mxu1 %v18787_v54 }
 0x681   :  { %5404 = vmatmul.mubr.f32.gmra.mrb[72].mxu0 %v19234_v43  ;;  %9138 = vmatmul.mubr.f32.gmra.mrb[72].mxu1 %v19234_v43 }
 0x682   :  { %5409 = vmatprep.mubr.f32.mxu0 %v18787_v54  ;;  %9143 = vmatprep.mubr.f32.mxu1 %v18787_v54 }
 0x685   :  { %5411 = vmatmul.mubr.f32.gmra.mrb[74].mxu0 %v19235_v34  ;;  %9145 = vmatmul.mubr.f32.gmra.mrb[74].mxu1 %v19235_v34 }
 0x686   :  { %5416 = vmatprep.mubr.f32.mxu0 %v18787_v54  ;;  %9150 = vmatprep.mubr.f32.mxu1 %v18787_v54 }
 0x689   :  { %5418 = vmatmul.mubr.f32.gmra.mrb[76].mxu0 %v19236_v29  ;;  %9152 = vmatmul.mubr.f32.gmra.mrb[76].mxu1 %v19236_v29 }
 0x68a   :  { %5423 = vmatprep.mubr.f32.mxu0 %v18787_v54  ;;  %9157 = vmatprep.mubr.f32.mxu1 %v18787_v54 }
 0x68d   :  { %5425 = vmatmul.mubr.f32.gmra.mrb[78].mxu0 %v19237_v3  ;;  %9159 = vmatmul.mubr.f32.gmra.mrb[78].mxu1 %v19237_v3 }
 0x68e   :  { %5430 = vmatprep.mubr.f32.mxu0 %v18787_v54  ;;  %9164 = vmatprep.mubr.f32.mxu1 %v18787_v54 }
 0x691   :  { %5432 = vmatmul.mubr.f32.gmra.mrb[80].mxu0 %v19238_v44  ;;  %9166 = vmatmul.mubr.f32.gmra.mrb[80].mxu1 %v19238_v44 }
 0x692   :  { %5437 = vmatprep.mubr.f32.mxu0 %v18787_v54  ;;  %9171 = vmatprep.mubr.f32.mxu1 %v18787_v54 }
 0x695   :  { %5439 = vmatmul.mubr.f32.gmra.mrb[82].mxu0 %v19239_v36  ;;  %9173 = vmatmul.mubr.f32.gmra.mrb[82].mxu1 %v19239_v36 }
 0x696   :  { %5444 = vmatprep.mubr.f32.mxu0 %v18787_v54  ;;  %9178 = vmatprep.mubr.f32.mxu1 %v18787_v54 }
 0x699   :  { %5446 = vmatmul.mubr.f32.gmra.mrb[84].mxu0 %v19240_v60  ;;  %9180 = vmatmul.mubr.f32.gmra.mrb[84].mxu1 %v19240_v60 }
 0x69a   :  { %5451 = vmatprep.mubr.f32.mxu0 %v18787_v54  ;;  %9185 = vmatprep.mubr.f32.mxu1 %v18787_v54 }
 0x69d   :  { %5453 = vmatmul.mubr.f32.gmra.mrb[86].mxu0 %v19241_v56  ;;  %9187 = vmatmul.mubr.f32.gmra.mrb[86].mxu1 %v19241_v56 }
 0x69e   :  { %5458 = vmatprep.mubr.f32.mxu0 %v18787_v54  ;;  %9192 = vmatprep.mubr.f32.mxu1 %v18787_v54 }
 0x6a1   :  { %5460 = vmatmul.mubr.f32.gmra.mrb[88].mxu0 %v19242_v11  ;;  %9194 = vmatmul.mubr.f32.gmra.mrb[88].mxu1 %v19242_v11 }
 0x6a2   :  { %5465 = vmatprep.mubr.f32.mxu0 %v18787_v54  ;;  %9199 = vmatprep.mubr.f32.mxu1 %v18787_v54 }
 0x6a5   :  { %5467 = vmatmul.mubr.f32.gmra.mrb[90].mxu0 %v19243_v18  ;;  %9201 = vmatmul.mubr.f32.gmra.mrb[90].mxu1 %v19243_v18 }
 0x6a6   :  { %5472 = vmatprep.mubr.f32.mxu0 %v18787_v54  ;;  %9206 = vmatprep.mubr.f32.mxu1 %v18787_v54 }
 0x6a9   :  { %5474 = vmatmul.mubr.f32.gmra.mrb[92].mxu0 %v19244_v22  ;;  %9208 = vmatmul.mubr.f32.gmra.mrb[92].mxu1 %v19244_v22 }
 0x6aa   :  { %5479 = vmatprep.mubr.f32.mxu0 %v18787_v54  ;;  %9213 = vmatprep.mubr.f32.mxu1 %v18787_v54 }
 0x6ad   :  { %5481 = vmatmul.mubr.f32.gmra.mrb[94].mxu0 %v19245_v1  ;;  %9215 = vmatmul.mubr.f32.gmra.mrb[94].mxu1 %v19245_v1 }
 0x6ae   :  { %5486 = vmatprep.mubr.f32.mxu0 %v18787_v54  ;;  %9220 = vmatprep.mubr.f32.mxu1 %v18787_v54 }
 0x6b1   :  { %5488 = vmatmul.mubr.f32.gmra.mrb[96].mxu0 %v19246_v55  ;;  %9222 = vmatmul.mubr.f32.gmra.mrb[96].mxu1 %v19246_v55 }
 0x6b2   :  { %5493 = vmatprep.mubr.f32.mxu0 %v18787_v54  ;;  %9227 = vmatprep.mubr.f32.mxu1 %v18787_v54 }
 0x6b5   :  { %5495 = vmatmul.mubr.f32.gmra.mrb[98].mxu0 %v19247_v57  ;;  %9229 = vmatmul.mubr.f32.gmra.mrb[98].mxu1 %v19247_v57 }
 0x6b6   :  { %5500 = vmatprep.mubr.f32.mxu0 %v18787_v54  ;;  %9234 = vmatprep.mubr.f32.mxu1 %v18787_v54 }
 0x6b9   :  { %5502 = vmatmul.mubr.f32.gmra.mrb[100].mxu0 %v19248_v49  ;;  %9236 = vmatmul.mubr.f32.gmra.mrb[100].mxu1 %v19248_v49 }
 0x6ba   :  { %5507 = vmatprep.mubr.f32.mxu0 %v18787_v54  ;;  %9241 = vmatprep.mubr.f32.mxu1 %v18787_v54 }
 0x6bd   :  { %5509 = vmatmul.mubr.f32.gmra.mrb[102].mxu0 %v19249_v25  ;;  %9243 = vmatmul.mubr.f32.gmra.mrb[102].mxu1 %v19249_v25 }
 0x6be   :  { %5514 = vmatprep.mubr.f32.mxu0 %v18787_v54  ;;  %9248 = vmatprep.mubr.f32.mxu1 %v18787_v54 }
 0x6c1   :  { %5516 = vmatmul.mubr.f32.gmra.mrb[104].mxu0 %v19250_v47  ;;  %9250 = vmatmul.mubr.f32.gmra.mrb[104].mxu1 %v19250_v47 }
 0x6c2   :  { %5521 = vmatprep.mubr.f32.mxu0 %v18787_v54  ;;  %9255 = vmatprep.mubr.f32.mxu1 %v18787_v54 }
 0x6c4   :  { %v5153_v30 = vpop.f32.mrb[0].mxu0  ;;  %v8887_v23 = vpop.f32.mrb[0].mxu1 }
 0x6c5   :  { %v11335_v37 = vmul.f32 -1.442695, %v5153_v30  ;;  %v11337_v50 = vmul.f32 -1.442695, %v8887_v23  ;;  %v5155_v24 = vpop.f32.mrb[1].mxu0  ;;  %5523 = vmatmul.mubr.f32.gmra.mrb[106].mxu0 %v19251_v39  ;;  %v8889_v13 = vpop.f32.mrb[1].mxu1  ;;  %9257 = vmatmul.mubr.f32.gmra.mrb[106].mxu1 %v19251_v39 }
 0x6c6   :  { %v11336_v45 = vmul.f32 -1.442695, %v5155_v24  ;;  %v11338_v26 = vmul.f32 -1.442695, %v8889_v13  ;;  %5528 = vmatprep.mubr.f32.mxu0 %v18787_v54  ;;  %9262 = vmatprep.mubr.f32.mxu1 %v18787_v54 }
 0x6c7   :  { %13067 = vpow2.f32 %v11335_v37 }
 0x6c8   :  { %13069 = vpow2.f32 %v11337_v50  ;;  %v5160_v14 = vpop.f32.mrb[2].mxu0  ;;  %v8894_v27 = vpop.f32.mrb[2].mxu1 }
 0x6c9   :  { %13071 = vpow2.f32 %v11336_v45  ;;  %v11339_v10 = vmul.f32 -1.442695, %v5160_v14  ;;  %v11341_v38 = vmul.f32 -1.442695, %v8894_v27  ;;  %v5162_v46 = vpop.f32.mrb[3].mxu0  ;;  %5530 = vmatmul.mubr.f32.gmra.mrb[108].mxu0 %v19252_v6  ;;  %v8896_v51 = vpop.f32.mrb[3].mxu1  ;;  %9264 = vmatmul.mubr.f32.gmra.mrb[108].mxu1 %v19252_v6 }
 0x6ca   :  { %13073 = vpow2.f32 %v11338_v26  ;;  %v11340_v59 = vmul.f32 -1.442695, %v5162_v46  ;;  %v11342_v62 = vmul.f32 -1.442695, %v8896_v51  ;;  %5535 = vmatprep.mubr.f32.mxu0 %v18787_v54  ;;  %9269 = vmatprep.mubr.f32.mxu1 %v18787_v54 }
 0x6cb   :  { %13075 = vpow2.f32 %v11339_v10 }
 0x6cc   :  { %13077 = vpow2.f32 %v11341_v38  ;;  %v5167_v41 = vpop.f32.mrb[4].mxu0  ;;  %v8901_v28 = vpop.f32.mrb[4].mxu1 }
 0x6cd   :  { %13079 = vpow2.f32 %v11340_v59  ;;  %v11343_v2 = vmul.f32 -1.442695, %v5167_v41  ;;  %v11345_v20 = vmul.f32 -1.442695, %v8901_v28  ;;  %v5169_v19 = vpop.f32.mrb[5].mxu0  ;;  %5537 = vmatmul.mubr.f32.gmra.mrb[110].mxu0 %v19253_v17  ;;  %v8903_v40 = vpop.f32.mrb[5].mxu1  ;;  %9271 = vmatmul.mubr.f32.gmra.mrb[110].mxu1 %v19253_v17 }
 0x6ce   :  { %13081 = vpow2.f32 %v11342_v62  ;;  %v11344_v63 = vmul.f32 -1.442695, %v5169_v19  ;;  %v11346_v53 = vmul.f32 -1.442695, %v8903_v40  ;;  %5542 = vmatprep.mubr.f32.mxu0 %v18787_v54  ;;  %9276 = vmatprep.mubr.f32.mxu1 %v18787_v54 }
 0x6cf   :  { %13083 = vpow2.f32 %v11343_v2 }
 0x6d0   :  { %13085 = vpow2.f32 %v11345_v20  ;;  %v5174_v9 = vpop.f32.mrb[6].mxu0  ;;  %v17490_v52 = vpop.f32.mrb[6].mxu1  ;;  %v19262_v20 = vld [vmem:[#allocation200_spill] sm:$0xff] }
 0x6d1   :  { %v13068_v12 = vpop.eup %13067  ;;  %13087 = vpow2.f32 %v11344_v63  ;;  %v11347_v35 = vmul.f32 -1.442695, %v5174_v9  ;;  %v17492_v61 = vpop.f32.mrb[7].mxu0  ;;  %5544 = vmatmul.mubr.f32.gmra.mrb[112].mxu0 %v19254_v33  ;;  %9278 = vmatmul.mubr.f32.gmra.mrb[112].mxu1 %v19254_v33  ;;  %v11349_v13 = vmul.f32 -1.442695, %v17490_v52 }
 0x6d2   :  { %v17495_v0 = vpop.f32.mrb[7].mxu1  ;;  %v13070_v42 = vpop.eup %13069  ;;  %v10101_v58 = vadd.f32 1.0, %v13068_v12  ;;  %13089 = vpow2.f32 %v11346_v53  ;;  %5549 = vmatprep.mubr.f32.mxu0 %v18787_v54  ;;  %9283 = vmatprep.mubr.f32.mxu1 %v18787_v54  ;;  %v11348_v27 = vmul.f32 -1.442695, %v17492_v61 }
 0x6d3   :  { %v13072_v32 = vpop.eup %13071  ;;  %v10103_v48 = vadd.f32 1.0, %v13070_v42  ;;  %13091 = vpow2.f32 %v11347_v35  ;;  %v11350_v46 = vmul.f32 -1.442695, %v17495_v0 }
 0x6d4   :  { %v13074_v15 = vpop.eup %13073  ;;  %13093 = vrcp.f32 %v10101_v58  ;;  %v10102_v7 = vadd.f32 1.0, %v13072_v32  ;;  %v5181_v43 = vpop.f32.mrb[8].mxu0 }
 0x6d5   :  { %v17500_v34 = vpop.f32.mrb[8].mxu1  ;;  %v13076_v29 = vpop.eup %13075  ;;  %13095 = vrcp.f32 %v10103_v48  ;;  %v10104_v3 = vadd.f32 1.0, %v13074_v15  ;;  %5551 = vmatmul.mubr.f32.gmra.mrb[114].mxu0 %v19255_v31  ;;  %9285 = vmatmul.mubr.f32.gmra.mrb[114].mxu1 %v19255_v31 }
 0x6d6   :  { %v17502_v44 = vpop.f32.mrb[9].mxu0  ;;  %v13078_v36 = vpop.eup %13077  ;;  %13097 = vrcp.f32 %v10102_v7  ;;  %v10105_v60 = vadd.f32 1.0, %v13076_v29  ;;  %5556 = vmatprep.mubr.f32.mxu0 %v18787_v54  ;;  %9290 = vmatprep.mubr.f32.mxu1 %v18787_v54  ;;  %v11353_v28 = vmul.f32 -1.442695, %v17500_v34 }
 0x6d7   :  { %v17506_v56 = vpop.f32.mrb[9].mxu1  ;;  %v13080_v11 = vpop.eup %13079  ;;  %13099 = vrcp.f32 %v10104_v3  ;;  %v10107_v18 = vadd.f32 1.0, %v13078_v36  ;;  %v11352_v63 = vmul.f32 -1.442695, %v17502_v44 }
 0x6d8   :  { %v13082_v22 = vpop.eup %13081  ;;  %13101 = vrcp.f32 %v10105_v60  ;;  %v10106_v1 = vadd.f32 1.0, %v13080_v11  ;;  %v17510_v55 = vpop.f32.mrb[10].mxu0  ;;  %v11354_v9 = vmul.f32 -1.442695, %v17506_v56 }
 0x6d9   :  { %v17512_v57 = vpop.f32.mrb[10].mxu1  ;;  %v13084_v49 = vpop.eup %13083  ;;  %13103 = vrcp.f32 %v10107_v18  ;;  %v10108_v25 = vadd.f32 1.0, %v13082_v22  ;;  %5558 = vmatmul.mubr.f32.gmra.mrb[116].mxu0 %v19256_v4  ;;  %9292 = vmatmul.mubr.f32.gmra.mrb[116].mxu1 %v19256_v4  ;;  %v11355_v12 = vmul.f32 -1.442695, %v17510_v55 }
 0x6da   :  { %v17514_v47 = vpop.f32.mrb[11].mxu0  ;;  %v13086_v39 = vpop.eup %13085  ;;  %13105 = vrcp.f32 %v10106_v1  ;;  %v10109_v6 = vadd.f32 1.0, %v13084_v49  ;;  %5563 = vmatprep.mubr.f32.mxu0 %v18787_v54  ;;  %9297 = vmatprep.mubr.f32.mxu1 %v18787_v54  ;;  %v11357_v42 = vmul.f32 -1.442695, %v17512_v57 }
 0x6db   :  { %v17518_v17 = vpop.f32.mrb[11].mxu1  ;;  %v13088_v33 = vpop.eup %13087  ;;  %13107 = vrcp.f32 %v10108_v25  ;;  %v10111_v31 = vadd.f32 1.0, %v13086_v39  ;;  %v11356_v15 = vmul.f32 -1.442695, %v17514_v47 }
 0x6dc   :  { %v13090_v30 = vpop.eup %13089  ;;  %13109 = vrcp.f32 %v10109_v6  ;;  %v10110_v23 = vadd.f32 1.0, %v13088_v33  ;;  %v17522_v37 = vpop.f32.mrb[12].mxu0 }
 0x6dd   :  { %v17524_v50 = vpop.f32.mrb[12].mxu1  ;;  %v13092_v4 = vpop.eup %13091  ;;  %13111 = vrcp.f32 %v10111_v31  ;;  %v10112_v24 = vadd.f32 1.0, %v13090_v30  ;;  %5565 = vmatmul.mubr.f32.gmra.mrb[118].mxu0 %v19257_v5  ;;  %9299 = vmatmul.mubr.f32.gmra.mrb[118].mxu1 %v19257_v5  ;;  %v11351_v5 = vmul.f32 -1.442695, %v5181_v43  ;;  %v11358_v43 = vmul.f32 -1.442695, %v17518_v17 }
 0x6de   :  { %v17527_v45 = vpop.f32.mrb[13].mxu0  ;;  %v13094_v26 = vpop.eup %13093  ;;  %13113 = vrcp.f32 %v10110_v23  ;;  %v10113_v14 = vadd.f32 1.0, %v13092_v4  ;;  %5570 = vmatprep.mubr.f32.mxu0 %v18787_v54  ;;  %9304 = vmatprep.mubr.f32.mxu1 %v18787_v54  ;;  %v11359_v29 = vmul.f32 -1.442695, %v17522_v37  ;;  %v11361_v36 = vmul.f32 -1.442695, %v17524_v50 }
 0x6df   :  { %v17532_v10 = vpop.f32.mrb[13].mxu1  ;;  %v13096_v38 = vpop.eup %13095  ;;  %10869 = vst [vmem:[#allocation3] sm:$0xff] %v13094_v26  ;;  %13115 = vrcp.f32 %v10112_v24 }
 0x6e0   :  { %v13098_v51 = vpop.eup %13097  ;;  %10871 = vst [vmem:[#allocation3 + $0x10] sm:$0xff] %v13096_v38  ;;  %13117 = vrcp.f32 %v10113_v14  ;;  %v17537_v59 = vpop.f32.mrb[14].mxu0 }
 0x6e1   :  { %v17539_v62 = vpop.f32.mrb[14].mxu1  ;;  %v13100_v41 = vpop.eup %13099  ;;  %10870 = vst [vmem:[#allocation3 + $0x8] sm:$0xff] %v13098_v51  ;;  %13119 = vpow2.f32 %v11349_v13  ;;  %5572 = vmatmul.mubr.f32.gmra.mrb[120].mxu0 %v19262_v20  ;;  %9306 = vmatmul.mubr.f32.gmra.mrb[120].mxu1 %v19262_v20 }
 0x6e2   :  { %v17542_v2 = vpop.f32.mrb[15].mxu0  ;;  %v17545_v19 = vpop.f32.mrb[15].mxu1  ;;  %10872 = vst [vmem:[#allocation3 + $0x18] sm:$0xff] %v13100_v41  ;;  %13121 = vpow2.f32 %v11348_v27  ;;  %5577 = vmatprep.mubr.f32.mxu0 %v18787_v54  ;;  %9311 = vmatprep.mubr.f32.mxu1 %v18787_v54 }
 0x6e3   :  { %v13102_v40 = vpop.eup %13101  ;;  %13123 = vpow2.f32 %v11350_v46 }
 0x6e4   :  { %v13104_v53 = vpop.eup %13103  ;;  %10873 = vst [vmem:[#allocation3 + $0x20] sm:$0xff] %v13102_v40  ;;  %13125 = vpow2.f32 %v11351_v5  ;;  %v17553_v35 = vpop.f32.mrb[16].mxu0 }
 0x6e5   :  { %v13106_v52 = vpop.eup %13105  ;;  %10875 = vst [vmem:[#allocation3 + $0x30] sm:$0xff] %v13104_v53  ;;  %v17555_v61 = vpop.f32.mrb[16].mxu1  ;;  %13127 = vpow2.f32 %v11353_v28  ;;  %5579 = vmatmul.mubr.f32.gmra.mrb[122].mxu0 %v19259_v21  ;;  %9313 = vmatmul.mubr.f32.gmra.mrb[122].mxu1 %v19259_v21 }
 0x6e6   :  { %v13108_v0 = vpop.eup %13107  ;;  %10874 = vst [vmem:[#allocation3 + $0x28] sm:$0xff] %v13106_v52  ;;  %v17558_v58 = vpop.f32.mrb[17].mxu0  ;;  %13129 = vpow2.f32 %v11352_v63  ;;  %5584 = vmatprep.mubr.f32.mxu0 %v18787_v54  ;;  %9318 = vmatprep.mubr.f32.mxu1 %v18787_v54  ;;  %v11360_v52 = vmul.f32 -1.442695, %v17527_v45  ;;  %v11365_v45 = vmul.f32 -1.442695, %v17539_v62 }
 0x6e7   :  { %v17561_v32 = vpop.f32.mrb[17].mxu1  ;;  %v13110_v48 = vpop.eup %13109  ;;  %10876 = vst [vmem:[#allocation3 + $0x38] sm:$0xff] %v13108_v0  ;;  %13131 = vpow2.f32 %v11354_v9 }
 0x6e8   :  { %v13112_v7 = vpop.eup %13111  ;;  %10877 = vst [vmem:[#allocation3 + $0x40] sm:$0xff] %v13110_v48  ;;  %13133 = vpow2.f32 %v11355_v12  ;;  %v17569_v21 = vpop.f32.mrb[18].mxu0 }
 0x6e9   :  { %v13114_v34 = vpop.eup %13113  ;;  %10879 = vst [vmem:[#allocation3 + $0x50] sm:$0xff] %v13112_v7  ;;  %v17571_v3 = vpop.f32.mrb[18].mxu1  ;;  %13135 = vpow2.f32 %v11357_v42  ;;  %5586 = vmatmul.mubr.f32.gmra.mrb[124].mxu0 %v19260_v8  ;;  %9320 = vmatmul.mubr.f32.gmra.mrb[124].mxu1 %v19260_v8  ;;  %v11362_v42 = vmul.f32 -1.442695, %v17532_v10  ;;  %v11364_v10 = vmul.f32 -1.442695, %v17542_v2 }
 0x6ea   :  { %v13116_v44 = vpop.eup %13115  ;;  %10878 = vst [vmem:[#allocation3 + $0x48] sm:$0xff] %v13114_v34  ;;  %v17574_v60 = vpop.f32.mrb[19].mxu0  ;;  %13137 = vpow2.f32 %v11356_v15  ;;  %5591 = vmatprep.mubr.f32.mxu0 %v18787_v54  ;;  %9325 = vmatprep.mubr.f32.mxu1 %v18787_v54  ;;  %v11369_v2 = vmul.f32 -1.442695, %v17555_v61 }
 0x6eb   :  { %v17577_v56 = vpop.f32.mrb[19].mxu1  ;;  %v13118_v11 = vpop.eup %13117  ;;  %10880 = vst [vmem:[#allocation3 + $0x58] sm:$0xff] %v13116_v44  ;;  %13139 = vpow2.f32 %v11358_v43  ;;  %v11363_v43 = vmul.f32 -1.442695, %v17537_v59 }
 0x6ec   :  { %v13120_v18 = vpop.eup %13119  ;;  %10881 = vst [vmem:[#allocation3 + $0x60] sm:$0xff] %v13118_v11  ;;  %13141 = vpow2.f32 %v11359_v29  ;;  %v17582_v55 = vpop.f32.mrb[20].mxu0 }
 0x6ed   :  { %v13122_v22 = vpop.eup %13121  ;;  %v10115_v1 = vadd.f32 1.0, %v13120_v18  ;;  %v17584_v57 = vpop.f32.mrb[20].mxu1  ;;  %13143 = vpow2.f32 %v11361_v36  ;;  %5593 = vmatmul.mubr.f32.gmra.mrb[126].mxu0 %v19261_v16  ;;  %9327 = vmatmul.mubr.f32.gmra.mrb[126].mxu1 %v19261_v16  ;;  %v11366_v18 = vmul.f32 -1.442695, %v17545_v19  ;;  %v11368_v19 = vmul.f32 -1.442695, %v17558_v58 }
 0x6ee   :  { %v13124_v49 = vpop.eup %13123  ;;  %v10114_v25 = vadd.f32 1.0, %v13122_v22  ;;  %v17586_v8 = vpop.f32.mrb[21].mxu0  ;;  %v11373_v58 = vmul.f32 -1.442695, %v17571_v3 }
 0x6ef   :  { %v13126_v54 = vpop.eup %13125  ;;  %13145 = vrcp.f32 %v10115_v1  ;;  %v10116_v47 = vadd.f32 1.0, %v13124_v49  ;;  %v17590_v39 = vpop.f32.mrb[21].mxu1  ;;  %v11367_v49 = vmul.f32 -1.442695, %v17553_v35 }
 0x6f0   :  { %v13128_v6 = vpop.eup %13127  ;;  %13147 = vrcp.f32 %v10114_v25  ;;  %v10117_v17 = vadd.f32 1.0, %v13126_v54  ;;  %v17592_v30 = vpop.f32.mrb[22].mxu0 }
 0x6f1   :  { %v13130_v33 = vpop.eup %13129  ;;  %13149 = vrcp.f32 %v10116_v47  ;;  %v10119_v31 = vadd.f32 1.0, %v13128_v6  ;;  %v17594_v23 = vpop.f32.mrb[22].mxu1 }
 0x6f2   :  { %v13132_v37 = vpop.eup %13131  ;;  %13151 = vrcp.f32 %v10117_v17  ;;  %v10118_v50 = vadd.f32 1.0, %v13130_v33  ;;  %v17596_v4 = vpop.f32.mrb[23].mxu0  ;;  %v11370_v17 = vmul.f32 -1.442695, %v17561_v32  ;;  %v11372_v32 = vmul.f32 -1.442695, %v17574_v60 }
 0x6f3   :  { %v13134_v16 = vpop.eup %13133  ;;  %13153 = vrcp.f32 %v10119_v31  ;;  %v10120_v24 = vadd.f32 1.0, %v13132_v37  ;;  %v17598_v13 = vpop.f32.mrb[23].mxu1  ;;  %v11371_v37 = vmul.f32 -1.442695, %v17569_v21 }
 0x6f4   :  { %v13136_v26 = vpop.eup %13135  ;;  %13155 = vrcp.f32 %v10118_v50  ;;  %v10121_v14 = vadd.f32 1.0, %v13134_v16  ;;  %v17600_v46 = vpop.f32.mrb[24].mxu0 }
 0x6f5   :  { %v13138_v27 = vpop.eup %13137  ;;  %13157 = vrcp.f32 %v10120_v24  ;;  %v10123_v38 = vadd.f32 1.0, %v13136_v26  ;;  %v17602_v51 = vpop.f32.mrb[24].mxu1 }
 0x6f6   :  { %v13140_v5 = vpop.eup %13139  ;;  %13159 = vrcp.f32 %v10121_v14  ;;  %v10122_v41 = vadd.f32 1.0, %v13138_v27  ;;  %v17604_v28 = vpop.f32.mrb[25].mxu0 }
 0x6f7   :  { %v13142_v20 = vpop.eup %13141  ;;  %13161 = vrcp.f32 %v10123_v38  ;;  %v10124_v40 = vadd.f32 1.0, %v13140_v5  ;;  %v17606_v63 = vpop.f32.mrb[25].mxu1 }
 0x6f8   :  { %v13144_v53 = vpop.eup %13143  ;;  %13163 = vrcp.f32 %v10122_v41  ;;  %v10125_v9 = vadd.f32 1.0, %v13142_v20  ;;  %v17610_v48 = vpop.f32.mrb[26].mxu0 }
 0x6f9   :  { %v13146_v12 = vpop.eup %13145  ;;  %13165 = vrcp.f32 %v10124_v40  ;;  %v10127_v0 = vadd.f32 1.0, %v13144_v53  ;;  %v17612_v15 = vpop.f32.mrb[26].mxu1 }
 0x6fa   :  { %v13148_v7 = vpop.eup %13147  ;;  %10883 = vst [vmem:[#allocation3 + $0x70] sm:$0xff] %v13146_v12  ;;  %13167 = vrcp.f32 %v10125_v9  ;;  %v17615_v34 = vpop.f32.mrb[27].mxu0 }
 0x6fb   :  { %v17617_v29 = vpop.f32.mrb[27].mxu1  ;;  %v13150_v44 = vpop.eup %13149  ;;  %10882 = vst [vmem:[#allocation3 + $0x68] sm:$0xff] %v13148_v7  ;;  %13169 = vrcp.f32 %v10127_v0 }
 0x6fc   :  { %v13152_v36 = vpop.eup %13151  ;;  %10884 = vst [vmem:[#allocation3 + $0x78] sm:$0xff] %v13150_v44  ;;  %13171 = vpow2.f32 %v11360_v52  ;;  %v17622_v59 = vpop.f32.mrb[28].mxu0 }
 0x6fd   :  { %v13154_v11 = vpop.eup %13153  ;;  %10885 = vst [vmem:[#allocation3 + $0x80] sm:$0xff] %v13152_v36  ;;  %13173 = vpow2.f32 %v11362_v42  ;;  %v17624_v22 = vpop.f32.mrb[28].mxu1 }
 0x6fe   :  { %v13156_v1 = vpop.eup %13155  ;;  %10887 = vst [vmem:[#allocation3 + $0x90] sm:$0xff] %v13154_v11  ;;  %13175 = vpow2.f32 %v11363_v43  ;;  %v17627_v62 = vpop.f32.mrb[29].mxu0 }
 0x6ff   :  { %v17629_v25 = vpop.f32.mrb[29].mxu1  ;;  %v13158_v54 = vpop.eup %13157  ;;  %10886 = vst [vmem:[#allocation3 + $0x88] sm:$0xff] %v13156_v1  ;;  %13177 = vpow2.f32 %v11365_v45 }
 0x700   :  { %v13160_v47 = vpop.eup %13159  ;;  %10888 = vst [vmem:[#allocation3 + $0x98] sm:$0xff] %v13158_v54  ;;  %13179 = vpow2.f32 %v11364_v10  ;;  %v17634_v35 = vpop.f32.mrb[30].mxu0 }
 0x701   :  { %v13162_v6 = vpop.eup %13161  ;;  %10889 = vst [vmem:[#allocation3 + $0xa0] sm:$0xff] %v13160_v47  ;;  %13181 = vpow2.f32 %v11366_v18  ;;  %v17636_v33 = vpop.f32.mrb[30].mxu1 }
 0x702   :  { %v13164_v31 = vpop.eup %13163  ;;  %10891 = vst [vmem:[#allocation3 + $0xb0] sm:$0xff] %v13162_v6  ;;  %13183 = vpow2.f32 %v11367_v49  ;;  %v17639_v61 = vpop.f32.mrb[31].mxu0 }
 0x703   :  { %v17641_v50 = vpop.f32.mrb[31].mxu1  ;;  %v13166_v16 = vpop.eup %13165  ;;  %10890 = vst [vmem:[#allocation3 + $0xa8] sm:$0xff] %v13164_v31  ;;  %13185 = vpow2.f32 %v11369_v2 }
 0x704   :  { %v13168_v24 = vpop.eup %13167  ;;  %10892 = vst [vmem:[#allocation3 + $0xb8] sm:$0xff] %v13166_v16  ;;  %13187 = vpow2.f32 %v11368_v19  ;;  %v17645_v14 = vpop.f32.mrb[32].mxu0 }
 0x705   :  { %v13170_v26 = vpop.eup %13169  ;;  %10893 = vst [vmem:[#allocation3 + $0xc0] sm:$0xff] %v13168_v24  ;;  %13189 = vpow2.f32 %v11370_v17  ;;  %v17647_v21 = vpop.f32.mrb[32].mxu1 }
 0x706   :  { %v13172_v27 = vpop.eup %13171  ;;  %10895 = vst [vmem:[#allocation3 + $0xd0] sm:$0xff] %v13170_v26  ;;  %13191 = vpow2.f32 %v11371_v37  ;;  %v17649_v38 = vpop.f32.mrb[33].mxu0 }
 0x707   :  { %v17651_v5 = vpop.f32.mrb[33].mxu1  ;;  %v13174_v3 = vpop.eup %13173  ;;  %v10126_v41 = vadd.f32 1.0, %v13172_v27  ;;  %13193 = vpow2.f32 %v11373_v58  ;;  %v11374_v27 = vmul.f32 -1.442695, %v17577_v56 }
 0x708   :  { %v13176_v20 = vpop.eup %13175  ;;  %v10128_v40 = vadd.f32 1.0, %v13174_v3  ;;  %13195 = vpow2.f32 %v11372_v32  ;;  %v17653_v9 = vpop.f32.mrb[34].mxu0 }
 0x709   :  { %v13178_v60 = vpop.eup %13177  ;;  %13197 = vrcp.f32 %v10126_v41  ;;  %v10129_v53 = vadd.f32 1.0, %v13176_v20  ;;  %v17655_v52 = vpop.f32.mrb[34].mxu1 }
 0x70a   :  { %v13180_v12 = vpop.eup %13179  ;;  %13199 = vrcp.f32 %v10128_v40  ;;  %v10131_v0 = vadd.f32 1.0, %v13178_v60  ;;  %v17657_v42 = vpop.f32.mrb[35].mxu0  ;;  %v11375_v40 = vmul.f32 -1.442695, %v17582_v55  ;;  %v11378_v55 = vmul.f32 -1.442695, %v17590_v39 }
 0x70b   :  { %v13182_v7 = vpop.eup %13181  ;;  %13201 = vrcp.f32 %v10129_v53  ;;  %v10130_v43 = vadd.f32 1.0, %v13180_v12  ;;  %v17659_v44 = vpop.f32.mrb[35].mxu1  ;;  %v11377_v12 = vmul.f32 -1.442695, %v17584_v57  ;;  %v11379_v57 = vmul.f32 -1.442695, %v17592_v30 }
 0x70c   :  { %v13184_v45 = vpop.eup %13183  ;;  %13203 = vrcp.f32 %v10131_v0  ;;  %v10132_v36 = vadd.f32 1.0, %v13182_v7  ;;  %v17661_v18 = vpop.f32.mrb[36].mxu0  ;;  %v11376_v7 = vmul.f32 -1.442695, %v17586_v8  ;;  %v11381_v8 = vmul.f32 -1.442695, %v17594_v23 }
 0x70d   :  { %v13186_v10 = vpop.eup %13185  ;;  %13205 = vrcp.f32 %v10130_v43  ;;  %v10133_v11 = vadd.f32 1.0, %v13184_v45  ;;  %v17663_v1 = vpop.f32.mrb[36].mxu1  ;;  %v11383_v23 = vmul.f32 -1.442695, %v17600_v46 }
 0x70e   :  { %v13188_v49 = vpop.eup %13187  ;;  %13207 = vrcp.f32 %v10132_v36  ;;  %v10135_v54 = vadd.f32 1.0, %v13186_v10  ;;  %v17665_v2 = vpop.f32.mrb[37].mxu0 }
 0x70f   :  { %v13190_v47 = vpop.eup %13189  ;;  %13209 = vrcp.f32 %v10133_v11  ;;  %v10134_v19 = vadd.f32 1.0, %v13188_v49  ;;  %v17667_v6 = vpop.f32.mrb[37].mxu1 }
 0x710   :  { %v13192_v17 = vpop.eup %13191  ;;  %13211 = vrcp.f32 %v10135_v54  ;;  %v10136_v31 = vadd.f32 1.0, %v13190_v47  ;;  %v17669_v58 = vpop.f32.mrb[38].mxu0  ;;  %v11380_v47 = vmul.f32 -1.442695, %v17596_v4  ;;  %v11385_v4 = vmul.f32 -1.442695, %v17602_v51 }
 0x711   :  { %v13194_v37 = vpop.eup %13193  ;;  %13213 = vrcp.f32 %v10134_v19  ;;  %v10137_v16 = vadd.f32 1.0, %v13192_v17  ;;  %v17671_v24 = vpop.f32.mrb[38].mxu1 }
 0x712   :  { %v13196_v32 = vpop.eup %13195  ;;  %13215 = vrcp.f32 %v10136_v31  ;;  %v10139_v26 = vadd.f32 1.0, %v13194_v37  ;;  %v17674_v3 = vpop.f32.mrb[39].mxu0  ;;  %v11382_v31 = vmul.f32 -1.442695, %v17598_v13 }
 0x713   :  { %v13198_v41 = vpop.eup %13197  ;;  %13217 = vrcp.f32 %v10137_v16  ;;  %v10138_v20 = vadd.f32 1.0, %v13196_v32  ;;  %v17677_v60 = vpop.f32.mrb[39].mxu1 }
 0x714   :  { %v13200_v53 = vpop.eup %13199  ;;  %10894 = vst [vmem:[#allocation3 + $0xc8] sm:$0xff] %v13198_v41  ;;  %13219 = vrcp.f32 %v10139_v26  ;;  %v17681_v56 = vpop.f32.mrb[40].mxu0 }
 0x715   :  { %v13202_v0 = vpop.eup %13201  ;;  %10896 = vst [vmem:[#allocation3 + $0xd8] sm:$0xff] %v13200_v53  ;;  %13221 = vrcp.f32 %v10138_v20  ;;  %v17683_v43 = vpop.f32.mrb[40].mxu1 }
 0x716   :  { %v13204_v45 = vpop.eup %13203  ;;  %10897 = vst [vmem:[#allocation3 + $0xe0] sm:$0xff] %v13202_v0  ;;  %13223 = vpow2.f32 %v11374_v27  ;;  %v17686_v36 = vpop.f32.mrb[41].mxu0  ;;  %v11384_v27 = vmul.f32 -1.442695, %v17604_v28 }
 0x717   :  { %v17688_v10 = vpop.f32.mrb[41].mxu1  ;;  %v13206_v11 = vpop.eup %13205  ;;  %10899 = vst [vmem:[#allocation3 + $0xf0] sm:$0xff] %v13204_v45  ;;  %13225 = vpow2.f32 %v11375_v40  ;;  %v11386_v40 = vmul.f32 -1.442695, %v17606_v63 }
 0x718   :  { %v13208_v49 = vpop.eup %13207  ;;  %10898 = vst [vmem:[#allocation3 + $0xe8] sm:$0xff] %v13206_v11  ;;  %13227 = vpow2.f32 %v11377_v12  ;;  %v17693_v39 = vpop.f32.mrb[42].mxu0 }
 0x719   :  { %v13210_v54 = vpop.eup %13209  ;;  %10900 = vst [vmem:[#allocation3 + $0xf8] sm:$0xff] %v13208_v49  ;;  %13229 = vpow2.f32 %v11376_v7  ;;  %v17695_v19 = vpop.f32.mrb[42].mxu1 }
 0x71a   :  { %v13212_v17 = vpop.eup %13211  ;;  %10901 = vst [vmem:[#allocation3 + $0x100] sm:$0xff] %v13210_v54  ;;  %13231 = vpow2.f32 %v11378_v55  ;;  %v17698_v30 = vpop.f32.mrb[43].mxu0 }
 0x71b   :  { %v17700_v37 = vpop.f32.mrb[43].mxu1  ;;  %v13214_v16 = vpop.eup %13213  ;;  %10903 = vst [vmem:[#allocation3 + $0x110] sm:$0xff] %v13212_v17  ;;  %13233 = vpow2.f32 %v11379_v57 }
 0x71c   :  { %v13216_v32 = vpop.eup %13215  ;;  %10902 = vst [vmem:[#allocation3 + $0x108] sm:$0xff] %v13214_v16  ;;  %13235 = vpow2.f32 %v11381_v8  ;;  %v17705_v13 = vpop.f32.mrb[44].mxu0 }
 0x71d   :  { %v13218_v26 = vpop.eup %13217  ;;  %10904 = vst [vmem:[#allocation3 + $0x118] sm:$0xff] %v13216_v32  ;;  %13237 = vpow2.f32 %v11380_v47  ;;  %v17707_v41 = vpop.f32.mrb[44].mxu1 }
 0x71e   :  { %v13220_v20 = vpop.eup %13219  ;;  %10905 = vst [vmem:[#allocation3 + $0x120] sm:$0xff] %v13218_v26  ;;  %13239 = vpow2.f32 %v11382_v31  ;;  %v17710_v46 = vpop.f32.mrb[45].mxu0 }
 0x71f   :  { %v17712_v53 = vpop.f32.mrb[45].mxu1  ;;  %v13222_v12 = vpop.eup %13221  ;;  %10907 = vst [vmem:[#allocation3 + $0x130] sm:$0xff] %v13220_v20  ;;  %13241 = vpow2.f32 %v11383_v23 }
 0x720   :  { %v13224_v51 = vpop.eup %13223  ;;  %10906 = vst [vmem:[#allocation3 + $0x128] sm:$0xff] %v13222_v12  ;;  %13243 = vpow2.f32 %v11385_v4  ;;  %v17714_v7 = vpop.f32.mrb[46].mxu0 }
 0x721   :  { %v13226_v28 = vpop.eup %13225  ;;  %v10140_v0 = vadd.f32 1.0, %v13224_v51  ;;  %13245 = vpow2.f32 %v11384_v27  ;;  %v17716_v45 = vpop.f32.mrb[46].mxu1 }
 0x722   :  { %v13228_v55 = vpop.eup %13227  ;;  %v10141_v11 = vadd.f32 1.0, %v13226_v28  ;;  %13247 = vpow2.f32 %v11386_v40  ;;  %v17718_v63 = vpop.f32.mrb[47].mxu0 }
 0x723   :  { %v13230_v57 = vpop.eup %13229  ;;  %13249 = vrcp.f32 %v10140_v0  ;;  %v10143_v49 = vadd.f32 1.0, %v13228_v55  ;;  %v17720_v8 = vpop.f32.mrb[47].mxu1 }
 0x724   :  { %v13232_v54 = vpop.eup %13231  ;;  %13251 = vrcp.f32 %v10141_v11  ;;  %v10142_v47 = vadd.f32 1.0, %v13230_v57  ;;  %v17722_v16 = vpop.f32.mrb[48].mxu0 }
 0x725   :  { %v13234_v17 = vpop.eup %13233  ;;  %13253 = vrcp.f32 %v10143_v49  ;;  %v10144_v31 = vadd.f32 1.0, %v13232_v54  ;;  %v17724_v23 = vpop.f32.mrb[48].mxu1 }
 0x726   :  { %v13236_v32 = vpop.eup %13235  ;;  %13255 = vrcp.f32 %v10142_v47  ;;  %v10145_v4 = vadd.f32 1.0, %v13234_v17  ;;  %v17726_v26 = vpop.f32.mrb[49].mxu0 }
 0x727   :  { %v13238_v27 = vpop.eup %13237  ;;  %13257 = vrcp.f32 %v10144_v31  ;;  %v10147_v20 = vadd.f32 1.0, %v13236_v32  ;;  %v17728_v40 = vpop.f32.mrb[49].mxu1 }
 0x728   :  { %v13240_v12 = vpop.eup %13239  ;;  %13259 = vrcp.f32 %v10145_v4  ;;  %v10146_v51 = vadd.f32 1.0, %v13238_v27  ;;  %v17730_v55 = vpop.f32.mrb[50].mxu0  ;;  %v11387_v27 = vmul.f32 -1.442695, %v17610_v48  ;;  %v11390_v48 = vmul.f32 -1.442695, %v17617_v29 }
 0x729   :  { %v13242_v28 = vpop.eup %13241  ;;  %13261 = vrcp.f32 %v10147_v20  ;;  %v10148_v0 = vadd.f32 1.0, %v13240_v12  ;;  %19263 = vst [vmem:[#allocation9_spill] sm:$0xff] %v17730_v55  ;;  %v17732_v11 = vpop.f32.mrb[50].mxu1 }
 0x72a   :  { %19264 = vst [vmem:[#allocation11_spill] sm:$0xff] %v17732_v11  ;;  %v13244_v57 = vpop.eup %13243  ;;  %13263 = vrcp.f32 %v10146_v51  ;;  %v10149_v49 = vadd.f32 1.0, %v13242_v28  ;;  %v17734_v54 = vpop.f32.mrb[51].mxu0  ;;  %v11389_v11 = vmul.f32 -1.442695, %v17612_v15 }
 0x72b   :  { %v13246_v47 = vpop.eup %13245  ;;  %13265 = vrcp.f32 %v10148_v0  ;;  %v10151_v17 = vadd.f32 1.0, %v13244_v57  ;;  %v17736_v31 = vpop.f32.mrb[51].mxu1  ;;  %v11388_v0 = vmul.f32 -1.442695, %v17615_v34  ;;  %v11391_v15 = vmul.f32 -1.442695, %v17622_v59 }
 0x72c   :  { %v13248_v32 = vpop.eup %13247  ;;  %13267 = vrcp.f32 %v10149_v49  ;;  %v10150_v4 = vadd.f32 1.0, %v13246_v47  ;;  %v17740_v55 = vpop.f32.mrb[52].mxu0  ;;  %v11394_v59 = vmul.f32 -1.442695, %v17629_v25 }
 0x72d   :  { %v13250_v20 = vpop.eup %13249  ;;  %13269 = vrcp.f32 %v10151_v17  ;;  %v10152_v12 = vadd.f32 1.0, %v13248_v32  ;;  %v17742_v51 = vpop.f32.mrb[52].mxu1 }
 0x72e   :  { %v13252_v28 = vpop.eup %13251  ;;  %10908 = vst [vmem:[#allocation3 + $0x138] sm:$0xff] %v13250_v20  ;;  %13271 = vrcp.f32 %v10150_v4  ;;  %v17745_v57 = vpop.f32.mrb[53].mxu0  ;;  %v11393_v4 = vmul.f32 -1.442695, %v17624_v22  ;;  %v11395_v22 = vmul.f32 -1.442695, %v17634_v35 }
 0x72f   :  { %v17747_v49 = vpop.f32.mrb[53].mxu1  ;;  %v13254_v47 = vpop.eup %13253  ;;  %10909 = vst [vmem:[#allocation3 + $0x140] sm:$0xff] %v13252_v28  ;;  %13273 = vrcp.f32 %v10152_v12  ;;  %v11392_v12 = vmul.f32 -1.442695, %v17627_v62  ;;  %v11398_v35 = vmul.f32 -1.442695, %v17641_v50 }
 0x730   :  { %19265 = vst [vmem:[#allocation12_spill] sm:$0xff] %v17747_v49  ;;  %v13256_v17 = vpop.eup %13255  ;;  %10911 = vst [vmem:[#allocation3 + $0x150] sm:$0xff] %v13254_v47  ;;  %13275 = vpow2.f32 %v11387_v27  ;;  %v17752_v34 = vpop.f32.mrb[54].mxu0 }
 0x731   :  { %v13258_v32 = vpop.eup %13257  ;;  %10910 = vst [vmem:[#allocation3 + $0x148] sm:$0xff] %v13256_v17  ;;  %13277 = vpow2.f32 %v11389_v11  ;;  %v17754_v20 = vpop.f32.mrb[54].mxu1 }
 0x732   :  { %v13260_v49 = vpop.eup %13259  ;;  %10912 = vst [vmem:[#allocation3 + $0x158] sm:$0xff] %v13258_v32  ;;  %13279 = vpow2.f32 %v11388_v0  ;;  %v17757_v29 = vpop.f32.mrb[55].mxu0  ;;  %v11397_v0 = vmul.f32 -1.442695, %v17636_v33  ;;  %v11399_v33 = vmul.f32 -1.442695, %v17645_v14 }
 0x733   :  { %v17759_v28 = vpop.f32.mrb[55].mxu1  ;;  %v13262_v27 = vpop.eup %13261  ;;  %10913 = vst [vmem:[#allocation3 + $0x160] sm:$0xff] %v13260_v49  ;;  %13281 = vpow2.f32 %v11390_v48  ;;  %v11396_v49 = vmul.f32 -1.442695, %v17639_v61 }
 0x734   :  { %v13264_v11 = vpop.eup %13263  ;;  %10915 = vst [vmem:[#allocation3 + $0x170] sm:$0xff] %v13262_v27  ;;  %13283 = vpow2.f32 %v11391_v15  ;;  %v17764_v62 = vpop.f32.mrb[56].mxu0 }
 0x735   :  { %v13266_v47 = vpop.eup %13265  ;;  %10914 = vst [vmem:[#allocation3 + $0x168] sm:$0xff] %v13264_v11  ;;  %13285 = vpow2.f32 %v11393_v4  ;;  %v17766_v17 = vpop.f32.mrb[56].mxu1 }
 0x736   :  { %v13268_v32 = vpop.eup %13267  ;;  %10916 = vst [vmem:[#allocation3 + $0x178] sm:$0xff] %v13266_v47  ;;  %13287 = vpow2.f32 %v11392_v12  ;;  %v17769_v25 = vpop.f32.mrb[57].mxu0 }
 0x737   :  { %v17771_v48 = vpop.f32.mrb[57].mxu1  ;;  %v13270_v15 = vpop.eup %13269  ;;  %10917 = vst [vmem:[#allocation3 + $0x180] sm:$0xff] %v13268_v32  ;;  %13289 = vpow2.f32 %v11394_v59 }
 0x738   :  { %v13272_v4 = vpop.eup %13271  ;;  %10919 = vst [vmem:[#allocation3 + $0x190] sm:$0xff] %v13270_v15  ;;  %13291 = vpow2.f32 %v11395_v22  ;;  %v17775_v12 = vpop.f32.mrb[58].mxu0 }
 0x739   :  { %v13274_v27 = vpop.eup %13273  ;;  %10918 = vst [vmem:[#allocation3 + $0x188] sm:$0xff] %v13272_v4  ;;  %13293 = vpow2.f32 %v11397_v0  ;;  %19266 = vst [vmem:[#allocation23_spill] sm:$0xff] %v17775_v12  ;;  %v17777_v61 = vpop.f32.mrb[58].mxu1 }
 0x73a   :  { %19267 = vst [vmem:[#allocation24_spill] sm:$0xff] %v17777_v61  ;;  %v13276_v11 = vpop.eup %13275  ;;  %10920 = vst [vmem:[#allocation3 + $0x198] sm:$0xff] %v13274_v27  ;;  %13295 = vpow2.f32 %v11396_v49  ;;  %v17779_v47 = vpop.f32.mrb[59].mxu0 }
 0x73b   :  { %19268 = vst [vmem:[#allocation30_spill] sm:$0xff] %v17779_v47  ;;  %v17781_v59 = vpop.f32.mrb[59].mxu1  ;;  %v13278_v50 = vpop.eup %13277  ;;  %v10153_v32 = vadd.f32 1.0, %v13276_v11  ;;  %13297 = vpow2.f32 %v11398_v35 }
 0x73c   :  { %19269 = vst [vmem:[#allocation6_spill] sm:$0xff] %v17781_v59  ;;  %v13280_v22 = vpop.eup %13279  ;;  %v10155_v15 = vadd.f32 1.0, %v13278_v50  ;;  %13299 = vpow2.f32 %v11399_v33  ;;  %v17783_v4 = vpop.f32.mrb[60].mxu0 }
 0x73d   :  { %v13282_v14 = vpop.eup %13281  ;;  %13301 = vrcp.f32 %v10153_v32  ;;  %v10154_v0 = vadd.f32 1.0, %v13280_v22  ;;  %19270 = vst [vmem:[#allocation7_spill] sm:$0xff] %v17783_v4  ;;  %v17785_v12 = vpop.f32.mrb[60].mxu1 }
 0x73e   :  { %19271 = vst [vmem:[#allocation32_spill] sm:$0xff] %v17785_v12  ;;  %v13284_v61 = vpop.eup %13283  ;;  %13303 = vrcp.f32 %v10155_v15  ;;  %v10156_v49 = vadd.f32 1.0, %v13282_v14  ;;  %v17787_v27 = vpop.f32.mrb[61].mxu0 }
 0x73f   :  { %19272 = vst [vmem:[#allocation8_spill] sm:$0xff] %v17787_v27  ;;  %v13286_v47 = vpop.eup %13285  ;;  %13305 = vrcp.f32 %v10154_v0  ;;  %v10157_v59 = vadd.f32 1.0, %v13284_v61  ;;  %v17789_v11 = vpop.f32.mrb[61].mxu1 }
 0x740   :  { %19273 = vst [vmem:[#allocation10_spill] sm:$0xff] %v17789_v11  ;;  %v13288_v35 = vpop.eup %13287  ;;  %13307 = vrcp.f32 %v10156_v49  ;;  %v10159_v33 = vadd.f32 1.0, %v13286_v47  ;;  %v17791_v22 = vpop.f32.mrb[62].mxu0 }
 0x741   :  { %v13290_v50 = vpop.eup %13289  ;;  %13309 = vrcp.f32 %v10157_v59  ;;  %v10158_v32 = vadd.f32 1.0, %v13288_v35  ;;  %19274 = vst [vmem:[#allocation13_spill] sm:$0xff] %v17791_v22  ;;  %v17793_v4 = vpop.f32.mrb[62].mxu1 }
 0x742   :  { %19275 = vst [vmem:[#allocation14_spill] sm:$0xff] %v17793_v4  ;;  %v13292_v12 = vpop.eup %13291  ;;  %13311 = vrcp.f32 %v10159_v33  ;;  %v10160_v15 = vadd.f32 1.0, %v13290_v50  ;;  %v17795_v14 = vpop.f32.mrb[63].mxu0  ;;  %v11401_v50 = vmul.f32 -1.442695, %v17647_v21 }
 0x743   :  { %19276 = vst [vmem:[#allocation35_spill] sm:$0xff] %v17795_v14  ;;  %v13294_v27 = vpop.eup %13293  ;;  %13313 = vrcp.f32 %v10158_v32  ;;  %v10161_v61 = vadd.f32 1.0, %v13292_v12  ;;  %v17797_v0 = vpop.f32.mrb[63].mxu1 }
 0x744   :  { %v13296_v11 = vpop.eup %13295  ;;  %13315 = vrcp.f32 %v10160_v15  ;;  %v10163_v47 = vadd.f32 1.0, %v13294_v27  ;;  %v17799_v35 = vpop.f32.mrb[64].mxu0  ;;  %v11400_v15 = vmul.f32 -1.442695, %v17649_v38  ;;  %v11404_v38 = vmul.f32 -1.442695, %v17657_v42 }
 0x745   :  { %v13298_v49 = vpop.eup %13297  ;;  %13317 = vrcp.f32 %v10161_v61  ;;  %v10162_v59 = vadd.f32 1.0, %v13296_v11  ;;  %v17801_v22 = vpop.f32.mrb[64].mxu1  ;;  %v11402_v11 = vmul.f32 -1.442695, %v17651_v5  ;;  %v11406_v5 = vmul.f32 -1.442695, %v17659_v44 }
 0x746   :  { %v13300_v4 = vpop.eup %13299  ;;  %13319 = vrcp.f32 %v10163_v47  ;;  %v10164_v33 = vadd.f32 1.0, %v13298_v49  ;;  %v17804_v14 = vpop.f32.mrb[65].mxu0  ;;  %v11403_v47 = vmul.f32 -1.442695, %v17653_v9  ;;  %v11407_v9 = vmul.f32 -1.442695, %v17661_v18 }
 0x747   :  { %v13302_v12 = vpop.eup %13301  ;;  %13321 = vrcp.f32 %v10162_v59  ;;  %v10165_v32 = vadd.f32 1.0, %v13300_v4  ;;  %v17809_v49 = vpop.f32.mrb[65].mxu1  ;;  %v11405_v59 = vmul.f32 -1.442695, %v17655_v52  ;;  %v11408_v44 = vmul.f32 -1.442695, %v17665_v2 }
 0x748   :  { %v13304_v27 = vpop.eup %13303  ;;  %10921 = vst [vmem:[#allocation3 + $0x1a0] sm:$0xff] %v13302_v12  ;;  %13323 = vrcp.f32 %v10164_v33  ;;  %v11410_v18 = vmul.f32 -1.442695, %v17667_v6 }
 0x749   :  { %v13306_v61 = vpop.eup %13305  ;;  %10923 = vst [vmem:[#allocation3 + $0x1b0] sm:$0xff] %v13304_v27  ;;  %13325 = vrcp.f32 %v10165_v32  ;;  %v17815_v32 = vpop.f32.mrb[66].mxu0 }
 0x74a   :  { %v13308_v21 = vpop.eup %13307  ;;  %10922 = vst [vmem:[#allocation3 + $0x1a8] sm:$0xff] %v13306_v61  ;;  %13327 = vpow2.f32 %v11401_v50  ;;  %v17817_v50 = vpop.f32.mrb[66].mxu1 }
 0x74b   :  { %v13310_v4 = vpop.eup %13309  ;;  %10924 = vst [vmem:[#allocation3 + $0x1b8] sm:$0xff] %v13308_v21  ;;  %13329 = vpow2.f32 %v11400_v15  ;;  %v11409_v15 = vmul.f32 -1.442695, %v17663_v1  ;;  %v17820_v42 = vpop.f32.mrb[67].mxu0  ;;  %v11411_v21 = vmul.f32 -1.442695, %v17669_v58 }
 0x74c   :  { %v13312_v33 = vpop.eup %13311  ;;  %10925 = vst [vmem:[#allocation3 + $0x1c0] sm:$0xff] %v13310_v4  ;;  %13331 = vpow2.f32 %v11402_v11  ;;  %v17822_v27 = vpop.f32.mrb[67].mxu1 }
 0x74d   :  { %v13314_v12 = vpop.eup %13313  ;;  %10927 = vst [vmem:[#allocation3 + $0x1d0] sm:$0xff] %v13312_v33  ;;  %13333 = vpow2.f32 %v11403_v47  ;;  %v17827_v1 = vpop.f32.mrb[68].mxu0 }
 0x74e   :  { %v13316_v52 = vpop.eup %13315  ;;  %10926 = vst [vmem:[#allocation3 + $0x1c8] sm:$0xff] %v13314_v12  ;;  %13335 = vpow2.f32 %v11405_v59  ;;  %v17829_v59 = vpop.f32.mrb[68].mxu1 }
 0x74f   :  { %v13318_v11 = vpop.eup %13317  ;;  %10928 = vst [vmem:[#allocation3 + $0x1d8] sm:$0xff] %v13316_v52  ;;  %13337 = vpow2.f32 %v11404_v38  ;;  %v11413_v38 = vmul.f32 -1.442695, %v17671_v24  ;;  %v17832_v2 = vpop.f32.mrb[69].mxu0 }
 0x750   :  { %v13320_v61 = vpop.eup %13319  ;;  %10929 = vst [vmem:[#allocation3 + $0x1e0] sm:$0xff] %v13318_v11  ;;  %13339 = vpow2.f32 %v11406_v5  ;;  %v17834_v33 = vpop.f32.mrb[69].mxu1 }
 0x751   :  { %v13322_v47 = vpop.eup %13321  ;;  %10931 = vst [vmem:[#allocation3 + $0x1f0] sm:$0xff] %v13320_v61  ;;  %13341 = vpow2.f32 %v11407_v9  ;;  %19277 = vst [vmem:[#allocation15_spill] sm:$0xff] %v17834_v33  ;;  %v17836_v9 = vpop.f32.mrb[70].mxu0 }
 0x752   :  { %v13324_v4 = vpop.eup %13323  ;;  %10930 = vst [vmem:[#allocation3 + $0x1e8] sm:$0xff] %v13322_v47  ;;  %13343 = vpow2.f32 %v11409_v15  ;;  %19278 = vst [vmem:[#allocation16_spill] sm:$0xff] %v17836_v9  ;;  %v17838_v52 = vpop.f32.mrb[70].mxu1 }
 0x753   :  { %v13326_v5 = vpop.eup %13325  ;;  %10932 = vst [vmem:[#allocation3 + $0x1f8] sm:$0xff] %v13324_v4  ;;  %13345 = vpow2.f32 %v11408_v44  ;;  %19279 = vst [vmem:[#allocation17_spill] sm:$0xff] %v17838_v52  ;;  %v17840_v24 = vpop.f32.mrb[71].mxu0 }
 0x754   :  { %v13328_v6 = vpop.eup %13327  ;;  %10933 = vst [vmem:[#allocation3 + $0x200] sm:$0xff] %v13326_v5  ;;  %13347 = vpow2.f32 %v11410_v18  ;;  %19280 = vst [vmem:[#allocation18_spill] sm:$0xff] %v17840_v24  ;;  %v17842_v4 = vpop.f32.mrb[71].mxu1 }
 0x755   :  { %v13330_v58 = vpop.eup %13329  ;;  %v10167_v12 = vadd.f32 1.0, %v13328_v6  ;;  %13349 = vpow2.f32 %v11411_v21  ;;  %19281 = vst [vmem:[#allocation39_spill] sm:$0xff] %v17842_v4 }
 0x756   :  { %v13332_v15 = vpop.eup %13331  ;;  %v10166_v11 = vadd.f32 1.0, %v13330_v58  ;;  %13351 = vpow2.f32 %v11413_v38 }
 0x757   :  { %v13334_v61 = vpop.eup %13333  ;;  %13353 = vrcp.f32 %v10167_v12  ;;  %v10168_v47 = vadd.f32 1.0, %v13332_v15 }
 0x758   :  { %v13336_v44 = vpop.eup %13335  ;;  %13355 = vrcp.f32 %v10166_v11  ;;  %v10169_v18 = vadd.f32 1.0, %v13334_v61 }
 0x759   :  { %v13338_v5 = vpop.eup %13337  ;;  %13357 = vrcp.f32 %v10168_v47  ;;  %v10171_v21 = vadd.f32 1.0, %v13336_v44 }
 0x75a   :  { %v13340_v6 = vpop.eup %13339  ;;  %13359 = vrcp.f32 %v10169_v18  ;;  %v10170_v9 = vadd.f32 1.0, %v13338_v5  ;;  %v11412_v18 = vmul.f32 -1.442695, %v17674_v3  ;;  %v11416_v3 = vmul.f32 -1.442695, %v17686_v36 }
 0x75b   :  { %v13342_v52 = vpop.eup %13341  ;;  %13361 = vrcp.f32 %v10171_v21  ;;  %v10172_v58 = vadd.f32 1.0, %v13340_v6  ;;  %v11415_v6 = vmul.f32 -1.442695, %v17681_v56  ;;  %v11419_v56 = vmul.f32 -1.442695, %v17693_v39 }
 0x75c   :  { %v13344_v38 = vpop.eup %13343  ;;  %13363 = vrcp.f32 %v10170_v9  ;;  %v10173_v24 = vadd.f32 1.0, %v13342_v52  ;;  %v11414_v9 = vmul.f32 -1.442695, %v17677_v60  ;;  %v11418_v60 = vmul.f32 -1.442695, %v17688_v10 }
 0x75d   :  { %v13346_v33 = vpop.eup %13345  ;;  %13365 = vrcp.f32 %v10172_v58  ;;  %v10175_v12 = vadd.f32 1.0, %v13344_v38  ;;  %v11420_v10 = vmul.f32 -1.442695, %v17698_v30  ;;  %v11422_v39 = vmul.f32 -1.442695, %v17700_v37 }
 0x75e   :  { %v13348_v15 = vpop.eup %13347  ;;  %13367 = vrcp.f32 %v10173_v24  ;;  %v10174_v4 = vadd.f32 1.0, %v13346_v33  ;;  %v11417_v33 = vmul.f32 -1.442695, %v17683_v43  ;;  %v11424_v37 = vmul.f32 -1.442695, %v17710_v46 }
 0x75f   :  { %v13350_v11 = vpop.eup %13349  ;;  %13369 = vrcp.f32 %v10175_v12  ;;  %v10176_v61 = vadd.f32 1.0, %v13348_v15  ;;  %v17851_v12 = vpop.f32.mrb[72].mxu0 }
 0x760   :  { %v13352_v47 = vpop.eup %13351  ;;  %13371 = vrcp.f32 %v10174_v4  ;;  %v10177_v44 = vadd.f32 1.0, %v13350_v11  ;;  %v17853_v15 = vpop.f32.mrb[72].mxu1  ;;  %v11421_v11 = vmul.f32 -1.442695, %v17695_v19 }
 0x761   :  { %v13354_v5 = vpop.eup %13353  ;;  %13373 = vrcp.f32 %v10176_v61  ;;  %v10179_v21 = vadd.f32 1.0, %v13352_v47  ;;  %v17856_v36 = vpop.f32.mrb[73].mxu0 }
 0x762   :  { %v13356_v52 = vpop.eup %13355  ;;  %10935 = vst [vmem:[#allocation3 + $0x210] sm:$0xff] %v13354_v5  ;;  %13375 = vrcp.f32 %v10177_v44  ;;  %v17858_v61 = vpop.f32.mrb[73].mxu1  ;;  %v11423_v5 = vmul.f32 -1.442695, %v17705_v13 }
 0x763   :  { %v13358_v24 = vpop.eup %13357  ;;  %10934 = vst [vmem:[#allocation3 + $0x208] sm:$0xff] %v13356_v52  ;;  %13377 = vrcp.f32 %v10179_v21  ;;  %v17863_v19 = vpop.f32.mrb[74].mxu0  ;;  %v11425_v52 = vmul.f32 -1.442695, %v17707_v41 }
 0x764   :  { %v13360_v58 = vpop.eup %13359  ;;  %10936 = vst [vmem:[#allocation3 + $0x218] sm:$0xff] %v13358_v24  ;;  %13379 = vpow2.f32 %v11412_v18  ;;  %v17865_v21 = vpop.f32.mrb[74].mxu1 }
 0x765   :  { %v13362_v4 = vpop.eup %13361  ;;  %10937 = vst [vmem:[#allocation3 + $0x220] sm:$0xff] %v13360_v58  ;;  %13381 = vpow2.f32 %v11414_v9  ;;  %v17868_v30 = vpop.f32.mrb[75].mxu0 }
 0x766   :  { %v13364_v38 = vpop.eup %13363  ;;  %10939 = vst [vmem:[#allocation3 + $0x230] sm:$0xff] %v13362_v4  ;;  %13383 = vpow2.f32 %v11415_v6  ;;  %v17870_v6 = vpop.f32.mrb[75].mxu1 }
 0x767   :  { %v13366_v43 = vpop.eup %13365  ;;  %10938 = vst [vmem:[#allocation3 + $0x228] sm:$0xff] %v13364_v38  ;;  %13385 = vpow2.f32 %v11417_v33  ;;  %v17873_v58 = vpop.f32.mrb[76].mxu0 }
 0x768   :  { %v13368_v47 = vpop.eup %13367  ;;  %10940 = vst [vmem:[#allocation3 + $0x238] sm:$0xff] %v13366_v43  ;;  %13387 = vpow2.f32 %v11416_v3  ;;  %v17875_v3 = vpop.f32.mrb[76].mxu1 }
 0x769   :  { %v13370_v44 = vpop.eup %13369  ;;  %10941 = vst [vmem:[#allocation3 + $0x240] sm:$0xff] %v13368_v47  ;;  %13389 = vpow2.f32 %v11418_v60  ;;  %v17877_v60 = vpop.f32.mrb[77].mxu0 }
 0x76a   :  { %v13372_v18 = vpop.eup %13371  ;;  %10943 = vst [vmem:[#allocation3 + $0x250] sm:$0xff] %v13370_v44  ;;  %13391 = vpow2.f32 %v11419_v56  ;;  %v17879_v43 = vpop.f32.mrb[77].mxu1 }
 0x76b   :  { %v13374_v9 = vpop.eup %13373  ;;  %10942 = vst [vmem:[#allocation3 + $0x248] sm:$0xff] %v13372_v18  ;;  %13393 = vpow2.f32 %v11421_v11  ;;  %v17881_v44 = vpop.f32.mrb[78].mxu0 }
 0x76c   :  { %v13376_v24 = vpop.eup %13375  ;;  %10944 = vst [vmem:[#allocation3 + $0x258] sm:$0xff] %v13374_v9  ;;  %13395 = vpow2.f32 %v11420_v10 }
 0x76d   :  { %v13378_v33 = vpop.eup %13377  ;;  %10945 = vst [vmem:[#allocation3 + $0x260] sm:$0xff] %v13376_v24  ;;  %13397 = vpow2.f32 %v11422_v39 }
 0x76e   :  { %v13380_v13 = vpop.eup %13379  ;;  %10947 = vst [vmem:[#allocation3 + $0x270] sm:$0xff] %v13378_v33  ;;  %13399 = vpow2.f32 %v11423_v5 }
 0x76f   :  { %v13382_v41 = vpop.eup %13381  ;;  %v10178_v4 = vadd.f32 1.0, %v13380_v13  ;;  %13401 = vpow2.f32 %v11425_v52 }
 0x770   :  { %v13384_v38 = vpop.eup %13383  ;;  %v10180_v56 = vadd.f32 1.0, %v13382_v41  ;;  %13403 = vpow2.f32 %v11424_v37 }
 0x771   :  { %v13386_v46 = vpop.eup %13385  ;;  %13405 = vrcp.f32 %v10178_v4  ;;  %v10181_v11 = vadd.f32 1.0, %v13384_v38 }
 0x772   :  { %v13388_v47 = vpop.eup %13387  ;;  %13407 = vrcp.f32 %v10180_v56  ;;  %v10183_v10 = vadd.f32 1.0, %v13386_v46 }
 0x773   :  { %v13390_v39 = vpop.eup %13389  ;;  %13409 = vrcp.f32 %v10181_v11  ;;  %v10182_v18 = vadd.f32 1.0, %v13388_v47 }
 0x774   :  { %v13392_v5 = vpop.eup %13391  ;;  %13411 = vrcp.f32 %v10183_v10  ;;  %v10184_v9 = vadd.f32 1.0, %v13390_v39  ;;  %v11426_v10 = vmul.f32 -1.442695, %v17712_v53  ;;  %v11430_v53 = vmul.f32 -1.442695, %v17720_v8 }
 0x775   :  { %v13394_v52 = vpop.eup %13393  ;;  %13413 = vrcp.f32 %v10182_v18  ;;  %v10185_v24 = vadd.f32 1.0, %v13392_v5  ;;  %v11427_v5 = vmul.f32 -1.442695, %v17714_v7  ;;  %v11431_v7 = vmul.f32 -1.442695, %v17722_v16 }
 0x776   :  { %v13396_v37 = vpop.eup %13395  ;;  %13415 = vrcp.f32 %v10184_v9  ;;  %v10187_v33 = vadd.f32 1.0, %v13394_v52  ;;  %v11429_v52 = vmul.f32 -1.442695, %v17716_v45 }
 0x777   :  { %v13398_v13 = vpop.eup %13397  ;;  %13417 = vrcp.f32 %v10185_v24  ;;  %v10186_v41 = vadd.f32 1.0, %v13396_v37  ;;  %v11428_v37 = vmul.f32 -1.442695, %v17718_v63  ;;  %v11433_v63 = vmul.f32 -1.442695, %v17724_v23 }
 0x778   :  { %v13400_v4 = vpop.eup %13399  ;;  %13419 = vrcp.f32 %v10187_v33  ;;  %v10188_v38 = vadd.f32 1.0, %v13398_v13  ;;  %v17887_v33 = vpop.f32.mrb[78].mxu1 }
 0x779   :  { %v13402_v56 = vpop.eup %13401  ;;  %13421 = vrcp.f32 %v10186_v41  ;;  %v10189_v46 = vadd.f32 1.0, %v13400_v4  ;;  %v17891_v4 = vpop.f32.mrb[79].mxu0 }
 0x77a   :  { %v13404_v11 = vpop.eup %13403  ;;  %13423 = vrcp.f32 %v10188_v38  ;;  %v10191_v47 = vadd.f32 1.0, %v13402_v56  ;;  %v17893_v45 = vpop.f32.mrb[79].mxu1 }
 0x77b   :  { %v13406_v39 = vpop.eup %13405  ;;  %13425 = vrcp.f32 %v10189_v46  ;;  %v10190_v18 = vadd.f32 1.0, %v13404_v11  ;;  %v11432_v46 = vmul.f32 -1.442695, %v17726_v26  ;;  %v11434_v11 = vmul.f32 -1.442695, %v17728_v40 }
 0x77c   :  { %v13408_v9 = vpop.eup %13407  ;;  %10946 = vst [vmem:[#allocation3 + $0x268] sm:$0xff] %v13406_v39  ;;  %13427 = vrcp.f32 %v10191_v47  ;;  %v19282_v47 = vld [vmem:[#allocation9_spill] sm:$0xff]  ;;  %v17899_v39 = vpop.f32.mrb[80].mxu0  ;;  %v11436_v40 = vmul.f32 -1.442695, %v17734_v54 }
 0x77d   :  { %v13410_v24 = vpop.eup %13409  ;;  %10948 = vst [vmem:[#allocation3 + $0x278] sm:$0xff] %v13408_v9  ;;  %13429 = vrcp.f32 %v10190_v18  ;;  %v17901_v18 = vpop.f32.mrb[80].mxu1 }
 0x77e   :  { %v13412_v13 = vpop.eup %13411  ;;  %10949 = vst [vmem:[#allocation3 + $0x280] sm:$0xff] %v13410_v24  ;;  %13431 = vpow2.f32 %v11426_v10  ;;  %v11435_v10 = vmul.f32 -1.442695, %v19282_v47  ;;  %v17904_v26 = vpop.f32.mrb[81].mxu0 }
 0x77f   :  { %v13414_v41 = vpop.eup %13413  ;;  %10951 = vst [vmem:[#allocation3 + $0x290] sm:$0xff] %v13412_v13  ;;  %13433 = vpow2.f32 %v11427_v5  ;;  %v19283_v5 = vld [vmem:[#allocation11_spill] sm:$0xff]  ;;  %v11438_v13 = vmul.f32 -1.442695, %v17736_v31 }
 0x780   :  { %v13416_v38 = vpop.eup %13415  ;;  %10950 = vst [vmem:[#allocation3 + $0x288] sm:$0xff] %v13414_v41  ;;  %13435 = vpow2.f32 %v11429_v52  ;;  %v11437_v9 = vmul.f32 -1.442695, %v19283_v5  ;;  %v17906_v52 = vpop.f32.mrb[81].mxu1 }
 0x781   :  { %v13418_v56 = vpop.eup %13417  ;;  %10952 = vst [vmem:[#allocation3 + $0x298] sm:$0xff] %v13416_v38  ;;  %13437 = vpow2.f32 %v11428_v37  ;;  %v17910_v41 = vpop.f32.mrb[82].mxu0 }
 0x782   :  { %v13420_v8 = vpop.eup %13419  ;;  %10953 = vst [vmem:[#allocation3 + $0x2a0] sm:$0xff] %v13418_v56  ;;  %13439 = vpow2.f32 %v11430_v53 }
 0x783   :  { %v13422_v16 = vpop.eup %13421  ;;  %10955 = vst [vmem:[#allocation3 + $0x2b0] sm:$0xff] %v13420_v8  ;;  %13441 = vpow2.f32 %v11431_v7  ;;  %v17912_v7 = vpop.f32.mrb[82].mxu1 }
 0x784   :  { %v13424_v23 = vpop.eup %13423  ;;  %10954 = vst [vmem:[#allocation3 + $0x2a8] sm:$0xff] %v13422_v16  ;;  %13443 = vpow2.f32 %v11433_v63  ;;  %v17914_v63 = vpop.f32.mrb[83].mxu0 }
 0x785   :  { %v13426_v24 = vpop.eup %13425  ;;  %10956 = vst [vmem:[#allocation3 + $0x2b8] sm:$0xff] %v13424_v23  ;;  %13445 = vpow2.f32 %v11432_v46  ;;  %v17916_v56 = vpop.f32.mrb[83].mxu1 }
 0x786   :  { %v13428_v37 = vpop.eup %13427  ;;  %10957 = vst [vmem:[#allocation3 + $0x2c0] sm:$0xff] %v13426_v24  ;;  %13447 = vpow2.f32 %v11434_v11  ;;  %v17918_v47 = vpop.f32.mrb[84].mxu0 }
 0x787   :  { %v13430_v53 = vpop.eup %13429  ;;  %10959 = vst [vmem:[#allocation3 + $0x2d0] sm:$0xff] %v13428_v37  ;;  %13449 = vpow2.f32 %v11435_v10  ;;  %19284 = vst [vmem:[#allocation19_spill] sm:$0xff] %v17918_v47  ;;  %v17920_v10 = vpop.f32.mrb[84].mxu1 }
 0x788   :  { %v13432_v38 = vpop.eup %13431  ;;  %10958 = vst [vmem:[#allocation3 + $0x2c8] sm:$0xff] %v13430_v53  ;;  %13451 = vpow2.f32 %v11437_v9  ;;  %19285 = vst [vmem:[#allocation22_spill] sm:$0xff] %v17920_v10 }
 0x789   :  { %v13434_v54 = vpop.eup %13433  ;;  %v10192_v46 = vadd.f32 1.0, %v13432_v38  ;;  %13453 = vpow2.f32 %v11436_v40 }
 0x78a   :  { %v13436_v8 = vpop.eup %13435  ;;  %v10193_v11 = vadd.f32 1.0, %v13434_v54  ;;  %13455 = vpow2.f32 %v11438_v13 }
 0x78b   :  { %v13438_v31 = vpop.eup %13437  ;;  %13457 = vrcp.f32 %v10192_v46  ;;  %v10195_v16 = vadd.f32 1.0, %v13436_v8 }
 0x78c   :  { %v13440_v23 = vpop.eup %13439  ;;  %13459 = vrcp.f32 %v10193_v11  ;;  %v10194_v5 = vadd.f32 1.0, %v13438_v31 }
 0x78d   :  { %v13442_v9 = vpop.eup %13441  ;;  %13461 = vrcp.f32 %v10195_v16  ;;  %v10196_v24 = vadd.f32 1.0, %v13440_v23 }
 0x78e   :  { %v13444_v37 = vpop.eup %13443  ;;  %13463 = vrcp.f32 %v10194_v5  ;;  %v10197_v53 = vadd.f32 1.0, %v13442_v9  ;;  %v11439_v5 = vmul.f32 -1.442695, %v17740_v55  ;;  %v11443_v55 = vmul.f32 -1.442695, %v17752_v34 }
 0x78f   :  { %v13446_v40 = vpop.eup %13445  ;;  %13465 = vrcp.f32 %v10196_v24  ;;  %v10199_v38 = vadd.f32 1.0, %v13444_v37  ;;  %v11441_v37 = vmul.f32 -1.442695, %v17742_v51 }
 0x790   :  { %v13448_v13 = vpop.eup %13447  ;;  %13467 = vrcp.f32 %v10197_v53  ;;  %v10198_v54 = vadd.f32 1.0, %v13446_v40  ;;  %v11440_v40 = vmul.f32 -1.442695, %v17745_v57 }
 0x791   :  { %v13450_v46 = vpop.eup %13449  ;;  %13469 = vrcp.f32 %v10199_v38  ;;  %v10200_v8 = vadd.f32 1.0, %v13448_v13  ;;  %v19286_v13 = vld [vmem:[#allocation12_spill] sm:$0xff] }
 0x792   :  { %v13452_v47 = vpop.eup %13451  ;;  %13471 = vrcp.f32 %v10198_v54  ;;  %v10201_v10 = vadd.f32 1.0, %v13450_v46  ;;  %v17929_v46 = vpop.f32.mrb[85].mxu1 }
 0x793   :  { %v13454_v11 = vpop.eup %13453  ;;  %13473 = vrcp.f32 %v10200_v8  ;;  %v10203_v31 = vadd.f32 1.0, %v13452_v47  ;;  %v11442_v47 = vmul.f32 -1.442695, %v19286_v13  ;;  %v11445_v8 = vmul.f32 -1.442695, %v17754_v20  ;;  %v19287_v13 = vld [vmem:[#allocation23_spill] sm:$0xff] }
 0x794   :  { %v13456_v16 = vpop.eup %13455  ;;  %13475 = vrcp.f32 %v10201_v10  ;;  %v10202_v23 = vadd.f32 1.0, %v13454_v11  ;;  %v17927_v10 = vpop.f32.mrb[85].mxu0  ;;  %v11444_v11 = vmul.f32 -1.442695, %v17757_v29 }
 0x795   :  { %v13458_v9 = vpop.eup %13457  ;;  %13477 = vrcp.f32 %v10203_v31  ;;  %v10204_v24 = vadd.f32 1.0, %v13456_v16  ;;  %v11446_v16 = vmul.f32 -1.442695, %v17759_v28  ;;  %v11448_v28 = vmul.f32 -1.442695, %v17769_v25 }
 0x796   :  { %v13460_v53 = vpop.eup %13459  ;;  %10960 = vst [vmem:[#allocation3 + $0x2d8] sm:$0xff] %v13458_v9  ;;  %13479 = vrcp.f32 %v10202_v23  ;;  %v11447_v23 = vmul.f32 -1.442695, %v17764_v62  ;;  %v17937_v9 = vpop.f32.mrb[86].mxu1  ;;  %v11450_v62 = vmul.f32 -1.442695, %v17771_v48 }
 0x797   :  { %v13462_v38 = vpop.eup %13461  ;;  %10961 = vst [vmem:[#allocation3 + $0x2e0] sm:$0xff] %v13460_v53  ;;  %13481 = vrcp.f32 %v10204_v24  ;;  %v11449_v24 = vmul.f32 -1.442695, %v17766_v17 }
 0x798   :  { %v13464_v54 = vpop.eup %13463  ;;  %10963 = vst [vmem:[#allocation3 + $0x2f0] sm:$0xff] %v13462_v38  ;;  %13483 = vpow2.f32 %v11439_v5  ;;  %v17935_v5 = vpop.f32.mrb[86].mxu0 }
 0x799   :  { %v13466_v51 = vpop.eup %13465  ;;  %10962 = vst [vmem:[#allocation3 + $0x2e8] sm:$0xff] %v13464_v54  ;;  %13485 = vpow2.f32 %v11441_v37  ;;  %v17940_v29 = vpop.f32.mrb[87].mxu0 }
 0x79a   :  { %v13468_v57 = vpop.eup %13467  ;;  %10964 = vst [vmem:[#allocation3 + $0x2f8] sm:$0xff] %v13466_v51  ;;  %13487 = vpow2.f32 %v11440_v40  ;;  %v17942_v37 = vpop.f32.mrb[87].mxu1 }
 0x79b   :  { %v13470_v31 = vpop.eup %13469  ;;  %10965 = vst [vmem:[#allocation3 + $0x300] sm:$0xff] %v13468_v57  ;;  %13489 = vpow2.f32 %v11442_v47  ;;  %v11451_v47 = vmul.f32 -1.442695, %v19287_v13  ;;  %v17947_v17 = vpop.f32.mrb[88].mxu0 }
 0x79c   :  { %v13472_v34 = vpop.eup %13471  ;;  %10967 = vst [vmem:[#allocation3 + $0x310] sm:$0xff] %v13470_v31  ;;  %13491 = vpow2.f32 %v11443_v55  ;;  %v17949_v54 = vpop.f32.mrb[88].mxu1 }
 0x79d   :  { %v13474_v20 = vpop.eup %13473  ;;  %10966 = vst [vmem:[#allocation3 + $0x308] sm:$0xff] %v13472_v34  ;;  %13493 = vpow2.f32 %v11445_v8  ;;  %v17951_v51 = vpop.f32.mrb[89].mxu0 }
 0x79e   :  { %v13476_v53 = vpop.eup %13475  ;;  %10968 = vst [vmem:[#allocation3 + $0x318] sm:$0xff] %v13474_v20  ;;  %13495 = vpow2.f32 %v11444_v11  ;;  %v17953_v25 = vpop.f32.mrb[89].mxu1 }
 0x79f   :  { %v13478_v40 = vpop.eup %13477  ;;  %10969 = vst [vmem:[#allocation3 + $0x320] sm:$0xff] %v13476_v53  ;;  %13497 = vpow2.f32 %v11446_v16  ;;  %v17955_v16 = vpop.f32.mrb[90].mxu0 }
 0x7a0   :  { %v13480_v38 = vpop.eup %13479  ;;  %10971 = vst [vmem:[#allocation3 + $0x330] sm:$0xff] %v13478_v40  ;;  %13499 = vpow2.f32 %v11447_v23  ;;  %19288 = vst [vmem:[#allocation25_spill] sm:$0xff] %v17955_v16  ;;  %v17957_v34 = vpop.f32.mrb[90].mxu1 }
 0x7a1   :  { %v13482_v55 = vpop.eup %13481  ;;  %10970 = vst [vmem:[#allocation3 + $0x328] sm:$0xff] %v13480_v38  ;;  %13501 = vpow2.f32 %v11449_v24  ;;  %19289 = vst [vmem:[#allocation40_spill] sm:$0xff] %v17957_v34  ;;  %v17959_v24 = vpop.f32.mrb[91].mxu0 }
 0x7a2   :  { %v13484_v8 = vpop.eup %13483  ;;  %10972 = vst [vmem:[#allocation3 + $0x338] sm:$0xff] %v13482_v55  ;;  %13503 = vpow2.f32 %v11448_v28  ;;  %19290 = vst [vmem:[#allocation44_spill] sm:$0xff] %v17959_v24 }
 0x7a3   :  { %v13486_v48 = vpop.eup %13485  ;;  %v10205_v57 = vadd.f32 1.0, %v13484_v8  ;;  %13505 = vpow2.f32 %v11450_v62 }
 0x7a4   :  { %v13488_v11 = vpop.eup %13487  ;;  %v10207_v31 = vadd.f32 1.0, %v13486_v48  ;;  %13507 = vpow2.f32 %v11451_v47 }
 0x7a5   :  { %v13490_v23 = vpop.eup %13489  ;;  %13509 = vrcp.f32 %v10205_v57  ;;  %v10206_v20 = vadd.f32 1.0, %v13488_v11 }
 0x7a6   :  { %v13492_v53 = vpop.eup %13491  ;;  %13511 = vrcp.f32 %v10207_v31  ;;  %v10208_v40 = vadd.f32 1.0, %v13490_v23 }
 0x7a7   :  { %v13494_v38 = vpop.eup %13493  ;;  %13513 = vrcp.f32 %v10206_v20  ;;  %v10209_v28 = vadd.f32 1.0, %v13492_v53 }
 0x7a8   :  { %v13496_v13 = vpop.eup %13495  ;;  %13515 = vrcp.f32 %v10208_v40  ;;  %v10211_v62 = vadd.f32 1.0, %v13494_v38  ;;  %v19291_v40 = vld [vmem:[#allocation24_spill] sm:$0xff] }
 0x7a9   :  { %v13498_v55 = vpop.eup %13497  ;;  %13517 = vrcp.f32 %v10209_v28  ;;  %v10210_v47 = vadd.f32 1.0, %v13496_v13  ;;  %v11453_v38 = vmul.f32 -1.442695, %v19291_v40  ;;  %v19292_v13 = vld [vmem:[#allocation30_spill] sm:$0xff]  ;;  %v19297_v40 = vld [vmem:[#allocation8_spill] sm:$0xff] }
 0x7aa   :  { %v13500_v8 = vpop.eup %13499  ;;  %13519 = vrcp.f32 %v10211_v62  ;;  %v10212_v48 = vadd.f32 1.0, %v13498_v55  ;;  %v11452_v62 = vmul.f32 -1.442695, %v19292_v13  ;;  %v19298_v13 = vld [vmem:[#allocation10_spill] sm:$0xff] }
 0x7ab   :  { %v13502_v34 = vpop.eup %13501  ;;  %13521 = vrcp.f32 %v10210_v47  ;;  %v10213_v57 = vadd.f32 1.0, %v13500_v8  ;;  %v19293_v47 = vld [vmem:[#allocation6_spill] sm:$0xff] }
 0x7ac   :  { %v13504_v11 = vpop.eup %13503  ;;  %13523 = vrcp.f32 %v10212_v48  ;;  %v10215_v24 = vadd.f32 1.0, %v13502_v34  ;;  %v11454_v8 = vmul.f32 -1.442695, %v19293_v47  ;;  %v19294_v34 = vld [vmem:[#allocation7_spill] sm:$0xff]  ;;  %v19299_v47 = vld [vmem:[#allocation13_spill] sm:$0xff] }
 0x7ad   :  { %v13506_v31 = vpop.eup %13505  ;;  %13525 = vrcp.f32 %v10213_v57  ;;  %v10214_v23 = vadd.f32 1.0, %v13504_v11  ;;  %v11455_v57 = vmul.f32 -1.442695, %v19294_v34  ;;  %v17965_v11 = vpop.f32.mrb[91].mxu1  ;;  %v11459_v34 = vmul.f32 -1.442695, %v19299_v47 }
 0x7ae   :  { %v13508_v20 = vpop.eup %13507  ;;  %13527 = vrcp.f32 %v10215_v24  ;;  %v10216_v53 = vadd.f32 1.0, %v13506_v31  ;;  %19295 = vst [vmem:[#allocation47_spill] sm:$0xff] %v17965_v11  ;;  %v19296_v31 = vld [vmem:[#allocation32_spill] sm:$0xff]  ;;  %v17971_v11 = vpop.f32.mrb[92].mxu0 }
 0x7af   :  { %v13510_v16 = vpop.eup %13509  ;;  %13529 = vrcp.f32 %v10214_v23  ;;  %v10217_v28 = vadd.f32 1.0, %v13508_v20  ;;  %v11457_v23 = vmul.f32 -1.442695, %v19296_v31  ;;  %v17976_v31 = vpop.f32.mrb[93].mxu0 }
 0x7b0   :  { %v13512_v55 = vpop.eup %13511  ;;  %10973 = vst [vmem:[#allocation3 + $0x340] sm:$0xff] %v13510_v16  ;;  %13531 = vrcp.f32 %v10216_v53  ;;  %v11456_v16 = vmul.f32 -1.442695, %v19297_v40  ;;  %v19302_v40 = vld [vmem:[#allocation35_spill] sm:$0xff] }
 0x7b1   :  { %v13514_v48 = vpop.eup %13513  ;;  %10975 = vst [vmem:[#allocation3 + $0x350] sm:$0xff] %v13512_v55  ;;  %13533 = vrcp.f32 %v10217_v28  ;;  %v11458_v55 = vmul.f32 -1.442695, %v19298_v13  ;;  %v11462_v13 = vmul.f32 -1.442695, %v17797_v0 }
 0x7b2   :  { %v13516_v24 = vpop.eup %13515  ;;  %10974 = vst [vmem:[#allocation3 + $0x348] sm:$0xff] %v13514_v48  ;;  %13535 = vpow2.f32 %v11453_v38  ;;  %v17973_v38 = vpop.f32.mrb[92].mxu1 }
 0x7b3   :  { %v13518_v20 = vpop.eup %13517  ;;  %10976 = vst [vmem:[#allocation3 + $0x358] sm:$0xff] %v13516_v24  ;;  %13537 = vpow2.f32 %v11452_v62  ;;  %v19300_v62 = vld [vmem:[#allocation14_spill] sm:$0xff] }
 0x7b4   :  { %v13520_v53 = vpop.eup %13519  ;;  %10977 = vst [vmem:[#allocation3 + $0x360] sm:$0xff] %v13518_v20  ;;  %13539 = vpow2.f32 %v11454_v8  ;;  %v11461_v24 = vmul.f32 -1.442695, %v19300_v62  ;;  %v17978_v20 = vpop.f32.mrb[93].mxu1 }
 0x7b5   :  { %v13522_v28 = vpop.eup %13521  ;;  %10979 = vst [vmem:[#allocation3 + $0x370] sm:$0xff] %v13520_v53  ;;  %13541 = vpow2.f32 %v11455_v57  ;;  %19301 = vst [vmem:[#allocation50_spill] sm:$0xff] %v17978_v20  ;;  %v11460_v57 = vmul.f32 -1.442695, %v19302_v40  ;;  %v17985_v62 = vpop.f32.mrb[94].mxu1 }
 0x7b6   :  { %v13524_v48 = vpop.eup %13523  ;;  %10978 = vst [vmem:[#allocation3 + $0x368] sm:$0xff] %v13522_v28  ;;  %13543 = vpow2.f32 %v11457_v23  ;;  %v11463_v23 = vmul.f32 -1.442695, %v17799_v35  ;;  %v17983_v28 = vpop.f32.mrb[94].mxu0  ;;  %19303 = vst [vmem:[#allocation53_spill] sm:$0xff] %v17985_v62 }
 0x7b7   :  { %v13526_v8 = vpop.eup %13525  ;;  %10980 = vst [vmem:[#allocation3 + $0x378] sm:$0xff] %v13524_v48  ;;  %13545 = vpow2.f32 %v11456_v16  ;;  %v11465_v16 = vmul.f32 -1.442695, %v17801_v22  ;;  %v17988_v48 = vpop.f32.mrb[95].mxu0 }
 0x7b8   :  { %v13528_v53 = vpop.eup %13527  ;;  %10981 = vst [vmem:[#allocation3 + $0x380] sm:$0xff] %v13526_v8  ;;  %13547 = vpow2.f32 %v11458_v55  ;;  %19304 = vst [vmem:[#allocation56_spill] sm:$0xff] %v17988_v48  ;;  %v17990_v8 = vpop.f32.mrb[95].mxu1 }
 0x7b9   :  { %v13530_v47 = vpop.eup %13529  ;;  %10983 = vst [vmem:[#allocation3 + $0x390] sm:$0xff] %v13528_v53  ;;  %13549 = vpow2.f32 %v11459_v34  ;;  %19305 = vst [vmem:[#allocation60_spill] sm:$0xff] %v17990_v8  ;;  %v17992_v40 = vpop.f32.mrb[96].mxu0 }
 0x7ba   :  { %v13532_v20 = vpop.eup %13531  ;;  %10982 = vst [vmem:[#allocation3 + $0x388] sm:$0xff] %v13530_v47  ;;  %13551 = vpow2.f32 %v11461_v24  ;;  %19306 = vst [vmem:[#allocation61_spill] sm:$0xff] %v17992_v40  ;;  %v17994_v53 = vpop.f32.mrb[96].mxu1 }
 0x7bb   :  { %v13534_v55 = vpop.eup %13533  ;;  %10984 = vst [vmem:[#allocation3 + $0x398] sm:$0xff] %v13532_v20  ;;  %13553 = vpow2.f32 %v11460_v57  ;;  %19307 = vst [vmem:[#allocation65_spill] sm:$0xff] %v17994_v53  ;;  %v17996_v22 = vpop.f32.mrb[97].mxu0 }
 0x7bc   :  { %v13536_v0 = vpop.eup %13535  ;;  %10985 = vst [vmem:[#allocation3 + $0x3a0] sm:$0xff] %v13534_v55  ;;  %13555 = vpow2.f32 %v11462_v13  ;;  %19308 = vst [vmem:[#allocation69_spill] sm:$0xff] %v17996_v22  ;;  %v17998_v20 = vpop.f32.mrb[97].mxu1 }
 0x7bd   :  { %v13538_v35 = vpop.eup %13537  ;;  %v10219_v34 = vadd.f32 1.0, %v13536_v0  ;;  %13557 = vpow2.f32 %v11463_v23  ;;  %19309 = vst [vmem:[#allocation70_spill] sm:$0xff] %v17998_v20 }
 0x7be   :  { %v13540_v24 = vpop.eup %13539  ;;  %v10218_v47 = vadd.f32 1.0, %v13538_v35  ;;  %13559 = vpow2.f32 %v11465_v16 }
 0x7bf   :  { %v13542_v48 = vpop.eup %13541  ;;  %13561 = vrcp.f32 %v10219_v34  ;;  %v10220_v8 = vadd.f32 1.0, %v13540_v24 }
 0x7c0   :  { %v13544_v57 = vpop.eup %13543  ;;  %13563 = vrcp.f32 %v10218_v47  ;;  %v10221_v13 = vadd.f32 1.0, %v13542_v48 }
 0x7c1   :  { %v13546_v55 = vpop.eup %13545  ;;  %13565 = vrcp.f32 %v10220_v8  ;;  %v10223_v23 = vadd.f32 1.0, %v13544_v57 }
 0x7c2   :  { %v13548_v0 = vpop.eup %13547  ;;  %13567 = vrcp.f32 %v10221_v13  ;;  %v10222_v40 = vadd.f32 1.0, %v13546_v55  ;;  %v11464_v13 = vmul.f32 -1.442695, %v17804_v14  ;;  %v11468_v14 = vmul.f32 -1.442695, %v17820_v42 }
 0x7c3   :  { %v13550_v53 = vpop.eup %13549  ;;  %13569 = vrcp.f32 %v10223_v23  ;;  %v10224_v35 = vadd.f32 1.0, %v13548_v0  ;;  %v11467_v0 = vmul.f32 -1.442695, %v17815_v32  ;;  %v11471_v32 = vmul.f32 -1.442695, %v17827_v1  ;;  %v19310_v1 = vld [vmem:[#allocation15_spill] sm:$0xff] }
 0x7c4   :  { %v13552_v16 = vpop.eup %13551  ;;  %13571 = vrcp.f32 %v10222_v40  ;;  %v10225_v22 = vadd.f32 1.0, %v13550_v53  ;;  %v11466_v40 = vmul.f32 -1.442695, %v17809_v49  ;;  %v11470_v49 = vmul.f32 -1.442695, %v17822_v27 }
 0x7c5   :  { %v13554_v62 = vpop.eup %13553  ;;  %13573 = vrcp.f32 %v10224_v35  ;;  %v10227_v34 = vadd.f32 1.0, %v13552_v16  ;;  %v11472_v27 = vmul.f32 -1.442695, %v17832_v2 }
 0x7c6   :  { %v13556_v24 = vpop.eup %13555  ;;  %13575 = vrcp.f32 %v10225_v22  ;;  %v10226_v20 = vadd.f32 1.0, %v13554_v62  ;;  %v11469_v62 = vmul.f32 -1.442695, %v17817_v50 }
 0x7c7   :  { %v13558_v47 = vpop.eup %13557  ;;  %13577 = vrcp.f32 %v10227_v34  ;;  %v10228_v48 = vadd.f32 1.0, %v13556_v24  ;;  %v18007_v34 = vpop.f32.mrb[98].mxu0 }
 0x7c8   :  { %v13560_v8 = vpop.eup %13559  ;;  %13579 = vrcp.f32 %v10226_v20  ;;  %v10229_v57 = vadd.f32 1.0, %v13558_v47  ;;  %v18009_v24 = vpop.f32.mrb[98].mxu1  ;;  %v11473_v47 = vmul.f32 -1.442695, %v17829_v59 }
 0x7c9   :  { %v13562_v55 = vpop.eup %13561  ;;  %13581 = vrcp.f32 %v10228_v48  ;;  %v10231_v23 = vadd.f32 1.0, %v13560_v8  ;;  %v18012_v42 = vpop.f32.mrb[99].mxu0 }
 0x7ca   :  { %v13564_v53 = vpop.eup %13563  ;;  %10987 = vst [vmem:[#allocation3 + $0x3b0] sm:$0xff] %v13562_v55  ;;  %13583 = vrcp.f32 %v10229_v57  ;;  %v18014_v48 = vpop.f32.mrb[99].mxu1 }
 0x7cb   :  { %v13566_v22 = vpop.eup %13565  ;;  %10986 = vst [vmem:[#allocation3 + $0x3a8] sm:$0xff] %v13564_v53  ;;  %13585 = vrcp.f32 %v10231_v23  ;;  %v19311_v23 = vld [vmem:[#allocation16_spill] sm:$0xff]  ;;  %v18019_v59 = vpop.f32.mrb[100].mxu0 }
 0x7cc   :  { %v13568_v35 = vpop.eup %13567  ;;  %10988 = vst [vmem:[#allocation3 + $0x3b8] sm:$0xff] %v13566_v22  ;;  %13587 = vpow2.f32 %v11464_v13  ;;  %v11474_v13 = vmul.f32 -1.442695, %v19310_v1  ;;  %v18021_v53 = vpop.f32.mrb[100].mxu1  ;;  %v19312_v22 = vld [vmem:[#allocation17_spill] sm:$0xff] }
 0x7cd   :  { %v13570_v20 = vpop.eup %13569  ;;  %10989 = vst [vmem:[#allocation3 + $0x3c0] sm:$0xff] %v13568_v35  ;;  %13589 = vpow2.f32 %v11466_v40  ;;  %v11475_v40 = vmul.f32 -1.442695, %v19311_v23  ;;  %v18024_v2 = vpop.f32.mrb[101].mxu0 }
 0x7ce   :  { %v13572_v16 = vpop.eup %13571  ;;  %10991 = vst [vmem:[#allocation3 + $0x3d0] sm:$0xff] %v13570_v20  ;;  %13591 = vpow2.f32 %v11467_v0  ;;  %v18026_v35 = vpop.f32.mrb[101].mxu1  ;;  %v19313_v20 = vld [vmem:[#allocation18_spill] sm:$0xff] }
 0x7cf   :  { %v13574_v50 = vpop.eup %13573  ;;  %10990 = vst [vmem:[#allocation3 + $0x3c8] sm:$0xff] %v13572_v16  ;;  %13593 = vpow2.f32 %v11469_v62  ;;  %v11477_v62 = vmul.f32 -1.442695, %v19312_v22 }
 0x7d0   :  { %v13576_v8 = vpop.eup %13575  ;;  %10992 = vst [vmem:[#allocation3 + $0x3d8] sm:$0xff] %v13574_v50  ;;  %13595 = vpow2.f32 %v11468_v14  ;;  %v18029_v50 = vpop.f32.mrb[102].mxu0 }
 0x7d1   :  { %v13578_v57 = vpop.eup %13577  ;;  %10993 = vst [vmem:[#allocation3 + $0x3e0] sm:$0xff] %v13576_v8  ;;  %13597 = vpow2.f32 %v11470_v49  ;;  %v11476_v49 = vmul.f32 -1.442695, %v19313_v20  ;;  %19314 = vst [vmem:[#allocation74_spill] sm:$0xff] %v18029_v50  ;;  %v18033_v1 = vpop.f32.mrb[103].mxu0 }
 0x7d2   :  { %v13580_v55 = vpop.eup %13579  ;;  %10995 = vst [vmem:[#allocation3 + $0x3f0] sm:$0xff] %v13578_v57  ;;  %13599 = vpow2.f32 %v11471_v32  ;;  %19316 = vst [vmem:[#allocation80_spill] sm:$0xff] %v18033_v1 }
 0x7d3   :  { %v13582_v0 = vpop.eup %13581  ;;  %10994 = vst [vmem:[#allocation3 + $0x3e8] sm:$0xff] %v13580_v55  ;;  %13601 = vpow2.f32 %v11473_v47  ;;  %v18031_v47 = vpop.f32.mrb[102].mxu1 }
 0x7d4   :  { %v13584_v14 = vpop.eup %13583  ;;  %10996 = vst [vmem:[#allocation3 + $0x3f8] sm:$0xff] %v13582_v0  ;;  %13603 = vpow2.f32 %v11472_v27  ;;  %19315 = vst [vmem:[#allocation77_spill] sm:$0xff] %v18031_v47  ;;  %v18035_v27 = vpop.f32.mrb[103].mxu1 }
 0x7d5   :  { %v13586_v16 = vpop.eup %13585  ;;  %10997 = vst [vmem:[#allocation3 + $0x400] sm:$0xff] %v13584_v14  ;;  %13605 = vpow2.f32 %v11474_v13  ;;  %19317 = vst [vmem:[#allocation84_spill] sm:$0xff] %v18035_v27  ;;  %v18037_v14 = vpop.f32.mrb[104].mxu0 }
 0x7d6   :  { %v13588_v32 = vpop.eup %13587  ;;  %10999 = vst [vmem:[#allocation3 + $0x410] sm:$0xff] %v13586_v16  ;;  %13607 = vpow2.f32 %v11475_v40  ;;  %19318 = vst [vmem:[#allocation86_spill] sm:$0xff] %v18037_v14 }
 0x7d7   :  { %v13590_v8 = vpop.eup %13589  ;;  %v10230_v57 = vadd.f32 1.0, %v13588_v32  ;;  %13609 = vpow2.f32 %v11477_v62 }
 0x7d8   :  { %v13592_v55 = vpop.eup %13591  ;;  %v10232_v23 = vadd.f32 1.0, %v13590_v8  ;;  %13611 = vpow2.f32 %v11476_v49 }
 0x7d9   :  { %v13594_v0 = vpop.eup %13593  ;;  %13613 = vrcp.f32 %v10230_v57  ;;  %v10233_v13 = vadd.f32 1.0, %v13592_v55 }
 0x7da   :  { %v13596_v22 = vpop.eup %13595  ;;  %13615 = vrcp.f32 %v10232_v23  ;;  %v10235_v40 = vadd.f32 1.0, %v13594_v0 }
 0x7db   :  { %v13598_v20 = vpop.eup %13597  ;;  %13617 = vrcp.f32 %v10233_v13  ;;  %v10234_v16 = vadd.f32 1.0, %v13596_v22 }
 0x7dc   :  { %v13600_v32 = vpop.eup %13599  ;;  %13619 = vrcp.f32 %v10235_v40  ;;  %v10236_v62 = vadd.f32 1.0, %v13598_v20  ;;  %v19319_v40 = vld [vmem:[#allocation39_spill] sm:$0xff] }
 0x7dd   :  { %v13602_v1 = vpop.eup %13601  ;;  %13621 = vrcp.f32 %v10234_v16  ;;  %v10237_v8 = vadd.f32 1.0, %v13600_v32  ;;  %v11478_v20 = vmul.f32 -1.442695, %v19319_v40  ;;  %v11479_v32 = vmul.f32 -1.442695, %v17851_v12 }
 0x7de   :  { %v13604_v49 = vpop.eup %13603  ;;  %13623 = vrcp.f32 %v10236_v62  ;;  %v10239_v27 = vadd.f32 1.0, %v13602_v1  ;;  %v11481_v62 = vmul.f32 -1.442695, %v17853_v15  ;;  %v11483_v12 = vmul.f32 -1.442695, %v17863_v19 }
 0x7df   :  { %v13606_v47 = vpop.eup %13605  ;;  %13625 = vrcp.f32 %v10237_v8  ;;  %v10238_v57 = vadd.f32 1.0, %v13604_v49  ;;  %v18043_v8 = vpop.f32.mrb[104].mxu1 }
 0x7e0   :  { %v13608_v55 = vpop.eup %13607  ;;  %13627 = vrcp.f32 %v10239_v27  ;;  %v10240_v23 = vadd.f32 1.0, %v13606_v47  ;;  %v11480_v47 = vmul.f32 -1.442695, %v17856_v36  ;;  %v18049_v15 = vpop.f32.mrb[105].mxu1  ;;  %v11485_v36 = vmul.f32 -1.442695, %v17865_v21 }
 0x7e1   :  { %v13610_v0 = vpop.eup %13609  ;;  %13629 = vrcp.f32 %v10238_v57  ;;  %v10241_v14 = vadd.f32 1.0, %v13608_v55 }
 0x7e2   :  { %v13612_v13 = vpop.eup %13611  ;;  %13631 = vrcp.f32 %v10240_v23  ;;  %v10243_v22 = vadd.f32 1.0, %v13610_v0  ;;  %v11484_v0 = vmul.f32 -1.442695, %v17868_v30 }
 0x7e3   :  { %v13614_v50 = vpop.eup %13613  ;;  %13633 = vrcp.f32 %v10241_v14  ;;  %v10242_v16 = vadd.f32 1.0, %v13612_v13  ;;  %v11482_v14 = vmul.f32 -1.442695, %v17858_v61  ;;  %v11486_v13 = vmul.f32 -1.442695, %v17870_v6 }
 0x7e4   :  { %v13616_v1 = vpop.eup %13615  ;;  %10998 = vst [vmem:[#allocation3 + $0x408] sm:$0xff] %v13614_v50  ;;  %13635 = vrcp.f32 %v10243_v22  ;;  %v18047_v50 = vpop.f32.mrb[105].mxu0  ;;  %v11487_v22 = vmul.f32 -1.442695, %v17873_v58  ;;  %v11488_v6 = vmul.f32 -1.442695, %v17877_v60 }
 0x7e5   :  { %v13618_v27 = vpop.eup %13617  ;;  %11000 = vst [vmem:[#allocation3 + $0x418] sm:$0xff] %v13616_v1  ;;  %13637 = vrcp.f32 %v10242_v16  ;;  %v18055_v40 = vpop.f32.mrb[106].mxu0  ;;  %v11489_v16 = vmul.f32 -1.442695, %v17875_v3  ;;  %v11490_v58 = vmul.f32 -1.442695, %v17879_v43 }
 0x7e6   :  { %v13620_v49 = vpop.eup %13619  ;;  %11001 = vst [vmem:[#allocation3 + $0x420] sm:$0xff] %v13618_v27  ;;  %13639 = vpow2.f32 %v11478_v20  ;;  %v18057_v20 = vpop.f32.mrb[106].mxu1 }
 0x7e7   :  { %v13622_v57 = vpop.eup %13621  ;;  %11003 = vst [vmem:[#allocation3 + $0x430] sm:$0xff] %v13620_v49  ;;  %13641 = vpow2.f32 %v11479_v32  ;;  %v18060_v30 = vpop.f32.mrb[107].mxu0 }
 0x7e8   :  { %v13624_v55 = vpop.eup %13623  ;;  %11002 = vst [vmem:[#allocation3 + $0x428] sm:$0xff] %v13622_v57  ;;  %13643 = vpow2.f32 %v11481_v62  ;;  %v18062_v32 = vpop.f32.mrb[107].mxu1 }
 0x7e9   :  { %v13626_v23 = vpop.eup %13625  ;;  %11004 = vst [vmem:[#allocation3 + $0x438] sm:$0xff] %v13624_v55  ;;  %13645 = vpow2.f32 %v11480_v47  ;;  %v18066_v47 = vpop.f32.mrb[108].mxu0 }
 0x7ea   :  { %v13628_v61 = vpop.eup %13627  ;;  %11005 = vst [vmem:[#allocation3 + $0x440] sm:$0xff] %v13626_v23  ;;  %13647 = vpow2.f32 %v11482_v14  ;;  %v18068_v3 = vpop.f32.mrb[108].mxu1 }
 0x7eb   :  { %v13630_v19 = vpop.eup %13629  ;;  %11007 = vst [vmem:[#allocation3 + $0x450] sm:$0xff] %v13628_v61  ;;  %13649 = vpow2.f32 %v11483_v12  ;;  %v18070_v14 = vpop.f32.mrb[109].mxu0 }
 0x7ec   :  { %v13632_v21 = vpop.eup %13631  ;;  %11006 = vst [vmem:[#allocation3 + $0x448] sm:$0xff] %v13630_v19  ;;  %13651 = vpow2.f32 %v11485_v36  ;;  %v18072_v57 = vpop.f32.mrb[109].mxu1 }
 0x7ed   :  { %v13634_v1 = vpop.eup %13633  ;;  %11008 = vst [vmem:[#allocation3 + $0x458] sm:$0xff] %v13632_v21  ;;  %13653 = vpow2.f32 %v11484_v0  ;;  %v18074_v0 = vpop.f32.mrb[110].mxu0 }
 0x7ee   :  { %v13636_v62 = vpop.eup %13635  ;;  %11009 = vst [vmem:[#allocation3 + $0x460] sm:$0xff] %v13634_v1  ;;  %13655 = vpow2.f32 %v11486_v13  ;;  %v18076_v61 = vpop.f32.mrb[110].mxu1 }
 0x7ef   :  { %v13638_v27 = vpop.eup %13637  ;;  %11011 = vst [vmem:[#allocation3 + $0x470] sm:$0xff] %v13636_v62  ;;  %13657 = vpow2.f32 %v11487_v22 }
 0x7f0   :  { %v13640_v49 = vpop.eup %13639  ;;  %11010 = vst [vmem:[#allocation3 + $0x468] sm:$0xff] %v13638_v27  ;;  %13659 = vpow2.f32 %v11489_v16 }
 0x7f1   :  { %v13642_v60 = vpop.eup %13641  ;;  %v10244_v12 = vadd.f32 1.0, %v13640_v49  ;;  %13661 = vpow2.f32 %v11488_v6 }
 0x7f2   :  { %v13644_v55 = vpop.eup %13643  ;;  %v10245_v36 = vadd.f32 1.0, %v13642_v60  ;;  %13663 = vpow2.f32 %v11490_v58 }
 0x7f3   :  { %v13646_v43 = vpop.eup %13645  ;;  %13665 = vrcp.f32 %v10244_v12  ;;  %v10247_v23 = vadd.f32 1.0, %v13644_v55 }
 0x7f4   :  { %v13648_v13 = vpop.eup %13647  ;;  %13667 = vrcp.f32 %v10245_v36  ;;  %v10246_v19 = vadd.f32 1.0, %v13646_v43 }
 0x7f5   :  { %v13650_v22 = vpop.eup %13649  ;;  %13669 = vrcp.f32 %v10247_v23  ;;  %v10248_v21 = vadd.f32 1.0, %v13648_v13 }
 0x7f6   :  { %v13652_v16 = vpop.eup %13651  ;;  %13671 = vrcp.f32 %v10246_v19  ;;  %v10249_v1 = vadd.f32 1.0, %v13650_v22  ;;  %v11491_v19 = vmul.f32 -1.442695, %v17881_v44  ;;  %v11495_v44 = vmul.f32 -1.442695, %v17899_v39 }
 0x7f7   :  { %v13654_v6 = vpop.eup %13653  ;;  %13673 = vrcp.f32 %v10248_v21  ;;  %v10251_v62 = vadd.f32 1.0, %v13652_v16  ;;  %v11493_v16 = vmul.f32 -1.442695, %v17887_v33 }
 0x7f8   :  { %v13656_v58 = vpop.eup %13655  ;;  %13675 = vrcp.f32 %v10249_v1  ;;  %v10250_v27 = vadd.f32 1.0, %v13654_v6  ;;  %v11492_v6 = vmul.f32 -1.442695, %v17891_v4 }
 0x7f9   :  { %v13658_v49 = vpop.eup %13657  ;;  %13677 = vrcp.f32 %v10251_v62  ;;  %v10252_v60 = vadd.f32 1.0, %v13656_v58  ;;  %v11494_v58 = vmul.f32 -1.442695, %v17893_v45 }
 0x7fa   :  { %v13660_v12 = vpop.eup %13659  ;;  %13679 = vrcp.f32 %v10250_v27  ;;  %v10253_v55 = vadd.f32 1.0, %v13658_v49  ;;  %v18083_v49 = vpop.f32.mrb[111].mxu0 }
 0x7fb   :  { %v13662_v36 = vpop.eup %13661  ;;  %13681 = vrcp.f32 %v10252_v60  ;;  %v10255_v43 = vadd.f32 1.0, %v13660_v12  ;;  %v18085_v60 = vpop.f32.mrb[111].mxu1  ;;  %v11497_v12 = vmul.f32 -1.442695, %v17901_v18 }
 0x7fc   :  { %v13664_v23 = vpop.eup %13663  ;;  %13683 = vrcp.f32 %v10253_v55  ;;  %v10254_v13 = vadd.f32 1.0, %v13662_v36  ;;  %v11496_v55 = vmul.f32 -1.442695, %v17904_v26  ;;  %v11498_v36 = vmul.f32 -1.442695, %v17906_v52 }
 0x7fd   :  { %v13666_v22 = vpop.eup %13665  ;;  %13685 = vrcp.f32 %v10255_v43  ;;  %v10256_v21 = vadd.f32 1.0, %v13664_v23  ;;  %v11499_v43 = vmul.f32 -1.442695, %v17910_v41  ;;  %v18091_v23 = vpop.f32.mrb[112].mxu0  ;;  %v11500_v52 = vmul.f32 -1.442695, %v17914_v63 }
 0x7fe   :  { %v13668_v1 = vpop.eup %13667  ;;  %11012 = vst [vmem:[#allocation3 + $0x478] sm:$0xff] %v13666_v22  ;;  %13687 = vrcp.f32 %v10254_v13  ;;  %v18093_v13 = vpop.f32.mrb[112].mxu1  ;;  %v11502_v41 = vmul.f32 -1.442695, %v17916_v56 }
 0x7ff   :  { %v13670_v62 = vpop.eup %13669  ;;  %11013 = vst [vmem:[#allocation3 + $0x480] sm:$0xff] %v13668_v1  ;;  %13689 = vrcp.f32 %v10256_v21  ;;  %v18096_v26 = vpop.f32.mrb[113].mxu0 }
 0x800   :  { %v13672_v27 = vpop.eup %13671  ;;  %11015 = vst [vmem:[#allocation3 + $0x490] sm:$0xff] %v13670_v62  ;;  %13691 = vpow2.f32 %v11491_v19  ;;  %v11501_v19 = vmul.f32 -1.442695, %v17912_v7  ;;  %v18098_v22 = vpop.f32.mrb[113].mxu1 }
 0x801   :  { %v13674_v33 = vpop.eup %13673  ;;  %11014 = vst [vmem:[#allocation3 + $0x488] sm:$0xff] %v13672_v27  ;;  %13693 = vpow2.f32 %v11493_v16  ;;  %v18103_v7 = vpop.f32.mrb[114].mxu0 }
 0x802   :  { %v13676_v4 = vpop.eup %13675  ;;  %11016 = vst [vmem:[#allocation3 + $0x498] sm:$0xff] %v13674_v33  ;;  %13695 = vpow2.f32 %v11492_v6  ;;  %v19320_v6 = vld [vmem:[#allocation19_spill] sm:$0xff] }
 0x803   :  { %v13678_v45 = vpop.eup %13677  ;;  %11017 = vst [vmem:[#allocation3 + $0x4a0] sm:$0xff] %v13676_v4  ;;  %13697 = vpow2.f32 %v11494_v58  ;;  %v11503_v62 = vmul.f32 -1.442695, %v19320_v6  ;;  %v18105_v58 = vpop.f32.mrb[114].mxu1 }
 0x804   :  { %v13680_v39 = vpop.eup %13679  ;;  %11019 = vst [vmem:[#allocation3 + $0x4b0] sm:$0xff] %v13678_v45  ;;  %13699 = vpow2.f32 %v11495_v44  ;;  %v18107_v44 = vpop.f32.mrb[115].mxu0 }
 0x805   :  { %v13682_v18 = vpop.eup %13681  ;;  %11018 = vst [vmem:[#allocation3 + $0x4a8] sm:$0xff] %v13680_v39  ;;  %13701 = vpow2.f32 %v11497_v12  ;;  %v18109_v63 = vpop.f32.mrb[115].mxu1 }
 0x806   :  { %v13684_v21 = vpop.eup %13683  ;;  %11020 = vst [vmem:[#allocation3 + $0x4b8] sm:$0xff] %v13682_v18  ;;  %13703 = vpow2.f32 %v11496_v55  ;;  %v18111_v45 = vpop.f32.mrb[116].mxu0 }
 0x807   :  { %v13686_v16 = vpop.eup %13685  ;;  %11021 = vst [vmem:[#allocation3 + $0x4c0] sm:$0xff] %v13684_v21  ;;  %13705 = vpow2.f32 %v11498_v36  ;;  %v18113_v36 = vpop.f32.mrb[116].mxu1 }
 0x808   :  { %v13688_v1 = vpop.eup %13687  ;;  %11023 = vst [vmem:[#allocation3 + $0x4d0] sm:$0xff] %v13686_v16  ;;  %13707 = vpow2.f32 %v11499_v43  ;;  %19321 = vst [vmem:[#allocation89_spill] sm:$0xff] %v18113_v36  ;;  %v18115_v18 = vpop.f32.mrb[117].mxu0 }
 0x809   :  { %v13690_v27 = vpop.eup %13689  ;;  %11022 = vst [vmem:[#allocation3 + $0x4c8] sm:$0xff] %v13688_v1  ;;  %13709 = vpow2.f32 %v11501_v19  ;;  %19322 = vst [vmem:[#allocation91_spill] sm:$0xff] %v18115_v18 }
 0x80a   :  { %v13692_v33 = vpop.eup %13691  ;;  %11024 = vst [vmem:[#allocation3 + $0x4d8] sm:$0xff] %v13690_v27  ;;  %13711 = vpow2.f32 %v11500_v52 }
 0x80b   :  { %v13694_v56 = vpop.eup %13693  ;;  %v10257_v12 = vadd.f32 1.0, %v13692_v33  ;;  %13713 = vpow2.f32 %v11502_v41 }
 0x80c   :  { %v13696_v4 = vpop.eup %13695  ;;  %v10259_v55 = vadd.f32 1.0, %v13694_v56  ;;  %13715 = vpow2.f32 %v11503_v62 }
 0x80d   :  { %v13698_v39 = vpop.eup %13697  ;;  %13717 = vrcp.f32 %v10257_v12  ;;  %v10258_v43 = vadd.f32 1.0, %v13696_v4 }
 0x80e   :  { %v13700_v19 = vpop.eup %13699  ;;  %13719 = vrcp.f32 %v10259_v55  ;;  %v10260_v21 = vadd.f32 1.0, %v13698_v39 }
 0x80f   :  { %v13702_v16 = vpop.eup %13701  ;;  %13721 = vrcp.f32 %v10258_v43  ;;  %v10261_v52 = vadd.f32 1.0, %v13700_v19 }
 0x810   :  { %v13704_v1 = vpop.eup %13703  ;;  %13723 = vrcp.f32 %v10260_v21  ;;  %v10263_v41 = vadd.f32 1.0, %v13702_v16  ;;  %v19323_v21 = vld [vmem:[#allocation22_spill] sm:$0xff] }
 0x811   :  { %v13706_v6 = vpop.eup %13705  ;;  %13725 = vrcp.f32 %v10261_v52  ;;  %v10262_v62 = vadd.f32 1.0, %v13704_v1  ;;  %v11505_v16 = vmul.f32 -1.442695, %v19323_v21  ;;  %v11504_v1 = vmul.f32 -1.442695, %v17927_v10 }
 0x812   :  { %v13708_v27 = vpop.eup %13707  ;;  %13727 = vrcp.f32 %v10263_v41  ;;  %v10264_v33 = vadd.f32 1.0, %v13706_v6  ;;  %v11506_v6 = vmul.f32 -1.442695, %v17929_v46  ;;  %v11508_v10 = vmul.f32 -1.442695, %v17940_v29 }
 0x813   :  { %v13710_v56 = vpop.eup %13709  ;;  %13729 = vrcp.f32 %v10262_v62  ;;  %v10265_v12 = vadd.f32 1.0, %v13708_v27  ;;  %v11507_v27 = vmul.f32 -1.442695, %v17935_v5  ;;  %v11510_v46 = vmul.f32 -1.442695, %v17942_v37 }
 0x814   :  { %v13712_v4 = vpop.eup %13711  ;;  %13731 = vrcp.f32 %v10264_v33  ;;  %v10267_v18 = vadd.f32 1.0, %v13710_v56  ;;  %v18121_v33 = vpop.f32.mrb[117].mxu1  ;;  %v11509_v56 = vmul.f32 -1.442695, %v17937_v9  ;;  %v11511_v5 = vmul.f32 -1.442695, %v17947_v17 }
 0x815   :  { %v13714_v55 = vpop.eup %13713  ;;  %13733 = vrcp.f32 %v10265_v12  ;;  %v10266_v39 = vadd.f32 1.0, %v13712_v4  ;;  %v11512_v37 = vmul.f32 -1.442695, %v17951_v51  ;;  %v11514_v17 = vmul.f32 -1.442695, %v17953_v25 }
 0x816   :  { %v13716_v43 = vpop.eup %13715  ;;  %13735 = vrcp.f32 %v10267_v18  ;;  %v10268_v19 = vadd.f32 1.0, %v13714_v55  ;;  %v18127_v55 = vpop.f32.mrb[118].mxu0 }
 0x817   :  { %v13718_v36 = vpop.eup %13717  ;;  %13737 = vrcp.f32 %v10266_v39  ;;  %v10269_v52 = vadd.f32 1.0, %v13716_v43  ;;  %v18129_v39 = vpop.f32.mrb[118].mxu1  ;;  %v11513_v43 = vmul.f32 -1.442695, %v17949_v54 }
 0x818   :  { %v13720_v41 = vpop.eup %13719  ;;  %11025 = vst [vmem:[#allocation3 + $0x4e0] sm:$0xff] %v13718_v36  ;;  %13739 = vrcp.f32 %v10268_v19  ;;  %v18132_v29 = vpop.f32.mrb[119].mxu0 }
 0x819   :  { %v13722_v62 = vpop.eup %13721  ;;  %11027 = vst [vmem:[#allocation3 + $0x4f0] sm:$0xff] %v13720_v41  ;;  %13741 = vrcp.f32 %v10269_v52  ;;  %v18134_v19 = vpop.f32.mrb[119].mxu1 }
 0x81a   :  { %v13724_v18 = vpop.eup %13723  ;;  %11026 = vst [vmem:[#allocation3 + $0x4e8] sm:$0xff] %v13722_v62  ;;  %13743 = vpow2.f32 %v11505_v16  ;;  %v18139_v54 = vpop.f32.mrb[120].mxu0 }
 0x81b   :  { %v13726_v12 = vpop.eup %13725  ;;  %11028 = vst [vmem:[#allocation3 + $0x4f8] sm:$0xff] %v13724_v18  ;;  %13745 = vpow2.f32 %v11504_v1  ;;  %v19324_v1 = vld [vmem:[#allocation25_spill] sm:$0xff]  ;;  %v18144_v51 = vpop.f32.mrb[121].mxu0 }
 0x81c   :  { %v13728_v36 = vpop.eup %13727  ;;  %11029 = vst [vmem:[#allocation3 + $0x500] sm:$0xff] %v13726_v12  ;;  %13747 = vpow2.f32 %v11506_v6  ;;  %v11515_v41 = vmul.f32 -1.442695, %v19324_v1  ;;  %v18141_v6 = vpop.f32.mrb[120].mxu1 }
 0x81d   :  { %v13730_v4 = vpop.eup %13729  ;;  %11031 = vst [vmem:[#allocation3 + $0x510] sm:$0xff] %v13728_v36  ;;  %13749 = vpow2.f32 %v11507_v27  ;;  %v19325_v27 = vld [vmem:[#allocation40_spill] sm:$0xff] }
 0x81e   :  { %v13732_v9 = vpop.eup %13731  ;;  %11030 = vst [vmem:[#allocation3 + $0x508] sm:$0xff] %v13730_v4  ;;  %13751 = vpow2.f32 %v11509_v56  ;;  %v11517_v18 = vmul.f32 -1.442695, %v19325_v27  ;;  %v18146_v56 = vpop.f32.mrb[121].mxu1 }
 0x81f   :  { %v13734_v21 = vpop.eup %13733  ;;  %11032 = vst [vmem:[#allocation3 + $0x518] sm:$0xff] %v13732_v9  ;;  %13753 = vpow2.f32 %v11508_v10  ;;  %v18150_v4 = vpop.f32.mrb[122].mxu1 }
 0x820   :  { %v13736_v16 = vpop.eup %13735  ;;  %11033 = vst [vmem:[#allocation3 + $0x520] sm:$0xff] %v13734_v21  ;;  %13755 = vpow2.f32 %v11510_v46  ;;  %v18148_v46 = vpop.f32.mrb[122].mxu0  ;;  %19326 = vst [vmem:[#allocation95_spill] sm:$0xff] %v18150_v4 }
 0x821   :  { %v13738_v52 = vpop.eup %13737  ;;  %11035 = vst [vmem:[#allocation3 + $0x530] sm:$0xff] %v13736_v16  ;;  %13757 = vpow2.f32 %v11511_v5 }
 0x822   :  { %v13740_v62 = vpop.eup %13739  ;;  %11034 = vst [vmem:[#allocation3 + $0x528] sm:$0xff] %v13738_v52  ;;  %13759 = vpow2.f32 %v11513_v43  ;;  %v18152_v43 = vpop.f32.mrb[123].mxu0 }
 0x823   :  { %v13742_v12 = vpop.eup %13741  ;;  %11036 = vst [vmem:[#allocation3 + $0x538] sm:$0xff] %v13740_v62  ;;  %13761 = vpow2.f32 %v11512_v37  ;;  %19327 = vst [vmem:[#allocation98_spill] sm:$0xff] %v18152_v43  ;;  %v18154_v52 = vpop.f32.mrb[123].mxu1 }
 0x824   :  { %v13744_v25 = vpop.eup %13743  ;;  %11037 = vst [vmem:[#allocation3 + $0x540] sm:$0xff] %v13742_v12  ;;  %13763 = vpow2.f32 %v11514_v17  ;;  %19328 = vst [vmem:[#allocation101_spill] sm:$0xff] %v18154_v52 }
 0x825   :  { %v13746_v10 = vpop.eup %13745  ;;  %v10271_v36 = vadd.f32 1.0, %v13744_v25  ;;  %13765 = vpow2.f32 %v11515_v41 }
 0x826   :  { %v13748_v5 = vpop.eup %13747  ;;  %v10270_v9 = vadd.f32 1.0, %v13746_v10  ;;  %13767 = vpow2.f32 %v11517_v18 }
 0x827   :  { %v13750_v21 = vpop.eup %13749  ;;  %13769 = vrcp.f32 %v10271_v36  ;;  %v10272_v16 = vadd.f32 1.0, %v13748_v5 }
 0x828   :  { %v13752_v37 = vpop.eup %13751  ;;  %13771 = vrcp.f32 %v10270_v9  ;;  %v10273_v17 = vadd.f32 1.0, %v13750_v21 }
 0x829   :  { %v13754_v1 = vpop.eup %13753  ;;  %13773 = vrcp.f32 %v10272_v16  ;;  %v10275_v41 = vadd.f32 1.0, %v13752_v37 }
 0x82a   :  { %v13756_v62 = vpop.eup %13755  ;;  %13775 = vrcp.f32 %v10273_v17  ;;  %v10274_v27 = vadd.f32 1.0, %v13754_v1  ;;  %v19329_v17 = vld [vmem:[#allocation44_spill] sm:$0xff] }
 0x82b   :  { %v13758_v12 = vpop.eup %13757  ;;  %13777 = vrcp.f32 %v10275_v41  ;;  %v10276_v25 = vadd.f32 1.0, %v13756_v62  ;;  %v11516_v1 = vmul.f32 -1.442695, %v19329_v17  ;;  %v19330_v62 = vld [vmem:[#allocation47_spill] sm:$0xff] }
 0x82c   :  { %v13760_v18 = vpop.eup %13759  ;;  %13779 = vrcp.f32 %v10274_v27  ;;  %v10277_v10 = vadd.f32 1.0, %v13758_v12  ;;  %v11518_v27 = vmul.f32 -1.442695, %v19330_v62  ;;  %v19333_v62 = vld [vmem:[#allocation56_spill] sm:$0xff] }
 0x82d   :  { %v13762_v43 = vpop.eup %13761  ;;  %13781 = vrcp.f32 %v10276_v25  ;;  %v10279_v36 = vadd.f32 1.0, %v13760_v18  ;;  %v11519_v25 = vmul.f32 -1.442695, %v17971_v11  ;;  %v11523_v11 = vmul.f32 -1.442695, %v17983_v28  ;;  %v19334_v28 = vld [vmem:[#allocation60_spill] sm:$0xff] }
 0x82e   :  { %v13764_v5 = vpop.eup %13763  ;;  %13783 = vrcp.f32 %v10277_v10  ;;  %v10278_v52 = vadd.f32 1.0, %v13762_v43  ;;  %v11521_v43 = vmul.f32 -1.442695, %v17973_v38 }
 0x82f   :  { %v13766_v9 = vpop.eup %13765  ;;  %13785 = vrcp.f32 %v10279_v36  ;;  %v10280_v21 = vadd.f32 1.0, %v13764_v5  ;;  %v19331_v5 = vld [vmem:[#allocation50_spill] sm:$0xff] }
 0x830   :  { %v13768_v16 = vpop.eup %13767  ;;  %13787 = vrcp.f32 %v10278_v52  ;;  %v10281_v37 = vadd.f32 1.0, %v13766_v9  ;;  %v11520_v52 = vmul.f32 -1.442695, %v17976_v31  ;;  %v11522_v9 = vmul.f32 -1.442695, %v19331_v5 }
 0x831   :  { %v13770_v4 = vpop.eup %13769  ;;  %13789 = vrcp.f32 %v10280_v21  ;;  %v10283_v41 = vadd.f32 1.0, %v13768_v16  ;;  %v18165_v16 = vpop.f32.mrb[124].mxu1 }
 0x832   :  { %v13772_v12 = vpop.eup %13771  ;;  %11039 = vst [vmem:[#allocation3 + $0x550] sm:$0xff] %v13770_v4  ;;  %13791 = vrcp.f32 %v10281_v37  ;;  %v18163_v4 = vpop.f32.mrb[124].mxu0  ;;  %v19332_v37 = vld [vmem:[#allocation53_spill] sm:$0xff] }
 0x833   :  { %v13774_v18 = vpop.eup %13773  ;;  %11038 = vst [vmem:[#allocation3 + $0x548] sm:$0xff] %v13772_v12  ;;  %13793 = vrcp.f32 %v10283_v41  ;;  %v11525_v17 = vmul.f32 -1.442695, %v19332_v37  ;;  %v18168_v31 = vpop.f32.mrb[125].mxu0 }
 0x834   :  { %v13776_v10 = vpop.eup %13775  ;;  %11040 = vst [vmem:[#allocation3 + $0x558] sm:$0xff] %v13774_v18  ;;  %13795 = vpow2.f32 %v11516_v1  ;;  %v18170_v1 = vpop.f32.mrb[125].mxu1 }
 0x835   :  { %v13778_v36 = vpop.eup %13777  ;;  %11041 = vst [vmem:[#allocation3 + $0x560] sm:$0xff] %v13776_v10  ;;  %13797 = vpow2.f32 %v11518_v27  ;;  %v11524_v27 = vmul.f32 -1.442695, %v19333_v62  ;;  %v18177_v5 = vpop.f32.mrb[126].mxu1  ;;  %v19341_v62 = vld [vmem:[#allocation69_spill] sm:$0xff] }
 0x836   :  { %v13780_v21 = vpop.eup %13779  ;;  %11043 = vst [vmem:[#allocation3 + $0x570] sm:$0xff] %v13778_v36  ;;  %13799 = vpow2.f32 %v11519_v25  ;;  %v11526_v25 = vmul.f32 -1.442695, %v19334_v28  ;;  %v18175_v36 = vpop.f32.mrb[126].mxu0  ;;  %19337 = vst [vmem:[#allocation108_spill] sm:$0xff] %v18177_v5 }
 0x837   :  { %v13782_v38 = vpop.eup %13781  ;;  %11042 = vst [vmem:[#allocation3 + $0x568] sm:$0xff] %v13780_v21  ;;  %13801 = vpow2.f32 %v11521_v43  ;;  %v19335_v43 = vld [vmem:[#allocation61_spill] sm:$0xff]  ;;  %19336 = vst [vmem:[#allocation104_spill] sm:$0xff] %v18175_v36  ;;  %v18180_v37 = vpop.f32.mrb[127].mxu0 }
 0x838   :  { %v13784_v41 = vpop.eup %13783  ;;  %11044 = vst [vmem:[#allocation3 + $0x578] sm:$0xff] %v13782_v38  ;;  %13803 = vpow2.f32 %v11520_v52  ;;  %v11527_v10 = vmul.f32 -1.442695, %v19335_v43  ;;  %v19338_v52 = vld [vmem:[#allocation65_spill] sm:$0xff]  ;;  %19339 = vst [vmem:[#allocation110_spill] sm:$0xff] %v18180_v37 }
 0x839   :  { %v13786_v12 = vpop.eup %13785  ;;  %11045 = vst [vmem:[#allocation3 + $0x580] sm:$0xff] %v13784_v41  ;;  %13805 = vpow2.f32 %v11522_v9  ;;  %v11529_v38 = vmul.f32 -1.442695, %v19338_v52  ;;  %v18182_v41 = vpop.f32.mrb[127].mxu1 }
 0x83a   :  { %v13788_v18 = vpop.eup %13787  ;;  %11047 = vst [vmem:[#allocation3 + $0x590] sm:$0xff] %v13786_v12  ;;  %13807 = vpow2.f32 %v11523_v11  ;;  %19340 = vst [vmem:[#allocation112_spill] sm:$0xff] %v18182_v41  ;;  %v11528_v11 = vmul.f32 -1.442695, %v19341_v62 }
 0x83b   :  { %v13790_v21 = vpop.eup %13789  ;;  %11046 = vst [vmem:[#allocation3 + $0x588] sm:$0xff] %v13788_v18  ;;  %13809 = vpow2.f32 %v11525_v17 }
 0x83c   :  { %v13792_v9 = vpop.eup %13791  ;;  %11048 = vst [vmem:[#allocation3 + $0x598] sm:$0xff] %v13790_v21  ;;  %13811 = vpow2.f32 %v11524_v27 }
 0x83d   :  { %v13794_v12 = vpop.eup %13793  ;;  %11049 = vst [vmem:[#allocation3 + $0x5a0] sm:$0xff] %v13792_v9  ;;  %13813 = vpow2.f32 %v11526_v25 }
 0x83e   :  { %v13796_v28 = vpop.eup %13795  ;;  %11051 = vst [vmem:[#allocation3 + $0x5b0] sm:$0xff] %v13794_v12  ;;  %13815 = vpow2.f32 %v11527_v10 }
 0x83f   :  { %v13798_v43 = vpop.eup %13797  ;;  %v10282_v18 = vadd.f32 1.0, %v13796_v28  ;;  %13817 = vpow2.f32 %v11529_v38 }
 0x840   :  { %v13800_v17 = vpop.eup %13799  ;;  %v10284_v52 = vadd.f32 1.0, %v13798_v43  ;;  %13819 = vpow2.f32 %v11528_v11 }
 0x841   :  { %v13802_v37 = vpop.eup %13801  ;;  %13821 = vrcp.f32 %v10282_v18  ;;  %v10285_v41 = vadd.f32 1.0, %v13800_v17 }
 0x842   :  { %v13804_v5 = vpop.eup %13803  ;;  %13823 = vrcp.f32 %v10284_v52  ;;  %v10287_v27 = vadd.f32 1.0, %v13802_v37 }
 0x843   :  { %v13806_v21 = vpop.eup %13805  ;;  %13825 = vrcp.f32 %v10285_v41  ;;  %v10286_v62 = vadd.f32 1.0, %v13804_v5 }
 0x844   :  { %v13808_v9 = vpop.eup %13807  ;;  %13827 = vrcp.f32 %v10287_v27  ;;  %v10288_v25 = vadd.f32 1.0, %v13806_v21  ;;  %v19342_v27 = vld [vmem:[#allocation70_spill] sm:$0xff] }
 0x845   :  { %v13810_v12 = vpop.eup %13809  ;;  %13829 = vrcp.f32 %v10286_v62  ;;  %v10289_v10 = vadd.f32 1.0, %v13808_v9  ;;  %v11530_v21 = vmul.f32 -1.442695, %v19342_v27  ;;  %v11531_v9 = vmul.f32 -1.442695, %v18007_v34 }
 0x846   :  { %v13812_v28 = vpop.eup %13811  ;;  %13831 = vrcp.f32 %v10288_v25  ;;  %v10291_v38 = vadd.f32 1.0, %v13810_v12  ;;  %v11533_v12 = vmul.f32 -1.442695, %v18009_v24  ;;  %v11535_v34 = vmul.f32 -1.442695, %v18019_v59 }
 0x847   :  { %v13814_v43 = vpop.eup %13813  ;;  %13833 = vrcp.f32 %v10289_v10  ;;  %v10290_v11 = vadd.f32 1.0, %v13812_v28  ;;  %v11532_v28 = vmul.f32 -1.442695, %v18012_v42  ;;  %v11537_v24 = vmul.f32 -1.442695, %v18021_v53 }
 0x848   :  { %v13816_v18 = vpop.eup %13815  ;;  %13835 = vrcp.f32 %v10291_v38  ;;  %v10292_v17 = vadd.f32 1.0, %v13814_v43  ;;  %v11534_v43 = vmul.f32 -1.442695, %v18014_v48  ;;  %v11536_v42 = vmul.f32 -1.442695, %v18024_v2 }
 0x849   :  { %v13818_v52 = vpop.eup %13817  ;;  %13837 = vrcp.f32 %v10290_v11  ;;  %v10293_v37 = vadd.f32 1.0, %v13816_v18  ;;  %v11538_v48 = vmul.f32 -1.442695, %v18026_v35 }
 0x84a   :  { %v13820_v41 = vpop.eup %13819  ;;  %13839 = vrcp.f32 %v10292_v17  ;;  %v10295_v5 = vadd.f32 1.0, %v13818_v52 }
 0x84b   :  { %v13822_v36 = vpop.eup %13821  ;;  %13841 = vrcp.f32 %v10293_v37  ;;  %v10294_v62 = vadd.f32 1.0, %v13820_v41  ;;  %v19343_v37 = vld [vmem:[#allocation74_spill] sm:$0xff] }
 0x84c   :  { %v13824_v25 = vpop.eup %13823  ;;  %11050 = vst [vmem:[#allocation3 + $0x5a8] sm:$0xff] %v13822_v36  ;;  %13843 = vrcp.f32 %v10295_v5  ;;  %v11539_v59 = vmul.f32 -1.442695, %v19343_v37  ;;  %v19344_v5 = vld [vmem:[#allocation77_spill] sm:$0xff] }
 0x84d   :  { %v13826_v10 = vpop.eup %13825  ;;  %11052 = vst [vmem:[#allocation3 + $0x5b8] sm:$0xff] %v13824_v25  ;;  %13845 = vrcp.f32 %v10294_v62  ;;  %v11541_v53 = vmul.f32 -1.442695, %v19344_v5 }
 0x84e   :  { %v13828_v38 = vpop.eup %13827  ;;  %11053 = vst [vmem:[#allocation3 + $0x5c0] sm:$0xff] %v13826_v10  ;;  %13847 = vpow2.f32 %v11530_v21  ;;  %v19345_v21 = vld [vmem:[#allocation80_spill] sm:$0xff] }
 0x84f   :  { %v13830_v11 = vpop.eup %13829  ;;  %11055 = vst [vmem:[#allocation3 + $0x5d0] sm:$0xff] %v13828_v38  ;;  %13849 = vpow2.f32 %v11531_v9  ;;  %v11540_v2 = vmul.f32 -1.442695, %v19345_v21  ;;  %v19346_v9 = vld [vmem:[#allocation84_spill] sm:$0xff] }
 0x850   :  { %v13832_v18 = vpop.eup %13831  ;;  %11054 = vst [vmem:[#allocation3 + $0x5c8] sm:$0xff] %v13830_v11  ;;  %13851 = vpow2.f32 %v11533_v12  ;;  %v11542_v35 = vmul.f32 -1.442695, %v19346_v9 }
 0x851   :  { %v13834_v36 = vpop.eup %13833  ;;  %11056 = vst [vmem:[#allocation3 + $0x5d8] sm:$0xff] %v13832_v18  ;;  %13853 = vpow2.f32 %v11532_v28 }
 0x852   :  { %v13836_v17 = vpop.eup %13835  ;;  %11057 = vst [vmem:[#allocation3 + $0x5e0] sm:$0xff] %v13834_v36  ;;  %13855 = vpow2.f32 %v11534_v43 }
 0x853   :  { %v13838_v52 = vpop.eup %13837  ;;  %11059 = vst [vmem:[#allocation3 + $0x5f0] sm:$0xff] %v13836_v17  ;;  %13857 = vpow2.f32 %v11535_v34 }
 0x854   :  { %v13840_v41 = vpop.eup %13839  ;;  %11058 = vst [vmem:[#allocation3 + $0x5e8] sm:$0xff] %v13838_v52  ;;  %13859 = vpow2.f32 %v11537_v24 }
 0x855   :  { %v13842_v27 = vpop.eup %13841  ;;  %11060 = vst [vmem:[#allocation3 + $0x5f8] sm:$0xff] %v13840_v41  ;;  %13861 = vpow2.f32 %v11536_v42 }
 0x856   :  { %v13844_v62 = vpop.eup %13843  ;;  %11061 = vst [vmem:[#allocation3 + $0x600] sm:$0xff] %v13842_v27  ;;  %13863 = vpow2.f32 %v11538_v48 }
 0x857   :  { %v13846_v25 = vpop.eup %13845  ;;  %11063 = vst [vmem:[#allocation3 + $0x610] sm:$0xff] %v13844_v62  ;;  %13865 = vpow2.f32 %v11539_v59 }
 0x858   :  { %v13848_v12 = vpop.eup %13847  ;;  %11062 = vst [vmem:[#allocation3 + $0x608] sm:$0xff] %v13846_v25  ;;  %13867 = vpow2.f32 %v11541_v53  ;;  %v19347_v25 = vld [vmem:[#allocation86_spill] sm:$0xff] }
 0x859   :  { %v13850_v10 = vpop.eup %13849  ;;  %v10296_v28 = vadd.f32 1.0, %v13848_v12  ;;  %13869 = vpow2.f32 %v11540_v2  ;;  %v11543_v12 = vmul.f32 -1.442695, %v19347_v25 }
 0x85a   :  { %v13852_v38 = vpop.eup %13851  ;;  %v10297_v43 = vadd.f32 1.0, %v13850_v10  ;;  %13871 = vpow2.f32 %v11542_v35 }
 0x85b   :  { %v13854_v11 = vpop.eup %13853  ;;  %13873 = vrcp.f32 %v10296_v28  ;;  %v10299_v34 = vadd.f32 1.0, %v13852_v38  ;;  %v11545_v38 = vmul.f32 -1.442695, %v18043_v8  ;;  %v11549_v8 = vmul.f32 -1.442695, %v18057_v20 }
 0x85c   :  { %v13856_v18 = vpop.eup %13855  ;;  %13875 = vrcp.f32 %v10297_v43  ;;  %v10298_v24 = vadd.f32 1.0, %v13854_v11  ;;  %v11544_v11 = vmul.f32 -1.442695, %v18047_v50  ;;  %v11548_v50 = vmul.f32 -1.442695, %v18060_v30 }
 0x85d   :  { %v13858_v36 = vpop.eup %13857  ;;  %13877 = vrcp.f32 %v10299_v34  ;;  %v10300_v42 = vadd.f32 1.0, %v13856_v18  ;;  %v11546_v18 = vmul.f32 -1.442695, %v18049_v15  ;;  %v11550_v15 = vmul.f32 -1.442695, %v18062_v32 }
 0x85e   :  { %v13860_v17 = vpop.eup %13859  ;;  %13879 = vrcp.f32 %v10298_v24  ;;  %v10301_v48 = vadd.f32 1.0, %v13858_v36  ;;  %v11547_v36 = vmul.f32 -1.442695, %v18055_v40  ;;  %v11551_v40 = vmul.f32 -1.442695, %v18066_v47 }
 0x85f   :  { %v13862_v52 = vpop.eup %13861  ;;  %13881 = vrcp.f32 %v10300_v42  ;;  %v10303_v37 = vadd.f32 1.0, %v13860_v17  ;;  %v11553_v20 = vmul.f32 -1.442695, %v18068_v3  ;;  %v11552_v30 = vmul.f32 -1.442695, %v18070_v14 }
 0x860   :  { %v13864_v59 = vpop.eup %13863  ;;  %13883 = vrcp.f32 %v10301_v48  ;;  %v10302_v41 = vadd.f32 1.0, %v13862_v52  ;;  %v11554_v32 = vmul.f32 -1.442695, %v18072_v57  ;;  %v11555_v47 = vmul.f32 -1.442695, %v18074_v0 }
 0x861   :  { %v13866_v5 = vpop.eup %13865  ;;  %13885 = vrcp.f32 %v10303_v37  ;;  %v10304_v53 = vadd.f32 1.0, %v13864_v59 }
 0x862   :  { %v13868_v27 = vpop.eup %13867  ;;  %13887 = vrcp.f32 %v10302_v41  ;;  %v10305_v21 = vadd.f32 1.0, %v13866_v5 }
 0x863   :  { %v13870_v2 = vpop.eup %13869  ;;  %13889 = vrcp.f32 %v10304_v53  ;;  %v10307_v62 = vadd.f32 1.0, %v13868_v27 }
 0x864   :  { %v13872_v9 = vpop.eup %13871  ;;  %13891 = vrcp.f32 %v10305_v21  ;;  %v10306_v35 = vadd.f32 1.0, %v13870_v2 }
 0x865   :  { %v13874_v10 = vpop.eup %13873  ;;  %13893 = vrcp.f32 %v10307_v62  ;;  %v10308_v28 = vadd.f32 1.0, %v13872_v9 }
 0x866   :  { %v13876_v43 = vpop.eup %13875  ;;  %11064 = vst [vmem:[#allocation3 + $0x618] sm:$0xff] %v13874_v10  ;;  %13895 = vrcp.f32 %v10306_v35 }
 0x867   :  { %v13878_v34 = vpop.eup %13877  ;;  %11065 = vst [vmem:[#allocation3 + $0x620] sm:$0xff] %v13876_v43  ;;  %13897 = vrcp.f32 %v10308_v28 }
 0x868   :  { %v13880_v24 = vpop.eup %13879  ;;  %11067 = vst [vmem:[#allocation3 + $0x630] sm:$0xff] %v13878_v34  ;;  %13899 = vpow2.f32 %v11543_v12 }
 0x869   :  { %v13882_v42 = vpop.eup %13881  ;;  %11066 = vst [vmem:[#allocation3 + $0x628] sm:$0xff] %v13880_v24  ;;  %13901 = vpow2.f32 %v11545_v38 }
 0x86a   :  { %v13884_v17 = vpop.eup %13883  ;;  %11068 = vst [vmem:[#allocation3 + $0x638] sm:$0xff] %v13882_v42  ;;  %13903 = vpow2.f32 %v11544_v11 }
 0x86b   :  { %v13886_v48 = vpop.eup %13885  ;;  %11069 = vst [vmem:[#allocation3 + $0x640] sm:$0xff] %v13884_v17  ;;  %13905 = vpow2.f32 %v11546_v18 }
 0x86c   :  { %v13888_v52 = vpop.eup %13887  ;;  %11071 = vst [vmem:[#allocation3 + $0x650] sm:$0xff] %v13886_v48  ;;  %13907 = vpow2.f32 %v11547_v36  ;;  %v11557_v48 = vmul.f32 -1.442695, %v18076_v61  ;;  %v11561_v61 = vmul.f32 -1.442695, %v18093_v13 }
 0x86d   :  { %v13890_v37 = vpop.eup %13889  ;;  %11070 = vst [vmem:[#allocation3 + $0x648] sm:$0xff] %v13888_v52  ;;  %13909 = vpow2.f32 %v11549_v8  ;;  %v11565_v13 = vmul.f32 -1.442695, %v18105_v58 }
 0x86e   :  { %v13892_v59 = vpop.eup %13891  ;;  %11072 = vst [vmem:[#allocation3 + $0x658] sm:$0xff] %v13890_v37  ;;  %13911 = vpow2.f32 %v11548_v50 }
 0x86f   :  { %v13894_v41 = vpop.eup %13893  ;;  %11073 = vst [vmem:[#allocation3 + $0x660] sm:$0xff] %v13892_v59  ;;  %13913 = vpow2.f32 %v11550_v15 }
 0x870   :  { %v13896_v5 = vpop.eup %13895  ;;  %11075 = vst [vmem:[#allocation3 + $0x670] sm:$0xff] %v13894_v41  ;;  %13915 = vpow2.f32 %v11551_v40  ;;  %v11556_v40 = vmul.f32 -1.442695, %v18083_v49  ;;  %v11560_v49 = vmul.f32 -1.442695, %v18096_v26 }
 0x871   :  { %v13898_v53 = vpop.eup %13897  ;;  %11074 = vst [vmem:[#allocation3 + $0x668] sm:$0xff] %v13896_v5  ;;  %13917 = vpow2.f32 %v11553_v20  ;;  %v11558_v20 = vmul.f32 -1.442695, %v18085_v60  ;;  %v11562_v60 = vmul.f32 -1.442695, %v18098_v22 }
 0x872   :  { %v13900_v27 = vpop.eup %13899  ;;  %11076 = vst [vmem:[#allocation3 + $0x678] sm:$0xff] %v13898_v53  ;;  %13919 = vpow2.f32 %v11552_v30  ;;  %v11559_v30 = vmul.f32 -1.442695, %v18091_v23  ;;  %v11563_v23 = vmul.f32 -1.442695, %v18103_v7 }
 0x873   :  { %v13902_v3 = vpop.eup %13901  ;;  %v10309_v21 = vadd.f32 1.0, %v13900_v27  ;;  %13921 = vpow2.f32 %v11554_v32  ;;  %v11564_v26 = vmul.f32 -1.442695, %v18107_v44  ;;  %v11566_v22 = vmul.f32 -1.442695, %v18109_v63 }
 0x874   :  { %v13904_v14 = vpop.eup %13903  ;;  %v10311_v2 = vadd.f32 1.0, %v13902_v3  ;;  %13923 = vpow2.f32 %v11555_v47  ;;  %v11567_v7 = vmul.f32 -1.442695, %v18111_v45 }
 0x875   :  { %v13906_v62 = vpop.eup %13905  ;;  %13925 = vrcp.f32 %v10309_v21  ;;  %v10310_v57 = vadd.f32 1.0, %v13904_v14 }
 0x876   :  { %v13908_v9 = vpop.eup %13907  ;;  %13927 = vrcp.f32 %v10311_v2  ;;  %v10312_v35 = vadd.f32 1.0, %v13906_v62  ;;  %v19348_v2 = vld [vmem:[#allocation89_spill] sm:$0xff] }
 0x877   :  { %v13910_v25 = vpop.eup %13909  ;;  %13929 = vrcp.f32 %v10310_v57  ;;  %v10313_v0 = vadd.f32 1.0, %v13908_v9  ;;  %v11569_v58 = vmul.f32 -1.442695, %v19348_v2 }
 0x878   :  { %v13912_v12 = vpop.eup %13911  ;;  %13931 = vrcp.f32 %v10312_v35  ;;  %v10315_v10 = vadd.f32 1.0, %v13910_v25 }
 0x879   :  { %v13914_v28 = vpop.eup %13913  ;;  %13933 = vrcp.f32 %v10313_v0  ;;  %v10314_v38 = vadd.f32 1.0, %v13912_v12 }
 0x87a   :  { %v13916_v43 = vpop.eup %13915  ;;  %13935 = vrcp.f32 %v10315_v10  ;;  %v10316_v11 = vadd.f32 1.0, %v13914_v28 }
 0x87b   :  { %v13918_v34 = vpop.eup %13917  ;;  %13937 = vrcp.f32 %v10314_v38  ;;  %v10317_v18 = vadd.f32 1.0, %v13916_v43 }
 0x87c   :  { %v13920_v24 = vpop.eup %13919  ;;  %13939 = vrcp.f32 %v10316_v11  ;;  %v10319_v36 = vadd.f32 1.0, %v13918_v34 }
 0x87d   :  { %v13922_v42 = vpop.eup %13921  ;;  %13941 = vrcp.f32 %v10317_v18  ;;  %v10318_v8 = vadd.f32 1.0, %v13920_v24 }
 0x87e   :  { %v13924_v17 = vpop.eup %13923  ;;  %13943 = vrcp.f32 %v10319_v36  ;;  %v10320_v50 = vadd.f32 1.0, %v13922_v42 }
 0x87f   :  { %v13926_v15 = vpop.eup %13925  ;;  %13945 = vrcp.f32 %v10318_v8  ;;  %v10321_v52 = vadd.f32 1.0, %v13924_v17 }
 0x880   :  { %v13928_v37 = vpop.eup %13927  ;;  %11077 = vst [vmem:[#allocation3 + $0x680] sm:$0xff] %v13926_v15  ;;  %13947 = vrcp.f32 %v10320_v50 }
 0x881   :  { %v13930_v59 = vpop.eup %13929  ;;  %11079 = vst [vmem:[#allocation3 + $0x690] sm:$0xff] %v13928_v37  ;;  %13949 = vrcp.f32 %v10321_v52 }
 0x882   :  { %v13932_v41 = vpop.eup %13931  ;;  %11078 = vst [vmem:[#allocation3 + $0x688] sm:$0xff] %v13930_v59  ;;  %13951 = vpow2.f32 %v11557_v48 }
 0x883   :  { %v13934_v32 = vpop.eup %13933  ;;  %11080 = vst [vmem:[#allocation3 + $0x698] sm:$0xff] %v13932_v41  ;;  %13953 = vpow2.f32 %v11556_v40  ;;  %v19349_v40 = vld [vmem:[#allocation91_spill] sm:$0xff] }
 0x884   :  { %v13936_v5 = vpop.eup %13935  ;;  %11081 = vst [vmem:[#allocation3 + $0x6a0] sm:$0xff] %v13934_v32  ;;  %13955 = vpow2.f32 %v11558_v20  ;;  %v11568_v37 = vmul.f32 -1.442695, %v19349_v40 }
 0x885   :  { %v13938_v47 = vpop.eup %13937  ;;  %11083 = vst [vmem:[#allocation3 + $0x6b0] sm:$0xff] %v13936_v5  ;;  %13957 = vpow2.f32 %v11559_v30  ;;  %v11570_v30 = vmul.f32 -1.442695, %v18121_v33  ;;  %v11574_v33 = vmul.f32 -1.442695, %v18134_v19 }
 0x886   :  { %v13940_v53 = vpop.eup %13939  ;;  %11082 = vst [vmem:[#allocation3 + $0x6a8] sm:$0xff] %v13938_v47  ;;  %13959 = vpow2.f32 %v11561_v61  ;;  %v11571_v61 = vmul.f32 -1.442695, %v18127_v55  ;;  %v11575_v55 = vmul.f32 -1.442695, %v18139_v54 }
 0x887   :  { %v13942_v27 = vpop.eup %13941  ;;  %11084 = vst [vmem:[#allocation3 + $0x6b8] sm:$0xff] %v13940_v53  ;;  %13961 = vpow2.f32 %v11560_v49  ;;  %v11573_v49 = vmul.f32 -1.442695, %v18129_v39  ;;  %v11577_v39 = vmul.f32 -1.442695, %v18141_v6 }
 0x888   :  { %v13944_v3 = vpop.eup %13943  ;;  %11085 = vst [vmem:[#allocation3 + $0x6c0] sm:$0xff] %v13942_v27  ;;  %13963 = vpow2.f32 %v11562_v60  ;;  %v11572_v60 = vmul.f32 -1.442695, %v18132_v29  ;;  %v11576_v29 = vmul.f32 -1.442695, %v18144_v51 }
 0x889   :  { %v13946_v21 = vpop.eup %13945  ;;  %11087 = vst [vmem:[#allocation3 + $0x6d0] sm:$0xff] %v13944_v3  ;;  %13965 = vpow2.f32 %v11563_v23  ;;  %v11578_v19 = vmul.f32 -1.442695, %v18146_v56  ;;  %v11579_v54 = vmul.f32 -1.442695, %v18148_v46 }
 0x88a   :  { %v13948_v14 = vpop.eup %13947  ;;  %11086 = vst [vmem:[#allocation3 + $0x6c8] sm:$0xff] %v13946_v21  ;;  %13967 = vpow2.f32 %v11565_v13 }
 0x88b   :  { %v13950_v62 = vpop.eup %13949  ;;  %11088 = vst [vmem:[#allocation3 + $0x6d8] sm:$0xff] %v13948_v14  ;;  %13969 = vpow2.f32 %v11564_v26 }
 0x88c   :  { %v13952_v57 = vpop.eup %13951  ;;  %11089 = vst [vmem:[#allocation3 + $0x6e0] sm:$0xff] %v13950_v62  ;;  %13971 = vpow2.f32 %v11566_v22  ;;  %v19350_v22 = vld [vmem:[#allocation95_spill] sm:$0xff] }
 0x88d   :  { %v13954_v44 = vpop.eup %13953  ;;  %v10323_v9 = vadd.f32 1.0, %v13952_v57  ;;  %13973 = vpow2.f32 %v11567_v7  ;;  %v11581_v6 = vmul.f32 -1.442695, %v19350_v22  ;;  %v19351_v7 = vld [vmem:[#allocation98_spill] sm:$0xff] }
 0x88e   :  { %v13956_v63 = vpop.eup %13955  ;;  %v10322_v35 = vadd.f32 1.0, %v13954_v44  ;;  %13975 = vpow2.f32 %v11569_v58  ;;  %v11580_v51 = vmul.f32 -1.442695, %v19351_v7 }
 0x88f   :  { %v13958_v25 = vpop.eup %13957  ;;  %13977 = vrcp.f32 %v10323_v9  ;;  %v10324_v45 = vadd.f32 1.0, %v13956_v63 }
 0x890   :  { %v13960_v0 = vpop.eup %13959  ;;  %13979 = vrcp.f32 %v10322_v35  ;;  %v10325_v12 = vadd.f32 1.0, %v13958_v25 }
 0x891   :  { %v13962_v10 = vpop.eup %13961  ;;  %13981 = vrcp.f32 %v10324_v45  ;;  %v10327_v28 = vadd.f32 1.0, %v13960_v0 }
 0x892   :  { %v13964_v38 = vpop.eup %13963  ;;  %13983 = vrcp.f32 %v10325_v12  ;;  %v10326_v43 = vadd.f32 1.0, %v13962_v10 }
 0x893   :  { %v13966_v11 = vpop.eup %13965  ;;  %13985 = vrcp.f32 %v10327_v28  ;;  %v10328_v34 = vadd.f32 1.0, %v13964_v38 }
 0x894   :  { %v13968_v18 = vpop.eup %13967  ;;  %13987 = vrcp.f32 %v10326_v43  ;;  %v10329_v24 = vadd.f32 1.0, %v13966_v11 }
 0x895   :  { %v13970_v36 = vpop.eup %13969  ;;  %13989 = vrcp.f32 %v10328_v34  ;;  %v10331_v42 = vadd.f32 1.0, %v13968_v18 }
 0x896   :  { %v13972_v8 = vpop.eup %13971  ;;  %13991 = vrcp.f32 %v10329_v24  ;;  %v10330_v17 = vadd.f32 1.0, %v13970_v36 }
 0x897   :  { %v13974_v50 = vpop.eup %13973  ;;  %13993 = vrcp.f32 %v10331_v42  ;;  %v10332_v48 = vadd.f32 1.0, %v13972_v8 }
 0x898   :  { %v13976_v15 = vpop.eup %13975  ;;  %13995 = vrcp.f32 %v10330_v17  ;;  %v10333_v52 = vadd.f32 1.0, %v13974_v50  ;;  %v19352_v17 = vld [vmem:[#allocation101_spill] sm:$0xff] }
 0x899   :  { %v13978_v20 = vpop.eup %13977  ;;  %13997 = vrcp.f32 %v10332_v48  ;;  %v10335_v59 = vadd.f32 1.0, %v13976_v15  ;;  %v11582_v50 = vmul.f32 -1.442695, %v19352_v17 }
 0x89a   :  { %v13980_v41 = vpop.eup %13979  ;;  %11091 = vst [vmem:[#allocation3 + $0x6f0] sm:$0xff] %v13978_v20  ;;  %13999 = vrcp.f32 %v10333_v52  ;;  %v11583_v52 = vmul.f32 -1.442695, %v18163_v4 }
 0x89b   :  { %v13982_v32 = vpop.eup %13981  ;;  %11090 = vst [vmem:[#allocation3 + $0x6e8] sm:$0xff] %v13980_v41  ;;  %14001 = vrcp.f32 %v10335_v59  ;;  %v11584_v59 = vmul.f32 -1.442695, %v18168_v31  ;;  %v11586_v41 = vmul.f32 -1.442695, %v18170_v1 }
 0x89c   :  { %v13984_v5 = vpop.eup %13983  ;;  %11092 = vst [vmem:[#allocation3 + $0x6f8] sm:$0xff] %v13982_v32  ;;  %14003 = vpow2.f32 %v11568_v37  ;;  %v11585_v37 = vmul.f32 -1.442695, %v18165_v16  ;;  %v19353_v32 = vld [vmem:[#allocation104_spill] sm:$0xff] }
 0x89d   :  { %v13986_v47 = vpop.eup %13985  ;;  %11093 = vst [vmem:[#allocation3 + $0x700] sm:$0xff] %v13984_v5  ;;  %14005 = vpow2.f32 %v11570_v30  ;;  %v11587_v4 = vmul.f32 -1.442695, %v19353_v32  ;;  %v19354_v5 = vld [vmem:[#allocation108_spill] sm:$0xff] }
 0x89e   :  { %v13988_v23 = vpop.eup %13987  ;;  %11095 = vst [vmem:[#allocation3 + $0x710] sm:$0xff] %v13986_v47  ;;  %14007 = vpow2.f32 %v11571_v61  ;;  %v11589_v16 = vmul.f32 -1.442695, %v19354_v5  ;;  %v19355_v47 = vld [vmem:[#allocation110_spill] sm:$0xff] }
 0x89f   :  { %v13990_v53 = vpop.eup %13989  ;;  %11094 = vst [vmem:[#allocation3 + $0x708] sm:$0xff] %v13988_v23  ;;  %14009 = vpow2.f32 %v11573_v49  ;;  %v11588_v31 = vmul.f32 -1.442695, %v19355_v47  ;;  %v19356_v23 = vld [vmem:[#allocation112_spill] sm:$0xff] }
 0x8a0   :  { %v13992_v13 = vpop.eup %13991  ;;  %11096 = vst [vmem:[#allocation3 + $0x718] sm:$0xff] %v13990_v53  ;;  %14011 = vpow2.f32 %v11572_v60  ;;  %v11590_v1 = vmul.f32 -1.442695, %v19356_v23 }
 0x8a1   :  { %v13994_v27 = vpop.eup %13993  ;;  %11097 = vst [vmem:[#allocation3 + $0x720] sm:$0xff] %v13992_v13  ;;  %14013 = vpow2.f32 %v11574_v33 }
 0x8a2   :  { %v13996_v26 = vpop.eup %13995  ;;  %11099 = vst [vmem:[#allocation3 + $0x730] sm:$0xff] %v13994_v27  ;;  %14015 = vpow2.f32 %v11575_v55 }
 0x8a3   :  { %v13998_v3 = vpop.eup %13997  ;;  %11098 = vst [vmem:[#allocation3 + $0x728] sm:$0xff] %v13996_v26  ;;  %14017 = vpow2.f32 %v11577_v39 }
 0x8a4   :  { %v14000_v21 = vpop.eup %13999  ;;  %11100 = vst [vmem:[#allocation3 + $0x738] sm:$0xff] %v13998_v3  ;;  %14019 = vpow2.f32 %v11576_v29 }
 0x8a5   :  { %v14002_v14 = vpop.eup %14001  ;;  %11101 = vst [vmem:[#allocation3 + $0x740] sm:$0xff] %v14000_v21  ;;  %14021 = vpow2.f32 %v11578_v19 }
 0x8a6   :  { %v14004_v2 = vpop.eup %14003  ;;  %11103 = vst [vmem:[#allocation3 + $0x750] sm:$0xff] %v14002_v14  ;;  %14023 = vpow2.f32 %v11579_v54 }
 0x8a7   :  { %v14006_v56 = vpop.eup %14005  ;;  %v10334_v58 = vadd.f32 1.0, %v14004_v2  ;;  %14025 = vpow2.f32 %v11581_v6 }
 0x8a8   :  { %v14008_v46 = vpop.eup %14007  ;;  %v10336_v62 = vadd.f32 1.0, %v14006_v56  ;;  %14027 = vpow2.f32 %v11580_v51 }
 0x8a9   :  { %v14010_v57 = vpop.eup %14009  ;;  %14029 = vrcp.f32 %v10334_v58  ;;  %v10337_v44 = vadd.f32 1.0, %v14008_v46 }
 0x8aa   :  { %v14012_v9 = vpop.eup %14011  ;;  %14031 = vrcp.f32 %v10336_v62  ;;  %v10339_v63 = vadd.f32 1.0, %v14010_v57 }
 0x8ab   :  { %v14014_v35 = vpop.eup %14013  ;;  %14033 = vrcp.f32 %v10337_v44  ;;  %v10338_v25 = vadd.f32 1.0, %v14012_v9 }
 0x8ac   :  { %v14016_v45 = vpop.eup %14015  ;;  %14035 = vrcp.f32 %v10339_v63  ;;  %v10340_v0 = vadd.f32 1.0, %v14014_v35 }
 0x8ad   :  { %v14018_v12 = vpop.eup %14017  ;;  %14037 = vrcp.f32 %v10338_v25  ;;  %v10341_v10 = vadd.f32 1.0, %v14016_v45 }
 0x8ae   :  { %v14020_v28 = vpop.eup %14019  ;;  %14039 = vrcp.f32 %v10340_v0  ;;  %v10343_v38 = vadd.f32 1.0, %v14018_v12 }
 0x8af   :  { %v14022_v43 = vpop.eup %14021  ;;  %14041 = vrcp.f32 %v10341_v10  ;;  %v10342_v11 = vadd.f32 1.0, %v14020_v28 }
 0x8b0   :  { %v14024_v34 = vpop.eup %14023  ;;  %14043 = vrcp.f32 %v10343_v38  ;;  %v10344_v18 = vadd.f32 1.0, %v14022_v43 }
 0x8b1   :  { %v14026_v24 = vpop.eup %14025  ;;  %14045 = vrcp.f32 %v10342_v11  ;;  %v10345_v36 = vadd.f32 1.0, %v14024_v34 }
 0x8b2   :  { %v14028_v42 = vpop.eup %14027  ;;  %14047 = vrcp.f32 %v10344_v18  ;;  %v10347_v8 = vadd.f32 1.0, %v14026_v24 }
 0x8b3   :  { %v14030_v48 = vpop.eup %14029  ;;  %14049 = vrcp.f32 %v10345_v36  ;;  %v10346_v15 = vadd.f32 1.0, %v14028_v42 }
 0x8b4   :  { %v14032_v40 = vpop.eup %14031  ;;  %11102 = vst [vmem:[#allocation3 + $0x748] sm:$0xff] %v14030_v48  ;;  %14051 = vrcp.f32 %v10347_v8 }
 0x8b5   :  { %v14034_v20 = vpop.eup %14033  ;;  %11104 = vst [vmem:[#allocation3 + $0x758] sm:$0xff] %v14032_v40  ;;  %14053 = vrcp.f32 %v10346_v15 }
 0x8b6   :  { %v14036_v30 = vpop.eup %14035  ;;  %11105 = vst [vmem:[#allocation3 + $0x760] sm:$0xff] %v14034_v20  ;;  %14055 = vpow2.f32 %v11582_v50 }
 0x8b7   :  { %v14038_v61 = vpop.eup %14037  ;;  %11107 = vst [vmem:[#allocation3 + $0x770] sm:$0xff] %v14036_v30  ;;  %14057 = vpow2.f32 %v11583_v52 }
 0x8b8   :  { %v14040_v49 = vpop.eup %14039  ;;  %11106 = vst [vmem:[#allocation3 + $0x768] sm:$0xff] %v14038_v61  ;;  %14059 = vpow2.f32 %v11585_v37 }
 0x8b9   :  { %v14042_v60 = vpop.eup %14041  ;;  %11108 = vst [vmem:[#allocation3 + $0x778] sm:$0xff] %v14040_v49  ;;  %14061 = vpow2.f32 %v11584_v59 }
 0x8ba   :  { %v14044_v33 = vpop.eup %14043  ;;  %11109 = vst [vmem:[#allocation3 + $0x780] sm:$0xff] %v14042_v60  ;;  %14063 = vpow2.f32 %v11586_v41 }
 0x8bb   :  { %v14046_v55 = vpop.eup %14045  ;;  %11111 = vst [vmem:[#allocation3 + $0x790] sm:$0xff] %v14044_v33  ;;  %14065 = vpow2.f32 %v11587_v4 }
 0x8bc   :  { %v14048_v53 = vpop.eup %14047  ;;  %11110 = vst [vmem:[#allocation3 + $0x788] sm:$0xff] %v14046_v55  ;;  %14067 = vpow2.f32 %v11589_v16 }
 0x8bd   :  { %v14050_v39 = vpop.eup %14049  ;;  %11112 = vst [vmem:[#allocation3 + $0x798] sm:$0xff] %v14048_v53  ;;  %14069 = vpow2.f32 %v11588_v31 }
 0x8be   :  { %v14052_v13 = vpop.eup %14051  ;;  %11113 = vst [vmem:[#allocation3 + $0x7a0] sm:$0xff] %v14050_v39  ;;  %14071 = vpow2.f32 %v11590_v1 }
 0x8bf   :  { %v14054_v29 = vpop.eup %14053  ;;  %11115 = vst [vmem:[#allocation3 + $0x7b0] sm:$0xff] %v14052_v13 }
 0x8c0   :  { %v14056_v27 = vpop.eup %14055  ;;  %11114 = vst [vmem:[#allocation3 + $0x7a8] sm:$0xff] %v14054_v29 }
 0x8c1   :  { %v14058_v19 = vpop.eup %14057  ;;  %v10348_v26 = vadd.f32 1.0, %v14056_v27 }
 0x8c2   :  { %v14060_v54 = vpop.eup %14059  ;;  %v10349_v3 = vadd.f32 1.0, %v14058_v19 }
 0x8c3   :  { %v14062_v22 = vpop.eup %14061  ;;  %14073 = vrcp.f32 %v10348_v26  ;;  %v10351_v6 = vadd.f32 1.0, %v14060_v54 }
 0x8c4   :  { %v14064_v21 = vpop.eup %14063  ;;  %14075 = vrcp.f32 %v10349_v3  ;;  %v10350_v7 = vadd.f32 1.0, %v14062_v22 }
 0x8c5   :  { %v14066_v51 = vpop.eup %14065  ;;  %14077 = vrcp.f32 %v10351_v6  ;;  %v10352_v14 = vadd.f32 1.0, %v14064_v21 }
 0x8c6   :  { %v14068_v2 = vpop.eup %14067  ;;  %14079 = vrcp.f32 %v10350_v7  ;;  %v10353_v56 = vadd.f32 1.0, %v14066_v51 }
 0x8c7   :  { %v14070_v58 = vpop.eup %14069  ;;  %14081 = vrcp.f32 %v10352_v14  ;;  %v10355_v46 = vadd.f32 1.0, %v14068_v2 }
 0x8c8   :  { %v14072_v62 = vpop.eup %14071  ;;  %14083 = vrcp.f32 %v10353_v56  ;;  %v10354_v57 = vadd.f32 1.0, %v14070_v58 }
 0x8c9   :  { %14085 = vrcp.f32 %v10355_v46  ;;  %v10356_v44 = vadd.f32 1.0, %v14072_v62 }
 0x8ca   :  { %14087 = vrcp.f32 %v10354_v57 }
 0x8cb   :  { %14089 = vrcp.f32 %v10356_v44 }
 0x8cd   :  { %v14074_v9 = vpop.eup %14073 }
 0x8ce   :  { %v14076_v63 = vpop.eup %14075  ;;  %11116 = vst [vmem:[#allocation3 + $0x7b8] sm:$0xff] %v14074_v9 }
 0x8cf   :  { %v14078_v35 = vpop.eup %14077  ;;  %11117 = vst [vmem:[#allocation3 + $0x7c0] sm:$0xff] %v14076_v63 }
 0x8d0   :  { %v14080_v25 = vpop.eup %14079  ;;  %11119 = vst [vmem:[#allocation3 + $0x7d0] sm:$0xff] %v14078_v35 }
 0x8d1   :  { %v14082_v45 = vpop.eup %14081  ;;  %11118 = vst [vmem:[#allocation3 + $0x7c8] sm:$0xff] %v14080_v25 }
 0x8d2   :  { %v14084_v0 = vpop.eup %14083  ;;  %11120 = vst [vmem:[#allocation3 + $0x7d8] sm:$0xff] %v14082_v45 }
 0x8d3   :  { %v14086_v12 = vpop.eup %14085  ;;  %11121 = vst [vmem:[#allocation3 + $0x7e0] sm:$0xff] %v14084_v0 }
 0x8d4   :  { %v14088_v10 = vpop.eup %14087  ;;  %11123 = vst [vmem:[#allocation3 + $0x7f0] sm:$0xff] %v14086_v12 }
 0x8d5   :  { %v14090_v28 = vpop.eup %14089  ;;  %11122 = vst [vmem:[#allocation3 + $0x7e8] sm:$0xff] %v14088_v10 }
 0x8d6   :  { %11124 = vst [vmem:[#allocation3 + $0x7f8] sm:$0xff] %v14090_v28 }
 0x8d7   :  { %14102 = shalt.err (!%p14099_p4)
}
 0x8d8   :  { %s14103_s9 = scalar_lea.hbm %s18261_s3, 32768 }
 0x8d9   :  { %p14104_p5 = scmp.ne.s32.totalorder %s18261_s3, %s14103_s9  ;;  %p14107_p6 = scmp.lt.u32.totalorder %s14103_s9, %s18261_s3 }
 0x8db   :  { %p14109_p7 = pnand %p14107_p6, %p14104_p5 }
 0x8dd   :  { %14112 = shalt.err (!%p14109_p7)
}
 0x8de   :  { %s14117_s14 = smov 512   ;;  %s14118_s15 = smov 32  }
 0x8df   :  { %11136 = dma.vmem_to_hbm [thread:$0]  %s11131_s5, 32768, %s18261_s3, [#allocation4], %s14117_s14, %s14117_s14, %s14118_s15  }
 0x8e0   :  { %14113 = dma.done.wait [#allocation4], 32768  }
 0x8e1   :  { %14114 = vsyncadd [#allocation4], 4294934528 }
 0x8e2   :  { %11140 = vsyncpa [#allocation4], 1 }

</bundles_post_ra>
